<compile_context>
chip_gen: v7x
topology: tpu7x:2x2x1
jax: 0.10.0
libtpu: 0.0.40
codegen_flags: <defaults>
</compile_context>

<pallas_src>
import math
from functools import partial

import jax
import jax.numpy as jnp
from jax.experimental import pallas as pl
from jax.experimental.pallas import tpu as pltpu


_PARALLEL = pltpu.CompilerParams(dimension_semantics=("parallel",))


def _tm_for(M, cap=512):
    """Row tile: whole M when small (avoid per-grid-step overhead), else largest
    8-aligned divisor <= cap."""
    if M <= cap:
        return M
    for t in (512, 256, 128, 64, 32, 16, 8):
        if M % t == 0:
            return t
    return M


# ----------------------------- in-kernel helpers -----------------------------

def _mm(x, w, b=None, act="none"):
    y = jnp.dot(x, w, preferred_element_type=jnp.float32)
    if b is not None:
        y = y + b
    if act == "relu":
        y = jnp.maximum(y, 0.0)
    elif act == "gelu":
        # TODO(synk): PyTorch nn.GELU default is exact erf-GELU; tanh approximation used here.
        y = jax.nn.gelu(y, approximate=True)
    return y


def _ln(x, g, b, eps):
    mu = jnp.mean(x, axis=-1, keepdims=True)
    xc = x - mu
    var = jnp.mean(xc * xc, axis=-1, keepdims=True)
    return xc * jax.lax.rsqrt(var + eps) * g + b


# -------------------------------- kernels ------------------------------------

def _linear_kernel(x_ref, w_ref, b_ref, o_ref, *, act):
    y = _mm(x_ref[...].astype(jnp.float32), w_ref[...].astype(jnp.float32),
            b_ref[...].astype(jnp.float32), act)
    o_ref[...] = y.astype(o_ref.dtype)


def _linear_ln_kernel(x_ref, w_ref, b_ref, g_ref, be_ref, o_ref, *, eps):
    y = _mm(x_ref[...].astype(jnp.float32), w_ref[...].astype(jnp.float32),
            b_ref[...].astype(jnp.float32))
    y = _ln(y, g_ref[...].astype(jnp.float32), be_ref[...].astype(jnp.float32), eps)
    o_ref[...] = y.astype(o_ref.dtype)


def _ln_linear_kernel(x_ref, g_ref, be_ref, w_ref, o_ref, *, eps):
    xn = _ln(x_ref[...].astype(jnp.float32), g_ref[...].astype(jnp.float32),
             be_ref[...].astype(jnp.float32), eps)
    o_ref[...] = jnp.dot(xn, w_ref[...].astype(jnp.float32),
                         preferred_element_type=jnp.float32).astype(o_ref.dtype)


def _layernorm_kernel(x_ref, g_ref, b_ref, o_ref, *, eps):
    o_ref[...] = _ln(x_ref[...].astype(jnp.float32), g_ref[...].astype(jnp.float32),
                     b_ref[...].astype(jnp.float32), eps).astype(o_ref.dtype)


def _proj_ln_res_kernel(x_ref, res_ref, w_ref, b_ref, g_ref, be_ref, o_ref, *, eps):
    y = _mm(x_ref[...].astype(jnp.float32), w_ref[...].astype(jnp.float32),
            b_ref[...].astype(jnp.float32))
    y = _ln(y, g_ref[...].astype(jnp.float32), be_ref[...].astype(jnp.float32), eps)
    o_ref[...] = (res_ref[...].astype(jnp.float32) + y).astype(o_ref.dtype)


def _mlp_ln_res_kernel(x_ref, w1_ref, b1_ref, w2_ref, b2_ref, g_ref, be_ref, o_ref, *, eps):
    x = x_ref[...].astype(jnp.float32)
    h = _mm(x, w1_ref[...].astype(jnp.float32), b1_ref[...].astype(jnp.float32), act="gelu")
    y = _mm(h, w2_ref[...].astype(jnp.float32), b2_ref[...].astype(jnp.float32))
    y = _ln(y, g_ref[...].astype(jnp.float32), be_ref[...].astype(jnp.float32), eps)
    o_ref[...] = (x + y).astype(o_ref.dtype)


def _window_attn_kernel(q_ref, k_ref, v_ref, bias_ref, o_ref):
    # One grid step = one image; G = nW * num_heads merged batch axis.
    q = q_ref[0].astype(jnp.float32)            # (G, A, hd) -- already cosine-normalized & scaled
    k = k_ref[0].astype(jnp.float32)
    v = v_ref[0].astype(jnp.float32)
    s = jnp.einsum("gad,gbd->gab", q, k, preferred_element_type=jnp.float32)
    s = s + bias_ref[...].astype(jnp.float32)   # rel-pos bias (+ shift mask) precomputed
    s = s - jnp.max(s, axis=-1, keepdims=True)
    p = jnp.exp(s)
    p = p * pl.reciprocal(jnp.sum(p, axis=-1, keepdims=True), approx=True)
    o = jnp.einsum("gab,gbd->gad", p, v, preferred_element_type=jnp.float32)
    o_ref[0] = o.astype(o_ref.dtype)


# ------------------------------- wrappers -------------------------------------
# NOTE(v7x): weights are kept fully resident per kernel (fine at these channel counts).
# TODO(synk): for real swinv2_cr_tiny channel widths (up to 768/3072) add an N/K grid
# dimension so the double-buffered weight fits v7x's 64 MiB VMEM.

def linear(x, w, b=None, act="none"):
    """y = x @ w + b; w is pre-transposed (K, N)."""
    M, K = x.shape
    N = w.shape[1]
    if b is None:
        b = jnp.zeros((N,), x.dtype)
    tm = _tm_for(M)
    return pl.pallas_call(
        partial(_linear_kernel, act=act),
        out_shape=jax.ShapeDtypeStruct((M, N), x.dtype),
        grid=(M // tm,),
        in_specs=[
            pl.BlockSpec((tm, K), lambda i: (i, 0)),
            pl.BlockSpec((K, N), lambda i: (0, 0)),
            pl.BlockSpec((1, N), lambda i: (0, 0)),
        ],
        out_specs=pl.BlockSpec((tm, N), lambda i: (i, 0)),
        compiler_params=_PARALLEL,
    )(x, w, b.reshape(1, N))


def linear_ln(x, w, b, g, beta, eps=1e-5):
    M, K = x.shape
    N = w.shape[1]
    tm = _tm_for(M)
    return pl.pallas_call(
        partial(_linear_ln_kernel, eps=eps),
        out_shape=jax.ShapeDtypeStruct((M, N), x.dtype),
        grid=(M // tm,),
        in_specs=[
            pl.BlockSpec((tm, K), lambda i: (i, 0)),
            pl.BlockSpec((K, N), lambda i: (0, 0)),
            pl.BlockSpec((1, N), lambda i: (0, 0)),
            pl.BlockSpec((1, N), lambda i: (0, 0)),
            pl.BlockSpec((1, N), lambda i: (0, 0)),
        ],
        out_specs=pl.BlockSpec((tm, N), lambda i: (i, 0)),
        compiler_params=_PARALLEL,
    )(x, w, b.reshape(1, N), g.reshape(1, N), beta.reshape(1, N))


def ln_linear(x, g, beta, w, eps=1e-5):
    M, K = x.shape
    N = w.shape[1]
    tm = _tm_for(M)
    return pl.pallas_call(
        partial(_ln_linear_kernel, eps=eps),
        out_shape=jax.ShapeDtypeStruct((M, N), x.dtype),
        grid=(M // tm,),
        in_specs=[
            pl.BlockSpec((tm, K), lambda i: (i, 0)),
            pl.BlockSpec((1, K), lambda i: (0, 0)),
            pl.BlockSpec((1, K), lambda i: (0, 0)),
            pl.BlockSpec((K, N), lambda i: (0, 0)),
        ],
        out_specs=pl.BlockSpec((tm, N), lambda i: (i, 0)),
        compiler_params=_PARALLEL,
    )(x, g.reshape(1, K), beta.reshape(1, K), w)


def layernorm(x2, g, beta, eps=1e-5):
    M, C = x2.shape
    tm = _tm_for(M)
    return pl.pallas_call(
        partial(_layernorm_kernel, eps=eps),
        out_shape=jax.ShapeDtypeStruct((M, C), x2.dtype),
        grid=(M // tm,),
        in_specs=[
            pl.BlockSpec((tm, C), lambda i: (i, 0)),
            pl.BlockSpec((1, C), lambda i: (0, 0)),
            pl.BlockSpec((1, C), lambda i: (0, 0)),
        ],
        out_specs=pl.BlockSpec((tm, C), lambda i: (i, 0)),
        compiler_params=_PARALLEL,
    )(x2, g.reshape(1, C), beta.reshape(1, C))


def proj_ln_residual(x, res, w, b, g, beta, eps=1e-5):
    """out = res + LN(x @ w + b)."""
    M, K = x.shape
    N = w.shape[1]
    tm = _tm_for(M)
    return pl.pallas_call(
        partial(_proj_ln_res_kernel, eps=eps),
        out_shape=jax.ShapeDtypeStruct((M, N), x.dtype),
        grid=(M // tm,),
        in_specs=[
            pl.BlockSpec((tm, K), lambda i: (i, 0)),
            pl.BlockSpec((tm, N), lambda i: (i, 0)),
            pl.BlockSpec((K, N), lambda i: (0, 0)),
            pl.BlockSpec((1, N), lambda i: (0, 0)),
            pl.BlockSpec((1, N), lambda i: (0, 0)),
            pl.BlockSpec((1, N), lambda i: (0, 0)),
        ],
        out_specs=pl.BlockSpec((tm, N), lambda i: (i, 0)),
        compiler_params=_PARALLEL,
    )(x, res, w, b.reshape(1, N), g.reshape(1, N), beta.reshape(1, N))


def mlp_ln_residual(x, w1, b1, w2, b2, g, beta, eps=1e-5):
    """out = x + LN(gelu(x @ w1 + b1) @ w2 + b2)."""
    M, C = x.shape
    Ch = w1.shape[1]
    tm = _tm_for(M)
    return pl.pallas_call(
        partial(_mlp_ln_res_kernel, eps=eps),
        out_shape=jax.ShapeDtypeStruct((M, C), x.dtype),
        grid=(M // tm,),
        in_specs=[
            pl.BlockSpec((tm, C), lambda i: (i, 0)),
            pl.BlockSpec((C, Ch), lambda i: (0, 0)),
            pl.BlockSpec((1, Ch), lambda i: (0, 0)),
            pl.BlockSpec((Ch, C), lambda i: (0, 0)),
            pl.BlockSpec((1, C), lambda i: (0, 0)),
            pl.BlockSpec((1, C), lambda i: (0, 0)),
            pl.BlockSpec((1, C), lambda i: (0, 0)),
        ],
        out_specs=pl.BlockSpec((tm, C), lambda i: (i, 0)),
        compiler_params=_PARALLEL,
    )(x, w1, b1.reshape(1, Ch), w2, b2.reshape(1, C), g.reshape(1, C), beta.reshape(1, C))


def window_attention(q, k, v, bias):
    # q, k, v: (B, G, A, hd) with G = nW*Hn; bias: (G, A, A) shared across the batch.
    B, G, A, hd = q.shape
    spec_qkv = pl.BlockSpec((1, G, A, hd), lambda i: (i, 0, 0, 0))
    spec_bias = pl.BlockSpec((G, A, A), lambda i: (0, 0, 0))   # constant index -> DMA'd once
    return pl.pallas_call(
        _window_attn_kernel,
        out_shape=jax.ShapeDtypeStruct((B, G, A, hd), q.dtype),
        grid=(B,),
        in_specs=[spec_qkv, spec_qkv, spec_qkv, spec_bias],
        out_specs=spec_qkv,
        compiler_params=_PARALLEL,
    )(q, k, v, bias)


# ------------------------------- JAX glue -------------------------------------

def window_partition(x, ws):
    B, H, W, C = x.shape
    x = x.reshape(B, H // ws, ws, W // ws, ws, C)
    return x.transpose(0, 1, 3, 2, 4, 5).reshape(B * (H // ws) * (W // ws), ws * ws, C)


def window_reverse(windows, ws, B, H, W):
    C = windows.shape[-1]
    x = windows.reshape(B, H // ws, W // ws, ws, ws, C)
    return x.transpose(0, 1, 3, 2, 4, 5).reshape(B, H, W, C)


def relative_coords_log(ws):
    coords = jnp.stack(
        jnp.meshgrid(jnp.arange(ws), jnp.arange(ws), indexing="ij"), axis=0
    ).reshape(2, -1)                                        # (2, A)
    rel = coords[:, :, None] - coords[:, None, :]           # (2, A, A)
    rel = rel.transpose(1, 2, 0).reshape(-1, 2).astype(jnp.float32)  # (A*A, 2)
    return jnp.sign(rel) * jnp.log1p(jnp.abs(rel))


def make_shift_mask(H, W, ws, shift):
    img_mask = jnp.zeros((1, H, W, 1), jnp.float32)
    cnt = 0
    for hs in (slice(0, -ws), slice(-ws, -shift), slice(-shift, None)):
        for wsl in (slice(0, -ws), slice(-ws, -shift), slice(-shift, None)):
            img_mask = img_mask.at[:, hs, wsl, :].set(float(cnt))
            cnt += 1
    win = window_partition(img_mask, ws).reshape(-1, ws * ws)   # (nW, A)
    diff = win[:, None, :] - win[:, :, None]                    # (nW, A, A)
    return jnp.where(diff != 0, -100.0, 0.0)


def precompute_aux(params, cfg, img_h, img_w):
    """Per-block static data (done ONCE outside the jitted forward):
    merged (nW*Hn, A, A) bias (rel-pos MLP bias + shift mask), per-head scale, shift."""
    ws = cfg["window"]
    A = ws * ws
    H, W = img_h // cfg["patch"], img_w // cfg["patch"]
    coords = relative_coords_log(ws)                            # (A*A, 2)
    aux = []
    for s, sp in enumerate(params["stages"]):
        if s > 0:
            H, W = H // 2, W // 2
        Hn = cfg["heads"][s]
        nW = (H // ws) * (W // ws)
        stage_aux = []
        for bi, bp in enumerate(sp["blocks"]):
            shift = 0 if bi % 2 == 0 else ws // 2
            if min(H, W) <= ws:          # timm: no shift when map fits in one window
                shift = 0
            h = jnp.maximum(coords @ bp["meta_w1"] + bp["meta_b1"], 0.0)
            bias = (h @ bp["meta_w2"] + bp["meta_b2"]).T.reshape(Hn, A, A)
            if shift > 0:
                mask = make_shift_mask(H, W, ws, shift)         # (nW, A, A)
                bias_full = bias[None, :, :, :] + mask[:, None, :, :]
            else:
                bias_full = jnp.broadcast_to(bias[None], (nW, Hn, A, A))
            scale = jnp.exp(jnp.minimum(bp["logit_scale"], math.log(1.0 / 0.01)))  # (Hn,)
            stage_aux.append({"bias": bias_full.reshape(nW * Hn, A, A),
                              "scale": scale, "shift": shift})
        aux.append(stage_aux)
    return aux


def shifted_window_attention(x, p, bias, scale, ws, shift, Hn):
    B, H, W, C = x.shape
    hd = C // Hn
    A = ws * ws
    nW = (H // ws) * (W // ws)
    if shift > 0:
        x = jnp.roll(x, shift=(-shift, -shift), axis=(1, 2))
    win = window_partition(x, ws)                               # (B*nW, A, C)
    tokens = win.reshape(B * nW * A, C)

    qkv = linear(tokens, p["qkv_w"], p["qkv_b"])                # (M, 3C)
    qkv = qkv.reshape(B, nW, A, 3, Hn, hd)
    q = jnp.transpose(qkv[:, :, :, 0], (0, 1, 3, 2, 4))         # (B, nW, Hn, A, hd)
    k = jnp.transpose(qkv[:, :, :, 1], (0, 1, 3, 2, 4))
    v = jnp.transpose(qkv[:, :, :, 2], (0, 1, 3, 2, 4))

    # cosine normalization; fold per-head logit scale into q (no scalar input to kernel)
    qn = q / jnp.maximum(jnp.sqrt(jnp.sum(q * q, axis=-1, keepdims=True)), 1e-12)
    kn = k / jnp.maximum(jnp.sqrt(jnp.sum(k * k, axis=-1, keepdims=True)), 1e-12)
    qn = qn * scale.reshape(1, 1, Hn, 1, 1)

    G = nW * Hn
    o = window_attention(qn.reshape(B, G, A, hd), kn.reshape(B, G, A, hd),
                         v.reshape(B, G, A, hd), bias)          # (B, G, A, hd)
    o = jnp.transpose(o.reshape(B, nW, Hn, A, hd), (0, 1, 3, 2, 4)).reshape(B * nW * A, C)

    # fused: out_win = win + LN(o @ proj + b)   (LN/residual commute with the window
    # permutation and cyclic shift, so this equals x + LN(attn) in the original frame)
    y = proj_ln_residual(o, tokens, p["proj_w"], p["proj_b"], p["norm1_g"], p["norm1_b"])
    x = window_reverse(y.reshape(B * nW, A, C), ws, B, H, W)
    if shift > 0:
        x = jnp.roll(x, shift=(shift, shift), axis=(1, 2))
    return x


def swin_block(x, p, aux, ws, Hn):
    B, H, W, C = x.shape
    x = shifted_window_attention(x, p, aux["bias"], aux["scale"], ws, aux["shift"], Hn)
    y = mlp_ln_residual(x.reshape(-1, C), p["fc1_w"], p["fc1_b"], p["fc2_w"], p["fc2_b"],
                        p["norm2_g"], p["norm2_b"])
    return y.reshape(B, H, W, C)


def patch_merging(x, p):
    B, H, W, C = x.shape
    x = x.reshape(B, H // 2, 2, W // 2, 2, C)
    x = x.transpose(0, 1, 3, 4, 2, 5).reshape(-1, 4 * C)
    y = ln_linear(x, p["norm_g"], p["norm_b"], p["red_w"])      # fused LN + reduction
    return y.reshape(B, H // 2, W // 2, 2 * C)


def patch_embed(x_nchw, p, patch):
    B, Cin, H, W = x_nchw.shape
    Hp, Wp = H // patch, W // patch
    xp = x_nchw.reshape(B, Cin, Hp, patch, Wp, patch).transpose(0, 2, 4, 1, 3, 5)
    xp = xp.reshape(B * Hp * Wp, Cin * patch * patch)
    y = linear_ln(xp, p["proj_w"], p["proj_b"], p["norm_g"], p["norm_b"])  # fused proj + LN
    return y.reshape(B, Hp, Wp, -1)


def swin_backbone_forward(x_nchw, params, aux, cfg):
    feats = []
    x = patch_embed(x_nchw, params["patch_embed"], cfg["patch"])
    for s, sp in enumerate(params["stages"]):
        if s > 0:
            x = patch_merging(x, sp["downsample"])
        Hn = cfg["heads"][s]
        for bi, bp in enumerate(sp["blocks"]):
            x = swin_block(x, bp, aux[s][bi], cfg["window"], Hn)
        B, H, W, C = x.shape
        x = layernorm(x.reshape(-1, C), sp["extra_norm_g"], sp["extra_norm_b"]).reshape(B, H, W, C)
        if s in cfg["out_indices"]:
            feats.append(jnp.transpose(x, (0, 3, 1, 2)))           # NCHW feature map
    return feats


# --------------------------- parameter creation --------------------------------

def init_params(key, cfg):
    keys = [key]

    def nxt():
        keys[0], sub = jax.random.split(keys[0])
        return sub

    def w(shape, scale=0.02):
        return (scale * jax.random.normal(nxt(), shape)).astype(jnp.float32)

    def zeros(shape):
        return jnp.zeros(shape, jnp.float32)

    def ones(shape):
        return jnp.ones(shape, jnp.float32)

    E, patch, mh = cfg["embed_dim"], cfg["patch"], cfg["meta_hidden"]
    # All linear weights stored pre-transposed as (in_features, out_features).
    params = {
        "patch_embed": {
            "proj_w": w((cfg["in_chans"] * patch * patch, E)),
            "proj_b": zeros((E,)),
            "norm_g": ones((E,)),
            "norm_b": zeros((E,)),
        },
        "stages": [],
    }
    for s, (depth, Hn) in enumerate(zip(cfg["depths"], cfg["heads"])):
        C = E * (2 ** s)
        sp = {"blocks": []}
        if s > 0:
            Cp = E * (2 ** (s - 1))
            sp["downsample"] = {
                "norm_g": ones((4 * Cp,)),
                "norm_b": zeros((4 * Cp,)),
                "red_w": w((4 * Cp, C)),
            }
        for _ in range(depth):
            sp["blocks"].append({
                "qkv_w": w((C, 3 * C)),
                "qkv_b": zeros((3 * C,)),
                "logit_scale": jnp.full((Hn,), math.log(10.0), jnp.float32),
                "meta_w1": w((2, mh)),
                "meta_b1": zeros((mh,)),
                "meta_w2": w((mh, Hn)),
                "meta_b2": zeros((Hn,)),
                "proj_w": w((C, C)),
                "proj_b": zeros((C,)),
                "norm1_g": ones((C,)),
                "norm1_b": zeros((C,)),
                "fc1_w": w((C, cfg["mlp_ratio"] * C)),
                "fc1_b": zeros((cfg["mlp_ratio"] * C,)),
                "fc2_w": w((cfg["mlp_ratio"] * C, C)),
                "fc2_b": zeros((C,)),
                "norm2_g": ones((C,)),
                "norm2_b": zeros((C,)),
            })
        sp["extra_norm_g"] = ones((C,))
        sp["extra_norm_b"] = zeros((C,))
        params["stages"].append(sp)
    return params


# ---------------------------------- main ----------------------------------------

if __name__ == "__main__":
    cfg = {
        "in_chans": 3,
        "embed_dim": 16,
        "depths": (2, 2, 2),
        "heads": (1, 2, 4),
        "window": 2,
        "patch": 4,
        "mlp_ratio": 4,
        "meta_hidden": 8,
        "out_indices": (0, 2),
    }

    root = jax.random.PRNGKey(0)
    kparams, kdata = jax.random.split(root)
    params = init_params(kparams, cfg)

    # Small input consistent with the module's forward: NCHW image batch.
    x = jax.random.normal(kdata, (2, 3, 32, 32), jnp.float32)

    # Static per-block attention bias / mask / scale, computed once (hoisted out of forward).
    aux = precompute_aux(params, cfg, 32, 32)
    aux = jax.tree_util.tree_map(lambda a: a, aux)

    fwd = jax.jit(lambda inp: swin_backbone_forward(inp, params, aux, cfg))
    feats = fwd(x)
    feats = [jax.block_until_ready(f) for f in feats]

    assert feats[0].shape == (2, cfg["embed_dim"], 8, 8), feats[0].shape
    assert feats[1].shape == (2, cfg["embed_dim"] * 4, 2, 2), feats[1].shape
    assert all(bool(jnp.all(jnp.isfinite(f))) for f in feats)

    print("KERNEL_OK")
</pallas_src>

<mosaic_0001>
module attributes {stable_mosaic.version = 11 : i64} {
  func.func @_linear_ln_kernel(%arg0: i32, %arg1: memref<128x48xf32, #tpu.memory_space<vmem>>, %arg2: memref<48x16xf32, #tpu.memory_space<vmem>>, %arg3: memref<1x16xf32, #tpu.memory_space<vmem>>, %arg4: memref<1x16xf32, #tpu.memory_space<vmem>>, %arg5: memref<1x16xf32, #tpu.memory_space<vmem>>, %arg6: memref<128x16xf32, #tpu.memory_space<vmem>>) attributes {dimension_semantics = [#tpu.dimension_semantics<parallel>], iteration_bounds = array<i64: 1>, scalar_prefetch = 0 : i64, scratch_operands = 0 : i64, tpu.core_type = #tpu.core_type<tc>, window_params = [{transform_indices = @transform_0, window_bounds = array<i64: 128, 48>}, {pipeline_mode = #tpu.pipeline_mode<synchronous>, transform_indices = @transform_1, window_bounds = array<i64: 48, 16>}, {pipeline_mode = #tpu.pipeline_mode<synchronous>, transform_indices = @transform_2, window_bounds = array<i64: 1, 16>}, {pipeline_mode = #tpu.pipeline_mode<synchronous>, transform_indices = @transform_3, window_bounds = array<i64: 1, 16>}, {pipeline_mode = #tpu.pipeline_mode<synchronous>, transform_indices = @transform_4, window_bounds = array<i64: 1, 16>}, {transform_indices = @transform_5, window_bounds = array<i64: 128, 16>}]} {
    %c0 = arith.constant 0 : index
    %c0_0 = arith.constant 0 : index
    %0 = vector.load %arg1[%c0, %c0_0] : memref<128x48xf32, #tpu.memory_space<vmem>>, vector<128x48xf32>
    %c0_1 = arith.constant 0 : index
    %c0_2 = arith.constant 0 : index
    %1 = vector.load %arg2[%c0_1, %c0_2] : memref<48x16xf32, #tpu.memory_space<vmem>>, vector<48x16xf32>
    %c0_3 = arith.constant 0 : index
    %c0_4 = arith.constant 0 : index
    %2 = vector.load %arg3[%c0_3, %c0_4] : memref<1x16xf32, #tpu.memory_space<vmem>>, vector<1x16xf32>
    %cst = arith.constant dense<0.000000e+00> : vector<128x16xf32>
    %3 = tpu.matmul %0, %1, %cst {dimension_numbers = #tpu.dot_dimension_numbers<[1], [0], [0], [1], [0, 0, 1, 1], [], []>} : vector<128x48xf32>, vector<48x16xf32>, vector<128x16xf32> -> vector<128x16xf32>
    %4 = vector.broadcast %2 : vector<1x16xf32> to vector<128x16xf32>
    %5 = arith.addf %3, %4 : vector<128x16xf32>
    %c0_5 = arith.constant 0 : index
    %c0_6 = arith.constant 0 : index
    %6 = vector.load %arg4[%c0_5, %c0_6] : memref<1x16xf32, #tpu.memory_space<vmem>>, vector<1x16xf32>
    %c0_7 = arith.constant 0 : index
    %c0_8 = arith.constant 0 : index
    %7 = vector.load %arg5[%c0_7, %c0_8] : memref<1x16xf32, #tpu.memory_space<vmem>>, vector<1x16xf32>
    %cst_9 = arith.constant dense<0.000000e+00> : vector<128xf32>
    %8 = vector.multi_reduction <add>, %5, %cst_9 [1] : vector<128x16xf32> to vector<128xf32>
    %9 = vector.shape_cast %8 : vector<128xf32> to vector<128x1xf32>
    %cst_10 = arith.constant 1.600000e+01 : f32
    %10 = vector.broadcast %cst_10 : f32 to vector<128x1xf32>
    %11 = arith.divf %9, %10 : vector<128x1xf32>
    %12 = vector.broadcast %11 : vector<128x1xf32> to vector<128x16xf32>
    %13 = arith.subf %5, %12 : vector<128x16xf32>
    %14 = arith.mulf %13, %13 : vector<128x16xf32>
    %cst_11 = arith.constant dense<0.000000e+00> : vector<128xf32>
    %15 = vector.multi_reduction <add>, %14, %cst_11 [1] : vector<128x16xf32> to vector<128xf32>
    %16 = vector.shape_cast %15 : vector<128xf32> to vector<128x1xf32>
    %cst_12 = arith.constant 1.600000e+01 : f32
    %17 = vector.broadcast %cst_12 : f32 to vector<128x1xf32>
    %18 = arith.divf %16, %17 : vector<128x1xf32>
    %cst_13 = arith.constant 9.99999974E-6 : f32
    %19 = vector.broadcast %cst_13 : f32 to vector<128x1xf32>
    %20 = arith.addf %18, %19 : vector<128x1xf32>
    %21 = math.rsqrt %20 : vector<128x1xf32>
    %22 = vector.broadcast %21 : vector<128x1xf32> to vector<128x16xf32>
    %23 = arith.mulf %13, %22 : vector<128x16xf32>
    %24 = vector.broadcast %6 : vector<1x16xf32> to vector<128x16xf32>
    %25 = arith.mulf %23, %24 : vector<128x16xf32>
    %26 = vector.broadcast %7 : vector<1x16xf32> to vector<128x16xf32>
    %27 = arith.addf %25, %26 : vector<128x16xf32>
    %c0_14 = arith.constant 0 : index
    %c0_15 = arith.constant 0 : index
    %28 = vector.load %arg6[%c0_14, %c0_15] : memref<128x16xf32, #tpu.memory_space<vmem>>, vector<128x16xf32>
    tpu.vector_store %arg6[%c0_14, %c0_15], %27 {strides = array<i32>} : memref<128x16xf32, #tpu.memory_space<vmem>>, vector<128x16xf32>,
    return
  }
  func.func @transform_0(%arg0: i32) -> (i32, i32) {
    %c0_i32 = arith.constant 0 : i32
    %c0_i32_0 = arith.constant 0 : i32
    return %arg0, %c0_i32 : i32, i32
  }
  func.func @transform_1(%arg0: i32) -> (i32, i32) {
    %c0_i32 = arith.constant 0 : i32
    %c0_i32_0 = arith.constant 0 : i32
    %c0_i32_1 = arith.constant 0 : i32
    return %c0_i32, %c0_i32_0 : i32, i32
  }
  func.func @transform_2(%arg0: i32) -> (i32, i32) {
    %c0_i32 = arith.constant 0 : i32
    %c0_i32_0 = arith.constant 0 : i32
    %c0_i32_1 = arith.constant 0 : i32
    return %c0_i32, %c0_i32_0 : i32, i32
  }
  func.func @transform_3(%arg0: i32) -> (i32, i32) {
    %c0_i32 = arith.constant 0 : i32
    %c0_i32_0 = arith.constant 0 : i32
    %c0_i32_1 = arith.constant 0 : i32
    return %c0_i32, %c0_i32_0 : i32, i32
  }
  func.func @transform_4(%arg0: i32) -> (i32, i32) {
    %c0_i32 = arith.constant 0 : i32
    %c0_i32_0 = arith.constant 0 : i32
    %c0_i32_1 = arith.constant 0 : i32
    return %c0_i32, %c0_i32_0 : i32, i32
  }
  func.func @transform_5(%arg0: i32) -> (i32, i32) {
    %c0_i32 = arith.constant 0 : i32
    %c0_i32_0 = arith.constant 0 : i32
    return %arg0, %c0_i32 : i32, i32
  }
}

module attributes {stable_mosaic.version = 11 : i64} {
  func.func @_linear_kernel(%arg0: i32, %arg1: memref<128x16xf32, #tpu.memory_space<vmem>>, %arg2: memref<16x48xf32, #tpu.memory_space<vmem>>, %arg3: memref<1x48xf32, #tpu.memory_space<vmem>>, %arg4: memref<128x48xf32, #tpu.memory_space<vmem>>) attributes {dimension_semantics = [#tpu.dimension_semantics<parallel>], iteration_bounds = array<i64: 1>, scalar_prefetch = 0 : i64, scratch_operands = 0 : i64, tpu.core_type = #tpu.core_type<tc>, window_params = [{transform_indices = @transform_0, window_bounds = array<i64: 128, 16>}, {pipeline_mode = #tpu.pipeline_mode<synchronous>, transform_indices = @transform_1, window_bounds = array<i64: 16, 48>}, {pipeline_mode = #tpu.pipeline_mode<synchronous>, transform_indices = @transform_2, window_bounds = array<i64: 1, 48>}, {transform_indices = @transform_3, window_bounds = array<i64: 128, 48>}]} {
    %c0 = arith.constant 0 : index
    %c0_0 = arith.constant 0 : index
    %0 = vector.load %arg1[%c0, %c0_0] : memref<128x16xf32, #tpu.memory_space<vmem>>, vector<128x16xf32>
    %c0_1 = arith.constant 0 : index
    %c0_2 = arith.constant 0 : index
    %1 = vector.load %arg2[%c0_1, %c0_2] : memref<16x48xf32, #tpu.memory_space<vmem>>, vector<16x48xf32>
    %c0_3 = arith.constant 0 : index
    %c0_4 = arith.constant 0 : index
    %2 = vector.load %arg3[%c0_3, %c0_4] : memref<1x48xf32, #tpu.memory_space<vmem>>, vector<1x48xf32>
    %cst = arith.constant dense<0.000000e+00> : vector<128x48xf32>
    %3 = tpu.matmul %0, %1, %cst {dimension_numbers = #tpu.dot_dimension_numbers<[1], [0], [0], [1], [0, 0, 1, 1], [], []>} : vector<128x16xf32>, vector<16x48xf32>, vector<128x48xf32> -> vector<128x48xf32>
    %4 = vector.broadcast %2 : vector<1x48xf32> to vector<128x48xf32>
    %5 = arith.addf %3, %4 : vector<128x48xf32>
    %c0_5 = arith.constant 0 : index
    %c0_6 = arith.constant 0 : index
    %6 = vector.load %arg4[%c0_5, %c0_6] : memref<128x48xf32, #tpu.memory_space<vmem>>, vector<128x48xf32>
    tpu.vector_store %arg4[%c0_5, %c0_6], %5 {strides = array<i32>} : memref<128x48xf32, #tpu.memory_space<vmem>>, vector<128x48xf32>,
    return
  }
  func.func @transform_0(%arg0: i32) -> (i32, i32) {
    %c0_i32 = arith.constant 0 : i32
    %c0_i32_0 = arith.constant 0 : i32
    return %arg0, %c0_i32 : i32, i32
  }
  func.func @transform_1(%arg0: i32) -> (i32, i32) {
    %c0_i32 = arith.constant 0 : i32
    %c0_i32_0 = arith.constant 0 : i32
    %c0_i32_1 = arith.constant 0 : i32
    return %c0_i32, %c0_i32_0 : i32, i32
  }
  func.func @transform_2(%arg0: i32) -> (i32, i32) {
    %c0_i32 = arith.constant 0 : i32
    %c0_i32_0 = arith.constant 0 : i32
    %c0_i32_1 = arith.constant 0 : i32
    return %c0_i32, %c0_i32_0 : i32, i32
  }
  func.func @transform_3(%arg0: i32) -> (i32, i32) {
    %c0_i32 = arith.constant 0 : i32
    %c0_i32_0 = arith.constant 0 : i32
    return %arg0, %c0_i32 : i32, i32
  }
}

module attributes {stable_mosaic.version = 11 : i64} {
  func.func @_window_attn_kernel(%arg0: i32, %arg1: memref<1x16x4x16xf32, #tpu.memory_space<vmem>>, %arg2: memref<1x16x4x16xf32, #tpu.memory_space<vmem>>, %arg3: memref<1x16x4x16xf32, #tpu.memory_space<vmem>>, %arg4: memref<16x4x4xf32, #tpu.memory_space<vmem>>, %arg5: memref<1x16x4x16xf32, #tpu.memory_space<vmem>>) attributes {dimension_semantics = [#tpu.dimension_semantics<parallel>], iteration_bounds = array<i64: 2>, scalar_prefetch = 0 : i64, scratch_operands = 0 : i64, tpu.core_type = #tpu.core_type<tc>, window_params = [{transform_indices = @transform_0, window_bounds = array<i64: 1, 16, 4, 16>}, {transform_indices = @transform_1, window_bounds = array<i64: 1, 16, 4, 16>}, {transform_indices = @transform_2, window_bounds = array<i64: 1, 16, 4, 16>}, {pipeline_mode = #tpu.pipeline_mode<synchronous>, transform_indices = @transform_3, window_bounds = array<i64: 16, 4, 4>}, {transform_indices = @transform_4, window_bounds = array<i64: 1, 16, 4, 16>}]} {
    %c0 = arith.constant 0 : index
    %c0_0 = arith.constant 0 : index
    %c0_1 = arith.constant 0 : index
    %c0_2 = arith.constant 0 : index
    %0 = vector.load %arg1[%c0, %c0_0, %c0_1, %c0_2] : memref<1x16x4x16xf32, #tpu.memory_space<vmem>>, vector<1x16x4x16xf32>
    %1 = vector.shape_cast %0 : vector<1x16x4x16xf32> to vector<16x4x16xf32>
    %c0_3 = arith.constant 0 : index
    %c0_4 = arith.constant 0 : index
    %c0_5 = arith.constant 0 : index
    %c0_6 = arith.constant 0 : index
    %2 = vector.load %arg2[%c0_3, %c0_4, %c0_5, %c0_6] : memref<1x16x4x16xf32, #tpu.memory_space<vmem>>, vector<1x16x4x16xf32>
    %3 = vector.shape_cast %2 : vector<1x16x4x16xf32> to vector<16x4x16xf32>
    %c0_7 = arith.constant 0 : index
    %c0_8 = arith.constant 0 : index
    %c0_9 = arith.constant 0 : index
    %c0_10 = arith.constant 0 : index
    %4 = vector.load %arg3[%c0_7, %c0_8, %c0_9, %c0_10] : memref<1x16x4x16xf32, #tpu.memory_space<vmem>>, vector<1x16x4x16xf32>
    %5 = vector.shape_cast %4 : vector<1x16x4x16xf32> to vector<16x4x16xf32>
    "tpu.trace_start"() <{level = 10 : i32, message = "gad,gbd->gab"}> : () -> ()
    %cst = arith.constant dense<0.000000e+00> : vector<16x4x4xf32>
    %6 = tpu.matmul %1, %3, %cst {dimension_numbers = #tpu.dot_dimension_numbers<[2], [2], [1], [1], [0, 0, 0, 1, 1, 1], [0], [0]>} : vector<16x4x16xf32>, vector<16x4x16xf32>, vector<16x4x4xf32> -> vector<16x4x4xf32>
    "tpu.trace_stop"() : () -> ()
    %c0_11 = arith.constant 0 : index
    %c0_12 = arith.constant 0 : index
    %c0_13 = arith.constant 0 : index
    %7 = vector.load %arg4[%c0_11, %c0_12, %c0_13] : memref<16x4x4xf32, #tpu.memory_space<vmem>>, vector<16x4x4xf32>
    %8 = arith.addf %6, %7 : vector<16x4x4xf32>
    %cst_14 = arith.constant dense<0xFF800000> : vector<16x4xf32>
    %9 = vector.multi_reduction <maximumf>, %8, %cst_14 [2] : vector<16x4x4xf32> to vector<16x4xf32>
    %10 = vector.shape_cast %9 : vector<16x4xf32> to vector<16x4x1xf32>
    %11 = vector.broadcast %10 : vector<16x4x1xf32> to vector<16x4x4xf32>
    %12 = arith.subf %8, %11 : vector<16x4x4xf32>
    %13 = math.exp %12 : vector<16x4x4xf32>
    %cst_15 = arith.constant dense<0.000000e+00> : vector<16x4xf32>
    %14 = vector.multi_reduction <add>, %13, %cst_15 [2] : vector<16x4x4xf32> to vector<16x4xf32>
    %15 = vector.shape_cast %14 : vector<16x4xf32> to vector<16x4x1xf32>
    %16 = tpu.reciprocal %15 {approx = true} : vector<16x4x1xf32> -> vector<16x4x1xf32>
    %17 = vector.broadcast %16 : vector<16x4x1xf32> to vector<16x4x4xf32>
    %18 = arith.mulf %13, %17 : vector<16x4x4xf32>
    "tpu.trace_start"() <{level = 10 : i32, message = "gab,gbd->gad"}> : () -> ()
    %cst_16 = arith.constant dense<0.000000e+00> : vector<16x4x16xf32>
    %19 = tpu.matmul %18, %5, %cst_16 {dimension_numbers = #tpu.dot_dimension_numbers<[2], [1], [1], [2], [0, 0, 0, 1, 1, 2], [0], [0]>} : vector<16x4x4xf32>, vector<16x4x16xf32>, vector<16x4x16xf32> -> vector<16x4x16xf32>
    "tpu.trace_stop"() : () -> ()
    %c0_17 = arith.constant 0 : index
    %c0_18 = arith.constant 0 : index
    %c0_19 = arith.constant 0 : index
    %c0_20 = arith.constant 0 : index
    %20 = vector.load %arg5[%c0_17, %c0_18, %c0_19, %c0_20] : memref<1x16x4x16xf32, #tpu.memory_space<vmem>>, vector<1x16x4x16xf32>
    %21 = vector.shape_cast %20 : vector<1x16x4x16xf32> to vector<16x4x16xf32>
    %22 = vector.shape_cast %19 : vector<16x4x16xf32> to vector<1x16x4x16xf32>
    tpu.vector_store %arg5[%c0_17, %c0_18, %c0_19, %c0_20], %22 {strides = array<i32>} : memref<1x16x4x16xf32, #tpu.memory_space<vmem>>, vector<1x16x4x16xf32>,
    return
  }
  func.func @transform_0(%arg0: i32) -> (i32, i32, i32, i32) {
    %c0_i32 = arith.constant 0 : i32
    %c0_i32_0 = arith.constant 0 : i32
    %c0_i32_1 = arith.constant 0 : i32
    %c0_i32_2 = arith.constant 0 : i32
    return %arg0, %c0_i32, %c0_i32_0, %c0_i32_1 : i32, i32, i32, i32
  }
  func.func @transform_1(%arg0: i32) -> (i32, i32, i32, i32) {
    %c0_i32 = arith.constant 0 : i32
    %c0_i32_0 = arith.constant 0 : i32
    %c0_i32_1 = arith.constant 0 : i32
    %c0_i32_2 = arith.constant 0 : i32
    return %arg0, %c0_i32, %c0_i32_0, %c0_i32_1 : i32, i32, i32, i32
  }
  func.func @transform_2(%arg0: i32) -> (i32, i32, i32, i32) {
    %c0_i32 = arith.constant 0 : i32
    %c0_i32_0 = arith.constant 0 : i32
    %c0_i32_1 = arith.constant 0 : i32
    %c0_i32_2 = arith.constant 0 : i32
    return %arg0, %c0_i32, %c0_i32_0, %c0_i32_1 : i32, i32, i32, i32
  }
  func.func @transform_3(%arg0: i32) -> (i32, i32, i32) {
    %c0_i32 = arith.constant 0 : i32
    %c0_i32_0 = arith.constant 0 : i32
    %c0_i32_1 = arith.constant 0 : i32
    %c0_i32_2 = arith.constant 0 : i32
    return %c0_i32, %c0_i32_0, %c0_i32_1 : i32, i32, i32
  }
  func.func @transform_4(%arg0: i32) -> (i32, i32, i32, i32) {
    %c0_i32 = arith.constant 0 : i32
    %c0_i32_0 = arith.constant 0 : i32
    %c0_i32_1 = arith.constant 0 : i32
    %c0_i32_2 = arith.constant 0 : i32
    return %arg0, %c0_i32, %c0_i32_0, %c0_i32_1 : i32, i32, i32, i32
  }
}

module attributes {stable_mosaic.version = 11 : i64} {
  func.func @_proj_ln_res_kernel(%arg0: i32, %arg1: memref<128x16xf32, #tpu.memory_space<vmem>>, %arg2: memref<128x16xf32, #tpu.memory_space<vmem>>, %arg3: memref<16x16xf32, #tpu.memory_space<vmem>>, %arg4: memref<1x16xf32, #tpu.memory_space<vmem>>, %arg5: memref<1x16xf32, #tpu.memory_space<vmem>>, %arg6: memref<1x16xf32, #tpu.memory_space<vmem>>, %arg7: memref<128x16xf32, #tpu.memory_space<vmem>>) attributes {dimension_semantics = [#tpu.dimension_semantics<parallel>], iteration_bounds = array<i64: 1>, scalar_prefetch = 0 : i64, scratch_operands = 0 : i64, tpu.core_type = #tpu.core_type<tc>, window_params = [{transform_indices = @transform_0, window_bounds = array<i64: 128, 16>}, {transform_indices = @transform_1, window_bounds = array<i64: 128, 16>}, {pipeline_mode = #tpu.pipeline_mode<synchronous>, transform_indices = @transform_2, window_bounds = array<i64: 16, 16>}, {pipeline_mode = #tpu.pipeline_mode<synchronous>, transform_indices = @transform_3, window_bounds = array<i64: 1, 16>}, {pipeline_mode = #tpu.pipeline_mode<synchronous>, transform_indices = @transform_4, window_bounds = array<i64: 1, 16>}, {pipeline_mode = #tpu.pipeline_mode<synchronous>, transform_indices = @transform_5, window_bounds = array<i64: 1, 16>}, {transform_indices = @transform_6, window_bounds = array<i64: 128, 16>}]} {
    %c0 = arith.constant 0 : index
    %c0_0 = arith.constant 0 : index
    %0 = vector.load %arg1[%c0, %c0_0] : memref<128x16xf32, #tpu.memory_space<vmem>>, vector<128x16xf32>
    %c0_1 = arith.constant 0 : index
    %c0_2 = arith.constant 0 : index
    %1 = vector.load %arg3[%c0_1, %c0_2] : memref<16x16xf32, #tpu.memory_space<vmem>>, vector<16x16xf32>
    %c0_3 = arith.constant 0 : index
    %c0_4 = arith.constant 0 : index
    %2 = vector.load %arg4[%c0_3, %c0_4] : memref<1x16xf32, #tpu.memory_space<vmem>>, vector<1x16xf32>
    %cst = arith.constant dense<0.000000e+00> : vector<128x16xf32>
    %3 = tpu.matmul %0, %1, %cst {dimension_numbers = #tpu.dot_dimension_numbers<[1], [0], [0], [1], [0, 0, 1, 1], [], []>} : vector<128x16xf32>, vector<16x16xf32>, vector<128x16xf32> -> vector<128x16xf32>
    %4 = vector.broadcast %2 : vector<1x16xf32> to vector<128x16xf32>
    %5 = arith.addf %3, %4 : vector<128x16xf32>
    %c0_5 = arith.constant 0 : index
    %c0_6 = arith.constant 0 : index
    %6 = vector.load %arg5[%c0_5, %c0_6] : memref<1x16xf32, #tpu.memory_space<vmem>>, vector<1x16xf32>
    %c0_7 = arith.constant 0 : index
    %c0_8 = arith.constant 0 : index
    %7 = vector.load %arg6[%c0_7, %c0_8] : memref<1x16xf32, #tpu.memory_space<vmem>>, vector<1x16xf32>
    %cst_9 = arith.constant dense<0.000000e+00> : vector<128xf32>
    %8 = vector.multi_reduction <add>, %5, %cst_9 [1] : vector<128x16xf32> to vector<128xf32>
    %9 = vector.shape_cast %8 : vector<128xf32> to vector<128x1xf32>
    %cst_10 = arith.constant 1.600000e+01 : f32
    %10 = vector.broadcast %cst_10 : f32 to vector<128x1xf32>
    %11 = arith.divf %9, %10 : vector<128x1xf32>
    %12 = vector.broadcast %11 : vector<128x1xf32> to vector<128x16xf32>
    %13 = arith.subf %5, %12 : vector<128x16xf32>
    %14 = arith.mulf %13, %13 : vector<128x16xf32>
    %cst_11 = arith.constant dense<0.000000e+00> : vector<128xf32>
    %15 = vector.multi_reduction <add>, %14, %cst_11 [1] : vector<128x16xf32> to vector<128xf32>
    %16 = vector.shape_cast %15 : vector<128xf32> to vector<128x1xf32>
    %cst_12 = arith.constant 1.600000e+01 : f32
    %17 = vector.broadcast %cst_12 : f32 to vector<128x1xf32>
    %18 = arith.divf %16, %17 : vector<128x1xf32>
    %cst_13 = arith.constant 9.99999974E-6 : f32
    %19 = vector.broadcast %cst_13 : f32 to vector<128x1xf32>
    %20 = arith.addf %18, %19 : vector<128x1xf32>
    %21 = math.rsqrt %20 : vector<128x1xf32>
    %22 = vector.broadcast %21 : vector<128x1xf32> to vector<128x16xf32>
    %23 = arith.mulf %13, %22 : vector<128x16xf32>
    %24 = vector.broadcast %6 : vector<1x16xf32> to vector<128x16xf32>
    %25 = arith.mulf %23, %24 : vector<128x16xf32>
    %26 = vector.broadcast %7 : vector<1x16xf32> to vector<128x16xf32>
    %27 = arith.addf %25, %26 : vector<128x16xf32>
    %c0_14 = arith.constant 0 : index
    %c0_15 = arith.constant 0 : index
    %28 = vector.load %arg2[%c0_14, %c0_15] : memref<128x16xf32, #tpu.memory_space<vmem>>, vector<128x16xf32>
    %29 = arith.addf %28, %27 : vector<128x16xf32>
    %c0_16 = arith.constant 0 : index
    %c0_17 = arith.constant 0 : index
    %30 = vector.load %arg7[%c0_16, %c0_17] : memref<128x16xf32, #tpu.memory_space<vmem>>, vector<128x16xf32>
    tpu.vector_store %arg7[%c0_16, %c0_17], %29 {strides = array<i32>} : memref<128x16xf32, #tpu.memory_space<vmem>>, vector<128x16xf32>,
    return
  }
  func.func @transform_0(%arg0: i32) -> (i32, i32) {
    %c0_i32 = arith.constant 0 : i32
    %c0_i32_0 = arith.constant 0 : i32
    return %arg0, %c0_i32 : i32, i32
  }
  func.func @transform_1(%arg0: i32) -> (i32, i32) {
    %c0_i32 = arith.constant 0 : i32
    %c0_i32_0 = arith.constant 0 : i32
    return %arg0, %c0_i32 : i32, i32
  }
  func.func @transform_2(%arg0: i32) -> (i32, i32) {
    %c0_i32 = arith.constant 0 : i32
    %c0_i32_0 = arith.constant 0 : i32
    %c0_i32_1 = arith.constant 0 : i32
    return %c0_i32, %c0_i32_0 : i32, i32
  }
  func.func @transform_3(%arg0: i32) -> (i32, i32) {
    %c0_i32 = arith.constant 0 : i32
    %c0_i32_0 = arith.constant 0 : i32
    %c0_i32_1 = arith.constant 0 : i32
    return %c0_i32, %c0_i32_0 : i32, i32
  }
  func.func @transform_4(%arg0: i32) -> (i32, i32) {
    %c0_i32 = arith.constant 0 : i32
    %c0_i32_0 = arith.constant 0 : i32
    %c0_i32_1 = arith.constant 0 : i32
    return %c0_i32, %c0_i32_0 : i32, i32
  }
  func.func @transform_5(%arg0: i32) -> (i32, i32) {
    %c0_i32 = arith.constant 0 : i32
    %c0_i32_0 = arith.constant 0 : i32
    %c0_i32_1 = arith.constant 0 : i32
    return %c0_i32, %c0_i32_0 : i32, i32
  }
  func.func @transform_6(%arg0: i32) -> (i32, i32) {
    %c0_i32 = arith.constant 0 : i32
    %c0_i32_0 = arith.constant 0 : i32
    return %arg0, %c0_i32 : i32, i32
  }
}

module attributes {stable_mosaic.version = 11 : i64} {
  func.func @_mlp_ln_res_kernel(%arg0: i32, %arg1: memref<128x16xf32, #tpu.memory_space<vmem>>, %arg2: memref<16x64xf32, #tpu.memory_space<vmem>>, %arg3: memref<1x64xf32, #tpu.memory_space<vmem>>, %arg4: memref<64x16xf32, #tpu.memory_space<vmem>>, %arg5: memref<1x16xf32, #tpu.memory_space<vmem>>, %arg6: memref<1x16xf32, #tpu.memory_space<vmem>>, %arg7: memref<1x16xf32, #tpu.memory_space<vmem>>, %arg8: memref<128x16xf32, #tpu.memory_space<vmem>>) attributes {dimension_semantics = [#tpu.dimension_semantics<parallel>], iteration_bounds = array<i64: 1>, scalar_prefetch = 0 : i64, scratch_operands = 0 : i64, tpu.core_type = #tpu.core_type<tc>, window_params = [{transform_indices = @transform_0, window_bounds = array<i64: 128, 16>}, {pipeline_mode = #tpu.pipeline_mode<synchronous>, transform_indices = @transform_1, window_bounds = array<i64: 16, 64>}, {pipeline_mode = #tpu.pipeline_mode<synchronous>, transform_indices = @transform_2, window_bounds = array<i64: 1, 64>}, {pipeline_mode = #tpu.pipeline_mode<synchronous>, transform_indices = @transform_3, window_bounds = array<i64: 64, 16>}, {pipeline_mode = #tpu.pipeline_mode<synchronous>, transform_indices = @transform_4, window_bounds = array<i64: 1, 16>}, {pipeline_mode = #tpu.pipeline_mode<synchronous>, transform_indices = @transform_5, window_bounds = array<i64: 1, 16>}, {pipeline_mode = #tpu.pipeline_mode<synchronous>, transform_indices = @transform_6, window_bounds = array<i64: 1, 16>}, {transform_indices = @transform_7, window_bounds = array<i64: 128, 16>}]} {
    %c0 = arith.constant 0 : index
    %c0_0 = arith.constant 0 : index
    %0 = vector.load %arg1[%c0, %c0_0] : memref<128x16xf32, #tpu.memory_space<vmem>>, vector<128x16xf32>
    %c0_1 = arith.constant 0 : index
    %c0_2 = arith.constant 0 : index
    %1 = vector.load %arg2[%c0_1, %c0_2] : memref<16x64xf32, #tpu.memory_space<vmem>>, vector<16x64xf32>
    %c0_3 = arith.constant 0 : index
    %c0_4 = arith.constant 0 : index
    %2 = vector.load %arg3[%c0_3, %c0_4] : memref<1x64xf32, #tpu.memory_space<vmem>>, vector<1x64xf32>
    %cst = arith.constant dense<0.000000e+00> : vector<128x64xf32>
    %3 = tpu.matmul %0, %1, %cst {dimension_numbers = #tpu.dot_dimension_numbers<[1], [0], [0], [1], [0, 0, 1, 1], [], []>} : vector<128x16xf32>, vector<16x64xf32>, vector<128x64xf32> -> vector<128x64xf32>
    %4 = vector.broadcast %2 : vector<1x64xf32> to vector<128x64xf32>
    %5 = arith.addf %3, %4 : vector<128x64xf32>
    %6 = arith.mulf %5, %5 : vector<128x64xf32>
    %7 = arith.mulf %5, %6 : vector<128x64xf32>
    %cst_5 = arith.constant 4.471500e-02 : f32
    %8 = vector.broadcast %cst_5 : f32 to vector<128x64xf32>
    %9 = arith.mulf %8, %7 : vector<128x64xf32>
    %10 = arith.addf %5, %9 : vector<128x64xf32>
    %cst_6 = arith.constant 0.797884583 : f32
    %11 = vector.broadcast %cst_6 : f32 to vector<128x64xf32>
    %12 = arith.mulf %11, %10 : vector<128x64xf32>
    %13 = math.tanh %12 : vector<128x64xf32>
    %cst_7 = arith.constant 1.000000e+00 : f32
    %14 = vector.broadcast %cst_7 : f32 to vector<128x64xf32>
    %15 = arith.addf %14, %13 : vector<128x64xf32>
    %cst_8 = arith.constant 5.000000e-01 : f32
    %16 = vector.broadcast %cst_8 : f32 to vector<128x64xf32>
    %17 = arith.mulf %16, %15 : vector<128x64xf32>
    %18 = arith.mulf %5, %17 : vector<128x64xf32>
    %c0_9 = arith.constant 0 : index
    %c0_10 = arith.constant 0 : index
    %19 = vector.load %arg4[%c0_9, %c0_10] : memref<64x16xf32, #tpu.memory_space<vmem>>, vector<64x16xf32>
    %c0_11 = arith.constant 0 : index
    %c0_12 = arith.constant 0 : index
    %20 = vector.load %arg5[%c0_11, %c0_12] : memref<1x16xf32, #tpu.memory_space<vmem>>, vector<1x16xf32>
    %cst_13 = arith.constant dense<0.000000e+00> : vector<128x16xf32>
    %21 = tpu.matmul %18, %19, %cst_13 {dimension_numbers = #tpu.dot_dimension_numbers<[1], [0], [0], [1], [0, 0, 1, 1], [], []>} : vector<128x64xf32>, vector<64x16xf32>, vector<128x16xf32> -> vector<128x16xf32>
    %22 = vector.broadcast %20 : vector<1x16xf32> to vector<128x16xf32>
    %23 = arith.addf %21, %22 : vector<128x16xf32>
    %c0_14 = arith.constant 0 : index
    %c0_15 = arith.constant 0 : index
    %24 = vector.load %arg6[%c0_14, %c0_15] : memref<1x16xf32, #tpu.memory_space<vmem>>, vector<1x16xf32>
    %c0_16 = arith.constant 0 : index
    %c0_17 = arith.constant 0 : index
    %25 = vector.load %arg7[%c0_16, %c0_17] : memref<1x16xf32, #tpu.memory_space<vmem>>, vector<1x16xf32>
    %cst_18 = arith.constant dense<0.000000e+00> : vector<128xf32>
    %26 = vector.multi_reduction <add>, %23, %cst_18 [1] : vector<128x16xf32> to vector<128xf32>
    %27 = vector.shape_cast %26 : vector<128xf32> to vector<128x1xf32>
    %cst_19 = arith.constant 1.600000e+01 : f32
    %28 = vector.broadcast %cst_19 : f32 to vector<128x1xf32>
    %29 = arith.divf %27, %28 : vector<128x1xf32>
    %30 = vector.broadcast %29 : vector<128x1xf32> to vector<128x16xf32>
    %31 = arith.subf %23, %30 : vector<128x16xf32>
    %32 = arith.mulf %31, %31 : vector<128x16xf32>
    %cst_20 = arith.constant dense<0.000000e+00> : vector<128xf32>
    %33 = vector.multi_reduction <add>, %32, %cst_20 [1] : vector<128x16xf32> to vector<128xf32>
    %34 = vector.shape_cast %33 : vector<128xf32> to vector<128x1xf32>
    %cst_21 = arith.constant 1.600000e+01 : f32
    %35 = vector.broadcast %cst_21 : f32 to vector<128x1xf32>
    %36 = arith.divf %34, %35 : vector<128x1xf32>
    %cst_22 = arith.constant 9.99999974E-6 : f32
    %37 = vector.broadcast %cst_22 : f32 to vector<128x1xf32>
    %38 = arith.addf %36, %37 : vector<128x1xf32>
    %39 = math.rsqrt %38 : vector<128x1xf32>
    %40 = vector.broadcast %39 : vector<128x1xf32> to vector<128x16xf32>
    %41 = arith.mulf %31, %40 : vector<128x16xf32>
    %42 = vector.broadcast %24 : vector<1x16xf32> to vector<128x16xf32>
    %43 = arith.mulf %41, %42 : vector<128x16xf32>
    %44 = vector.broadcast %25 : vector<1x16xf32> to vector<128x16xf32>
    %45 = arith.addf %43, %44 : vector<128x16xf32>
    %46 = arith.addf %0, %45 : vector<128x16xf32>
    %c0_23 = arith.constant 0 : index
    %c0_24 = arith.constant 0 : index
    %47 = vector.load %arg8[%c0_23, %c0_24] : memref<128x16xf32, #tpu.memory_space<vmem>>, vector<128x16xf32>
    tpu.vector_store %arg8[%c0_23, %c0_24], %46 {strides = array<i32>} : memref<128x16xf32, #tpu.memory_space<vmem>>, vector<128x16xf32>,
    return
  }
  func.func @transform_0(%arg0: i32) -> (i32, i32) {
    %c0_i32 = arith.constant 0 : i32
    %c0_i32_0 = arith.constant 0 : i32
    return %arg0, %c0_i32 : i32, i32
  }
  func.func @transform_1(%arg0: i32) -> (i32, i32) {
    %c0_i32 = arith.constant 0 : i32
    %c0_i32_0 = arith.constant 0 : i32
    %c0_i32_1 = arith.constant 0 : i32
    return %c0_i32, %c0_i32_0 : i32, i32
  }
  func.func @transform_2(%arg0: i32) -> (i32, i32) {
    %c0_i32 = arith.constant 0 : i32
    %c0_i32_0 = arith.constant 0 : i32
    %c0_i32_1 = arith.constant 0 : i32
    return %c0_i32, %c0_i32_0 : i32, i32
  }
  func.func @transform_3(%arg0: i32) -> (i32, i32) {
    %c0_i32 = arith.constant 0 : i32
    %c0_i32_0 = arith.constant 0 : i32
    %c0_i32_1 = arith.constant 0 : i32
    return %c0_i32, %c0_i32_0 : i32, i32
  }
  func.func @transform_4(%arg0: i32) -> (i32, i32) {
    %c0_i32 = arith.constant 0 : i32
    %c0_i32_0 = arith.constant 0 : i32
    %c0_i32_1 = arith.constant 0 : i32
    return %c0_i32, %c0_i32_0 : i32, i32
  }
  func.func @transform_5(%arg0: i32) -> (i32, i32) {
    %c0_i32 = arith.constant 0 : i32
    %c0_i32_0 = arith.constant 0 : i32
    %c0_i32_1 = arith.constant 0 : i32
    return %c0_i32, %c0_i32_0 : i32, i32
  }
  func.func @transform_6(%arg0: i32) -> (i32, i32) {
    %c0_i32 = arith.constant 0 : i32
    %c0_i32_0 = arith.constant 0 : i32
    %c0_i32_1 = arith.constant 0 : i32
    return %c0_i32, %c0_i32_0 : i32, i32
  }
  func.func @transform_7(%arg0: i32) -> (i32, i32) {
    %c0_i32 = arith.constant 0 : i32
    %c0_i32_0 = arith.constant 0 : i32
    return %arg0, %c0_i32 : i32, i32
  }
}

module attributes {stable_mosaic.version = 11 : i64} {
  func.func @_layernorm_kernel(%arg0: i32, %arg1: memref<128x16xf32, #tpu.memory_space<vmem>>, %arg2: memref<1x16xf32, #tpu.memory_space<vmem>>, %arg3: memref<1x16xf32, #tpu.memory_space<vmem>>, %arg4: memref<128x16xf32, #tpu.memory_space<vmem>>) attributes {dimension_semantics = [#tpu.dimension_semantics<parallel>], iteration_bounds = array<i64: 1>, scalar_prefetch = 0 : i64, scratch_operands = 0 : i64, tpu.core_type = #tpu.core_type<tc>, window_params = [{transform_indices = @transform_0, window_bounds = array<i64: 128, 16>}, {pipeline_mode = #tpu.pipeline_mode<synchronous>, transform_indices = @transform_1, window_bounds = array<i64: 1, 16>}, {pipeline_mode = #tpu.pipeline_mode<synchronous>, transform_indices = @transform_2, window_bounds = array<i64: 1, 16>}, {transform_indices = @transform_3, window_bounds = array<i64: 128, 16>}]} {
    %c0 = arith.constant 0 : index
    %c0_0 = arith.constant 0 : index
    %0 = vector.load %arg1[%c0, %c0_0] : memref<128x16xf32, #tpu.memory_space<vmem>>, vector<128x16xf32>
    %c0_1 = arith.constant 0 : index
    %c0_2 = arith.constant 0 : index
    %1 = vector.load %arg2[%c0_1, %c0_2] : memref<1x16xf32, #tpu.memory_space<vmem>>, vector<1x16xf32>
    %c0_3 = arith.constant 0 : index
    %c0_4 = arith.constant 0 : index
    %2 = vector.load %arg3[%c0_3, %c0_4] : memref<1x16xf32, #tpu.memory_space<vmem>>, vector<1x16xf32>
    %cst = arith.constant dense<0.000000e+00> : vector<128xf32>
    %3 = vector.multi_reduction <add>, %0, %cst [1] : vector<128x16xf32> to vector<128xf32>
    %4 = vector.shape_cast %3 : vector<128xf32> to vector<128x1xf32>
    %cst_5 = arith.constant 1.600000e+01 : f32
    %5 = vector.broadcast %cst_5 : f32 to vector<128x1xf32>
    %6 = arith.divf %4, %5 : vector<128x1xf32>
    %7 = vector.broadcast %6 : vector<128x1xf32> to vector<128x16xf32>
    %8 = arith.subf %0, %7 : vector<128x16xf32>
    %9 = arith.mulf %8, %8 : vector<128x16xf32>
    %cst_6 = arith.constant dense<0.000000e+00> : vector<128xf32>
    %10 = vector.multi_reduction <add>, %9, %cst_6 [1] : vector<128x16xf32> to vector<128xf32>
    %11 = vector.shape_cast %10 : vector<128xf32> to vector<128x1xf32>
    %cst_7 = arith.constant 1.600000e+01 : f32
    %12 = vector.broadcast %cst_7 : f32 to vector<128x1xf32>
    %13 = arith.divf %11, %12 : vector<128x1xf32>
    %cst_8 = arith.constant 9.99999974E-6 : f32
    %14 = vector.broadcast %cst_8 : f32 to vector<128x1xf32>
    %15 = arith.addf %13, %14 : vector<128x1xf32>
    %16 = math.rsqrt %15 : vector<128x1xf32>
    %17 = vector.broadcast %16 : vector<128x1xf32> to vector<128x16xf32>
    %18 = arith.mulf %8, %17 : vector<128x16xf32>
    %19 = vector.broadcast %1 : vector<1x16xf32> to vector<128x16xf32>
    %20 = arith.mulf %18, %19 : vector<128x16xf32>
    %21 = vector.broadcast %2 : vector<1x16xf32> to vector<128x16xf32>
    %22 = arith.addf %20, %21 : vector<128x16xf32>
    %c0_9 = arith.constant 0 : index
    %c0_10 = arith.constant 0 : index
    %23 = vector.load %arg4[%c0_9, %c0_10] : memref<128x16xf32, #tpu.memory_space<vmem>>, vector<128x16xf32>
    tpu.vector_store %arg4[%c0_9, %c0_10], %22 {strides = array<i32>} : memref<128x16xf32, #tpu.memory_space<vmem>>, vector<128x16xf32>,
    return
  }
  func.func @transform_0(%arg0: i32) -> (i32, i32) {
    %c0_i32 = arith.constant 0 : i32
    %c0_i32_0 = arith.constant 0 : i32
    return %arg0, %c0_i32 : i32, i32
  }
  func.func @transform_1(%arg0: i32) -> (i32, i32) {
    %c0_i32 = arith.constant 0 : i32
    %c0_i32_0 = arith.constant 0 : i32
    %c0_i32_1 = arith.constant 0 : i32
    return %c0_i32, %c0_i32_0 : i32, i32
  }
  func.func @transform_2(%arg0: i32) -> (i32, i32) {
    %c0_i32 = arith.constant 0 : i32
    %c0_i32_0 = arith.constant 0 : i32
    %c0_i32_1 = arith.constant 0 : i32
    return %c0_i32, %c0_i32_0 : i32, i32
  }
  func.func @transform_3(%arg0: i32) -> (i32, i32) {
    %c0_i32 = arith.constant 0 : i32
    %c0_i32_0 = arith.constant 0 : i32
    return %arg0, %c0_i32 : i32, i32
  }
}

module attributes {stable_mosaic.version = 11 : i64} {
  func.func @_ln_linear_kernel(%arg0: i32, %arg1: memref<32x64xf32, #tpu.memory_space<vmem>>, %arg2: memref<1x64xf32, #tpu.memory_space<vmem>>, %arg3: memref<1x64xf32, #tpu.memory_space<vmem>>, %arg4: memref<64x32xf32, #tpu.memory_space<vmem>>, %arg5: memref<32x32xf32, #tpu.memory_space<vmem>>) attributes {dimension_semantics = [#tpu.dimension_semantics<parallel>], iteration_bounds = array<i64: 1>, scalar_prefetch = 0 : i64, scratch_operands = 0 : i64, tpu.core_type = #tpu.core_type<tc>, window_params = [{transform_indices = @transform_0, window_bounds = array<i64: 32, 64>}, {pipeline_mode = #tpu.pipeline_mode<synchronous>, transform_indices = @transform_1, window_bounds = array<i64: 1, 64>}, {pipeline_mode = #tpu.pipeline_mode<synchronous>, transform_indices = @transform_2, window_bounds = array<i64: 1, 64>}, {pipeline_mode = #tpu.pipeline_mode<synchronous>, transform_indices = @transform_3, window_bounds = array<i64: 64, 32>}, {transform_indices = @transform_4, window_bounds = array<i64: 32, 32>}]} {
    %c0 = arith.constant 0 : index
    %c0_0 = arith.constant 0 : index
    %0 = vector.load %arg1[%c0, %c0_0] : memref<32x64xf32, #tpu.memory_space<vmem>>, vector<32x64xf32>
    %c0_1 = arith.constant 0 : index
    %c0_2 = arith.constant 0 : index
    %1 = vector.load %arg2[%c0_1, %c0_2] : memref<1x64xf32, #tpu.memory_space<vmem>>, vector<1x64xf32>
    %c0_3 = arith.constant 0 : index
    %c0_4 = arith.constant 0 : index
    %2 = vector.load %arg3[%c0_3, %c0_4] : memref<1x64xf32, #tpu.memory_space<vmem>>, vector<1x64xf32>
    %cst = arith.constant dense<0.000000e+00> : vector<32xf32>
    %3 = vector.multi_reduction <add>, %0, %cst [1] : vector<32x64xf32> to vector<32xf32>
    %4 = vector.shape_cast %3 : vector<32xf32> to vector<32x1xf32>
    %cst_5 = arith.constant 6.400000e+01 : f32
    %5 = vector.broadcast %cst_5 : f32 to vector<32x1xf32>
    %6 = arith.divf %4, %5 : vector<32x1xf32>
    %7 = vector.broadcast %6 : vector<32x1xf32> to vector<32x64xf32>
    %8 = arith.subf %0, %7 : vector<32x64xf32>
    %9 = arith.mulf %8, %8 : vector<32x64xf32>
    %cst_6 = arith.constant dense<0.000000e+00> : vector<32xf32>
    %10 = vector.multi_reduction <add>, %9, %cst_6 [1] : vector<32x64xf32> to vector<32xf32>
    %11 = vector.shape_cast %10 : vector<32xf32> to vector<32x1xf32>
    %cst_7 = arith.constant 6.400000e+01 : f32
    %12 = vector.broadcast %cst_7 : f32 to vector<32x1xf32>
    %13 = arith.divf %11, %12 : vector<32x1xf32>
    %cst_8 = arith.constant 9.99999974E-6 : f32
    %14 = vector.broadcast %cst_8 : f32 to vector<32x1xf32>
    %15 = arith.addf %13, %14 : vector<32x1xf32>
    %16 = math.rsqrt %15 : vector<32x1xf32>
    %17 = vector.broadcast %16 : vector<32x1xf32> to vector<32x64xf32>
    %18 = arith.mulf %8, %17 : vector<32x64xf32>
    %19 = vector.broadcast %1 : vector<1x64xf32> to vector<32x64xf32>
    %20 = arith.mulf %18, %19 : vector<32x64xf32>
    %21 = vector.broadcast %2 : vector<1x64xf32> to vector<32x64xf32>
    %22 = arith.addf %20, %21 : vector<32x64xf32>
    %c0_9 = arith.constant 0 : index
    %c0_10 = arith.constant 0 : index
    %23 = vector.load %arg4[%c0_9, %c0_10] : memref<64x32xf32, #tpu.memory_space<vmem>>, vector<64x32xf32>
    %cst_11 = arith.constant dense<0.000000e+00> : vector<32x32xf32>
    %24 = tpu.matmul %22, %23, %cst_11 {dimension_numbers = #tpu.dot_dimension_numbers<[1], [0], [0], [1], [0, 0, 1, 1], [], []>} : vector<32x64xf32>, vector<64x32xf32>, vector<32x32xf32> -> vector<32x32xf32>
    %c0_12 = arith.constant 0 : index
    %c0_13 = arith.constant 0 : index
    %25 = vector.load %arg5[%c0_12, %c0_13] : memref<32x32xf32, #tpu.memory_space<vmem>>, vector<32x32xf32>
    tpu.vector_store %arg5[%c0_12, %c0_13], %24 {strides = array<i32>} : memref<32x32xf32, #tpu.memory_space<vmem>>, vector<32x32xf32>,
    return
  }
  func.func @transform_0(%arg0: i32) -> (i32, i32) {
    %c0_i32 = arith.constant 0 : i32
    %c0_i32_0 = arith.constant 0 : i32
    return %arg0, %c0_i32 : i32, i32
  }
  func.func @transform_1(%arg0: i32) -> (i32, i32) {
    %c0_i32 = arith.constant 0 : i32
    %c0_i32_0 = arith.constant 0 : i32
    %c0_i32_1 = arith.constant 0 : i32
    return %c0_i32, %c0_i32_0 : i32, i32
  }
  func.func @transform_2(%arg0: i32) -> (i32, i32) {
    %c0_i32 = arith.constant 0 : i32
    %c0_i32_0 = arith.constant 0 : i32
    %c0_i32_1 = arith.constant 0 : i32
    return %c0_i32, %c0_i32_0 : i32, i32
  }
  func.func @transform_3(%arg0: i32) -> (i32, i32) {
    %c0_i32 = arith.constant 0 : i32
    %c0_i32_0 = arith.constant 0 : i32
    %c0_i32_1 = arith.constant 0 : i32
    return %c0_i32, %c0_i32_0 : i32, i32
  }
  func.func @transform_4(%arg0: i32) -> (i32, i32) {
    %c0_i32 = arith.constant 0 : i32
    %c0_i32_0 = arith.constant 0 : i32
    return %arg0, %c0_i32 : i32, i32
  }
}

module attributes {stable_mosaic.version = 11 : i64} {
  func.func @_linear_kernel(%arg0: i32, %arg1: memref<32x32xf32, #tpu.memory_space<vmem>>, %arg2: memref<32x96xf32, #tpu.memory_space<vmem>>, %arg3: memref<1x96xf32, #tpu.memory_space<vmem>>, %arg4: memref<32x96xf32, #tpu.memory_space<vmem>>) attributes {dimension_semantics = [#tpu.dimension_semantics<parallel>], iteration_bounds = array<i64: 1>, scalar_prefetch = 0 : i64, scratch_operands = 0 : i64, tpu.core_type = #tpu.core_type<tc>, window_params = [{transform_indices = @transform_0, window_bounds = array<i64: 32, 32>}, {pipeline_mode = #tpu.pipeline_mode<synchronous>, transform_indices = @transform_1, window_bounds = array<i64: 32, 96>}, {pipeline_mode = #tpu.pipeline_mode<synchronous>, transform_indices = @transform_2, window_bounds = array<i64: 1, 96>}, {transform_indices = @transform_3, window_bounds = array<i64: 32, 96>}]} {
    %c0 = arith.constant 0 : index
    %c0_0 = arith.constant 0 : index
    %0 = vector.load %arg1[%c0, %c0_0] : memref<32x32xf32, #tpu.memory_space<vmem>>, vector<32x32xf32>
    %c0_1 = arith.constant 0 : index
    %c0_2 = arith.constant 0 : index
    %1 = vector.load %arg2[%c0_1, %c0_2] : memref<32x96xf32, #tpu.memory_space<vmem>>, vector<32x96xf32>
    %c0_3 = arith.constant 0 : index
    %c0_4 = arith.constant 0 : index
    %2 = vector.load %arg3[%c0_3, %c0_4] : memref<1x96xf32, #tpu.memory_space<vmem>>, vector<1x96xf32>
    %cst = arith.constant dense<0.000000e+00> : vector<32x96xf32>
    %3 = tpu.matmul %0, %1, %cst {dimension_numbers = #tpu.dot_dimension_numbers<[1], [0], [0], [1], [0, 0, 1, 1], [], []>} : vector<32x32xf32>, vector<32x96xf32>, vector<32x96xf32> -> vector<32x96xf32>
    %4 = vector.broadcast %2 : vector<1x96xf32> to vector<32x96xf32>
    %5 = arith.addf %3, %4 : vector<32x96xf32>
    %c0_5 = arith.constant 0 : index
    %c0_6 = arith.constant 0 : index
    %6 = vector.load %arg4[%c0_5, %c0_6] : memref<32x96xf32, #tpu.memory_space<vmem>>, vector<32x96xf32>
    tpu.vector_store %arg4[%c0_5, %c0_6], %5 {strides = array<i32>} : memref<32x96xf32, #tpu.memory_space<vmem>>, vector<32x96xf32>,
    return
  }
  func.func @transform_0(%arg0: i32) -> (i32, i32) {
    %c0_i32 = arith.constant 0 : i32
    %c0_i32_0 = arith.constant 0 : i32
    return %arg0, %c0_i32 : i32, i32
  }
  func.func @transform_1(%arg0: i32) -> (i32, i32) {
    %c0_i32 = arith.constant 0 : i32
    %c0_i32_0 = arith.constant 0 : i32
    %c0_i32_1 = arith.constant 0 : i32
    return %c0_i32, %c0_i32_0 : i32, i32
  }
  func.func @transform_2(%arg0: i32) -> (i32, i32) {
    %c0_i32 = arith.constant 0 : i32
    %c0_i32_0 = arith.constant 0 : i32
    %c0_i32_1 = arith.constant 0 : i32
    return %c0_i32, %c0_i32_0 : i32, i32
  }
  func.func @transform_3(%arg0: i32) -> (i32, i32) {
    %c0_i32 = arith.constant 0 : i32
    %c0_i32_0 = arith.constant 0 : i32
    return %arg0, %c0_i32 : i32, i32
  }
}

module attributes {stable_mosaic.version = 11 : i64} {
  func.func @_window_attn_kernel(%arg0: i32, %arg1: memref<1x8x4x16xf32, #tpu.memory_space<vmem>>, %arg2: memref<1x8x4x16xf32, #tpu.memory_space<vmem>>, %arg3: memref<1x8x4x16xf32, #tpu.memory_space<vmem>>, %arg4: memref<8x4x4xf32, #tpu.memory_space<vmem>>, %arg5: memref<1x8x4x16xf32, #tpu.memory_space<vmem>>) attributes {dimension_semantics = [#tpu.dimension_semantics<parallel>], iteration_bounds = array<i64: 2>, scalar_prefetch = 0 : i64, scratch_operands = 0 : i64, tpu.core_type = #tpu.core_type<tc>, window_params = [{transform_indices = @transform_0, window_bounds = array<i64: 1, 8, 4, 16>}, {transform_indices = @transform_1, window_bounds = array<i64: 1, 8, 4, 16>}, {transform_indices = @transform_2, window_bounds = array<i64: 1, 8, 4, 16>}, {pipeline_mode = #tpu.pipeline_mode<synchronous>, transform_indices = @transform_3, window_bounds = array<i64: 8, 4, 4>}, {transform_indices = @transform_4, window_bounds = array<i64: 1, 8, 4, 16>}]} {
    %c0 = arith.constant 0 : index
    %c0_0 = arith.constant 0 : index
    %c0_1 = arith.constant 0 : index
    %c0_2 = arith.constant 0 : index
    %0 = vector.load %arg1[%c0, %c0_0, %c0_1, %c0_2] : memref<1x8x4x16xf32, #tpu.memory_space<vmem>>, vector<1x8x4x16xf32>
    %1 = vector.shape_cast %0 : vector<1x8x4x16xf32> to vector<8x4x16xf32>
    %c0_3 = arith.constant 0 : index
    %c0_4 = arith.constant 0 : index
    %c0_5 = arith.constant 0 : index
    %c0_6 = arith.constant 0 : index
    %2 = vector.load %arg2[%c0_3, %c0_4, %c0_5, %c0_6] : memref<1x8x4x16xf32, #tpu.memory_space<vmem>>, vector<1x8x4x16xf32>
    %3 = vector.shape_cast %2 : vector<1x8x4x16xf32> to vector<8x4x16xf32>
    %c0_7 = arith.constant 0 : index
    %c0_8 = arith.constant 0 : index
    %c0_9 = arith.constant 0 : index
    %c0_10 = arith.constant 0 : index
    %4 = vector.load %arg3[%c0_7, %c0_8, %c0_9, %c0_10] : memref<1x8x4x16xf32, #tpu.memory_space<vmem>>, vector<1x8x4x16xf32>
    %5 = vector.shape_cast %4 : vector<1x8x4x16xf32> to vector<8x4x16xf32>
    "tpu.trace_start"() <{level = 10 : i32, message = "gad,gbd->gab"}> : () -> ()
    %cst = arith.constant dense<0.000000e+00> : vector<8x4x4xf32>
    %6 = tpu.matmul %1, %3, %cst {dimension_numbers = #tpu.dot_dimension_numbers<[2], [2], [1], [1], [0, 0, 0, 1, 1, 1], [0], [0]>} : vector<8x4x16xf32>, vector<8x4x16xf32>, vector<8x4x4xf32> -> vector<8x4x4xf32>
    "tpu.trace_stop"() : () -> ()
    %c0_11 = arith.constant 0 : index
    %c0_12 = arith.constant 0 : index
    %c0_13 = arith.constant 0 : index
    %7 = vector.load %arg4[%c0_11, %c0_12, %c0_13] : memref<8x4x4xf32, #tpu.memory_space<vmem>>, vector<8x4x4xf32>
    %8 = arith.addf %6, %7 : vector<8x4x4xf32>
    %cst_14 = arith.constant dense<0xFF800000> : vector<8x4xf32>
    %9 = vector.multi_reduction <maximumf>, %8, %cst_14 [2] : vector<8x4x4xf32> to vector<8x4xf32>
    %10 = vector.shape_cast %9 : vector<8x4xf32> to vector<8x4x1xf32>
    %11 = vector.broadcast %10 : vector<8x4x1xf32> to vector<8x4x4xf32>
    %12 = arith.subf %8, %11 : vector<8x4x4xf32>
    %13 = math.exp %12 : vector<8x4x4xf32>
    %cst_15 = arith.constant dense<0.000000e+00> : vector<8x4xf32>
    %14 = vector.multi_reduction <add>, %13, %cst_15 [2] : vector<8x4x4xf32> to vector<8x4xf32>
    %15 = vector.shape_cast %14 : vector<8x4xf32> to vector<8x4x1xf32>
    %16 = tpu.reciprocal %15 {approx = true} : vector<8x4x1xf32> -> vector<8x4x1xf32>
    %17 = vector.broadcast %16 : vector<8x4x1xf32> to vector<8x4x4xf32>
    %18 = arith.mulf %13, %17 : vector<8x4x4xf32>
    "tpu.trace_start"() <{level = 10 : i32, message = "gab,gbd->gad"}> : () -> ()
    %cst_16 = arith.constant dense<0.000000e+00> : vector<8x4x16xf32>
    %19 = tpu.matmul %18, %5, %cst_16 {dimension_numbers = #tpu.dot_dimension_numbers<[2], [1], [1], [2], [0, 0, 0, 1, 1, 2], [0], [0]>} : vector<8x4x4xf32>, vector<8x4x16xf32>, vector<8x4x16xf32> -> vector<8x4x16xf32>
    "tpu.trace_stop"() : () -> ()
    %c0_17 = arith.constant 0 : index
    %c0_18 = arith.constant 0 : index
    %c0_19 = arith.constant 0 : index
    %c0_20 = arith.constant 0 : index
    %20 = vector.load %arg5[%c0_17, %c0_18, %c0_19, %c0_20] : memref<1x8x4x16xf32, #tpu.memory_space<vmem>>, vector<1x8x4x16xf32>
    %21 = vector.shape_cast %20 : vector<1x8x4x16xf32> to vector<8x4x16xf32>
    %22 = vector.shape_cast %19 : vector<8x4x16xf32> to vector<1x8x4x16xf32>
    tpu.vector_store %arg5[%c0_17, %c0_18, %c0_19, %c0_20], %22 {strides = array<i32>} : memref<1x8x4x16xf32, #tpu.memory_space<vmem>>, vector<1x8x4x16xf32>,
    return
  }
  func.func @transform_0(%arg0: i32) -> (i32, i32, i32, i32) {
    %c0_i32 = arith.constant 0 : i32
    %c0_i32_0 = arith.constant 0 : i32
    %c0_i32_1 = arith.constant 0 : i32
    %c0_i32_2 = arith.constant 0 : i32
    return %arg0, %c0_i32, %c0_i32_0, %c0_i32_1 : i32, i32, i32, i32
  }
  func.func @transform_1(%arg0: i32) -> (i32, i32, i32, i32) {
    %c0_i32 = arith.constant 0 : i32
    %c0_i32_0 = arith.constant 0 : i32
    %c0_i32_1 = arith.constant 0 : i32
    %c0_i32_2 = arith.constant 0 : i32
    return %arg0, %c0_i32, %c0_i32_0, %c0_i32_1 : i32, i32, i32, i32
  }
  func.func @transform_2(%arg0: i32) -> (i32, i32, i32, i32) {
    %c0_i32 = arith.constant 0 : i32
    %c0_i32_0 = arith.constant 0 : i32
    %c0_i32_1 = arith.constant 0 : i32
    %c0_i32_2 = arith.constant 0 : i32
    return %arg0, %c0_i32, %c0_i32_0, %c0_i32_1 : i32, i32, i32, i32
  }
  func.func @transform_3(%arg0: i32) -> (i32, i32, i32) {
    %c0_i32 = arith.constant 0 : i32
    %c0_i32_0 = arith.constant 0 : i32
    %c0_i32_1 = arith.constant 0 : i32
    %c0_i32_2 = arith.constant 0 : i32
    return %c0_i32, %c0_i32_0, %c0_i32_1 : i32, i32, i32
  }
  func.func @transform_4(%arg0: i32) -> (i32, i32, i32, i32) {
    %c0_i32 = arith.constant 0 : i32
    %c0_i32_0 = arith.constant 0 : i32
    %c0_i32_1 = arith.constant 0 : i32
    %c0_i32_2 = arith.constant 0 : i32
    return %arg0, %c0_i32, %c0_i32_0, %c0_i32_1 : i32, i32, i32, i32
  }
}

module attributes {stable_mosaic.version = 11 : i64} {
  func.func @_mlp_ln_res_kernel(%arg0: i32, %arg1: memref<32x32xf32, #tpu.memory_space<vmem>>, %arg2: memref<32x128xf32, #tpu.memory_space<vmem>>, %arg3: memref<1x128xf32, #tpu.memory_space<vmem>>, %arg4: memref<128x32xf32, #tpu.memory_space<vmem>>, %arg5: memref<1x32xf32, #tpu.memory_space<vmem>>, %arg6: memref<1x32xf32, #tpu.memory_space<vmem>>, %arg7: memref<1x32xf32, #tpu.memory_space<vmem>>, %arg8: memref<32x32xf32, #tpu.memory_space<vmem>>) attributes {dimension_semantics = [#tpu.dimension_semantics<parallel>], iteration_bounds = array<i64: 1>, scalar_prefetch = 0 : i64, scratch_operands = 0 : i64, tpu.core_type = #tpu.core_type<tc>, window_params = [{transform_indices = @transform_0, window_bounds = array<i64: 32, 32>}, {pipeline_mode = #tpu.pipeline_mode<synchronous>, transform_indices = @transform_1, window_bounds = array<i64: 32, 128>}, {pipeline_mode = #tpu.pipeline_mode<synchronous>, transform_indices = @transform_2, window_bounds = array<i64: 1, 128>}, {pipeline_mode = #tpu.pipeline_mode<synchronous>, transform_indices = @transform_3, window_bounds = array<i64: 128, 32>}, {pipeline_mode = #tpu.pipeline_mode<synchronous>, transform_indices = @transform_4, window_bounds = array<i64: 1, 32>}, {pipeline_mode = #tpu.pipeline_mode<synchronous>, transform_indices = @transform_5, window_bounds = array<i64: 1, 32>}, {pipeline_mode = #tpu.pipeline_mode<synchronous>, transform_indices = @transform_6, window_bounds = array<i64: 1, 32>}, {transform_indices = @transform_7, window_bounds = array<i64: 32, 32>}]} {
    %c0 = arith.constant 0 : index
    %c0_0 = arith.constant 0 : index
    %0 = vector.load %arg1[%c0, %c0_0] : memref<32x32xf32, #tpu.memory_space<vmem>>, vector<32x32xf32>
    %c0_1 = arith.constant 0 : index
    %c0_2 = arith.constant 0 : index
    %1 = vector.load %arg2[%c0_1, %c0_2] : memref<32x128xf32, #tpu.memory_space<vmem>>, vector<32x128xf32>
    %c0_3 = arith.constant 0 : index
    %c0_4 = arith.constant 0 : index
    %2 = vector.load %arg3[%c0_3, %c0_4] : memref<1x128xf32, #tpu.memory_space<vmem>>, vector<1x128xf32>
    %cst = arith.constant dense<0.000000e+00> : vector<32x128xf32>
    %3 = tpu.matmul %0, %1, %cst {dimension_numbers = #tpu.dot_dimension_numbers<[1], [0], [0], [1], [0, 0, 1, 1], [], []>} : vector<32x32xf32>, vector<32x128xf32>, vector<32x128xf32> -> vector<32x128xf32>
    %4 = vector.broadcast %2 : vector<1x128xf32> to vector<32x128xf32>
    %5 = arith.addf %3, %4 : vector<32x128xf32>
    %6 = arith.mulf %5, %5 : vector<32x128xf32>
    %7 = arith.mulf %5, %6 : vector<32x128xf32>
    %cst_5 = arith.constant 4.471500e-02 : f32
    %8 = vector.broadcast %cst_5 : f32 to vector<32x128xf32>
    %9 = arith.mulf %8, %7 : vector<32x128xf32>
    %10 = arith.addf %5, %9 : vector<32x128xf32>
    %cst_6 = arith.constant 0.797884583 : f32
    %11 = vector.broadcast %cst_6 : f32 to vector<32x128xf32>
    %12 = arith.mulf %11, %10 : vector<32x128xf32>
    %13 = math.tanh %12 : vector<32x128xf32>
    %cst_7 = arith.constant 1.000000e+00 : f32
    %14 = vector.broadcast %cst_7 : f32 to vector<32x128xf32>
    %15 = arith.addf %14, %13 : vector<32x128xf32>
    %cst_8 = arith.constant 5.000000e-01 : f32
    %16 = vector.broadcast %cst_8 : f32 to vector<32x128xf32>
    %17 = arith.mulf %16, %15 : vector<32x128xf32>
    %18 = arith.mulf %5, %17 : vector<32x128xf32>
    %c0_9 = arith.constant 0 : index
    %c0_10 = arith.constant 0 : index
    %19 = vector.load %arg4[%c0_9, %c0_10] : memref<128x32xf32, #tpu.memory_space<vmem>>, vector<128x32xf32>
    %c0_11 = arith.constant 0 : index
    %c0_12 = arith.constant 0 : index
    %20 = vector.load %arg5[%c0_11, %c0_12] : memref<1x32xf32, #tpu.memory_space<vmem>>, vector<1x32xf32>
    %cst_13 = arith.constant dense<0.000000e+00> : vector<32x32xf32>
    %21 = tpu.matmul %18, %19, %cst_13 {dimension_numbers = #tpu.dot_dimension_numbers<[1], [0], [0], [1], [0, 0, 1, 1], [], []>} : vector<32x128xf32>, vector<128x32xf32>, vector<32x32xf32> -> vector<32x32xf32>
    %22 = vector.broadcast %20 : vector<1x32xf32> to vector<32x32xf32>
    %23 = arith.addf %21, %22 : vector<32x32xf32>
    %c0_14 = arith.constant 0 : index
    %c0_15 = arith.constant 0 : index
    %24 = vector.load %arg6[%c0_14, %c0_15] : memref<1x32xf32, #tpu.memory_space<vmem>>, vector<1x32xf32>
    %c0_16 = arith.constant 0 : index
    %c0_17 = arith.constant 0 : index
    %25 = vector.load %arg7[%c0_16, %c0_17] : memref<1x32xf32, #tpu.memory_space<vmem>>, vector<1x32xf32>
    %cst_18 = arith.constant dense<0.000000e+00> : vector<32xf32>
    %26 = vector.multi_reduction <add>, %23, %cst_18 [1] : vector<32x32xf32> to vector<32xf32>
    %27 = vector.shape_cast %26 : vector<32xf32> to vector<32x1xf32>
    %cst_19 = arith.constant 3.200000e+01 : f32
    %28 = vector.broadcast %cst_19 : f32 to vector<32x1xf32>
    %29 = arith.divf %27, %28 : vector<32x1xf32>
    %30 = vector.broadcast %29 : vector<32x1xf32> to vector<32x32xf32>
    %31 = arith.subf %23, %30 : vector<32x32xf32>
    %32 = arith.mulf %31, %31 : vector<32x32xf32>
    %cst_20 = arith.constant dense<0.000000e+00> : vector<32xf32>
    %33 = vector.multi_reduction <add>, %32, %cst_20 [1] : vector<32x32xf32> to vector<32xf32>
    %34 = vector.shape_cast %33 : vector<32xf32> to vector<32x1xf32>
    %cst_21 = arith.constant 3.200000e+01 : f32
    %35 = vector.broadcast %cst_21 : f32 to vector<32x1xf32>
    %36 = arith.divf %34, %35 : vector<32x1xf32>
    %cst_22 = arith.constant 9.99999974E-6 : f32
    %37 = vector.broadcast %cst_22 : f32 to vector<32x1xf32>
    %38 = arith.addf %36, %37 : vector<32x1xf32>
    %39 = math.rsqrt %38 : vector<32x1xf32>
    %40 = vector.broadcast %39 : vector<32x1xf32> to vector<32x32xf32>
    %41 = arith.mulf %31, %40 : vector<32x32xf32>
    %42 = vector.broadcast %24 : vector<1x32xf32> to vector<32x32xf32>
    %43 = arith.mulf %41, %42 : vector<32x32xf32>
    %44 = vector.broadcast %25 : vector<1x32xf32> to vector<32x32xf32>
    %45 = arith.addf %43, %44 : vector<32x32xf32>
    %46 = arith.addf %0, %45 : vector<32x32xf32>
    %c0_23 = arith.constant 0 : index
    %c0_24 = arith.constant 0 : index
    %47 = vector.load %arg8[%c0_23, %c0_24] : memref<32x32xf32, #tpu.memory_space<vmem>>, vector<32x32xf32>
    tpu.vector_store %arg8[%c0_23, %c0_24], %46 {strides = array<i32>} : memref<32x32xf32, #tpu.memory_space<vmem>>, vector<32x32xf32>,
    return
  }
  func.func @transform_0(%arg0: i32) -> (i32, i32) {
    %c0_i32 = arith.constant 0 : i32
    %c0_i32_0 = arith.constant 0 : i32
    return %arg0, %c0_i32 : i32, i32
  }
  func.func @transform_1(%arg0: i32) -> (i32, i32) {
    %c0_i32 = arith.constant 0 : i32
    %c0_i32_0 = arith.constant 0 : i32
    %c0_i32_1 = arith.constant 0 : i32
    return %c0_i32, %c0_i32_0 : i32, i32
  }
  func.func @transform_2(%arg0: i32) -> (i32, i32) {
    %c0_i32 = arith.constant 0 : i32
    %c0_i32_0 = arith.constant 0 : i32
    %c0_i32_1 = arith.constant 0 : i32
    return %c0_i32, %c0_i32_0 : i32, i32
  }
  func.func @transform_3(%arg0: i32) -> (i32, i32) {
    %c0_i32 = arith.constant 0 : i32
    %c0_i32_0 = arith.constant 0 : i32
    %c0_i32_1 = arith.constant 0 : i32
    return %c0_i32, %c0_i32_0 : i32, i32
  }
  func.func @transform_4(%arg0: i32) -> (i32, i32) {
    %c0_i32 = arith.constant 0 : i32
    %c0_i32_0 = arith.constant 0 : i32
    %c0_i32_1 = arith.constant 0 : i32
    return %c0_i32, %c0_i32_0 : i32, i32
  }
  func.func @transform_5(%arg0: i32) -> (i32, i32) {
    %c0_i32 = arith.constant 0 : i32
    %c0_i32_0 = arith.constant 0 : i32
    %c0_i32_1 = arith.constant 0 : i32
    return %c0_i32, %c0_i32_0 : i32, i32
  }
  func.func @transform_6(%arg0: i32) -> (i32, i32) {
    %c0_i32 = arith.constant 0 : i32
    %c0_i32_0 = arith.constant 0 : i32
    %c0_i32_1 = arith.constant 0 : i32
    return %c0_i32, %c0_i32_0 : i32, i32
  }
  func.func @transform_7(%arg0: i32) -> (i32, i32) {
    %c0_i32 = arith.constant 0 : i32
    %c0_i32_0 = arith.constant 0 : i32
    return %arg0, %c0_i32 : i32, i32
  }
}

module attributes {stable_mosaic.version = 11 : i64} {
  func.func @_proj_ln_res_kernel(%arg0: i32, %arg1: memref<32x32xf32, #tpu.memory_space<vmem>>, %arg2: memref<32x32xf32, #tpu.memory_space<vmem>>, %arg3: memref<32x32xf32, #tpu.memory_space<vmem>>, %arg4: memref<1x32xf32, #tpu.memory_space<vmem>>, %arg5: memref<1x32xf32, #tpu.memory_space<vmem>>, %arg6: memref<1x32xf32, #tpu.memory_space<vmem>>, %arg7: memref<32x32xf32, #tpu.memory_space<vmem>>) attributes {dimension_semantics = [#tpu.dimension_semantics<parallel>], iteration_bounds = array<i64: 1>, scalar_prefetch = 0 : i64, scratch_operands = 0 : i64, tpu.core_type = #tpu.core_type<tc>, window_params = [{transform_indices = @transform_0, window_bounds = array<i64: 32, 32>}, {transform_indices = @transform_1, window_bounds = array<i64: 32, 32>}, {pipeline_mode = #tpu.pipeline_mode<synchronous>, transform_indices = @transform_2, window_bounds = array<i64: 32, 32>}, {pipeline_mode = #tpu.pipeline_mode<synchronous>, transform_indices = @transform_3, window_bounds = array<i64: 1, 32>}, {pipeline_mode = #tpu.pipeline_mode<synchronous>, transform_indices = @transform_4, window_bounds = array<i64: 1, 32>}, {pipeline_mode = #tpu.pipeline_mode<synchronous>, transform_indices = @transform_5, window_bounds = array<i64: 1, 32>}, {transform_indices = @transform_6, window_bounds = array<i64: 32, 32>}]} {
    %c0 = arith.constant 0 : index
    %c0_0 = arith.constant 0 : index
    %0 = vector.load %arg1[%c0, %c0_0] : memref<32x32xf32, #tpu.memory_space<vmem>>, vector<32x32xf32>
    %c0_1 = arith.constant 0 : index
    %c0_2 = arith.constant 0 : index
    %1 = vector.load %arg3[%c0_1, %c0_2] : memref<32x32xf32, #tpu.memory_space<vmem>>, vector<32x32xf32>
    %c0_3 = arith.constant 0 : index
    %c0_4 = arith.constant 0 : index
    %2 = vector.load %arg4[%c0_3, %c0_4] : memref<1x32xf32, #tpu.memory_space<vmem>>, vector<1x32xf32>
    %cst = arith.constant dense<0.000000e+00> : vector<32x32xf32>
    %3 = tpu.matmul %0, %1, %cst {dimension_numbers = #tpu.dot_dimension_numbers<[1], [0], [0], [1], [0, 0, 1, 1], [], []>} : vector<32x32xf32>, vector<32x32xf32>, vector<32x32xf32> -> vector<32x32xf32>
    %4 = vector.broadcast %2 : vector<1x32xf32> to vector<32x32xf32>
    %5 = arith.addf %3, %4 : vector<32x32xf32>
    %c0_5 = arith.constant 0 : index
    %c0_6 = arith.constant 0 : index
    %6 = vector.load %arg5[%c0_5, %c0_6] : memref<1x32xf32, #tpu.memory_space<vmem>>, vector<1x32xf32>
    %c0_7 = arith.constant 0 : index
    %c0_8 = arith.constant 0 : index
    %7 = vector.load %arg6[%c0_7, %c0_8] : memref<1x32xf32, #tpu.memory_space<vmem>>, vector<1x32xf32>
    %cst_9 = arith.constant dense<0.000000e+00> : vector<32xf32>
    %8 = vector.multi_reduction <add>, %5, %cst_9 [1] : vector<32x32xf32> to vector<32xf32>
    %9 = vector.shape_cast %8 : vector<32xf32> to vector<32x1xf32>
    %cst_10 = arith.constant 3.200000e+01 : f32
    %10 = vector.broadcast %cst_10 : f32 to vector<32x1xf32>
    %11 = arith.divf %9, %10 : vector<32x1xf32>
    %12 = vector.broadcast %11 : vector<32x1xf32> to vector<32x32xf32>
    %13 = arith.subf %5, %12 : vector<32x32xf32>
    %14 = arith.mulf %13, %13 : vector<32x32xf32>
    %cst_11 = arith.constant dense<0.000000e+00> : vector<32xf32>
    %15 = vector.multi_reduction <add>, %14, %cst_11 [1] : vector<32x32xf32> to vector<32xf32>
    %16 = vector.shape_cast %15 : vector<32xf32> to vector<32x1xf32>
    %cst_12 = arith.constant 3.200000e+01 : f32
    %17 = vector.broadcast %cst_12 : f32 to vector<32x1xf32>
    %18 = arith.divf %16, %17 : vector<32x1xf32>
    %cst_13 = arith.constant 9.99999974E-6 : f32
    %19 = vector.broadcast %cst_13 : f32 to vector<32x1xf32>
    %20 = arith.addf %18, %19 : vector<32x1xf32>
    %21 = math.rsqrt %20 : vector<32x1xf32>
    %22 = vector.broadcast %21 : vector<32x1xf32> to vector<32x32xf32>
    %23 = arith.mulf %13, %22 : vector<32x32xf32>
    %24 = vector.broadcast %6 : vector<1x32xf32> to vector<32x32xf32>
    %25 = arith.mulf %23, %24 : vector<32x32xf32>
    %26 = vector.broadcast %7 : vector<1x32xf32> to vector<32x32xf32>
    %27 = arith.addf %25, %26 : vector<32x32xf32>
    %c0_14 = arith.constant 0 : index
    %c0_15 = arith.constant 0 : index
    %28 = vector.load %arg2[%c0_14, %c0_15] : memref<32x32xf32, #tpu.memory_space<vmem>>, vector<32x32xf32>
    %29 = arith.addf %28, %27 : vector<32x32xf32>
    %c0_16 = arith.constant 0 : index
    %c0_17 = arith.constant 0 : index
    %30 = vector.load %arg7[%c0_16, %c0_17] : memref<32x32xf32, #tpu.memory_space<vmem>>, vector<32x32xf32>
    tpu.vector_store %arg7[%c0_16, %c0_17], %29 {strides = array<i32>} : memref<32x32xf32, #tpu.memory_space<vmem>>, vector<32x32xf32>,
    return
  }
  func.func @transform_0(%arg0: i32) -> (i32, i32) {
    %c0_i32 = arith.constant 0 : i32
    %c0_i32_0 = arith.constant 0 : i32
    return %arg0, %c0_i32 : i32, i32
  }
  func.func @transform_1(%arg0: i32) -> (i32, i32) {
    %c0_i32 = arith.constant 0 : i32
    %c0_i32_0 = arith.constant 0 : i32
    return %arg0, %c0_i32 : i32, i32
  }
  func.func @transform_2(%arg0: i32) -> (i32, i32) {
    %c0_i32 = arith.constant 0 : i32
    %c0_i32_0 = arith.constant 0 : i32
    %c0_i32_1 = arith.constant 0 : i32
    return %c0_i32, %c0_i32_0 : i32, i32
  }
  func.func @transform_3(%arg0: i32) -> (i32, i32) {
    %c0_i32 = arith.constant 0 : i32
    %c0_i32_0 = arith.constant 0 : i32
    %c0_i32_1 = arith.constant 0 : i32
    return %c0_i32, %c0_i32_0 : i32, i32
  }
  func.func @transform_4(%arg0: i32) -> (i32, i32) {
    %c0_i32 = arith.constant 0 : i32
    %c0_i32_0 = arith.constant 0 : i32
    %c0_i32_1 = arith.constant 0 : i32
    return %c0_i32, %c0_i32_0 : i32, i32
  }
  func.func @transform_5(%arg0: i32) -> (i32, i32) {
    %c0_i32 = arith.constant 0 : i32
    %c0_i32_0 = arith.constant 0 : i32
    %c0_i32_1 = arith.constant 0 : i32
    return %c0_i32, %c0_i32_0 : i32, i32
  }
  func.func @transform_6(%arg0: i32) -> (i32, i32) {
    %c0_i32 = arith.constant 0 : i32
    %c0_i32_0 = arith.constant 0 : i32
    return %arg0, %c0_i32 : i32, i32
  }
}

module attributes {stable_mosaic.version = 11 : i64} {
  func.func @_layernorm_kernel(%arg0: i32, %arg1: memref<32x32xf32, #tpu.memory_space<vmem>>, %arg2: memref<1x32xf32, #tpu.memory_space<vmem>>, %arg3: memref<1x32xf32, #tpu.memory_space<vmem>>, %arg4: memref<32x32xf32, #tpu.memory_space<vmem>>) attributes {dimension_semantics = [#tpu.dimension_semantics<parallel>], iteration_bounds = array<i64: 1>, scalar_prefetch = 0 : i64, scratch_operands = 0 : i64, tpu.core_type = #tpu.core_type<tc>, window_params = [{transform_indices = @transform_0, window_bounds = array<i64: 32, 32>}, {pipeline_mode = #tpu.pipeline_mode<synchronous>, transform_indices = @transform_1, window_bounds = array<i64: 1, 32>}, {pipeline_mode = #tpu.pipeline_mode<synchronous>, transform_indices = @transform_2, window_bounds = array<i64: 1, 32>}, {transform_indices = @transform_3, window_bounds = array<i64: 32, 32>}]} {
    %c0 = arith.constant 0 : index
    %c0_0 = arith.constant 0 : index
    %0 = vector.load %arg1[%c0, %c0_0] : memref<32x32xf32, #tpu.memory_space<vmem>>, vector<32x32xf32>
    %c0_1 = arith.constant 0 : index
    %c0_2 = arith.constant 0 : index
    %1 = vector.load %arg2[%c0_1, %c0_2] : memref<1x32xf32, #tpu.memory_space<vmem>>, vector<1x32xf32>
    %c0_3 = arith.constant 0 : index
    %c0_4 = arith.constant 0 : index
    %2 = vector.load %arg3[%c0_3, %c0_4] : memref<1x32xf32, #tpu.memory_space<vmem>>, vector<1x32xf32>
    %cst = arith.constant dense<0.000000e+00> : vector<32xf32>
    %3 = vector.multi_reduction <add>, %0, %cst [1] : vector<32x32xf32> to vector<32xf32>
    %4 = vector.shape_cast %3 : vector<32xf32> to vector<32x1xf32>
    %cst_5 = arith.constant 3.200000e+01 : f32
    %5 = vector.broadcast %cst_5 : f32 to vector<32x1xf32>
    %6 = arith.divf %4, %5 : vector<32x1xf32>
    %7 = vector.broadcast %6 : vector<32x1xf32> to vector<32x32xf32>
    %8 = arith.subf %0, %7 : vector<32x32xf32>
    %9 = arith.mulf %8, %8 : vector<32x32xf32>
    %cst_6 = arith.constant dense<0.000000e+00> : vector<32xf32>
    %10 = vector.multi_reduction <add>, %9, %cst_6 [1] : vector<32x32xf32> to vector<32xf32>
    %11 = vector.shape_cast %10 : vector<32xf32> to vector<32x1xf32>
    %cst_7 = arith.constant 3.200000e+01 : f32
    %12 = vector.broadcast %cst_7 : f32 to vector<32x1xf32>
    %13 = arith.divf %11, %12 : vector<32x1xf32>
    %cst_8 = arith.constant 9.99999974E-6 : f32
    %14 = vector.broadcast %cst_8 : f32 to vector<32x1xf32>
    %15 = arith.addf %13, %14 : vector<32x1xf32>
    %16 = math.rsqrt %15 : vector<32x1xf32>
    %17 = vector.broadcast %16 : vector<32x1xf32> to vector<32x32xf32>
    %18 = arith.mulf %8, %17 : vector<32x32xf32>
    %19 = vector.broadcast %1 : vector<1x32xf32> to vector<32x32xf32>
    %20 = arith.mulf %18, %19 : vector<32x32xf32>
    %21 = vector.broadcast %2 : vector<1x32xf32> to vector<32x32xf32>
    %22 = arith.addf %20, %21 : vector<32x32xf32>
    %c0_9 = arith.constant 0 : index
    %c0_10 = arith.constant 0 : index
    %23 = vector.load %arg4[%c0_9, %c0_10] : memref<32x32xf32, #tpu.memory_space<vmem>>, vector<32x32xf32>
    tpu.vector_store %arg4[%c0_9, %c0_10], %22 {strides = array<i32>} : memref<32x32xf32, #tpu.memory_space<vmem>>, vector<32x32xf32>,
    return
  }
  func.func @transform_0(%arg0: i32) -> (i32, i32) {
    %c0_i32 = arith.constant 0 : i32
    %c0_i32_0 = arith.constant 0 : i32
    return %arg0, %c0_i32 : i32, i32
  }
  func.func @transform_1(%arg0: i32) -> (i32, i32) {
    %c0_i32 = arith.constant 0 : i32
    %c0_i32_0 = arith.constant 0 : i32
    %c0_i32_1 = arith.constant 0 : i32
    return %c0_i32, %c0_i32_0 : i32, i32
  }
  func.func @transform_2(%arg0: i32) -> (i32, i32) {
    %c0_i32 = arith.constant 0 : i32
    %c0_i32_0 = arith.constant 0 : i32
    %c0_i32_1 = arith.constant 0 : i32
    return %c0_i32, %c0_i32_0 : i32, i32
  }
  func.func @transform_3(%arg0: i32) -> (i32, i32) {
    %c0_i32 = arith.constant 0 : i32
    %c0_i32_0 = arith.constant 0 : i32
    return %arg0, %c0_i32 : i32, i32
  }
}

module attributes {stable_mosaic.version = 11 : i64} {
  func.func @_ln_linear_kernel(%arg0: i32, %arg1: memref<8x128xf32, #tpu.memory_space<vmem>>, %arg2: memref<1x128xf32, #tpu.memory_space<vmem>>, %arg3: memref<1x128xf32, #tpu.memory_space<vmem>>, %arg4: memref<128x64xf32, #tpu.memory_space<vmem>>, %arg5: memref<8x64xf32, #tpu.memory_space<vmem>>) attributes {dimension_semantics = [#tpu.dimension_semantics<parallel>], iteration_bounds = array<i64: 1>, scalar_prefetch = 0 : i64, scratch_operands = 0 : i64, tpu.core_type = #tpu.core_type<tc>, window_params = [{transform_indices = @transform_0, window_bounds = array<i64: 8, 128>}, {pipeline_mode = #tpu.pipeline_mode<synchronous>, transform_indices = @transform_1, window_bounds = array<i64: 1, 128>}, {pipeline_mode = #tpu.pipeline_mode<synchronous>, transform_indices = @transform_2, window_bounds = array<i64: 1, 128>}, {pipeline_mode = #tpu.pipeline_mode<synchronous>, transform_indices = @transform_3, window_bounds = array<i64: 128, 64>}, {transform_indices = @transform_4, window_bounds = array<i64: 8, 64>}]} {
    %c0 = arith.constant 0 : index
    %c0_0 = arith.constant 0 : index
    %0 = vector.load %arg1[%c0, %c0_0] : memref<8x128xf32, #tpu.memory_space<vmem>>, vector<8x128xf32>
    %c0_1 = arith.constant 0 : index
    %c0_2 = arith.constant 0 : index
    %1 = vector.load %arg2[%c0_1, %c0_2] : memref<1x128xf32, #tpu.memory_space<vmem>>, vector<1x128xf32>
    %c0_3 = arith.constant 0 : index
    %c0_4 = arith.constant 0 : index
    %2 = vector.load %arg3[%c0_3, %c0_4] : memref<1x128xf32, #tpu.memory_space<vmem>>, vector<1x128xf32>
    %cst = arith.constant dense<0.000000e+00> : vector<8xf32>
    %3 = vector.multi_reduction <add>, %0, %cst [1] : vector<8x128xf32> to vector<8xf32>
    %4 = vector.shape_cast %3 : vector<8xf32> to vector<8x1xf32>
    %cst_5 = arith.constant 1.280000e+02 : f32
    %5 = vector.broadcast %cst_5 : f32 to vector<8x1xf32>
    %6 = arith.divf %4, %5 : vector<8x1xf32>
    %7 = vector.broadcast %6 : vector<8x1xf32> to vector<8x128xf32>
    %8 = arith.subf %0, %7 : vector<8x128xf32>
    %9 = arith.mulf %8, %8 : vector<8x128xf32>
    %cst_6 = arith.constant dense<0.000000e+00> : vector<8xf32>
    %10 = vector.multi_reduction <add>, %9, %cst_6 [1] : vector<8x128xf32> to vector<8xf32>
    %11 = vector.shape_cast %10 : vector<8xf32> to vector<8x1xf32>
    %cst_7 = arith.constant 1.280000e+02 : f32
    %12 = vector.broadcast %cst_7 : f32 to vector<8x1xf32>
    %13 = arith.divf %11, %12 : vector<8x1xf32>
    %cst_8 = arith.constant 9.99999974E-6 : f32
    %14 = vector.broadcast %cst_8 : f32 to vector<8x1xf32>
    %15 = arith.addf %13, %14 : vector<8x1xf32>
    %16 = math.rsqrt %15 : vector<8x1xf32>
    %17 = vector.broadcast %16 : vector<8x1xf32> to vector<8x128xf32>
    %18 = arith.mulf %8, %17 : vector<8x128xf32>
    %19 = vector.broadcast %1 : vector<1x128xf32> to vector<8x128xf32>
    %20 = arith.mulf %18, %19 : vector<8x128xf32>
    %21 = vector.broadcast %2 : vector<1x128xf32> to vector<8x128xf32>
    %22 = arith.addf %20, %21 : vector<8x128xf32>
    %c0_9 = arith.constant 0 : index
    %c0_10 = arith.constant 0 : index
    %23 = vector.load %arg4[%c0_9, %c0_10] : memref<128x64xf32, #tpu.memory_space<vmem>>, vector<128x64xf32>
    %cst_11 = arith.constant dense<0.000000e+00> : vector<8x64xf32>
    %24 = tpu.matmul %22, %23, %cst_11 {dimension_numbers = #tpu.dot_dimension_numbers<[1], [0], [0], [1], [0, 0, 1, 1], [], []>} : vector<8x128xf32>, vector<128x64xf32>, vector<8x64xf32> -> vector<8x64xf32>
    %c0_12 = arith.constant 0 : index
    %c0_13 = arith.constant 0 : index
    %25 = vector.load %arg5[%c0_12, %c0_13] : memref<8x64xf32, #tpu.memory_space<vmem>>, vector<8x64xf32>
    tpu.vector_store %arg5[%c0_12, %c0_13], %24 {strides = array<i32>} : memref<8x64xf32, #tpu.memory_space<vmem>>, vector<8x64xf32>,
    return
  }
  func.func @transform_0(%arg0: i32) -> (i32, i32) {
    %c0_i32 = arith.constant 0 : i32
    %c0_i32_0 = arith.constant 0 : i32
    return %arg0, %c0_i32 : i32, i32
  }
  func.func @transform_1(%arg0: i32) -> (i32, i32) {
    %c0_i32 = arith.constant 0 : i32
    %c0_i32_0 = arith.constant 0 : i32
    %c0_i32_1 = arith.constant 0 : i32
    return %c0_i32, %c0_i32_0 : i32, i32
  }
  func.func @transform_2(%arg0: i32) -> (i32, i32) {
    %c0_i32 = arith.constant 0 : i32
    %c0_i32_0 = arith.constant 0 : i32
    %c0_i32_1 = arith.constant 0 : i32
    return %c0_i32, %c0_i32_0 : i32, i32
  }
  func.func @transform_3(%arg0: i32) -> (i32, i32) {
    %c0_i32 = arith.constant 0 : i32
    %c0_i32_0 = arith.constant 0 : i32
    %c0_i32_1 = arith.constant 0 : i32
    return %c0_i32, %c0_i32_0 : i32, i32
  }
  func.func @transform_4(%arg0: i32) -> (i32, i32) {
    %c0_i32 = arith.constant 0 : i32
    %c0_i32_0 = arith.constant 0 : i32
    return %arg0, %c0_i32 : i32, i32
  }
}

module attributes {stable_mosaic.version = 11 : i64} {
  func.func @_linear_kernel(%arg0: i32, %arg1: memref<8x64xf32, #tpu.memory_space<vmem>>, %arg2: memref<64x192xf32, #tpu.memory_space<vmem>>, %arg3: memref<1x192xf32, #tpu.memory_space<vmem>>, %arg4: memref<8x192xf32, #tpu.memory_space<vmem>>) attributes {dimension_semantics = [#tpu.dimension_semantics<parallel>], iteration_bounds = array<i64: 1>, scalar_prefetch = 0 : i64, scratch_operands = 0 : i64, tpu.core_type = #tpu.core_type<tc>, window_params = [{transform_indices = @transform_0, window_bounds = array<i64: 8, 64>}, {pipeline_mode = #tpu.pipeline_mode<synchronous>, transform_indices = @transform_1, window_bounds = array<i64: 64, 192>}, {pipeline_mode = #tpu.pipeline_mode<synchronous>, transform_indices = @transform_2, window_bounds = array<i64: 1, 192>}, {transform_indices = @transform_3, window_bounds = array<i64: 8, 192>}]} {
    %c0 = arith.constant 0 : index
    %c0_0 = arith.constant 0 : index
    %0 = vector.load %arg1[%c0, %c0_0] : memref<8x64xf32, #tpu.memory_space<vmem>>, vector<8x64xf32>
    %c0_1 = arith.constant 0 : index
    %c0_2 = arith.constant 0 : index
    %1 = vector.load %arg2[%c0_1, %c0_2] : memref<64x192xf32, #tpu.memory_space<vmem>>, vector<64x192xf32>
    %c0_3 = arith.constant 0 : index
    %c0_4 = arith.constant 0 : index
    %2 = vector.load %arg3[%c0_3, %c0_4] : memref<1x192xf32, #tpu.memory_space<vmem>>, vector<1x192xf32>
    %cst = arith.constant dense<0.000000e+00> : vector<8x192xf32>
    %3 = tpu.matmul %0, %1, %cst {dimension_numbers = #tpu.dot_dimension_numbers<[1], [0], [0], [1], [0, 0, 1, 1], [], []>} : vector<8x64xf32>, vector<64x192xf32>, vector<8x192xf32> -> vector<8x192xf32>
    %4 = vector.broadcast %2 : vector<1x192xf32> to vector<8x192xf32>
    %5 = arith.addf %3, %4 : vector<8x192xf32>
    %c0_5 = arith.constant 0 : index
    %c0_6 = arith.constant 0 : index
    %6 = vector.load %arg4[%c0_5, %c0_6] : memref<8x192xf32, #tpu.memory_space<vmem>>, vector<8x192xf32>
    tpu.vector_store %arg4[%c0_5, %c0_6], %5 {strides = array<i32>} : memref<8x192xf32, #tpu.memory_space<vmem>>, vector<8x192xf32>,
    return
  }
  func.func @transform_0(%arg0: i32) -> (i32, i32) {
    %c0_i32 = arith.constant 0 : i32
    %c0_i32_0 = arith.constant 0 : i32
    return %arg0, %c0_i32 : i32, i32
  }
  func.func @transform_1(%arg0: i32) -> (i32, i32) {
    %c0_i32 = arith.constant 0 : i32
    %c0_i32_0 = arith.constant 0 : i32
    %c0_i32_1 = arith.constant 0 : i32
    return %c0_i32, %c0_i32_0 : i32, i32
  }
  func.func @transform_2(%arg0: i32) -> (i32, i32) {
    %c0_i32 = arith.constant 0 : i32
    %c0_i32_0 = arith.constant 0 : i32
    %c0_i32_1 = arith.constant 0 : i32
    return %c0_i32, %c0_i32_0 : i32, i32
  }
  func.func @transform_3(%arg0: i32) -> (i32, i32) {
    %c0_i32 = arith.constant 0 : i32
    %c0_i32_0 = arith.constant 0 : i32
    return %arg0, %c0_i32 : i32, i32
  }
}

module attributes {stable_mosaic.version = 11 : i64} {
  func.func @_window_attn_kernel(%arg0: i32, %arg1: memref<1x4x4x16xf32, #tpu.memory_space<vmem>>, %arg2: memref<1x4x4x16xf32, #tpu.memory_space<vmem>>, %arg3: memref<1x4x4x16xf32, #tpu.memory_space<vmem>>, %arg4: memref<4x4x4xf32, #tpu.memory_space<vmem>>, %arg5: memref<1x4x4x16xf32, #tpu.memory_space<vmem>>) attributes {dimension_semantics = [#tpu.dimension_semantics<parallel>], iteration_bounds = array<i64: 2>, scalar_prefetch = 0 : i64, scratch_operands = 0 : i64, tpu.core_type = #tpu.core_type<tc>, window_params = [{transform_indices = @transform_0, window_bounds = array<i64: 1, 4, 4, 16>}, {transform_indices = @transform_1, window_bounds = array<i64: 1, 4, 4, 16>}, {transform_indices = @transform_2, window_bounds = array<i64: 1, 4, 4, 16>}, {pipeline_mode = #tpu.pipeline_mode<synchronous>, transform_indices = @transform_3, window_bounds = array<i64: 4, 4, 4>}, {transform_indices = @transform_4, window_bounds = array<i64: 1, 4, 4, 16>}]} {
    %c0 = arith.constant 0 : index
    %c0_0 = arith.constant 0 : index
    %c0_1 = arith.constant 0 : index
    %c0_2 = arith.constant 0 : index
    %0 = vector.load %arg1[%c0, %c0_0, %c0_1, %c0_2] : memref<1x4x4x16xf32, #tpu.memory_space<vmem>>, vector<1x4x4x16xf32>
    %1 = vector.shape_cast %0 : vector<1x4x4x16xf32> to vector<4x4x16xf32>
    %c0_3 = arith.constant 0 : index
    %c0_4 = arith.constant 0 : index
    %c0_5 = arith.constant 0 : index
    %c0_6 = arith.constant 0 : index
    %2 = vector.load %arg2[%c0_3, %c0_4, %c0_5, %c0_6] : memref<1x4x4x16xf32, #tpu.memory_space<vmem>>, vector<1x4x4x16xf32>
    %3 = vector.shape_cast %2 : vector<1x4x4x16xf32> to vector<4x4x16xf32>
    %c0_7 = arith.constant 0 : index
    %c0_8 = arith.constant 0 : index
    %c0_9 = arith.constant 0 : index
    %c0_10 = arith.constant 0 : index
    %4 = vector.load %arg3[%c0_7, %c0_8, %c0_9, %c0_10] : memref<1x4x4x16xf32, #tpu.memory_space<vmem>>, vector<1x4x4x16xf32>
    %5 = vector.shape_cast %4 : vector<1x4x4x16xf32> to vector<4x4x16xf32>
    "tpu.trace_start"() <{level = 10 : i32, message = "gad,gbd->gab"}> : () -> ()
    %cst = arith.constant dense<0.000000e+00> : vector<4x4x4xf32>
    %6 = tpu.matmul %1, %3, %cst {dimension_numbers = #tpu.dot_dimension_numbers<[2], [2], [1], [1], [0, 0, 0, 1, 1, 1], [0], [0]>} : vector<4x4x16xf32>, vector<4x4x16xf32>, vector<4x4x4xf32> -> vector<4x4x4xf32>
    "tpu.trace_stop"() : () -> ()
    %c0_11 = arith.constant 0 : index
    %c0_12 = arith.constant 0 : index
    %c0_13 = arith.constant 0 : index
    %7 = vector.load %arg4[%c0_11, %c0_12, %c0_13] : memref<4x4x4xf32, #tpu.memory_space<vmem>>, vector<4x4x4xf32>
    %8 = arith.addf %6, %7 : vector<4x4x4xf32>
    %cst_14 = arith.constant dense<0xFF800000> : vector<4x4xf32>
    %9 = vector.multi_reduction <maximumf>, %8, %cst_14 [2] : vector<4x4x4xf32> to vector<4x4xf32>
    %10 = vector.shape_cast %9 : vector<4x4xf32> to vector<4x4x1xf32>
    %11 = vector.broadcast %10 : vector<4x4x1xf32> to vector<4x4x4xf32>
    %12 = arith.subf %8, %11 : vector<4x4x4xf32>
    %13 = math.exp %12 : vector<4x4x4xf32>
    %cst_15 = arith.constant dense<0.000000e+00> : vector<4x4xf32>
    %14 = vector.multi_reduction <add>, %13, %cst_15 [2] : vector<4x4x4xf32> to vector<4x4xf32>
    %15 = vector.shape_cast %14 : vector<4x4xf32> to vector<4x4x1xf32>
    %16 = tpu.reciprocal %15 {approx = true} : vector<4x4x1xf32> -> vector<4x4x1xf32>
    %17 = vector.broadcast %16 : vector<4x4x1xf32> to vector<4x4x4xf32>
    %18 = arith.mulf %13, %17 : vector<4x4x4xf32>
    "tpu.trace_start"() <{level = 10 : i32, message = "gab,gbd->gad"}> : () -> ()
    %cst_16 = arith.constant dense<0.000000e+00> : vector<4x4x16xf32>
    %19 = tpu.matmul %18, %5, %cst_16 {dimension_numbers = #tpu.dot_dimension_numbers<[2], [1], [1], [2], [0, 0, 0, 1, 1, 2], [0], [0]>} : vector<4x4x4xf32>, vector<4x4x16xf32>, vector<4x4x16xf32> -> vector<4x4x16xf32>
    "tpu.trace_stop"() : () -> ()
    %c0_17 = arith.constant 0 : index
    %c0_18 = arith.constant 0 : index
    %c0_19 = arith.constant 0 : index
    %c0_20 = arith.constant 0 : index
    %20 = vector.load %arg5[%c0_17, %c0_18, %c0_19, %c0_20] : memref<1x4x4x16xf32, #tpu.memory_space<vmem>>, vector<1x4x4x16xf32>
    %21 = vector.shape_cast %20 : vector<1x4x4x16xf32> to vector<4x4x16xf32>
    %22 = vector.shape_cast %19 : vector<4x4x16xf32> to vector<1x4x4x16xf32>
    tpu.vector_store %arg5[%c0_17, %c0_18, %c0_19, %c0_20], %22 {strides = array<i32>} : memref<1x4x4x16xf32, #tpu.memory_space<vmem>>, vector<1x4x4x16xf32>,
    return
  }
  func.func @transform_0(%arg0: i32) -> (i32, i32, i32, i32) {
    %c0_i32 = arith.constant 0 : i32
    %c0_i32_0 = arith.constant 0 : i32
    %c0_i32_1 = arith.constant 0 : i32
    %c0_i32_2 = arith.constant 0 : i32
    return %arg0, %c0_i32, %c0_i32_0, %c0_i32_1 : i32, i32, i32, i32
  }
  func.func @transform_1(%arg0: i32) -> (i32, i32, i32, i32) {
    %c0_i32 = arith.constant 0 : i32
    %c0_i32_0 = arith.constant 0 : i32
    %c0_i32_1 = arith.constant 0 : i32
    %c0_i32_2 = arith.constant 0 : i32
    return %arg0, %c0_i32, %c0_i32_0, %c0_i32_1 : i32, i32, i32, i32
  }
  func.func @transform_2(%arg0: i32) -> (i32, i32, i32, i32) {
    %c0_i32 = arith.constant 0 : i32
    %c0_i32_0 = arith.constant 0 : i32
    %c0_i32_1 = arith.constant 0 : i32
    %c0_i32_2 = arith.constant 0 : i32
    return %arg0, %c0_i32, %c0_i32_0, %c0_i32_1 : i32, i32, i32, i32
  }
  func.func @transform_3(%arg0: i32) -> (i32, i32, i32) {
    %c0_i32 = arith.constant 0 : i32
    %c0_i32_0 = arith.constant 0 : i32
    %c0_i32_1 = arith.constant 0 : i32
    %c0_i32_2 = arith.constant 0 : i32
    return %c0_i32, %c0_i32_0, %c0_i32_1 : i32, i32, i32
  }
  func.func @transform_4(%arg0: i32) -> (i32, i32, i32, i32) {
    %c0_i32 = arith.constant 0 : i32
    %c0_i32_0 = arith.constant 0 : i32
    %c0_i32_1 = arith.constant 0 : i32
    %c0_i32_2 = arith.constant 0 : i32
    return %arg0, %c0_i32, %c0_i32_0, %c0_i32_1 : i32, i32, i32, i32
  }
}

module attributes {stable_mosaic.version = 11 : i64} {
  func.func @_layernorm_kernel(%arg0: i32, %arg1: memref<8x64xf32, #tpu.memory_space<vmem>>, %arg2: memref<1x64xf32, #tpu.memory_space<vmem>>, %arg3: memref<1x64xf32, #tpu.memory_space<vmem>>, %arg4: memref<8x64xf32, #tpu.memory_space<vmem>>) attributes {dimension_semantics = [#tpu.dimension_semantics<parallel>], iteration_bounds = array<i64: 1>, scalar_prefetch = 0 : i64, scratch_operands = 0 : i64, tpu.core_type = #tpu.core_type<tc>, window_params = [{transform_indices = @transform_0, window_bounds = array<i64: 8, 64>}, {pipeline_mode = #tpu.pipeline_mode<synchronous>, transform_indices = @transform_1, window_bounds = array<i64: 1, 64>}, {pipeline_mode = #tpu.pipeline_mode<synchronous>, transform_indices = @transform_2, window_bounds = array<i64: 1, 64>}, {transform_indices = @transform_3, window_bounds = array<i64: 8, 64>}]} {
    %c0 = arith.constant 0 : index
    %c0_0 = arith.constant 0 : index
    %0 = vector.load %arg1[%c0, %c0_0] : memref<8x64xf32, #tpu.memory_space<vmem>>, vector<8x64xf32>
    %c0_1 = arith.constant 0 : index
    %c0_2 = arith.constant 0 : index
    %1 = vector.load %arg2[%c0_1, %c0_2] : memref<1x64xf32, #tpu.memory_space<vmem>>, vector<1x64xf32>
    %c0_3 = arith.constant 0 : index
    %c0_4 = arith.constant 0 : index
    %2 = vector.load %arg3[%c0_3, %c0_4] : memref<1x64xf32, #tpu.memory_space<vmem>>, vector<1x64xf32>
    %cst = arith.constant dense<0.000000e+00> : vector<8xf32>
    %3 = vector.multi_reduction <add>, %0, %cst [1] : vector<8x64xf32> to vector<8xf32>
    %4 = vector.shape_cast %3 : vector<8xf32> to vector<8x1xf32>
    %cst_5 = arith.constant 6.400000e+01 : f32
    %5 = vector.broadcast %cst_5 : f32 to vector<8x1xf32>
    %6 = arith.divf %4, %5 : vector<8x1xf32>
    %7 = vector.broadcast %6 : vector<8x1xf32> to vector<8x64xf32>
    %8 = arith.subf %0, %7 : vector<8x64xf32>
    %9 = arith.mulf %8, %8 : vector<8x64xf32>
    %cst_6 = arith.constant dense<0.000000e+00> : vector<8xf32>
    %10 = vector.multi_reduction <add>, %9, %cst_6 [1] : vector<8x64xf32> to vector<8xf32>
    %11 = vector.shape_cast %10 : vector<8xf32> to vector<8x1xf32>
    %cst_7 = arith.constant 6.400000e+01 : f32
    %12 = vector.broadcast %cst_7 : f32 to vector<8x1xf32>
    %13 = arith.divf %11, %12 : vector<8x1xf32>
    %cst_8 = arith.constant 9.99999974E-6 : f32
    %14 = vector.broadcast %cst_8 : f32 to vector<8x1xf32>
    %15 = arith.addf %13, %14 : vector<8x1xf32>
    %16 = math.rsqrt %15 : vector<8x1xf32>
    %17 = vector.broadcast %16 : vector<8x1xf32> to vector<8x64xf32>
    %18 = arith.mulf %8, %17 : vector<8x64xf32>
    %19 = vector.broadcast %1 : vector<1x64xf32> to vector<8x64xf32>
    %20 = arith.mulf %18, %19 : vector<8x64xf32>
    %21 = vector.broadcast %2 : vector<1x64xf32> to vector<8x64xf32>
    %22 = arith.addf %20, %21 : vector<8x64xf32>
    %c0_9 = arith.constant 0 : index
    %c0_10 = arith.constant 0 : index
    %23 = vector.load %arg4[%c0_9, %c0_10] : memref<8x64xf32, #tpu.memory_space<vmem>>, vector<8x64xf32>
    tpu.vector_store %arg4[%c0_9, %c0_10], %22 {strides = array<i32>} : memref<8x64xf32, #tpu.memory_space<vmem>>, vector<8x64xf32>,
    return
  }
  func.func @transform_0(%arg0: i32) -> (i32, i32) {
    %c0_i32 = arith.constant 0 : i32
    %c0_i32_0 = arith.constant 0 : i32
    return %arg0, %c0_i32 : i32, i32
  }
  func.func @transform_1(%arg0: i32) -> (i32, i32) {
    %c0_i32 = arith.constant 0 : i32
    %c0_i32_0 = arith.constant 0 : i32
    %c0_i32_1 = arith.constant 0 : i32
    return %c0_i32, %c0_i32_0 : i32, i32
  }
  func.func @transform_2(%arg0: i32) -> (i32, i32) {
    %c0_i32 = arith.constant 0 : i32
    %c0_i32_0 = arith.constant 0 : i32
    %c0_i32_1 = arith.constant 0 : i32
    return %c0_i32, %c0_i32_0 : i32, i32
  }
  func.func @transform_3(%arg0: i32) -> (i32, i32) {
    %c0_i32 = arith.constant 0 : i32
    %c0_i32_0 = arith.constant 0 : i32
    return %arg0, %c0_i32 : i32, i32
  }
}

module attributes {stable_mosaic.version = 11 : i64} {
  func.func @_mlp_ln_res_kernel(%arg0: i32, %arg1: memref<8x64xf32, #tpu.memory_space<vmem>>, %arg2: memref<64x256xf32, #tpu.memory_space<vmem>>, %arg3: memref<1x256xf32, #tpu.memory_space<vmem>>, %arg4: memref<256x64xf32, #tpu.memory_space<vmem>>, %arg5: memref<1x64xf32, #tpu.memory_space<vmem>>, %arg6: memref<1x64xf32, #tpu.memory_space<vmem>>, %arg7: memref<1x64xf32, #tpu.memory_space<vmem>>, %arg8: memref<8x64xf32, #tpu.memory_space<vmem>>) attributes {dimension_semantics = [#tpu.dimension_semantics<parallel>], iteration_bounds = array<i64: 1>, scalar_prefetch = 0 : i64, scratch_operands = 0 : i64, tpu.core_type = #tpu.core_type<tc>, window_params = [{transform_indices = @transform_0, window_bounds = array<i64: 8, 64>}, {pipeline_mode = #tpu.pipeline_mode<synchronous>, transform_indices = @transform_1, window_bounds = array<i64: 64, 256>}, {pipeline_mode = #tpu.pipeline_mode<synchronous>, transform_indices = @transform_2, window_bounds = array<i64: 1, 256>}, {pipeline_mode = #tpu.pipeline_mode<synchronous>, transform_indices = @transform_3, window_bounds = array<i64: 256, 64>}, {pipeline_mode = #tpu.pipeline_mode<synchronous>, transform_indices = @transform_4, window_bounds = array<i64: 1, 64>}, {pipeline_mode = #tpu.pipeline_mode<synchronous>, transform_indices = @transform_5, window_bounds = array<i64: 1, 64>}, {pipeline_mode = #tpu.pipeline_mode<synchronous>, transform_indices = @transform_6, window_bounds = array<i64: 1, 64>}, {transform_indices = @transform_7, window_bounds = array<i64: 8, 64>}]} {
    %c0 = arith.constant 0 : index
    %c0_0 = arith.constant 0 : index
    %0 = vector.load %arg1[%c0, %c0_0] : memref<8x64xf32, #tpu.memory_space<vmem>>, vector<8x64xf32>
    %c0_1 = arith.constant 0 : index
    %c0_2 = arith.constant 0 : index
    %1 = vector.load %arg2[%c0_1, %c0_2] : memref<64x256xf32, #tpu.memory_space<vmem>>, vector<64x256xf32>
    %c0_3 = arith.constant 0 : index
    %c0_4 = arith.constant 0 : index
    %2 = vector.load %arg3[%c0_3, %c0_4] : memref<1x256xf32, #tpu.memory_space<vmem>>, vector<1x256xf32>
    %cst = arith.constant dense<0.000000e+00> : vector<8x256xf32>
    %3 = tpu.matmul %0, %1, %cst {dimension_numbers = #tpu.dot_dimension_numbers<[1], [0], [0], [1], [0, 0, 1, 1], [], []>} : vector<8x64xf32>, vector<64x256xf32>, vector<8x256xf32> -> vector<8x256xf32>
    %4 = vector.broadcast %2 : vector<1x256xf32> to vector<8x256xf32>
    %5 = arith.addf %3, %4 : vector<8x256xf32>
    %6 = arith.mulf %5, %5 : vector<8x256xf32>
    %7 = arith.mulf %5, %6 : vector<8x256xf32>
    %cst_5 = arith.constant 4.471500e-02 : f32
    %8 = vector.broadcast %cst_5 : f32 to vector<8x256xf32>
    %9 = arith.mulf %8, %7 : vector<8x256xf32>
    %10 = arith.addf %5, %9 : vector<8x256xf32>
    %cst_6 = arith.constant 0.797884583 : f32
    %11 = vector.broadcast %cst_6 : f32 to vector<8x256xf32>
    %12 = arith.mulf %11, %10 : vector<8x256xf32>
    %13 = math.tanh %12 : vector<8x256xf32>
    %cst_7 = arith.constant 1.000000e+00 : f32
    %14 = vector.broadcast %cst_7 : f32 to vector<8x256xf32>
    %15 = arith.addf %14, %13 : vector<8x256xf32>
    %cst_8 = arith.constant 5.000000e-01 : f32
    %16 = vector.broadcast %cst_8 : f32 to vector<8x256xf32>
    %17 = arith.mulf %16, %15 : vector<8x256xf32>
    %18 = arith.mulf %5, %17 : vector<8x256xf32>
    %c0_9 = arith.constant 0 : index
    %c0_10 = arith.constant 0 : index
    %19 = vector.load %arg4[%c0_9, %c0_10] : memref<256x64xf32, #tpu.memory_space<vmem>>, vector<256x64xf32>
    %c0_11 = arith.constant 0 : index
    %c0_12 = arith.constant 0 : index
    %20 = vector.load %arg5[%c0_11, %c0_12] : memref<1x64xf32, #tpu.memory_space<vmem>>, vector<1x64xf32>
    %cst_13 = arith.constant dense<0.000000e+00> : vector<8x64xf32>
    %21 = tpu.matmul %18, %19, %cst_13 {dimension_numbers = #tpu.dot_dimension_numbers<[1], [0], [0], [1], [0, 0, 1, 1], [], []>} : vector<8x256xf32>, vector<256x64xf32>, vector<8x64xf32> -> vector<8x64xf32>
    %22 = vector.broadcast %20 : vector<1x64xf32> to vector<8x64xf32>
    %23 = arith.addf %21, %22 : vector<8x64xf32>
    %c0_14 = arith.constant 0 : index
    %c0_15 = arith.constant 0 : index
    %24 = vector.load %arg6[%c0_14, %c0_15] : memref<1x64xf32, #tpu.memory_space<vmem>>, vector<1x64xf32>
    %c0_16 = arith.constant 0 : index
    %c0_17 = arith.constant 0 : index
    %25 = vector.load %arg7[%c0_16, %c0_17] : memref<1x64xf32, #tpu.memory_space<vmem>>, vector<1x64xf32>
    %cst_18 = arith.constant dense<0.000000e+00> : vector<8xf32>
    %26 = vector.multi_reduction <add>, %23, %cst_18 [1] : vector<8x64xf32> to vector<8xf32>
    %27 = vector.shape_cast %26 : vector<8xf32> to vector<8x1xf32>
    %cst_19 = arith.constant 6.400000e+01 : f32
    %28 = vector.broadcast %cst_19 : f32 to vector<8x1xf32>
    %29 = arith.divf %27, %28 : vector<8x1xf32>
    %30 = vector.broadcast %29 : vector<8x1xf32> to vector<8x64xf32>
    %31 = arith.subf %23, %30 : vector<8x64xf32>
    %32 = arith.mulf %31, %31 : vector<8x64xf32>
    %cst_20 = arith.constant dense<0.000000e+00> : vector<8xf32>
    %33 = vector.multi_reduction <add>, %32, %cst_20 [1] : vector<8x64xf32> to vector<8xf32>
    %34 = vector.shape_cast %33 : vector<8xf32> to vector<8x1xf32>
    %cst_21 = arith.constant 6.400000e+01 : f32
    %35 = vector.broadcast %cst_21 : f32 to vector<8x1xf32>
    %36 = arith.divf %34, %35 : vector<8x1xf32>
    %cst_22 = arith.constant 9.99999974E-6 : f32
    %37 = vector.broadcast %cst_22 : f32 to vector<8x1xf32>
    %38 = arith.addf %36, %37 : vector<8x1xf32>
    %39 = math.rsqrt %38 : vector<8x1xf32>
    %40 = vector.broadcast %39 : vector<8x1xf32> to vector<8x64xf32>
    %41 = arith.mulf %31, %40 : vector<8x64xf32>
    %42 = vector.broadcast %24 : vector<1x64xf32> to vector<8x64xf32>
    %43 = arith.mulf %41, %42 : vector<8x64xf32>
    %44 = vector.broadcast %25 : vector<1x64xf32> to vector<8x64xf32>
    %45 = arith.addf %43, %44 : vector<8x64xf32>
    %46 = arith.addf %0, %45 : vector<8x64xf32>
    %c0_23 = arith.constant 0 : index
    %c0_24 = arith.constant 0 : index
    %47 = vector.load %arg8[%c0_23, %c0_24] : memref<8x64xf32, #tpu.memory_space<vmem>>, vector<8x64xf32>
    tpu.vector_store %arg8[%c0_23, %c0_24], %46 {strides = array<i32>} : memref<8x64xf32, #tpu.memory_space<vmem>>, vector<8x64xf32>,
    return
  }
  func.func @transform_0(%arg0: i32) -> (i32, i32) {
    %c0_i32 = arith.constant 0 : i32
    %c0_i32_0 = arith.constant 0 : i32
    return %arg0, %c0_i32 : i32, i32
  }
  func.func @transform_1(%arg0: i32) -> (i32, i32) {
    %c0_i32 = arith.constant 0 : i32
    %c0_i32_0 = arith.constant 0 : i32
    %c0_i32_1 = arith.constant 0 : i32
    return %c0_i32, %c0_i32_0 : i32, i32
  }
  func.func @transform_2(%arg0: i32) -> (i32, i32) {
    %c0_i32 = arith.constant 0 : i32
    %c0_i32_0 = arith.constant 0 : i32
    %c0_i32_1 = arith.constant 0 : i32
    return %c0_i32, %c0_i32_0 : i32, i32
  }
  func.func @transform_3(%arg0: i32) -> (i32, i32) {
    %c0_i32 = arith.constant 0 : i32
    %c0_i32_0 = arith.constant 0 : i32
    %c0_i32_1 = arith.constant 0 : i32
    return %c0_i32, %c0_i32_0 : i32, i32
  }
  func.func @transform_4(%arg0: i32) -> (i32, i32) {
    %c0_i32 = arith.constant 0 : i32
    %c0_i32_0 = arith.constant 0 : i32
    %c0_i32_1 = arith.constant 0 : i32
    return %c0_i32, %c0_i32_0 : i32, i32
  }
  func.func @transform_5(%arg0: i32) -> (i32, i32) {
    %c0_i32 = arith.constant 0 : i32
    %c0_i32_0 = arith.constant 0 : i32
    %c0_i32_1 = arith.constant 0 : i32
    return %c0_i32, %c0_i32_0 : i32, i32
  }
  func.func @transform_6(%arg0: i32) -> (i32, i32) {
    %c0_i32 = arith.constant 0 : i32
    %c0_i32_0 = arith.constant 0 : i32
    %c0_i32_1 = arith.constant 0 : i32
    return %c0_i32, %c0_i32_0 : i32, i32
  }
  func.func @transform_7(%arg0: i32) -> (i32, i32) {
    %c0_i32 = arith.constant 0 : i32
    %c0_i32_0 = arith.constant 0 : i32
    return %arg0, %c0_i32 : i32, i32
  }
}

module attributes {stable_mosaic.version = 11 : i64} {
  func.func @_proj_ln_res_kernel(%arg0: i32, %arg1: memref<8x64xf32, #tpu.memory_space<vmem>>, %arg2: memref<8x64xf32, #tpu.memory_space<vmem>>, %arg3: memref<64x64xf32, #tpu.memory_space<vmem>>, %arg4: memref<1x64xf32, #tpu.memory_space<vmem>>, %arg5: memref<1x64xf32, #tpu.memory_space<vmem>>, %arg6: memref<1x64xf32, #tpu.memory_space<vmem>>, %arg7: memref<8x64xf32, #tpu.memory_space<vmem>>) attributes {dimension_semantics = [#tpu.dimension_semantics<parallel>], iteration_bounds = array<i64: 1>, scalar_prefetch = 0 : i64, scratch_operands = 0 : i64, tpu.core_type = #tpu.core_type<tc>, window_params = [{transform_indices = @transform_0, window_bounds = array<i64: 8, 64>}, {transform_indices = @transform_1, window_bounds = array<i64: 8, 64>}, {pipeline_mode = #tpu.pipeline_mode<synchronous>, transform_indices = @transform_2, window_bounds = array<i64: 64, 64>}, {pipeline_mode = #tpu.pipeline_mode<synchronous>, transform_indices = @transform_3, window_bounds = array<i64: 1, 64>}, {pipeline_mode = #tpu.pipeline_mode<synchronous>, transform_indices = @transform_4, window_bounds = array<i64: 1, 64>}, {pipeline_mode = #tpu.pipeline_mode<synchronous>, transform_indices = @transform_5, window_bounds = array<i64: 1, 64>}, {transform_indices = @transform_6, window_bounds = array<i64: 8, 64>}]} {
    %c0 = arith.constant 0 : index
    %c0_0 = arith.constant 0 : index
    %0 = vector.load %arg1[%c0, %c0_0] : memref<8x64xf32, #tpu.memory_space<vmem>>, vector<8x64xf32>
    %c0_1 = arith.constant 0 : index
    %c0_2 = arith.constant 0 : index
    %1 = vector.load %arg3[%c0_1, %c0_2] : memref<64x64xf32, #tpu.memory_space<vmem>>, vector<64x64xf32>
    %c0_3 = arith.constant 0 : index
    %c0_4 = arith.constant 0 : index
    %2 = vector.load %arg4[%c0_3, %c0_4] : memref<1x64xf32, #tpu.memory_space<vmem>>, vector<1x64xf32>
    %cst = arith.constant dense<0.000000e+00> : vector<8x64xf32>
    %3 = tpu.matmul %0, %1, %cst {dimension_numbers = #tpu.dot_dimension_numbers<[1], [0], [0], [1], [0, 0, 1, 1], [], []>} : vector<8x64xf32>, vector<64x64xf32>, vector<8x64xf32> -> vector<8x64xf32>
    %4 = vector.broadcast %2 : vector<1x64xf32> to vector<8x64xf32>
    %5 = arith.addf %3, %4 : vector<8x64xf32>
    %c0_5 = arith.constant 0 : index
    %c0_6 = arith.constant 0 : index
    %6 = vector.load %arg5[%c0_5, %c0_6] : memref<1x64xf32, #tpu.memory_space<vmem>>, vector<1x64xf32>
    %c0_7 = arith.constant 0 : index
    %c0_8 = arith.constant 0 : index
    %7 = vector.load %arg6[%c0_7, %c0_8] : memref<1x64xf32, #tpu.memory_space<vmem>>, vector<1x64xf32>
    %cst_9 = arith.constant dense<0.000000e+00> : vector<8xf32>
    %8 = vector.multi_reduction <add>, %5, %cst_9 [1] : vector<8x64xf32> to vector<8xf32>
    %9 = vector.shape_cast %8 : vector<8xf32> to vector<8x1xf32>
    %cst_10 = arith.constant 6.400000e+01 : f32
    %10 = vector.broadcast %cst_10 : f32 to vector<8x1xf32>
    %11 = arith.divf %9, %10 : vector<8x1xf32>
    %12 = vector.broadcast %11 : vector<8x1xf32> to vector<8x64xf32>
    %13 = arith.subf %5, %12 : vector<8x64xf32>
    %14 = arith.mulf %13, %13 : vector<8x64xf32>
    %cst_11 = arith.constant dense<0.000000e+00> : vector<8xf32>
    %15 = vector.multi_reduction <add>, %14, %cst_11 [1] : vector<8x64xf32> to vector<8xf32>
    %16 = vector.shape_cast %15 : vector<8xf32> to vector<8x1xf32>
    %cst_12 = arith.constant 6.400000e+01 : f32
    %17 = vector.broadcast %cst_12 : f32 to vector<8x1xf32>
    %18 = arith.divf %16, %17 : vector<8x1xf32>
    %cst_13 = arith.constant 9.99999974E-6 : f32
    %19 = vector.broadcast %cst_13 : f32 to vector<8x1xf32>
    %20 = arith.addf %18, %19 : vector<8x1xf32>
    %21 = math.rsqrt %20 : vector<8x1xf32>
    %22 = vector.broadcast %21 : vector<8x1xf32> to vector<8x64xf32>
    %23 = arith.mulf %13, %22 : vector<8x64xf32>
    %24 = vector.broadcast %6 : vector<1x64xf32> to vector<8x64xf32>
    %25 = arith.mulf %23, %24 : vector<8x64xf32>
    %26 = vector.broadcast %7 : vector<1x64xf32> to vector<8x64xf32>
    %27 = arith.addf %25, %26 : vector<8x64xf32>
    %c0_14 = arith.constant 0 : index
    %c0_15 = arith.constant 0 : index
    %28 = vector.load %arg2[%c0_14, %c0_15] : memref<8x64xf32, #tpu.memory_space<vmem>>, vector<8x64xf32>
    %29 = arith.addf %28, %27 : vector<8x64xf32>
    %c0_16 = arith.constant 0 : index
    %c0_17 = arith.constant 0 : index
    %30 = vector.load %arg7[%c0_16, %c0_17] : memref<8x64xf32, #tpu.memory_space<vmem>>, vector<8x64xf32>
    tpu.vector_store %arg7[%c0_16, %c0_17], %29 {strides = array<i32>} : memref<8x64xf32, #tpu.memory_space<vmem>>, vector<8x64xf32>,
    return
  }
  func.func @transform_0(%arg0: i32) -> (i32, i32) {
    %c0_i32 = arith.constant 0 : i32
    %c0_i32_0 = arith.constant 0 : i32
    return %arg0, %c0_i32 : i32, i32
  }
  func.func @transform_1(%arg0: i32) -> (i32, i32) {
    %c0_i32 = arith.constant 0 : i32
    %c0_i32_0 = arith.constant 0 : i32
    return %arg0, %c0_i32 : i32, i32
  }
  func.func @transform_2(%arg0: i32) -> (i32, i32) {
    %c0_i32 = arith.constant 0 : i32
    %c0_i32_0 = arith.constant 0 : i32
    %c0_i32_1 = arith.constant 0 : i32
    return %c0_i32, %c0_i32_0 : i32, i32
  }
  func.func @transform_3(%arg0: i32) -> (i32, i32) {
    %c0_i32 = arith.constant 0 : i32
    %c0_i32_0 = arith.constant 0 : i32
    %c0_i32_1 = arith.constant 0 : i32
    return %c0_i32, %c0_i32_0 : i32, i32
  }
  func.func @transform_4(%arg0: i32) -> (i32, i32) {
    %c0_i32 = arith.constant 0 : i32
    %c0_i32_0 = arith.constant 0 : i32
    %c0_i32_1 = arith.constant 0 : i32
    return %c0_i32, %c0_i32_0 : i32, i32
  }
  func.func @transform_5(%arg0: i32) -> (i32, i32) {
    %c0_i32 = arith.constant 0 : i32
    %c0_i32_0 = arith.constant 0 : i32
    %c0_i32_1 = arith.constant 0 : i32
    return %c0_i32, %c0_i32_0 : i32, i32
  }
  func.func @transform_6(%arg0: i32) -> (i32, i32) {
    %c0_i32 = arith.constant 0 : i32
    %c0_i32_0 = arith.constant 0 : i32
    return %arg0, %c0_i32 : i32, i32
  }
}

</mosaic_0001>

<bundles_post_ra>
// kernel: _lambda_.31
= control target key start
LH: loop header
LB: loop body
LE: loop exit
PB: predicated region body
PF: predicated region fallthrough
CT: control target
= control target key end

     0   :  { %vm39_vm0 = vcmask 130048   ;;  %vm233_vm1 = vcmask 392192   ;;  %s480_s1 = inlined_call_operand.vmem [shape: f32[16,48], index: 1, kind: input, shape index: {}]   ;;  %s481_s0 = inlined_call_operand.vmem [shape: f32[128,16], index: 0, kind: input, shape index: {}]   ;;  %s482_s2 = inlined_call_operand.vmem [shape: f32[1,48], index: 2, kind: input, shape index: {}]   ;;  %s483_s3 = inlined_call_operand.vmem [shape: f32[128,48], index: 3, kind: output, shape index: {}]  }
   0x1   :  { %v30_v0 = vld [vmem:[%s480_s1] sm:$0xff]  ;;  %v31_v1 = vld [vmem:[%s480_s1 + $0x8] sm:$0xff]  ;;  %v16_v7 = vld [vmem:[%s481_s0 + $0x10] sm:$0xff] }
   0x2   :  { %v14_v2 = vld [vmem:[%s481_s0] sm:$0xff]  ;;  %v317_v3 = vpack.c.bf16 %v31_v1, %v30_v0  ;;  %v15_v5 = vld [vmem:[%s481_s0 + $0x8] sm:$0xff]  ;;  %v24_v8 = vld [vmem:[%s481_s0 + $0x50] sm:$0xff] }
   0x3   :  { %293 = vmatprep.mubr.msk.f32.mxu0 %vm39_vm0, %v14_v2  ;;  %v22_v4 = vld [vmem:[%s481_s0 + $0x40] sm:$0xff]  ;;  %v23_v6 = vld [vmem:[%s481_s0 + $0x48] sm:$0xff]  ;;  %v17_v9 = vld [vmem:[%s481_s0 + $0x18] sm:$0xff] }
   0x4   :  { %305 = vmatprep.mubr.msk.f32.mxu1 %vm39_vm0, %v22_v4  ;;  %318 = vmatprep.subr.bf16.mxu0 %v317_v3  ;;  %v25_v10 = vld [vmem:[%s481_s0 + $0x58] sm:$0xff]  ;;  %v18_v11 = vld [vmem:[%s481_s0 + $0x20] sm:$0xff]  ;;  %v19_v13 = vld [vmem:[%s481_s0 + $0x28] sm:$0xff] }
   0x5   :  { %321 = vmatprep.subr.bf16.mxu1 %v317_v3  ;;  %320 = vmatpush3.bf16.msra.mxu0 %v317_v3  ;;  %v26_v12 = vld [vmem:[%s481_s0 + $0x60] sm:$0xff]  ;;  %v27_v14 = vld [vmem:[%s481_s0 + $0x68] sm:$0xff]  ;;  %v20_v15 = vld [vmem:[%s481_s0 + $0x30] sm:$0xff] }
   0x6   :  { %322 = vmatpush3.bf16.msra.mxu1 %v317_v3  ;;  %v28_v16 = vld [vmem:[%s481_s0 + $0x70] sm:$0xff]  ;;  %v21_v17 = vld [vmem:[%s481_s0 + $0x38] sm:$0xff]  ;;  %v254_v19 = vld [vmem:[%s482_s2] ss:$0 sm:$0xff] }
   0x7   :  { %v29_v18 = vld [vmem:[%s481_s0 + $0x78] sm:$0xff] }
   0x8   :  { %294 = vmatmul.mubr.msk.f32.vlgmr.msra.gmra.mrb[0].mxu0 %vm39_vm0, %v15_v5 }
   0x9   :  { %306 = vmatmul.mubr.msk.f32.vlgmr.msra.gmra.mrb[0].mxu1 %vm39_vm0, %v23_v6  ;;  %296 = vmatprep.mubr.msk.f32.mxu0 %vm39_vm0, %v16_v7 }
   0xa   :  { %308 = vmatprep.mubr.msk.f32.mxu1 %vm39_vm0, %v24_v8 }
   0xc   :  { %297 = vmatmul.mubr.msk.f32.gmra.mrb[2].mxu0 %vm39_vm0, %v17_v9 }
   0xd   :  { %309 = vmatmul.mubr.msk.f32.gmra.mrb[2].mxu1 %vm39_vm0, %v25_v10  ;;  %299 = vmatprep.mubr.msk.f32.mxu0 %vm39_vm0, %v18_v11 }
   0xe   :  { %311 = vmatprep.mubr.msk.f32.mxu1 %vm39_vm0, %v26_v12 }
  0x10   :  { %300 = vmatmul.mubr.msk.f32.gmra.mrb[4].mxu0 %vm39_vm0, %v19_v13 }
  0x11   :  { %312 = vmatmul.mubr.msk.f32.gmra.mrb[4].mxu1 %vm39_vm0, %v27_v14  ;;  %302 = vmatprep.mubr.msk.f32.mxu0 %vm39_vm0, %v20_v15 }
  0x12   :  { %314 = vmatprep.mubr.msk.f32.mxu1 %vm39_vm0, %v28_v16 }
  0x14   :  { %303 = vmatmul.mubr.msk.f32.gmra.mrb[6].mxu0 %vm39_vm0, %v21_v17 }
  0x15   :  { %315 = vmatmul.mubr.msk.f32.gmra.mrb[6].mxu1 %vm39_vm0, %v29_v18 }
  0xdb   :  { %v295_v20 = vpop.f32.mrb[0].mxu0 }
  0xdc   :  { %v307_v21 = vpop.f32.mrb[0].mxu1  ;;  %v160_v22 = vadd.f32 %v295_v20, %v254_v19  ;;  %v154_v24 = vpop.f32.mrb[1].mxu0 }
  0xdd   :  { %v200_v23 = vadd.f32 %v307_v21, %v254_v19  ;;  %v194_v25 = vpop.f32.mrb[1].mxu1  ;;  %v155_v26 = vadd.f32 %v254_v19, %v154_v24 }
  0xde   :  { %v195_v27 = vadd.f32 %v254_v19, %v194_v25  ;;  %235 = vst.msk [vmem:[%s483_s3 + $0x8] sm:$0xff] %vm233_vm1, %v160_v22 }
  0xdf   :  { %243 = vst.msk [vmem:[%s483_s3 + $0x48] sm:$0xff] %vm233_vm1, %v200_v23  ;;  %234 = vst.msk [vmem:[%s483_s3] sm:$0xff] %vm233_vm1, %v155_v26  ;;  %v298_v28 = vpop.f32.mrb[2].mxu0 }
  0xe0   :  { %242 = vst.msk [vmem:[%s483_s3 + $0x40] sm:$0xff] %vm233_vm1, %v195_v27  ;;  %v310_v29 = vpop.f32.mrb[2].mxu1  ;;  %v170_v30 = vadd.f32 %v298_v28, %v254_v19  ;;  %v164_v32 = vpop.f32.mrb[3].mxu0 }
  0xe1   :  { %v210_v31 = vadd.f32 %v310_v29, %v254_v19  ;;  %v204_v33 = vpop.f32.mrb[3].mxu1  ;;  %v165_v34 = vadd.f32 %v254_v19, %v164_v32 }
  0xe2   :  { %v205_v35 = vadd.f32 %v254_v19, %v204_v33  ;;  %237 = vst.msk [vmem:[%s483_s3 + $0x18] sm:$0xff] %vm233_vm1, %v170_v30 }
  0xe3   :  { %245 = vst.msk [vmem:[%s483_s3 + $0x58] sm:$0xff] %vm233_vm1, %v210_v31  ;;  %236 = vst.msk [vmem:[%s483_s3 + $0x10] sm:$0xff] %vm233_vm1, %v165_v34  ;;  %v301_v36 = vpop.f32.mrb[4].mxu0 }
  0xe4   :  { %244 = vst.msk [vmem:[%s483_s3 + $0x50] sm:$0xff] %vm233_vm1, %v205_v35  ;;  %v313_v37 = vpop.f32.mrb[4].mxu1  ;;  %v180_v38 = vadd.f32 %v301_v36, %v254_v19  ;;  %v174_v40 = vpop.f32.mrb[5].mxu0 }
  0xe5   :  { %v220_v39 = vadd.f32 %v313_v37, %v254_v19  ;;  %v214_v41 = vpop.f32.mrb[5].mxu1  ;;  %v175_v42 = vadd.f32 %v254_v19, %v174_v40 }
  0xe6   :  { %v215_v43 = vadd.f32 %v254_v19, %v214_v41  ;;  %239 = vst.msk [vmem:[%s483_s3 + $0x28] sm:$0xff] %vm233_vm1, %v180_v38 }
  0xe7   :  { %247 = vst.msk [vmem:[%s483_s3 + $0x68] sm:$0xff] %vm233_vm1, %v220_v39  ;;  %238 = vst.msk [vmem:[%s483_s3 + $0x20] sm:$0xff] %vm233_vm1, %v175_v42  ;;  %v304_v44 = vpop.f32.mrb[6].mxu0 }
  0xe8   :  { %246 = vst.msk [vmem:[%s483_s3 + $0x60] sm:$0xff] %vm233_vm1, %v215_v43  ;;  %v316_v45 = vpop.f32.mrb[6].mxu1  ;;  %v190_v46 = vadd.f32 %v304_v44, %v254_v19  ;;  %v184_v48 = vpop.f32.mrb[7].mxu0 }
  0xe9   :  { %v230_v47 = vadd.f32 %v316_v45, %v254_v19  ;;  %v224_v49 = vpop.f32.mrb[7].mxu1  ;;  %v185_v50 = vadd.f32 %v254_v19, %v184_v48 }
  0xea   :  { %v225_v51 = vadd.f32 %v254_v19, %v224_v49  ;;  %241 = vst.msk [vmem:[%s483_s3 + $0x38] sm:$0xff] %vm233_vm1, %v190_v46 }
  0xeb   :  { %249 = vst.msk [vmem:[%s483_s3 + $0x78] sm:$0xff] %vm233_vm1, %v230_v47  ;;  %240 = vst.msk [vmem:[%s483_s3 + $0x30] sm:$0xff] %vm233_vm1, %v185_v50 }
  0xec   :  { %248 = vst.msk [vmem:[%s483_s3 + $0x70] sm:$0xff] %vm233_vm1, %v225_v51 }

// kernel: _lambda_.30
= control target key start
LH: loop header
LB: loop body
LE: loop exit
PB: predicated region body
PF: predicated region fallthrough
CT: control target
= control target key end

     0   :  { %vm49_vm0 = vcmask 392192   ;;  %vm245_vm1 = vcmask 130048   ;;  %s1039_s1 = inlined_call_operand.vmem [shape: f32[48,16], index: 1, kind: input, shape index: {}]   ;;  %s1040_s0 = inlined_call_operand.vmem [shape: f32[128,48], index: 0, kind: input, shape index: {}]   ;;  %s1041_s2 = inlined_call_operand.vmem [shape: f32[1,16], index: 2, kind: input, shape index: {}, may-alias: {2,4}]   ;;  %s1042_s3 = inlined_call_operand.vmem [shape: f32[1,16], index: 3, kind: input, shape index: {}]   ;;  %s1043_s4 = inlined_call_operand.vmem [shape: f32[1,16], index: 4, kind: input, shape index: {}, may-alias: {2,4}]   ;;  %s1044_s5 = inlined_call_operand.vmem [shape: f32[128,16], index: 5, kind: output, shape index: {}]  }
   0x1   :  { %v36_v0 = vld [vmem:[%s1039_s1] sm:$0xff]  ;;  %v37_v1 = vld [vmem:[%s1039_s1 + $0x8] sm:$0xff]  ;;  %v38_v2 = vld [vmem:[%s1039_s1 + $0x10] sm:$0xff] }
   0x2   :  { %v596_v3 = vpack.c.bf16 %v37_v1, %v36_v0  ;;  %v39_v4 = vld [vmem:[%s1039_s1 + $0x18] sm:$0xff]  ;;  %v40_v6 = vld [vmem:[%s1039_s1 + $0x20] sm:$0xff]  ;;  %v41_v7 = vld [vmem:[%s1039_s1 + $0x28] sm:$0xff] }
   0x3   :  { %v600_v5 = vpack.c.bf16 %v39_v4, %v38_v2  ;;  %v20_v8 = vld [vmem:[%s1040_s0] sm:$0xff]  ;;  %v604_v10 = vpack.c.bf16 %v41_v7, %v40_v6  ;;  %v21_v11 = vld [vmem:[%s1040_s0 + $0x8] sm:$0xff]  ;;  %v22_v13 = vld [vmem:[%s1040_s0 + $0x10] sm:$0xff] }
   0x4   :  { %597 = vmatprep.subr.bf16.mxu0 %v596_v3  ;;  %608 = vmatprep.subr.bf16.mxu1 %v596_v3  ;;  %v28_v9 = vld [vmem:[%s1040_s0 + $0x40] sm:$0xff]  ;;  %v29_v12 = vld [vmem:[%s1040_s0 + $0x48] sm:$0xff]  ;;  %v30_v14 = vld [vmem:[%s1040_s0 + $0x50] sm:$0xff] }
   0x5   :  { %599 = vmatpush3.bf16.msra.mxu0 %v596_v3  ;;  %611 = vmatpush3.bf16.msra.mxu1 %v596_v3  ;;  %v23_v15 = vld [vmem:[%s1040_s0 + $0x18] sm:$0xff]  ;;  %v24_v17 = vld [vmem:[%s1040_s0 + $0x20] sm:$0xff]  ;;  %v25_v19 = vld [vmem:[%s1040_s0 + $0x28] sm:$0xff] }
   0x6   :  { %601 = vmatprep.subr.bf16.mxu0 %v600_v5  ;;  %609 = vmatprep.subr.bf16.mxu1 %v600_v5  ;;  %v31_v16 = vld [vmem:[%s1040_s0 + $0x58] sm:$0xff]  ;;  %v32_v18 = vld [vmem:[%s1040_s0 + $0x60] sm:$0xff]  ;;  %v33_v20 = vld [vmem:[%s1040_s0 + $0x68] sm:$0xff] }
   0x7   :  { %572 = vmatprep.mubr.msk.f32.mxu0 %vm49_vm0, %v20_v8  ;;  %584 = vmatprep.mubr.msk.f32.mxu1 %vm49_vm0, %v28_v9  ;;  %v26_v21 = vld [vmem:[%s1040_s0 + $0x30] sm:$0xff]  ;;  %v27_v23 = vld [vmem:[%s1040_s0 + $0x38] sm:$0xff]  ;;  %v519_v25 = vld [vmem:[%s1041_s2] ss:$0 sm:$0xff] }
   0x8   :  { %v34_v22 = vld [vmem:[%s1040_s0 + $0x70] sm:$0xff]  ;;  %v35_v24 = vld [vmem:[%s1040_s0 + $0x78] sm:$0xff] }
   0x9   :  { %603 = vmatpush3.bf16.msra.mxu0 %v600_v5  ;;  %612 = vmatpush3.bf16.msra.mxu1 %v600_v5 }
   0xa   :  { %605 = vmatprep.subr.bf16.mxu0 %v604_v10  ;;  %610 = vmatprep.subr.bf16.mxu1 %v604_v10 }
   0xd   :  { %607 = vmatpush3.bf16.msra.mxu0 %v604_v10  ;;  %613 = vmatpush3.bf16.msra.mxu1 %v604_v10 }
  0x10   :  { %573 = vmatmul.mubr.msk.f32.vlgmr.msra.gmra.mrb[0].mxu0 %vm49_vm0, %v21_v11  ;;  %585 = vmatmul.mubr.msk.f32.vlgmr.msra.gmra.mrb[0].mxu1 %vm49_vm0, %v29_v12 }
  0x11   :  { %575 = vmatprep.mubr.msk.f32.mxu0 %vm49_vm0, %v22_v13  ;;  %587 = vmatprep.mubr.msk.f32.mxu1 %vm49_vm0, %v30_v14 }
  0x14   :  { %576 = vmatmul.mubr.msk.f32.gmra.mrb[2].mxu0 %vm49_vm0, %v23_v15  ;;  %588 = vmatmul.mubr.msk.f32.gmra.mrb[2].mxu1 %vm49_vm0, %v31_v16 }
  0x15   :  { %578 = vmatprep.mubr.msk.f32.mxu0 %vm49_vm0, %v24_v17  ;;  %590 = vmatprep.mubr.msk.f32.mxu1 %vm49_vm0, %v32_v18 }
  0x18   :  { %579 = vmatmul.mubr.msk.f32.gmra.mrb[4].mxu0 %vm49_vm0, %v25_v19  ;;  %591 = vmatmul.mubr.msk.f32.gmra.mrb[4].mxu1 %vm49_vm0, %v33_v20 }
  0x19   :  { %581 = vmatprep.mubr.msk.f32.mxu0 %vm49_vm0, %v26_v21  ;;  %593 = vmatprep.mubr.msk.f32.mxu1 %vm49_vm0, %v34_v22 }
  0x1c   :  { %582 = vmatmul.mubr.msk.f32.gmra.mrb[6].mxu0 %vm49_vm0, %v27_v23  ;;  %594 = vmatmul.mubr.msk.f32.gmra.mrb[6].mxu1 %vm49_vm0, %v35_v24 }
  0xe3   :  { %v574_v26 = vpop.f32.mrb[0].mxu0  ;;  %v586_v27 = vpop.f32.mrb[0].mxu1 }
  0xe4   :  { %v761_v28 = vadd.f32 %v574_v26, %v519_v25  ;;  %v763_v29 = vadd.f32 %v586_v27, %v519_v25  ;;  %v164_v30 = vpop.f32.mrb[1].mxu0  ;;  %v204_v31 = vpop.f32.mrb[1].mxu1 }
  0xe5   :  { %v765_v32 = vadd.f32 %v519_v25, %v164_v30  ;;  %v773_v41 = vadd.f32 %v519_v25, %v204_v31 }
  0xe6   :  { %v273_v33 = vsel %vm245_vm1, %v763_v29, 0.0  ;;  %v249_v34 = vsel %vm245_vm1, %v761_v28, 0.0 }
  0xe7   :  { %274 = vadd.xlane.f32.xlu1 %v273_v33  ;;  %250 = vadd.xlane.f32.xlu0 %v249_v34  ;;  %v577_v35 = vpop.f32.mrb[2].mxu0  ;;  %v589_v36 = vpop.f32.mrb[2].mxu1  ;;  %v246_v43 = vsel %vm245_vm1, %v765_v32, 0.0  ;;  %v270_v51 = vsel %vm245_vm1, %v773_v41, 0.0 }
  0xe8   :  { %v180_v37 = vadd.f32 %v577_v35, %v519_v25  ;;  %v174_v38 = vpop.f32.mrb[3].mxu0  ;;  %v771_v39 = vadd.f32 %v589_v36, %v519_v25  ;;  %v214_v40 = vpop.f32.mrb[3].mxu1 }
  0xe9   :  { %v780_v49 = vadd.f32 %v519_v25, %v174_v38  ;;  %v782_v50 = vadd.f32 %v519_v25, %v214_v40 }
  0xea   :  { %v255_v42 = vsel %vm245_vm1, %v180_v37, 0.0  ;;  %v279_v46 = vsel %vm245_vm1, %v771_v39, 0.0 }
  0xeb   :  { %256 = vadd.xlane.f32.xlu1 %v255_v42  ;;  %247 = vadd.xlane.f32.xlu0 %v246_v43  ;;  %v580_v44 = vpop.f32.mrb[4].mxu0  ;;  %v592_v45 = vpop.f32.mrb[4].mxu1  ;;  %v252_v58 = vsel %vm245_vm1, %v780_v49, 0.0  ;;  %v276_v59 = vsel %vm245_vm1, %v782_v50, 0.0 }
  0xec   :  { %v184_v47 = vpop.f32.mrb[5].mxu0  ;;  %v224_v48 = vpop.f32.mrb[5].mxu1  ;;  %v786_v54 = vadd.f32 %v580_v44, %v519_v25  ;;  %v794_v60 = vadd.f32 %v592_v45, %v519_v25 }
  0xed   :  { %v788_v55 = vadd.f32 %v519_v25, %v184_v47  ;;  %v796_v61 = vadd.f32 %v519_v25, %v224_v48 }
  0xee   :  { %v261_v62 = vsel %vm245_vm1, %v786_v54, 0.0  ;;  %v285_v2 = vsel %vm245_vm1, %v794_v60, 0.0 }
  0xef   :  { %280 = vadd.xlane.f32.xlu1 %v279_v46  ;;  %271 = vadd.xlane.f32.xlu0 %v270_v51  ;;  %v583_v52 = vpop.f32.mrb[6].mxu0  ;;  %v595_v53 = vpop.f32.mrb[6].mxu1  ;;  %v258_v63 = vsel %vm245_vm1, %v788_v55, 0.0  ;;  %v282_v3 = vsel %vm245_vm1, %v796_v61, 0.0 }
  0xf0   :  { %v194_v56 = vpop.f32.mrb[7].mxu0  ;;  %v234_v57 = vpop.f32.mrb[7].mxu1  ;;  %v802_v0 = vadd.f32 %v583_v52, %v519_v25  ;;  %v810_v4 = vadd.f32 %v595_v53, %v519_v25 }
  0xf1   :  { %v804_v1 = vadd.f32 %v519_v25, %v194_v56  ;;  %v812_v5 = vadd.f32 %v519_v25, %v234_v57 }
  0xf2   :  { %v267_v6 = vsel %vm245_vm1, %v802_v0, 0.0  ;;  %v291_v8 = vsel %vm245_vm1, %v810_v4, 0.0 }
  0xf3   :  { %253 = vadd.xlane.f32.xlu1 %v252_v58  ;;  %277 = vadd.xlane.f32.xlu0 %v276_v59  ;;  %v264_v7 = vsel %vm245_vm1, %v804_v1, 0.0  ;;  %v288_v9 = vsel %vm245_vm1, %v812_v5, 0.0 }
  0xf7   :  { %262 = vadd.xlane.f32.xlu1 %v261_v62  ;;  %259 = vadd.xlane.f32.xlu0 %v258_v63 }
  0xfb   :  { %286 = vadd.xlane.f32.xlu1 %v285_v2  ;;  %283 = vadd.xlane.f32.xlu0 %v282_v3 }
  0xff   :  { %268 = vadd.xlane.f32.xlu1 %v267_v6  ;;  %265 = vadd.xlane.f32.xlu0 %v264_v7 }
 0x103   :  { %292 = vadd.xlane.f32.xlu1 %v291_v8  ;;  %289 = vadd.xlane.f32.xlu0 %v288_v9 }
 0x174   :  { %v275_v10 = vpop.xlane.xlu1 %274  ;;  %v251_v11 = vpop.xlane.xlu0 %250 }
 0x175   :  { %v304_v12 = vmul.f32 0.0625, %v275_v10  ;;  %v296_v13 = vmul.f32 0.0625, %v251_v11 }
 0x177   :  { %v823_v14 = vsub.f32 %v763_v29, %v304_v12  ;;  %v826_v15 = vsub.f32 %v761_v28, %v296_v13 }
 0x178   :  { %v257_v16 = vpop.xlane.xlu1 %256  ;;  %v248_v17 = vpop.xlane.xlu0 %247 }
 0x179   :  { %v298_v18 = vmul.f32 0.0625, %v257_v16  ;;  %v295_v19 = vmul.f32 0.0625, %v248_v17  ;;  %v328_v20 = vmul.f32 %v826_v15, %v826_v15  ;;  %v336_v24 = vmul.f32 %v823_v14, %v823_v14 }
 0x17b   :  { %v830_v21 = vsub.f32 %v180_v37, %v298_v18  ;;  %v833_v22 = vsub.f32 %v765_v32, %v295_v19  ;;  %v346_v23 = vsel %vm245_vm1, %v328_v20, 0.0  ;;  %v370_v33 = vsel %vm245_vm1, %v336_v24, 0.0 }
 0x17c   :  { %v281_v25 = vpop.xlane.xlu1 %280  ;;  %347 = vadd.xlane.f32.xlu1 %v346_v23  ;;  %v272_v26 = vpop.xlane.xlu0 %271 }
 0x17d   :  { %v306_v27 = vmul.f32 0.0625, %v281_v25  ;;  %v303_v28 = vmul.f32 0.0625, %v272_v26  ;;  %v327_v29 = vmul.f32 %v833_v22, %v833_v22  ;;  %v330_v30 = vmul.f32 %v830_v21, %v830_v21 }
 0x17f   :  { %v843_v31 = vsub.f32 %v771_v39, %v306_v27  ;;  %v846_v32 = vsub.f32 %v773_v41, %v303_v28  ;;  %v343_v34 = vsel %vm245_vm1, %v327_v29, 0.0  ;;  %v352_v42 = vsel %vm245_vm1, %v330_v30, 0.0 }
 0x180   :  { %371 = vadd.xlane.f32.xlu1 %v370_v33  ;;  %v254_v35 = vpop.xlane.xlu1 %253  ;;  %344 = vadd.xlane.f32.xlu0 %v343_v34  ;;  %v278_v36 = vpop.xlane.xlu0 %277 }
 0x181   :  { %v297_v37 = vmul.f32 0.0625, %v254_v35  ;;  %v305_v38 = vmul.f32 0.0625, %v278_v36  ;;  %v335_v40 = vmul.f32 %v846_v32, %v846_v32  ;;  %v338_v44 = vmul.f32 %v843_v31, %v843_v31 }
 0x183   :  { %v854_v39 = vsub.f32 %v780_v49, %v297_v37  ;;  %v857_v41 = vsub.f32 %v782_v50, %v305_v38  ;;  %v367_v43 = vsel %vm245_vm1, %v335_v40, 0.0  ;;  %v376_v53 = vsel %vm245_vm1, %v338_v44, 0.0 }
 0x184   :  { %353 = vadd.xlane.f32.xlu1 %v352_v42  ;;  %v263_v45 = vpop.xlane.xlu1 %262  ;;  %368 = vadd.xlane.f32.xlu0 %v367_v43  ;;  %v260_v46 = vpop.xlane.xlu0 %259 }
 0x185   :  { %v300_v47 = vmul.f32 0.0625, %v263_v45  ;;  %v299_v48 = vmul.f32 0.0625, %v260_v46  ;;  %v329_v51 = vmul.f32 %v854_v39, %v854_v39  ;;  %v337_v49 = vmul.f32 %v857_v41, %v857_v41 }
 0x187   :  { %v867_v50 = vsub.f32 %v786_v54, %v300_v47  ;;  %v870_v52 = vsub.f32 %v788_v55, %v299_v48  ;;  %v349_v56 = vsel %vm245_vm1, %v329_v51, 0.0  ;;  %v373_v2 = vsel %vm245_vm1, %v337_v49, 0.0 }
 0x188   :  { %377 = vadd.xlane.f32.xlu1 %v376_v53  ;;  %v287_v57 = vpop.xlane.xlu1 %286  ;;  %350 = vadd.xlane.f32.xlu0 %v349_v56  ;;  %v284_v58 = vpop.xlane.xlu0 %283 }
 0x189   :  { %v308_v59 = vmul.f32 0.0625, %v287_v57  ;;  %v307_v62 = vmul.f32 0.0625, %v284_v58  ;;  %v332_v63 = vmul.f32 %v867_v50, %v867_v50  ;;  %v331_v6 = vmul.f32 %v870_v52, %v870_v52  ;;  %v920_v58 = vld [vmem:[%s1042_s3] ss:$0 sm:$0xff] }
 0x18b   :  { %v878_v54 = vsub.f32 %v794_v60, %v308_v59  ;;  %v881_v55 = vsub.f32 %v796_v61, %v307_v62  ;;  %v358_v3 = vsel %vm245_vm1, %v332_v63, 0.0  ;;  %v355_v16 = vsel %vm245_vm1, %v331_v6, 0.0  ;;  %v926_v6 = vld [vmem:[%s1043_s4] ss:$0 sm:$0xff] }
 0x18c   :  { %359 = vadd.xlane.f32.xlu1 %v358_v3  ;;  %v269_v7 = vpop.xlane.xlu1 %268  ;;  %374 = vadd.xlane.f32.xlu0 %v373_v2  ;;  %v266_v8 = vpop.xlane.xlu0 %265 }
 0x18d   :  { %v302_v9 = vmul.f32 0.0625, %v269_v7  ;;  %v301_v10 = vmul.f32 0.0625, %v266_v8  ;;  %v340_v11 = vmul.f32 %v878_v54, %v878_v54  ;;  %v339_v60 = vmul.f32 %v881_v55, %v881_v55 }
 0x18f   :  { %v891_v61 = vsub.f32 %v802_v0, %v302_v9  ;;  %v894_v12 = vsub.f32 %v804_v1, %v301_v10  ;;  %v382_v13 = vsel %vm245_vm1, %v340_v11, 0.0  ;;  %v379_v24 = vsel %vm245_vm1, %v339_v60, 0.0 }
 0x190   :  { %383 = vadd.xlane.f32.xlu1 %v382_v13  ;;  %v293_v17 = vpop.xlane.xlu1 %292  ;;  %356 = vadd.xlane.f32.xlu0 %v355_v16  ;;  %v290_v18 = vpop.xlane.xlu0 %289 }
 0x191   :  { %v310_v19 = vmul.f32 0.0625, %v293_v17  ;;  %v309_v20 = vmul.f32 0.0625, %v290_v18  ;;  %v334_v23 = vmul.f32 %v891_v61, %v891_v61  ;;  %v333_v26 = vmul.f32 %v894_v12, %v894_v12 }
 0x193   :  { %v902_v0 = vsub.f32 %v810_v4, %v310_v19  ;;  %v905_v1 = vsub.f32 %v812_v5, %v309_v20  ;;  %v364_v25 = vsel %vm245_vm1, %v334_v23, 0.0  ;;  %v361_v29 = vsel %vm245_vm1, %v333_v26, 0.0 }
 0x194   :  { %365 = vadd.xlane.f32.xlu1 %v364_v25  ;;  %380 = vadd.xlane.f32.xlu0 %v379_v24 }
 0x195   :  { %v342_v27 = vmul.f32 %v902_v0, %v902_v0  ;;  %v341_v4 = vmul.f32 %v905_v1, %v905_v1 }
 0x197   :  { %v388_v28 = vsel %vm245_vm1, %v342_v27, 0.0  ;;  %v385_v5 = vsel %vm245_vm1, %v341_v4, 0.0 }
 0x198   :  { %389 = vadd.xlane.f32.xlu1 %v388_v28  ;;  %362 = vadd.xlane.f32.xlu0 %v361_v29 }
 0x19c   :  { %386 = vadd.xlane.f32.xlu0 %v385_v5 }
 0x209   :  { %v348_v30 = vpop.xlane.xlu1 %347 }
 0x20a   :  { %v392_v33 = vmul.f32 0.0625, %v348_v30 }
 0x20c   :  { %v408_v34 = vadd.f32 1e-05, %v392_v33 }
 0x20d   :  { %v372_v35 = vpop.xlane.xlu1 %371  ;;  %v345_v36 = vpop.xlane.xlu0 %344 }
 0x20e   :  { %614 = vrsqrt.f32 %v408_v34  ;;  %v400_v37 = vmul.f32 0.0625, %v372_v35  ;;  %v391_v38 = vmul.f32 0.0625, %v345_v36 }
 0x210   :  { %v416_v40 = vadd.f32 1e-05, %v400_v37  ;;  %v407_v42 = vadd.f32 1e-05, %v391_v38 }
 0x211   :  { %v354_v43 = vpop.xlane.xlu1 %353  ;;  %v369_v44 = vpop.xlane.xlu0 %368 }
 0x212   :  { %616 = vrsqrt.f32 %v416_v40  ;;  %v394_v45 = vmul.f32 0.0625, %v354_v43  ;;  %v399_v46 = vmul.f32 0.0625, %v369_v44 }
 0x213   :  { %618 = vrsqrt.f32 %v407_v42 }
 0x214   :  { %v410_v47 = vadd.f32 1e-05, %v394_v45  ;;  %v415_v48 = vadd.f32 1e-05, %v399_v46 }
 0x215   :  { %v378_v51 = vpop.xlane.xlu1 %377  ;;  %v351_v49 = vpop.xlane.xlu0 %350 }
 0x216   :  { %620 = vrsqrt.f32 %v410_v47  ;;  %v402_v53 = vmul.f32 0.0625, %v378_v51  ;;  %v393_v56 = vmul.f32 0.0625, %v351_v49 }
 0x217   :  { %622 = vrsqrt.f32 %v415_v48 }
 0x218   :  { %v615_v57 = vpop.eup %614  ;;  %v418_v59 = vadd.f32 1e-05, %v402_v53  ;;  %v409_v62 = vadd.f32 1e-05, %v393_v56 }
 0x219   :  { %v440_v63 = vmul.f32 %v615_v57, %v826_v15  ;;  %v360_v2 = vpop.xlane.xlu1 %359  ;;  %v375_v3 = vpop.xlane.xlu0 %374 }
 0x21a   :  { %624 = vrsqrt.f32 %v418_v59  ;;  %v396_v7 = vmul.f32 0.0625, %v360_v2  ;;  %v401_v8 = vmul.f32 0.0625, %v375_v3 }
 0x21b   :  { %v462_v9 = vmul.f32 %v920_v58, %v440_v63  ;;  %626 = vrsqrt.f32 %v409_v62 }
 0x21c   :  { %v617_v10 = vpop.eup %616  ;;  %v412_v11 = vadd.f32 1e-05, %v396_v7  ;;  %v417_v60 = vadd.f32 1e-05, %v401_v8 }
 0x21d   :  { %v619_v13 = vpop.eup %618  ;;  %v484_v16 = vadd.f32 %v926_v6, %v462_v9  ;;  %v448_v15 = vmul.f32 %v617_v10, %v823_v14  ;;  %v384_v17 = vpop.xlane.xlu1 %383 }
 0x21e   :  { %v357_v18 = vpop.xlane.xlu0 %356  ;;  %v439_v19 = vmul.f32 %v619_v13, %v833_v22  ;;  %628 = vrsqrt.f32 %v412_v11  ;;  %v404_v20 = vmul.f32 0.0625, %v384_v17 }
 0x21f   :  { %v395_v23 = vmul.f32 0.0625, %v357_v18  ;;  %500 = vst.msk [vmem:[%s1044_s5 + $0x8] sm:$0xff] %vm245_vm1, %v484_v16  ;;  %v470_v24 = vmul.f32 %v920_v58, %v448_v15  ;;  %630 = vrsqrt.f32 %v417_v60 }
 0x220   :  { %v621_v25 = vpop.eup %620  ;;  %v461_v26 = vmul.f32 %v920_v58, %v439_v19  ;;  %v420_v27 = vadd.f32 1e-05, %v404_v20 }
 0x221   :  { %v411_v14 = vadd.f32 1e-05, %v395_v23  ;;  %v623_v28 = vpop.eup %622  ;;  %v492_v29 = vadd.f32 %v926_v6, %v470_v24  ;;  %v442_v22 = vmul.f32 %v621_v25, %v830_v21  ;;  %v366_v4 = vpop.xlane.xlu1 %365 }
 0x222   :  { %v381_v5 = vpop.xlane.xlu0 %380  ;;  %v483_v30 = vadd.f32 %v926_v6, %v461_v26  ;;  %v447_v33 = vmul.f32 %v623_v28, %v846_v32  ;;  %632 = vrsqrt.f32 %v420_v27  ;;  %v398_v34 = vmul.f32 0.0625, %v366_v4 }
 0x223   :  { %508 = vst.msk [vmem:[%s1044_s5 + $0x48] sm:$0xff] %vm245_vm1, %v492_v29  ;;  %v464_v35 = vmul.f32 %v920_v58, %v442_v22  ;;  %634 = vrsqrt.f32 %v411_v14  ;;  %v403_v36 = vmul.f32 0.0625, %v381_v5 }
 0x224   :  { %v625_v37 = vpop.eup %624  ;;  %499 = vst.msk [vmem:[%s1044_s5] sm:$0xff] %vm245_vm1, %v483_v30  ;;  %v469_v21 = vmul.f32 %v920_v58, %v447_v33  ;;  %v414_v32 = vadd.f32 1e-05, %v398_v34 }
 0x225   :  { %v627_v38 = vpop.eup %626  ;;  %v486_v40 = vadd.f32 %v926_v6, %v464_v35  ;;  %v450_v42 = vmul.f32 %v625_v37, %v843_v31  ;;  %v419_v43 = vadd.f32 1e-05, %v403_v36  ;;  %v390_v44 = vpop.xlane.xlu1 %389 }
 0x226   :  { %v363_v45 = vpop.xlane.xlu0 %362  ;;  %v491_v46 = vadd.f32 %v926_v6, %v469_v21  ;;  %v441_v47 = vmul.f32 %v627_v38, %v854_v39  ;;  %636 = vrsqrt.f32 %v414_v32  ;;  %v406_v48 = vmul.f32 0.0625, %v390_v44 }
 0x227   :  { %502 = vst.msk [vmem:[%s1044_s5 + $0x18] sm:$0xff] %vm245_vm1, %v486_v40  ;;  %v472_v51 = vmul.f32 %v920_v58, %v450_v42  ;;  %638 = vrsqrt.f32 %v419_v43  ;;  %v397_v49 = vmul.f32 0.0625, %v363_v45 }
 0x228   :  { %v629_v53 = vpop.eup %628  ;;  %507 = vst.msk [vmem:[%s1044_s5 + $0x40] sm:$0xff] %vm245_vm1, %v491_v46  ;;  %v463_v31 = vmul.f32 %v920_v58, %v441_v47  ;;  %v422_v39 = vadd.f32 1e-05, %v406_v48 }
 0x229   :  { %v631_v56 = vpop.eup %630  ;;  %v494_v57 = vadd.f32 %v926_v6, %v472_v51  ;;  %v444_v59 = vmul.f32 %v629_v53, %v867_v50  ;;  %v413_v62 = vadd.f32 1e-05, %v397_v49 }
 0x22a   :  { %v387_v63 = vpop.xlane.xlu0 %386  ;;  %v485_v2 = vadd.f32 %v926_v6, %v463_v31  ;;  %v449_v3 = vmul.f32 %v631_v56, %v857_v41  ;;  %640 = vrsqrt.f32 %v422_v39 }
 0x22b   :  { %v405_v7 = vmul.f32 0.0625, %v387_v63  ;;  %510 = vst.msk [vmem:[%s1044_s5 + $0x58] sm:$0xff] %vm245_vm1, %v494_v57  ;;  %v466_v8 = vmul.f32 %v920_v58, %v444_v59  ;;  %642 = vrsqrt.f32 %v413_v62 }
 0x22c   :  { %v633_v9 = vpop.eup %632  ;;  %501 = vst.msk [vmem:[%s1044_s5 + $0x10] sm:$0xff] %vm245_vm1, %v485_v2  ;;  %v471_v50 = vmul.f32 %v920_v58, %v449_v3 }
 0x22d   :  { %v421_v10 = vadd.f32 1e-05, %v405_v7  ;;  %v635_v41 = vpop.eup %634  ;;  %v488_v11 = vadd.f32 %v926_v6, %v466_v8  ;;  %v452_v60 = vmul.f32 %v633_v9, %v878_v54 }
 0x22e   :  { %v493_v13 = vadd.f32 %v926_v6, %v471_v50  ;;  %v443_v16 = vmul.f32 %v635_v41, %v870_v52 }
 0x22f   :  { %644 = vrsqrt.f32 %v421_v10  ;;  %504 = vst.msk [vmem:[%s1044_s5 + $0x28] sm:$0xff] %vm245_vm1, %v488_v11  ;;  %v474_v15 = vmul.f32 %v920_v58, %v452_v60 }
 0x230   :  { %v637_v17 = vpop.eup %636  ;;  %509 = vst.msk [vmem:[%s1044_s5 + $0x50] sm:$0xff] %vm245_vm1, %v493_v13  ;;  %v465_v54 = vmul.f32 %v920_v58, %v443_v16 }
 0x231   :  { %v639_v18 = vpop.eup %638  ;;  %v496_v19 = vadd.f32 %v926_v6, %v474_v15  ;;  %v446_v52 = vmul.f32 %v637_v17, %v891_v61 }
 0x232   :  { %v487_v20 = vadd.f32 %v926_v6, %v465_v54  ;;  %v451_v23 = vmul.f32 %v639_v18, %v881_v55 }
 0x233   :  { %512 = vst.msk [vmem:[%s1044_s5 + $0x68] sm:$0xff] %vm245_vm1, %v496_v19  ;;  %v468_v24 = vmul.f32 %v920_v58, %v446_v52 }
 0x234   :  { %v641_v25 = vpop.eup %640  ;;  %503 = vst.msk [vmem:[%s1044_s5 + $0x20] sm:$0xff] %vm245_vm1, %v487_v20  ;;  %v473_v26 = vmul.f32 %v920_v58, %v451_v23 }
 0x235   :  { %v643_v61 = vpop.eup %642  ;;  %v490_v27 = vadd.f32 %v926_v6, %v468_v24  ;;  %v454_v55 = vmul.f32 %v641_v25, %v902_v0 }
 0x236   :  { %v495_v14 = vadd.f32 %v926_v6, %v473_v26  ;;  %v445_v28 = vmul.f32 %v643_v61, %v894_v12 }
 0x237   :  { %506 = vst.msk [vmem:[%s1044_s5 + $0x38] sm:$0xff] %vm245_vm1, %v490_v27  ;;  %v476_v29 = vmul.f32 %v920_v58, %v454_v55 }
 0x238   :  { %511 = vst.msk [vmem:[%s1044_s5 + $0x60] sm:$0xff] %vm245_vm1, %v495_v14  ;;  %v467_v4 = vmul.f32 %v920_v58, %v445_v28 }
 0x239   :  { %v645_v22 = vpop.eup %644  ;;  %v498_v0 = vadd.f32 %v926_v6, %v476_v29 }
 0x23a   :  { %v453_v5 = vmul.f32 %v645_v22, %v905_v1  ;;  %v489_v12 = vadd.f32 %v926_v6, %v467_v4 }
 0x23b   :  { %514 = vst.msk [vmem:[%s1044_s5 + $0x78] sm:$0xff] %vm245_vm1, %v498_v0 }
 0x23c   :  { %v475_v30 = vmul.f32 %v920_v58, %v453_v5  ;;  %505 = vst.msk [vmem:[%s1044_s5 + $0x30] sm:$0xff] %vm245_vm1, %v489_v12 }
 0x23e   :  { %v497_v33 = vadd.f32 %v926_v6, %v475_v30 }
 0x240   :  { %513 = vst.msk [vmem:[%s1044_s5 + $0x70] sm:$0xff] %vm245_vm1, %v497_v33 }

// kernel: _lambda_.33
= control target key start
LH: loop header
LB: loop body
LE: loop exit
PB: predicated region body
PF: predicated region fallthrough
CT: control target
= control target key end

     0   :  { %vm48_vm0 = vcmask 130048   ;;  %s1086_s2 = inlined_call_operand.vmem [shape: f32[16,16], index: 2, kind: input, shape index: {}]   ;;  %s1087_s0 = inlined_call_operand.vmem [shape: f32[128,16], index: 0, kind: input, shape index: {}]   ;;  %s1088_s3 = inlined_call_operand.vmem [shape: f32[1,16], index: 3, kind: input, shape index: {}, may-alias: {3,5}]   ;;  %s1089_s4 = inlined_call_operand.vmem [shape: f32[1,16], index: 4, kind: input, shape index: {}]   ;;  %s1090_s5 = inlined_call_operand.vmem [shape: f32[1,16], index: 5, kind: input, shape index: {}, may-alias: {3,5}]   ;;  %s1091_s1 = inlined_call_operand.vmem [shape: f32[128,16], index: 1, kind: input, shape index: {}]   ;;  %s1092_s6 = inlined_call_operand.vmem [shape: f32[128,16], index: 6, kind: output, shape index: {}]  }
   0x1   :  { %v39_v0 = vld [vmem:[%s1086_s2] sm:$0xff]  ;;  %v40_v1 = vld [vmem:[%s1086_s2 + $0x8] sm:$0xff]  ;;  %v25_v7 = vld [vmem:[%s1087_s0 + $0x10] sm:$0xff] }
   0x2   :  { %v23_v2 = vld [vmem:[%s1087_s0] sm:$0xff]  ;;  %v614_v3 = vpack.c.bf16 %v40_v1, %v39_v0  ;;  %v24_v5 = vld [vmem:[%s1087_s0 + $0x8] sm:$0xff]  ;;  %v33_v8 = vld [vmem:[%s1087_s0 + $0x50] sm:$0xff] }
   0x3   :  { %590 = vmatprep.mubr.msk.f32.mxu0 %vm48_vm0, %v23_v2  ;;  %v31_v4 = vld [vmem:[%s1087_s0 + $0x40] sm:$0xff]  ;;  %v32_v6 = vld [vmem:[%s1087_s0 + $0x48] sm:$0xff]  ;;  %v26_v9 = vld [vmem:[%s1087_s0 + $0x18] sm:$0xff] }
   0x4   :  { %602 = vmatprep.mubr.msk.f32.mxu1 %vm48_vm0, %v31_v4  ;;  %615 = vmatprep.subr.bf16.mxu0 %v614_v3  ;;  %v34_v10 = vld [vmem:[%s1087_s0 + $0x58] sm:$0xff]  ;;  %v27_v11 = vld [vmem:[%s1087_s0 + $0x20] sm:$0xff]  ;;  %v28_v13 = vld [vmem:[%s1087_s0 + $0x28] sm:$0xff] }
   0x5   :  { %618 = vmatprep.subr.bf16.mxu1 %v614_v3  ;;  %617 = vmatpush3.bf16.msra.mxu0 %v614_v3  ;;  %v35_v12 = vld [vmem:[%s1087_s0 + $0x60] sm:$0xff]  ;;  %v36_v14 = vld [vmem:[%s1087_s0 + $0x68] sm:$0xff]  ;;  %v29_v15 = vld [vmem:[%s1087_s0 + $0x30] sm:$0xff] }
   0x6   :  { %619 = vmatpush3.bf16.msra.mxu1 %v614_v3  ;;  %v37_v16 = vld [vmem:[%s1087_s0 + $0x70] sm:$0xff]  ;;  %v30_v17 = vld [vmem:[%s1087_s0 + $0x38] sm:$0xff]  ;;  %v549_v19 = vld [vmem:[%s1088_s3] ss:$0 sm:$0xff] }
   0x7   :  { %v38_v18 = vld [vmem:[%s1087_s0 + $0x78] sm:$0xff] }
   0x8   :  { %591 = vmatmul.mubr.msk.f32.vlgmr.msra.gmra.mrb[0].mxu0 %vm48_vm0, %v24_v5 }
   0x9   :  { %603 = vmatmul.mubr.msk.f32.vlgmr.msra.gmra.mrb[0].mxu1 %vm48_vm0, %v32_v6  ;;  %593 = vmatprep.mubr.msk.f32.mxu0 %vm48_vm0, %v25_v7 }
   0xa   :  { %605 = vmatprep.mubr.msk.f32.mxu1 %vm48_vm0, %v33_v8 }
   0xc   :  { %594 = vmatmul.mubr.msk.f32.gmra.mrb[2].mxu0 %vm48_vm0, %v26_v9 }
   0xd   :  { %606 = vmatmul.mubr.msk.f32.gmra.mrb[2].mxu1 %vm48_vm0, %v34_v10  ;;  %596 = vmatprep.mubr.msk.f32.mxu0 %vm48_vm0, %v27_v11 }
   0xe   :  { %608 = vmatprep.mubr.msk.f32.mxu1 %vm48_vm0, %v35_v12 }
  0x10   :  { %597 = vmatmul.mubr.msk.f32.gmra.mrb[4].mxu0 %vm48_vm0, %v28_v13 }
  0x11   :  { %609 = vmatmul.mubr.msk.f32.gmra.mrb[4].mxu1 %vm48_vm0, %v36_v14  ;;  %599 = vmatprep.mubr.msk.f32.mxu0 %vm48_vm0, %v29_v15 }
  0x12   :  { %611 = vmatprep.mubr.msk.f32.mxu1 %vm48_vm0, %v37_v16 }
  0x14   :  { %600 = vmatmul.mubr.msk.f32.gmra.mrb[6].mxu0 %vm48_vm0, %v30_v17 }
  0x15   :  { %612 = vmatmul.mubr.msk.f32.gmra.mrb[6].mxu1 %vm48_vm0, %v38_v18 }
  0xdb   :  { %v592_v20 = vpop.f32.mrb[0].mxu0 }
  0xdc   :  { %v604_v21 = vpop.f32.mrb[0].mxu1  ;;  %v760_v22 = vadd.f32 %v592_v20, %v549_v19  ;;  %v163_v24 = vpop.f32.mrb[1].mxu0 }
  0xdd   :  { %v762_v23 = vadd.f32 %v604_v21, %v549_v19  ;;  %v203_v25 = vpop.f32.mrb[1].mxu1  ;;  %v764_v26 = vadd.f32 %v549_v19, %v163_v24 }
  0xde   :  { %v247_v28 = vsel %vm48_vm0, %v760_v22, 0.0  ;;  %v772_v35 = vadd.f32 %v549_v19, %v203_v25 }
  0xdf   :  { %v271_v27 = vsel %vm48_vm0, %v762_v23, 0.0  ;;  %248 = vadd.xlane.f32.xlu0 %v247_v28  ;;  %v595_v29 = vpop.f32.mrb[2].mxu0  ;;  %v244_v37 = vsel %vm48_vm0, %v764_v26, 0.0 }
  0xe0   :  { %272 = vadd.xlane.f32.xlu1 %v271_v27  ;;  %v607_v30 = vpop.f32.mrb[2].mxu1  ;;  %v179_v31 = vadd.f32 %v595_v29, %v549_v19  ;;  %v173_v32 = vpop.f32.mrb[3].mxu0  ;;  %v268_v45 = vsel %vm48_vm0, %v772_v35, 0.0 }
  0xe1   :  { %v770_v33 = vadd.f32 %v607_v30, %v549_v19  ;;  %v213_v34 = vpop.f32.mrb[3].mxu1  ;;  %v779_v43 = vadd.f32 %v549_v19, %v173_v32 }
  0xe2   :  { %v253_v36 = vsel %vm48_vm0, %v179_v31, 0.0  ;;  %v781_v44 = vadd.f32 %v549_v19, %v213_v34 }
  0xe3   :  { %245 = vadd.xlane.f32.xlu0 %v244_v37  ;;  %v598_v38 = vpop.f32.mrb[4].mxu0  ;;  %v277_v40 = vsel %vm48_vm0, %v770_v33, 0.0  ;;  %v250_v52 = vsel %vm48_vm0, %v779_v43, 0.0 }
  0xe4   :  { %254 = vadd.xlane.f32.xlu1 %v253_v36  ;;  %v610_v39 = vpop.f32.mrb[4].mxu1  ;;  %v183_v41 = vpop.f32.mrb[5].mxu0  ;;  %v785_v48 = vadd.f32 %v598_v38, %v549_v19  ;;  %v274_v53 = vsel %vm48_vm0, %v781_v44, 0.0 }
  0xe5   :  { %v223_v42 = vpop.f32.mrb[5].mxu1  ;;  %v787_v49 = vadd.f32 %v549_v19, %v183_v41  ;;  %v793_v54 = vadd.f32 %v610_v39, %v549_v19 }
  0xe6   :  { %v795_v55 = vadd.f32 %v549_v19, %v223_v42  ;;  %v259_v56 = vsel %vm48_vm0, %v785_v48, 0.0 }
  0xe7   :  { %269 = vadd.xlane.f32.xlu0 %v268_v45  ;;  %v601_v46 = vpop.f32.mrb[6].mxu0  ;;  %v256_v57 = vsel %vm48_vm0, %v787_v49, 0.0  ;;  %v283_v60 = vsel %vm48_vm0, %v793_v54, 0.0 }
  0xe8   :  { %278 = vadd.xlane.f32.xlu1 %v277_v40  ;;  %v613_v47 = vpop.f32.mrb[6].mxu1  ;;  %v193_v50 = vpop.f32.mrb[7].mxu0  ;;  %v801_v58 = vadd.f32 %v601_v46, %v549_v19  ;;  %v280_v61 = vsel %vm48_vm0, %v795_v55, 0.0 }
  0xe9   :  { %v233_v51 = vpop.f32.mrb[7].mxu1  ;;  %v803_v59 = vadd.f32 %v549_v19, %v193_v50  ;;  %v809_v62 = vadd.f32 %v613_v47, %v549_v19 }
  0xea   :  { %v811_v63 = vadd.f32 %v549_v19, %v233_v51  ;;  %v265_v0 = vsel %vm48_vm0, %v801_v58, 0.0 }
  0xeb   :  { %275 = vadd.xlane.f32.xlu0 %v274_v53  ;;  %v262_v1 = vsel %vm48_vm0, %v803_v59, 0.0  ;;  %v289_v2 = vsel %vm48_vm0, %v809_v62, 0.0 }
  0xec   :  { %251 = vadd.xlane.f32.xlu1 %v250_v52  ;;  %v286_v3 = vsel %vm48_vm0, %v811_v63, 0.0 }
  0xef   :  { %257 = vadd.xlane.f32.xlu0 %v256_v57 }
  0xf0   :  { %260 = vadd.xlane.f32.xlu1 %v259_v56 }
  0xf3   :  { %281 = vadd.xlane.f32.xlu0 %v280_v61 }
  0xf4   :  { %284 = vadd.xlane.f32.xlu1 %v283_v60 }
  0xf7   :  { %263 = vadd.xlane.f32.xlu0 %v262_v1 }
  0xf8   :  { %266 = vadd.xlane.f32.xlu1 %v265_v0 }
  0xfb   :  { %287 = vadd.xlane.f32.xlu0 %v286_v3 }
  0xfc   :  { %290 = vadd.xlane.f32.xlu1 %v289_v2 }
 0x16c   :  { %v249_v5 = vpop.xlane.xlu0 %248 }
 0x16d   :  { %v273_v4 = vpop.xlane.xlu1 %272  ;;  %v294_v7 = vmul.f32 0.0625, %v249_v5 }
 0x16e   :  { %v302_v6 = vmul.f32 0.0625, %v273_v4 }
 0x16f   :  { %v825_v9 = vsub.f32 %v760_v22, %v294_v7 }
 0x170   :  { %v822_v8 = vsub.f32 %v762_v23, %v302_v6  ;;  %v246_v11 = vpop.xlane.xlu0 %245 }
 0x171   :  { %v255_v10 = vpop.xlane.xlu1 %254  ;;  %v293_v13 = vmul.f32 0.0625, %v246_v11  ;;  %v326_v14 = vmul.f32 %v825_v9, %v825_v9 }
 0x172   :  { %v296_v12 = vmul.f32 0.0625, %v255_v10  ;;  %v334_v18 = vmul.f32 %v822_v8, %v822_v8 }
 0x173   :  { %v832_v16 = vsub.f32 %v764_v26, %v293_v13  ;;  %v344_v17 = vsel %vm48_vm0, %v326_v14, 0.0 }
 0x174   :  { %v829_v15 = vsub.f32 %v179_v31, %v296_v12  ;;  %345 = vadd.xlane.f32.xlu1 %v344_v17  ;;  %v270_v20 = vpop.xlane.xlu0 %269  ;;  %v368_v27 = vsel %vm48_vm0, %v334_v18, 0.0 }
 0x175   :  { %v279_v19 = vpop.xlane.xlu1 %278  ;;  %v301_v22 = vmul.f32 0.0625, %v270_v20  ;;  %v325_v23 = vmul.f32 %v832_v16, %v832_v16 }
 0x176   :  { %v304_v21 = vmul.f32 0.0625, %v279_v19  ;;  %v328_v24 = vmul.f32 %v829_v15, %v829_v15 }
 0x177   :  { %v845_v26 = vsub.f32 %v772_v35, %v301_v22  ;;  %v341_v28 = vsel %vm48_vm0, %v325_v23, 0.0 }
 0x178   :  { %v842_v25 = vsub.f32 %v770_v33, %v304_v21  ;;  %369 = vadd.xlane.f32.xlu1 %v368_v27  ;;  %342 = vadd.xlane.f32.xlu0 %v341_v28  ;;  %v276_v30 = vpop.xlane.xlu0 %275  ;;  %v350_v36 = vsel %vm48_vm0, %v328_v24, 0.0 }
 0x179   :  { %v252_v29 = vpop.xlane.xlu1 %251  ;;  %v303_v32 = vmul.f32 0.0625, %v276_v30  ;;  %v333_v34 = vmul.f32 %v845_v26, %v845_v26 }
 0x17a   :  { %v295_v31 = vmul.f32 0.0625, %v252_v29  ;;  %v336_v38 = vmul.f32 %v842_v25, %v842_v25 }
 0x17b   :  { %v856_v35 = vsub.f32 %v781_v44, %v303_v32  ;;  %v365_v37 = vsel %vm48_vm0, %v333_v34, 0.0 }
 0x17c   :  { %v853_v33 = vsub.f32 %v779_v43, %v295_v31  ;;  %351 = vadd.xlane.f32.xlu1 %v350_v36  ;;  %366 = vadd.xlane.f32.xlu0 %v365_v37  ;;  %v258_v40 = vpop.xlane.xlu0 %257  ;;  %v374_v47 = vsel %vm48_vm0, %v336_v38, 0.0 }
 0x17d   :  { %v261_v39 = vpop.xlane.xlu1 %260  ;;  %v297_v42 = vmul.f32 0.0625, %v258_v40  ;;  %v335_v43 = vmul.f32 %v856_v35, %v856_v35 }
 0x17e   :  { %v298_v41 = vmul.f32 0.0625, %v261_v39  ;;  %v327_v45 = vmul.f32 %v853_v33, %v853_v33 }
 0x17f   :  { %v869_v46 = vsub.f32 %v787_v49, %v297_v42  ;;  %v371_v60 = vsel %vm48_vm0, %v335_v43, 0.0 }
 0x180   :  { %v866_v44 = vsub.f32 %v785_v48, %v298_v41  ;;  %v347_v50 = vsel %vm48_vm0, %v327_v45, 0.0  ;;  %375 = vadd.xlane.f32.xlu1 %v374_v47  ;;  %v282_v52 = vpop.xlane.xlu0 %281 }
 0x181   :  { %v285_v51 = vpop.xlane.xlu1 %284  ;;  %348 = vadd.xlane.f32.xlu0 %v347_v50  ;;  %v305_v56 = vmul.f32 0.0625, %v282_v52  ;;  %v329_v0 = vmul.f32 %v869_v46, %v869_v46  ;;  %v919_v52 = vld [vmem:[%s1089_s4] ss:$0 sm:$0xff] }
 0x182   :  { %v306_v53 = vmul.f32 0.0625, %v285_v51  ;;  %v330_v57 = vmul.f32 %v866_v44, %v866_v44 }
 0x183   :  { %v880_v49 = vsub.f32 %v795_v55, %v305_v56  ;;  %v353_v10 = vsel %vm48_vm0, %v329_v0, 0.0  ;;  %v925_v0 = vld [vmem:[%s1090_s5] ss:$0 sm:$0xff] }
 0x184   :  { %v877_v48 = vsub.f32 %v793_v54, %v306_v53  ;;  %v356_v61 = vsel %vm48_vm0, %v330_v57, 0.0  ;;  %v264_v2 = vpop.xlane.xlu0 %263 }
 0x185   :  { %357 = vadd.xlane.f32.xlu1 %v356_v61  ;;  %v267_v1 = vpop.xlane.xlu1 %266  ;;  %372 = vadd.xlane.f32.xlu0 %v371_v60  ;;  %v299_v4 = vmul.f32 0.0625, %v264_v2  ;;  %v337_v54 = vmul.f32 %v880_v49, %v880_v49 }
 0x186   :  { %v300_v3 = vmul.f32 0.0625, %v267_v1  ;;  %v338_v5 = vmul.f32 %v877_v48, %v877_v48 }
 0x187   :  { %v893_v6 = vsub.f32 %v803_v59, %v299_v4  ;;  %v377_v18 = vsel %vm48_vm0, %v337_v54, 0.0 }
 0x188   :  { %v890_v55 = vsub.f32 %v801_v58, %v300_v3  ;;  %v380_v7 = vsel %vm48_vm0, %v338_v5, 0.0  ;;  %v288_v12 = vpop.xlane.xlu0 %287  ;;  %v498_v5 = vld [vmem:[%s1091_s1 + $0x8] sm:$0xff] }
 0x189   :  { %381 = vadd.xlane.f32.xlu1 %v380_v7  ;;  %v291_v11 = vpop.xlane.xlu1 %290  ;;  %354 = vadd.xlane.f32.xlu0 %v353_v10  ;;  %v307_v14 = vmul.f32 0.0625, %v288_v12  ;;  %v331_v20 = vmul.f32 %v893_v6, %v893_v6 }
 0x18a   :  { %v308_v13 = vmul.f32 0.0625, %v291_v11  ;;  %v332_v17 = vmul.f32 %v890_v55, %v890_v55 }
 0x18b   :  { %v904_v59 = vsub.f32 %v811_v63, %v307_v14  ;;  %v359_v23 = vsel %vm48_vm0, %v331_v20, 0.0 }
 0x18c   :  { %v901_v58 = vsub.f32 %v809_v62, %v308_v13  ;;  %v362_v19 = vsel %vm48_vm0, %v332_v17, 0.0 }
 0x18d   :  { %363 = vadd.xlane.f32.xlu1 %v362_v19  ;;  %378 = vadd.xlane.f32.xlu0 %v377_v18  ;;  %v339_v62 = vmul.f32 %v904_v59, %v904_v59 }
 0x18e   :  { %v340_v21 = vmul.f32 %v901_v58, %v901_v58 }
 0x18f   :  { %v383_v63 = vsel %vm48_vm0, %v339_v62, 0.0 }
 0x190   :  { %v386_v22 = vsel %vm48_vm0, %v340_v21, 0.0 }
 0x191   :  { %387 = vadd.xlane.f32.xlu1 %v386_v22  ;;  %360 = vadd.xlane.f32.xlu0 %v359_v23  ;;  %v506_v22 = vld [vmem:[%s1091_s1 + $0x48] sm:$0xff] }
 0x195   :  { %384 = vadd.xlane.f32.xlu0 %v383_v63 }
 0x201   :  { %v346_v24 = vpop.xlane.xlu1 %345 }
 0x202   :  { %v390_v27 = vmul.f32 0.0625, %v346_v24  ;;  %v497_v24 = vld [vmem:[%s1091_s1] sm:$0xff] }
 0x204   :  { %v406_v28 = vadd.f32 1e-05, %v390_v27 }
 0x205   :  { %v370_v29 = vpop.xlane.xlu1 %369  ;;  %v343_v30 = vpop.xlane.xlu0 %342 }
 0x206   :  { %620 = vrsqrt.f32 %v406_v28  ;;  %v398_v31 = vmul.f32 0.0625, %v370_v29  ;;  %v389_v32 = vmul.f32 0.0625, %v343_v30 }
 0x208   :  { %v414_v34 = vadd.f32 1e-05, %v398_v31  ;;  %v405_v36 = vadd.f32 1e-05, %v389_v32 }
 0x209   :  { %v352_v37 = vpop.xlane.xlu1 %351  ;;  %v367_v38 = vpop.xlane.xlu0 %366 }
 0x20a   :  { %622 = vrsqrt.f32 %v414_v34  ;;  %v392_v39 = vmul.f32 0.0625, %v352_v37  ;;  %v397_v40 = vmul.f32 0.0625, %v367_v38 }
 0x20b   :  { %624 = vrsqrt.f32 %v405_v36 }
 0x20c   :  { %v408_v41 = vadd.f32 1e-05, %v392_v39  ;;  %v413_v42 = vadd.f32 1e-05, %v397_v40  ;;  %v500_v40 = vld [vmem:[%s1091_s1 + $0x18] sm:$0xff] }
 0x20d   :  { %v376_v45 = vpop.xlane.xlu1 %375 }
 0x20e   :  { %v349_v43 = vpop.xlane.xlu0 %348  ;;  %626 = vrsqrt.f32 %v408_v41  ;;  %v400_v47 = vmul.f32 0.0625, %v376_v45  ;;  %v505_v45 = vld [vmem:[%s1091_s1 + $0x40] sm:$0xff] }
 0x20f   :  { %v391_v50 = vmul.f32 0.0625, %v349_v43  ;;  %628 = vrsqrt.f32 %v413_v42 }
 0x210   :  { %v621_v51 = vpop.eup %620  ;;  %v416_v53 = vadd.f32 1e-05, %v400_v47 }
 0x211   :  { %v407_v56 = vadd.f32 1e-05, %v391_v50  ;;  %v438_v57 = vmul.f32 %v621_v51, %v825_v9 }
 0x212   :  { %v358_v60 = vpop.xlane.xlu1 %357  ;;  %v373_v61 = vpop.xlane.xlu0 %372  ;;  %630 = vrsqrt.f32 %v416_v53 }
 0x213   :  { %v394_v1 = vmul.f32 0.0625, %v358_v60  ;;  %v399_v2 = vmul.f32 0.0625, %v373_v61  ;;  %v460_v3 = vmul.f32 %v919_v52, %v438_v57  ;;  %632 = vrsqrt.f32 %v407_v56 }
 0x214   :  { %v623_v4 = vpop.eup %622 }
 0x215   :  { %v410_v54 = vadd.f32 1e-05, %v394_v1  ;;  %v415_v9 = vadd.f32 1e-05, %v399_v2  ;;  %v625_v7 = vpop.eup %624  ;;  %v482_v10 = vadd.f32 %v925_v0, %v460_v3  ;;  %v446_v11 = vmul.f32 %v623_v4, %v822_v8  ;;  %v508_v3 = vld [vmem:[%s1091_s1 + $0x58] sm:$0xff] }
 0x216   :  { %v382_v12 = vpop.xlane.xlu1 %381  ;;  %v355_v13 = vpop.xlane.xlu0 %354  ;;  %v437_v14 = vmul.f32 %v625_v7, %v832_v16 }
 0x217   :  { %634 = vrsqrt.f32 %v410_v54  ;;  %v402_v17 = vmul.f32 0.0625, %v382_v12  ;;  %v393_v18 = vmul.f32 0.0625, %v355_v13  ;;  %v514_v19 = vadd.f32 %v498_v5, %v482_v10 }
 0x218   :  { %v468_v20 = vmul.f32 %v919_v52, %v446_v11  ;;  %636 = vrsqrt.f32 %v415_v9  ;;  %v627_v21 = vpop.eup %626  ;;  %v459_v23 = vmul.f32 %v919_v52, %v437_v14  ;;  %v499_v9 = vld [vmem:[%s1091_s1 + $0x10] sm:$0xff] }
 0x219   :  { %v418_v62 = vadd.f32 1e-05, %v402_v17  ;;  %v409_v8 = vadd.f32 1e-05, %v393_v18  ;;  %v629_v63 = vpop.eup %628  ;;  %530 = vst.msk [vmem:[%s1092_s6 + $0x8] sm:$0xff] %vm48_vm0, %v514_v19  ;;  %v440_v27 = vmul.f32 %v627_v21, %v829_v15 }
 0x21a   :  { %v490_v16 = vadd.f32 %v925_v0, %v468_v20  ;;  %v364_v28 = vpop.xlane.xlu1 %363  ;;  %v379_v29 = vpop.xlane.xlu0 %378  ;;  %v481_v30 = vadd.f32 %v925_v0, %v459_v23  ;;  %v445_v31 = vmul.f32 %v629_v63, %v845_v26 }
 0x21b   :  { %638 = vrsqrt.f32 %v418_v62  ;;  %v396_v32 = vmul.f32 0.0625, %v364_v28  ;;  %v462_v36 = vmul.f32 %v919_v52, %v440_v27  ;;  %v401_v37 = vmul.f32 0.0625, %v379_v29  ;;  %v507_v62 = vld [vmem:[%s1091_s1 + $0x50] sm:$0xff] }
 0x21c   :  { %v522_v34 = vadd.f32 %v506_v22, %v490_v16  ;;  %640 = vrsqrt.f32 %v409_v8  ;;  %v631_v38 = vpop.eup %630  ;;  %v513_v39 = vadd.f32 %v497_v24, %v481_v30  ;;  %v467_v15 = vmul.f32 %v919_v52, %v445_v31  ;;  %v510_v30 = vld [vmem:[%s1091_s1 + $0x68] sm:$0xff] }
 0x21d   :  { %v412_v41 = vadd.f32 1e-05, %v396_v32  ;;  %v633_v42 = vpop.eup %632  ;;  %v484_v26 = vadd.f32 %v925_v0, %v462_v36  ;;  %v448_v43 = vmul.f32 %v631_v38, %v842_v25  ;;  %v417_v47 = vadd.f32 1e-05, %v401_v37  ;;  %v501_v32 = vld [vmem:[%s1091_s1 + $0x20] sm:$0xff] }
 0x21e   :  { %538 = vst.msk [vmem:[%s1092_s6 + $0x48] sm:$0xff] %vm48_vm0, %v522_v34  ;;  %v388_v50 = vpop.xlane.xlu1 %387  ;;  %v361_v51 = vpop.xlane.xlu0 %360  ;;  %529 = vst.msk [vmem:[%s1092_s6] sm:$0xff] %vm48_vm0, %v513_v39  ;;  %v489_v53 = vadd.f32 %v925_v0, %v467_v15  ;;  %v439_v56 = vmul.f32 %v633_v42, %v853_v33 }
 0x21f   :  { %642 = vrsqrt.f32 %v412_v41  ;;  %v404_v57 = vmul.f32 0.0625, %v388_v50  ;;  %v516_v60 = vadd.f32 %v500_v40, %v484_v26  ;;  %v470_v61 = vmul.f32 %v919_v52, %v448_v43  ;;  %v504_v41 = vld [vmem:[%s1091_s1 + $0x38] sm:$0xff] }
 0x220   :  { %644 = vrsqrt.f32 %v417_v47  ;;  %v395_v1 = vmul.f32 0.0625, %v361_v51  ;;  %v521_v2 = vadd.f32 %v505_v45, %v489_v53  ;;  %v461_v4 = vmul.f32 %v919_v52, %v439_v56 }
 0x221   :  { %v635_v25 = vpop.eup %634  ;;  %v420_v5 = vadd.f32 1e-05, %v404_v57  ;;  %532 = vst.msk [vmem:[%s1092_s6 + $0x18] sm:$0xff] %vm48_vm0, %v516_v60  ;;  %v492_v33 = vadd.f32 %v925_v0, %v470_v61  ;;  %v512_v57 = vld [vmem:[%s1091_s1 + $0x78] sm:$0xff] }
 0x222   :  { %v637_v54 = vpop.eup %636  ;;  %v442_v7 = vmul.f32 %v635_v25, %v866_v44  ;;  %v411_v10 = vadd.f32 1e-05, %v395_v1  ;;  %v385_v11 = vpop.xlane.xlu0 %384  ;;  %537 = vst.msk [vmem:[%s1092_s6 + $0x40] sm:$0xff] %vm48_vm0, %v521_v2  ;;  %v483_v12 = vadd.f32 %v925_v0, %v461_v4  ;;  %v502_v44 = vld [vmem:[%s1091_s1 + $0x28] sm:$0xff]  ;;  %v511_v4 = vld [vmem:[%s1091_s1 + $0x70] sm:$0xff] }
 0x223   :  { %v447_v13 = vmul.f32 %v637_v54, %v856_v35  ;;  %646 = vrsqrt.f32 %v420_v5  ;;  %v403_v14 = vmul.f32 0.0625, %v385_v11  ;;  %v524_v17 = vadd.f32 %v508_v3, %v492_v33 }
 0x224   :  { %v464_v18 = vmul.f32 %v919_v52, %v442_v7  ;;  %648 = vrsqrt.f32 %v411_v10  ;;  %v515_v20 = vadd.f32 %v499_v9, %v483_v12 }
 0x225   :  { %v639_v19 = vpop.eup %638  ;;  %v469_v21 = vmul.f32 %v919_v52, %v447_v13  ;;  %v419_v22 = vadd.f32 1e-05, %v403_v14  ;;  %540 = vst.msk [vmem:[%s1092_s6 + $0x58] sm:$0xff] %vm48_vm0, %v524_v17 }
 0x226   :  { %v641_v23 = vpop.eup %640  ;;  %v486_v35 = vadd.f32 %v925_v0, %v464_v18  ;;  %v450_v8 = vmul.f32 %v639_v19, %v877_v48  ;;  %531 = vst.msk [vmem:[%s1092_s6 + $0x10] sm:$0xff] %vm48_vm0, %v515_v20 }
 0x227   :  { %v491_v63 = vadd.f32 %v925_v0, %v469_v21  ;;  %v441_v16 = vmul.f32 %v641_v23, %v869_v46  ;;  %650 = vrsqrt.f32 %v419_v22 }
 0x228   :  { %v518_v24 = vadd.f32 %v502_v44, %v486_v35  ;;  %v472_v27 = vmul.f32 %v919_v52, %v450_v8 }
 0x229   :  { %v643_v28 = vpop.eup %642  ;;  %v523_v29 = vadd.f32 %v507_v62, %v491_v63  ;;  %v463_v48 = vmul.f32 %v919_v52, %v441_v16 }
 0x22a   :  { %v645_v31 = vpop.eup %644  ;;  %534 = vst.msk [vmem:[%s1092_s6 + $0x28] sm:$0xff] %vm48_vm0, %v518_v24  ;;  %v494_v46 = vadd.f32 %v925_v0, %v472_v27  ;;  %v444_v34 = vmul.f32 %v643_v28, %v890_v55 }
 0x22b   :  { %539 = vst.msk [vmem:[%s1092_s6 + $0x50] sm:$0xff] %vm48_vm0, %v523_v29  ;;  %v485_v36 = vadd.f32 %v925_v0, %v463_v48  ;;  %v449_v37 = vmul.f32 %v645_v31, %v880_v49  ;;  %v509_v49 = vld [vmem:[%s1091_s1 + $0x60] sm:$0xff] }
 0x22c   :  { %v526_v38 = vadd.f32 %v510_v30, %v494_v46  ;;  %v466_v39 = vmul.f32 %v919_v52, %v444_v34 }
 0x22d   :  { %v647_v40 = vpop.eup %646  ;;  %v517_v15 = vadd.f32 %v501_v32, %v485_v36  ;;  %v471_v55 = vmul.f32 %v919_v52, %v449_v37 }
 0x22e   :  { %v649_v42 = vpop.eup %648  ;;  %542 = vst.msk [vmem:[%s1092_s6 + $0x68] sm:$0xff] %vm48_vm0, %v526_v38  ;;  %v488_v26 = vadd.f32 %v925_v0, %v466_v39  ;;  %v452_v45 = vmul.f32 %v647_v40, %v901_v58 }
 0x22f   :  { %533 = vst.msk [vmem:[%s1092_s6 + $0x20] sm:$0xff] %vm48_vm0, %v517_v15  ;;  %v493_v43 = vadd.f32 %v925_v0, %v471_v55  ;;  %v443_v47 = vmul.f32 %v649_v42, %v893_v6  ;;  %v503_v6 = vld [vmem:[%s1091_s1 + $0x30] sm:$0xff] }
 0x230   :  { %v520_v50 = vadd.f32 %v504_v41, %v488_v26  ;;  %v474_v51 = vmul.f32 %v919_v52, %v452_v45 }
 0x231   :  { %v651_v53 = vpop.eup %650  ;;  %v525_v56 = vadd.f32 %v509_v49, %v493_v43  ;;  %v465_v58 = vmul.f32 %v919_v52, %v443_v47 }
 0x232   :  { %536 = vst.msk [vmem:[%s1092_s6 + $0x38] sm:$0xff] %vm48_vm0, %v520_v50  ;;  %v496_v60 = vadd.f32 %v925_v0, %v474_v51  ;;  %v451_v61 = vmul.f32 %v651_v53, %v904_v59 }
 0x233   :  { %541 = vst.msk [vmem:[%s1092_s6 + $0x60] sm:$0xff] %vm48_vm0, %v525_v56  ;;  %v487_v1 = vadd.f32 %v925_v0, %v465_v58 }
 0x234   :  { %v528_v25 = vadd.f32 %v512_v57, %v496_v60  ;;  %v473_v2 = vmul.f32 %v919_v52, %v451_v61 }
 0x235   :  { %v519_v3 = vadd.f32 %v503_v6, %v487_v1 }
 0x236   :  { %544 = vst.msk [vmem:[%s1092_s6 + $0x78] sm:$0xff] %vm48_vm0, %v528_v25  ;;  %v495_v59 = vadd.f32 %v925_v0, %v473_v2 }
 0x237   :  { %535 = vst.msk [vmem:[%s1092_s6 + $0x30] sm:$0xff] %vm48_vm0, %v519_v3 }
 0x238   :  { %v527_v5 = vadd.f32 %v511_v4, %v495_v59 }
 0x23a   :  { %543 = vst.msk [vmem:[%s1092_s6 + $0x70] sm:$0xff] %vm48_vm0, %v527_v5 }

// kernel: _lambda_.34
= control target key start
LH: loop header
LB: loop body
LE: loop exit
PB: predicated region body
PF: predicated region fallthrough
CT: control target
= control target key end

     0   :  { %vm51_vm0 = vcmask 130048   ;;  %vm404_vm1 = vcmask 523264   ;;  %s1759_s1 = inlined_call_operand.vmem [shape: f32[16,64], index: 1, kind: input, shape index: {}]   ;;  %s1760_s0 = inlined_call_operand.vmem [shape: f32[128,16], index: 0, kind: input, shape index: {}]   ;;  %s1761_s3 = inlined_call_operand.vmem [shape: f32[64,16], index: 3, kind: input, shape index: {}]   ;;  %s1762_s2 = inlined_call_operand.vmem [shape: f32[1,64], index: 2, kind: input, shape index: {}]   ;;  %s1763_s4 = inlined_call_operand.vmem [shape: f32[1,16], index: 4, kind: input, shape index: {}, may-alias: {4,6}]   ;;  %s1764_s5 = inlined_call_operand.vmem [shape: f32[1,16], index: 5, kind: input, shape index: {}]   ;;  %s1765_s6 = inlined_call_operand.vmem [shape: f32[1,16], index: 6, kind: input, shape index: {}, may-alias: {4,6}]   ;;  %s1766_s7 = inlined_call_operand.vmem [shape: f32[128,16], index: 7, kind: output, shape index: {}]  }
   0x1   :  { %v42_v0 = vld [vmem:[%s1759_s1] sm:$0xff]  ;;  %v43_v1 = vld [vmem:[%s1759_s1 + $0x8] sm:$0xff]  ;;  %v28_v5 = vld [vmem:[%s1760_s0 + $0x10] sm:$0xff] }
   0x2   :  { %v1189_v2 = vld [vmem:[%s1760_s0] sm:$0xff]  ;;  %v1035_v3 = vpack.c.bf16 %v43_v1, %v42_v0  ;;  %v1196_v4 = vld [vmem:[%s1760_s0 + $0x8] sm:$0xff]  ;;  %v1213_v9 = vld [vmem:[%s1760_s0 + $0x18] sm:$0xff] }
   0x3   :  { %971 = vmatprep.mubr.msk.f32.mxu0 %vm51_vm0, %v1189_v2  ;;  %v389_v6 = vld [vmem:[%s1761_s3] sm:$0xff]  ;;  %v390_v7 = vld [vmem:[%s1761_s3 + $0x8] sm:$0xff]  ;;  %v32_v12 = vld [vmem:[%s1760_s0 + $0x30] sm:$0xff] }
   0x4   :  { %1036 = vmatprep.subr.bf16.mxu0 %v1035_v3  ;;  %v1039_v8 = vpack.c.bf16 %v390_v7, %v389_v6  ;;  %v30_v10 = vld [vmem:[%s1760_s0 + $0x20] sm:$0xff]  ;;  %v31_v11 = vld [vmem:[%s1760_s0 + $0x28] sm:$0xff]  ;;  %v33_v13 = vld [vmem:[%s1760_s0 + $0x38] sm:$0xff] }
   0x5   :  { %1038 = vmatpush3.bf16.msra.mxu0 %v1035_v3  ;;  %v34_v14 = vld [vmem:[%s1760_s0 + $0x40] sm:$0xff]  ;;  %v35_v15 = vld [vmem:[%s1760_s0 + $0x48] sm:$0xff]  ;;  %v36_v16 = vld [vmem:[%s1760_s0 + $0x50] sm:$0xff] }
   0x6   :  { %1040 = vmatprep.subr.bf16.mxu0 %v1039_v8  ;;  %1055 = vmatprep.subr.bf16.mxu1 %v1039_v8  ;;  %v37_v17 = vld [vmem:[%s1760_s0 + $0x58] sm:$0xff]  ;;  %v38_v18 = vld [vmem:[%s1760_s0 + $0x60] sm:$0xff]  ;;  %v39_v19 = vld [vmem:[%s1760_s0 + $0x68] sm:$0xff] }
   0x7   :  { %1059 = vmatpush3.bf16.msra.mxu1 %v1039_v8  ;;  %v40_v20 = vld [vmem:[%s1760_s0 + $0x70] sm:$0xff]  ;;  %v41_v21 = vld [vmem:[%s1760_s0 + $0x78] sm:$0xff]  ;;  %v393_v25 = vld [vmem:[%s1761_s3 + $0x20] sm:$0xff] }
   0x8   :  { %972 = vmatmul.mubr.msk.f32.vlgmr.msra.gmra.mrb[0].mxu0 %vm51_vm0, %v1196_v4  ;;  %v391_v22 = vld [vmem:[%s1761_s3 + $0x10] sm:$0xff]  ;;  %v392_v23 = vld [vmem:[%s1761_s3 + $0x18] sm:$0xff]  ;;  %v394_v26 = vld [vmem:[%s1761_s3 + $0x28] sm:$0xff] }
   0x9   :  { %974 = vmatprep.mubr.msk.f32.mxu0 %vm51_vm0, %v28_v5  ;;  %1042 = vmatpush3.bf16.msra.mxu0 %v1039_v8  ;;  %v1043_v24 = vpack.c.bf16 %v392_v23, %v391_v22  ;;  %v1047_v27 = vpack.c.bf16 %v394_v26, %v393_v25  ;;  %v395_v28 = vld [vmem:[%s1761_s3 + $0x30] sm:$0xff]  ;;  %v396_v29 = vld [vmem:[%s1761_s3 + $0x38] sm:$0xff]  ;;  %v1286_v31 = vld [vmem:[%s1762_s2] ss:$0 sm:$0xff] }
   0xa   :  { %v1051_v30 = vpack.c.bf16 %v396_v29, %v395_v28 }
   0xb   :  { %1044 = vmatprep.subr.bf16.mxu0 %v1043_v24  ;;  %1056 = vmatprep.subr.bf16.mxu1 %v1043_v24 }
   0xc   :  { %975 = vmatmul.mubr.msk.f32.gmra.mrb[2].mxu0 %vm51_vm0, %v1213_v9  ;;  %1060 = vmatpush3.bf16.msra.mxu1 %v1043_v24 }
   0xd   :  { %977 = vmatprep.mubr.msk.f32.mxu0 %vm51_vm0, %v30_v10  ;;  %1046 = vmatpush3.bf16.msra.mxu0 %v1043_v24 }
   0xe   :  { %1048 = vmatprep.subr.bf16.mxu0 %v1047_v27  ;;  %1057 = vmatprep.subr.bf16.mxu1 %v1047_v27 }
  0x10   :  { %978 = vmatmul.mubr.msk.f32.gmra.mrb[4].mxu0 %vm51_vm0, %v31_v11  ;;  %1061 = vmatpush3.bf16.msra.mxu1 %v1047_v27 }
  0x11   :  { %980 = vmatprep.mubr.msk.f32.mxu0 %vm51_vm0, %v32_v12  ;;  %1050 = vmatpush3.bf16.msra.mxu0 %v1047_v27 }
  0x12   :  { %1052 = vmatprep.subr.bf16.mxu0 %v1051_v30  ;;  %1058 = vmatprep.subr.bf16.mxu1 %v1051_v30 }
  0x14   :  { %981 = vmatmul.mubr.msk.f32.gmra.mrb[6].mxu0 %vm51_vm0, %v33_v13  ;;  %1062 = vmatpush3.bf16.msra.mxu1 %v1051_v30 }
  0x15   :  { %983 = vmatprep.mubr.msk.f32.mxu0 %vm51_vm0, %v34_v14  ;;  %1054 = vmatpush3.bf16.msra.mxu0 %v1051_v30 }
  0x18   :  { %984 = vmatmul.mubr.msk.f32.gmra.mrb[8].mxu0 %vm51_vm0, %v35_v15 }
  0x19   :  { %986 = vmatprep.mubr.msk.f32.mxu0 %vm51_vm0, %v36_v16 }
  0x1c   :  { %987 = vmatmul.mubr.msk.f32.gmra.mrb[10].mxu0 %vm51_vm0, %v37_v17 }
  0x1d   :  { %989 = vmatprep.mubr.msk.f32.mxu0 %vm51_vm0, %v38_v18 }
  0x20   :  { %990 = vmatmul.mubr.msk.f32.gmra.mrb[12].mxu0 %vm51_vm0, %v39_v19 }
  0x21   :  { %992 = vmatprep.mubr.msk.f32.mxu0 %vm51_vm0, %v40_v20 }
  0x24   :  { %993 = vmatmul.mubr.msk.f32.gmra.mrb[14].mxu0 %vm51_vm0, %v41_v21 }
  0xdb   :  { %v973_v32 = vpop.f32.mrb[0].mxu0 }
  0xdc   :  { %v1289_v33 = vadd.f32 %v973_v32, %v1286_v31  ;;  %v166_v34 = vpop.f32.mrb[1].mxu0 }
  0xdd   :  { %v1292_v35 = vadd.f32 %v1286_v31, %v166_v34 }
  0xde   :  { %v246_v36 = vmul.f32 %v1289_v33, %v1289_v33 }
  0xdf   :  { %v245_v37 = vmul.f32 %v1292_v35, %v1292_v35  ;;  %v976_v38 = vpop.f32.mrb[2].mxu0 }
  0xe0   :  { %v262_v39 = vmul.f32 %v246_v36, %v1289_v33  ;;  %v1300_v40 = vadd.f32 %v976_v38, %v1286_v31  ;;  %v176_v41 = vpop.f32.mrb[3].mxu0 }
  0xe1   :  { %v261_v42 = vmul.f32 %v245_v37, %v1292_v35  ;;  %v1304_v43 = vadd.f32 %v1286_v31, %v176_v41 }
  0xe2   :  { %v278_v44 = vmul.f32 0.044715, %v262_v39  ;;  %v248_v45 = vmul.f32 %v1300_v40, %v1300_v40 }
  0xe3   :  { %v277_v46 = vmul.f32 0.044715, %v261_v42  ;;  %v247_v47 = vmul.f32 %v1304_v43, %v1304_v43  ;;  %v979_v48 = vpop.f32.mrb[4].mxu0 }
  0xe4   :  { %v294_v49 = vadd.f32 %v278_v44, %v1289_v33  ;;  %v264_v50 = vmul.f32 %v248_v45, %v1300_v40  ;;  %v1313_v51 = vadd.f32 %v979_v48, %v1286_v31  ;;  %v186_v52 = vpop.f32.mrb[5].mxu0 }
  0xe5   :  { %v293_v53 = vadd.f32 %v277_v46, %v1292_v35  ;;  %v263_v54 = vmul.f32 %v247_v47, %v1304_v43  ;;  %v1318_v55 = vadd.f32 %v1286_v31, %v186_v52 }
  0xe6   :  { %v310_v56 = vmul.f32 0.7978846, %v294_v49  ;;  %v280_v57 = vmul.f32 0.044715, %v264_v50  ;;  %v250_v58 = vmul.f32 %v1313_v51, %v1313_v51 }
  0xe7   :  { %v309_v59 = vmul.f32 0.7978846, %v293_v53  ;;  %v279_v60 = vmul.f32 0.044715, %v263_v54  ;;  %v249_v61 = vmul.f32 %v1318_v55, %v1318_v55  ;;  %v982_v62 = vpop.f32.mrb[6].mxu0 }
  0xe8   :  { %1063 = vtanh.f32 %v310_v56  ;;  %v296_v63 = vadd.f32 %v280_v57, %v1300_v40  ;;  %v266_v0 = vmul.f32 %v250_v58, %v1313_v51  ;;  %v1327_v1 = vadd.f32 %v982_v62, %v1286_v31  ;;  %v196_v3 = vpop.f32.mrb[7].mxu0 }
  0xe9   :  { %v265_v5 = vmul.f32 %v249_v61, %v1318_v55  ;;  %v1331_v6 = vadd.f32 %v1286_v31, %v196_v3  ;;  %v295_v7 = vadd.f32 %v279_v60, %v1304_v43  ;;  %1065 = vtanh.f32 %v309_v59 }
  0xea   :  { %v282_v8 = vmul.f32 0.044715, %v266_v0  ;;  %v252_v10 = vmul.f32 %v1327_v1, %v1327_v1  ;;  %v312_v15 = vmul.f32 0.7978846, %v296_v63 }
  0xeb   :  { %v281_v11 = vmul.f32 0.044715, %v265_v5  ;;  %v251_v12 = vmul.f32 %v1331_v6, %v1331_v6  ;;  %v985_v13 = vpop.f32.mrb[8].mxu0  ;;  %v311_v14 = vmul.f32 0.7978846, %v295_v7 }
  0xec   :  { %v298_v16 = vadd.f32 %v282_v8, %v1313_v51  ;;  %v268_v17 = vmul.f32 %v252_v10, %v1327_v1  ;;  %v1341_v18 = vadd.f32 %v985_v13, %v1286_v31  ;;  %v206_v19 = vpop.f32.mrb[9].mxu0 }
  0xed   :  { %v297_v20 = vadd.f32 %v281_v11, %v1318_v55  ;;  %v267_v21 = vmul.f32 %v251_v12, %v1331_v6  ;;  %v1346_v22 = vadd.f32 %v1286_v31, %v206_v19  ;;  %1067 = vtanh.f32 %v311_v14 }
  0xee   :  { %v314_v23 = vmul.f32 0.7978846, %v298_v16  ;;  %v284_v24 = vmul.f32 0.044715, %v268_v17  ;;  %v254_v25 = vmul.f32 %v1341_v18, %v1341_v18  ;;  %1069 = vtanh.f32 %v312_v15 }
  0xef   :  { %v313_v26 = vmul.f32 0.7978846, %v297_v20  ;;  %v283_v27 = vmul.f32 0.044715, %v267_v21  ;;  %v253_v28 = vmul.f32 %v1346_v22, %v1346_v22  ;;  %v988_v29 = vpop.f32.mrb[10].mxu0 }
  0xf0   :  { %v300_v30 = vadd.f32 %v284_v24, %v1327_v1  ;;  %v270_v32 = vmul.f32 %v254_v25, %v1341_v18  ;;  %v1355_v34 = vadd.f32 %v988_v29, %v1286_v31  ;;  %v216_v36 = vpop.f32.mrb[11].mxu0 }
  0xf1   :  { %1071 = vtanh.f32 %v313_v26  ;;  %v299_v37 = vadd.f32 %v283_v27, %v1331_v6  ;;  %v269_v38 = vmul.f32 %v253_v28, %v1346_v22  ;;  %v1360_v39 = vadd.f32 %v1286_v31, %v216_v36 }
  0xf2   :  { %v1064_v41 = vpop.eup %1063  ;;  %1073 = vtanh.f32 %v314_v23  ;;  %v316_v42 = vmul.f32 0.7978846, %v300_v30  ;;  %v286_v44 = vmul.f32 0.044715, %v270_v32  ;;  %v256_v45 = vmul.f32 %v1355_v34, %v1355_v34 }
  0xf3   :  { %v342_v46 = vadd.f32 1.0, %v1064_v41  ;;  %v315_v47 = vmul.f32 0.7978846, %v299_v37  ;;  %v285_v48 = vmul.f32 0.044715, %v269_v38  ;;  %v255_v49 = vmul.f32 %v1360_v39, %v1360_v39  ;;  %v991_v50 = vpop.f32.mrb[12].mxu0  ;;  %v1066_v52 = vpop.eup %1065 }
  0xf4   :  { %1075 = vtanh.f32 %v316_v42  ;;  %v302_v53 = vadd.f32 %v286_v44, %v1341_v18  ;;  %v272_v54 = vmul.f32 %v256_v45, %v1355_v34  ;;  %v1369_v56 = vadd.f32 %v991_v50, %v1286_v31  ;;  %v226_v57 = vpop.f32.mrb[13].mxu0 }
  0xf5   :  { %v358_v58 = vmul.f32 0.5, %v342_v46  ;;  %1077 = vtanh.f32 %v315_v47  ;;  %v301_v59 = vadd.f32 %v285_v48, %v1346_v22  ;;  %v271_v60 = vmul.f32 %v255_v49, %v1360_v39 }
  0xf6   :  { %v318_v61 = vmul.f32 0.7978846, %v302_v53  ;;  %v288_v62 = vmul.f32 0.044715, %v272_v54  ;;  %v258_v63 = vmul.f32 %v1369_v56, %v1369_v56  ;;  %v1376_v0 = vadd.f32 %v1286_v31, %v226_v57 }
  0xf7   :  { %v374_v3 = vmul.f32 %v358_v58, %v1289_v33  ;;  %v317_v5 = vmul.f32 0.7978846, %v301_v59  ;;  %v287_v7 = vmul.f32 0.044715, %v271_v60  ;;  %v994_v8 = vpop.f32.mrb[14].mxu0  ;;  %v341_v10 = vadd.f32 1.0, %v1066_v52  ;;  %v1068_v11 = vpop.eup %1067 }
  0xf8   :  { %1079 = vtanh.f32 %v318_v61  ;;  %v304_v12 = vadd.f32 %v288_v62, %v1355_v34  ;;  %v274_v13 = vmul.f32 %v258_v63, %v1369_v56  ;;  %v257_v14 = vmul.f32 %v1376_v0, %v1376_v0  ;;  %v236_v15 = vpop.f32.mrb[15].mxu0  ;;  %v1070_v19 = vpop.eup %1069 }
  0xf9   :  { %1081 = vtanh.f32 %v317_v5  ;;  %v303_v16 = vadd.f32 %v287_v7, %v1360_v39  ;;  %v1385_v17 = vadd.f32 %v994_v8, %v1286_v31  ;;  %v1388_v33 = vadd.f32 %v1286_v31, %v236_v15 }
  0xfa   :  { %v320_v20 = vmul.f32 0.7978846, %v304_v12  ;;  %v290_v21 = vmul.f32 0.044715, %v274_v13  ;;  %v273_v23 = vmul.f32 %v257_v14, %v1376_v0  ;;  %v357_v24 = vmul.f32 0.5, %v341_v10 }
  0xfb   :  { %v1072_v25 = vpop.eup %1071  ;;  %v319_v26 = vmul.f32 0.7978846, %v303_v16  ;;  %v260_v27 = vmul.f32 %v1385_v17, %v1385_v17  ;;  %v259_v28 = vmul.f32 %v1388_v33, %v1388_v33  ;;  %v343_v29 = vadd.f32 1.0, %v1068_v11 }
  0xfc   :  { %v1074_v30 = vpop.eup %1073  ;;  %1083 = vtanh.f32 %v320_v20  ;;  %v306_v31 = vadd.f32 %v290_v21, %v1369_v56  ;;  %v289_v32 = vmul.f32 0.044715, %v273_v23  ;;  %v373_v36 = vmul.f32 %v357_v24, %v1292_v35 }
  0xfd   :  { %1085 = vtanh.f32 %v319_v26  ;;  %v276_v37 = vmul.f32 %v260_v27, %v1385_v17  ;;  %v275_v38 = vmul.f32 %v259_v28, %v1388_v33  ;;  %v359_v41 = vmul.f32 0.5, %v343_v29 }
  0xfe   :  { %v1076_v42 = vpop.eup %1075  ;;  %v322_v44 = vmul.f32 0.7978846, %v306_v31  ;;  %v305_v45 = vadd.f32 %v289_v32, %v1376_v0  ;;  %1011 = vmatprep.mubr.msk.f32.mxu0 %vm404_vm1, %v373_v36  ;;  %v344_v46 = vadd.f32 1.0, %v1070_v19  ;;  %v345_v47 = vadd.f32 1.0, %v1072_v25 }
  0xff   :  { %v1078_v48 = vpop.eup %1077  ;;  %v292_v49 = vmul.f32 0.044715, %v276_v37  ;;  %v291_v50 = vmul.f32 0.044715, %v275_v38  ;;  %1012 = vmatmul.mubr.msk.f32.vlgmr.msra.gmra.mrb[16].mxu0 %vm404_vm1, %v374_v3  ;;  %v375_v35 = vmul.f32 %v359_v41, %v1304_v43  ;;  %v346_v52 = vadd.f32 1.0, %v1074_v30 }
 0x100   :  { %1087 = vtanh.f32 %v322_v44  ;;  %v321_v53 = vmul.f32 0.7978846, %v305_v45  ;;  %v360_v54 = vmul.f32 0.5, %v344_v46  ;;  %v361_v57 = vmul.f32 0.5, %v345_v47 }
 0x101   :  { %v308_v58 = vadd.f32 %v292_v49, %v1385_v17  ;;  %v307_v59 = vadd.f32 %v291_v50, %v1388_v33  ;;  %1014 = vmatprep.mubr.msk.f32.mxu1 %vm404_vm1, %v375_v35  ;;  %v362_v60 = vmul.f32 0.5, %v346_v52  ;;  %v347_v61 = vadd.f32 1.0, %v1078_v48 }
 0x102   :  { %v1080_v62 = vpop.eup %1079  ;;  %1089 = vtanh.f32 %v321_v53  ;;  %v376_v63 = vmul.f32 %v360_v54, %v1300_v40  ;;  %v377_v3 = vmul.f32 %v361_v57, %v1318_v55  ;;  %v348_v43 = vadd.f32 1.0, %v1076_v42 }
 0x103   :  { %v1082_v5 = vpop.eup %1081  ;;  %v324_v7 = vmul.f32 0.7978846, %v308_v58  ;;  %v323_v8 = vmul.f32 0.7978846, %v307_v59  ;;  %v363_v10 = vmul.f32 0.5, %v347_v61  ;;  %v378_v12 = vmul.f32 %v362_v60, %v1313_v51 }
 0x104   :  { %1015 = vmatmul.mubr.msk.f32.vlgmr.msra.gmra.mrb[0].mxu1 %vm404_vm1, %v376_v63  ;;  %v349_v11 = vadd.f32 1.0, %v1082_v5  ;;  %v364_v40 = vmul.f32 0.5, %v348_v43  ;;  %v350_v55 = vadd.f32 1.0, %v1080_v62 }
 0x105   :  { %1091 = vtanh.f32 %v324_v7  ;;  %1017 = vmatprep.mubr.msk.f32.mxu1 %vm404_vm1, %v377_v3  ;;  %v379_v13 = vmul.f32 %v363_v10, %v1331_v6 }
 0x106   :  { %v1084_v14 = vpop.eup %1083  ;;  %1093 = vtanh.f32 %v323_v8  ;;  %v365_v15 = vmul.f32 0.5, %v349_v11  ;;  %v380_v23 = vmul.f32 %v364_v40, %v1327_v1  ;;  %v366_v24 = vmul.f32 0.5, %v350_v55 }
 0x107   :  { %v1086_v16 = vpop.eup %1085  ;;  %v352_v25 = vadd.f32 1.0, %v1084_v14 }
 0x108   :  { %1018 = vmatmul.mubr.msk.f32.gmra.mrb[2].mxu1 %vm404_vm1, %v378_v12  ;;  %v351_v19 = vadd.f32 1.0, %v1086_v16  ;;  %v381_v20 = vmul.f32 %v365_v15, %v1346_v22  ;;  %v382_v28 = vmul.f32 %v366_v24, %v1341_v18 }
 0x109   :  { %1020 = vmatprep.mubr.msk.f32.mxu1 %vm404_vm1, %v379_v13  ;;  %v368_v29 = vmul.f32 0.5, %v352_v25 }
 0x10a   :  { %v1088_v21 = vpop.eup %1087  ;;  %v367_v51 = vmul.f32 0.5, %v351_v19 }
 0x10b   :  { %v354_v30 = vadd.f32 1.0, %v1088_v21  ;;  %v384_v37 = vmul.f32 %v368_v29, %v1355_v34  ;;  %v906_v34 = vld [vmem:[%s1763_s4] ss:$0 sm:$0xff] }
 0x10c   :  { %v1090_v6 = vpop.eup %1089  ;;  %1021 = vmatmul.mubr.msk.f32.gmra.mrb[4].mxu1 %vm404_vm1, %v380_v23  ;;  %v383_v26 = vmul.f32 %v367_v51, %v1360_v39 }
 0x10d   :  { %1023 = vmatprep.mubr.msk.f32.mxu1 %vm404_vm1, %v381_v20  ;;  %v353_v27 = vadd.f32 1.0, %v1090_v6  ;;  %v370_v38 = vmul.f32 0.5, %v354_v30 }
 0x10f   :  { %v1092_v31 = vpop.eup %1091  ;;  %v369_v22 = vmul.f32 0.5, %v353_v27  ;;  %v386_v42 = vmul.f32 %v370_v38, %v1369_v56 }
 0x110   :  { %v1094_v32 = vpop.eup %1093  ;;  %1024 = vmatmul.mubr.msk.f32.gmra.mrb[6].mxu1 %vm404_vm1, %v382_v28  ;;  %v356_v41 = vadd.f32 1.0, %v1092_v31 }
 0x111   :  { %1026 = vmatprep.mubr.msk.f32.mxu1 %vm404_vm1, %v383_v26  ;;  %v385_v1 = vmul.f32 %v369_v22, %v1376_v0  ;;  %v355_v36 = vadd.f32 1.0, %v1094_v32 }
 0x112   :  { %v372_v44 = vmul.f32 0.5, %v356_v41 }
 0x113   :  { %v371_v39 = vmul.f32 0.5, %v355_v36 }
 0x114   :  { %1027 = vmatmul.mubr.msk.f32.gmra.mrb[8].mxu1 %vm404_vm1, %v384_v37  ;;  %v388_v0 = vmul.f32 %v372_v44, %v1385_v17 }
 0x115   :  { %1029 = vmatprep.mubr.msk.f32.mxu1 %vm404_vm1, %v385_v1  ;;  %v387_v18 = vmul.f32 %v371_v39, %v1388_v33 }
 0x118   :  { %1030 = vmatmul.mubr.msk.f32.gmra.mrb[10].mxu1 %vm404_vm1, %v386_v42 }
 0x119   :  { %1032 = vmatprep.mubr.msk.f32.mxu1 %vm404_vm1, %v387_v18 }
 0x11c   :  { %1033 = vmatmul.mubr.msk.f32.gmra.mrb[12].mxu1 %vm404_vm1, %v388_v0 }
 0x1d2   :  { %v1013_v45 = vpop.f32.mrb[16].mxu0 }
 0x1d3   :  { %v1435_v46 = vadd.f32 %v1013_v45, %v906_v34  ;;  %v519_v47 = vpop.f32.mrb[17].mxu0 }
 0x1d4   :  { %v1437_v33 = vadd.f32 %v906_v34, %v519_v47 }
 0x1d5   :  { %v603_v56 = vsel %vm51_vm0, %v1435_v46, 0.0 }
 0x1d6   :  { %604 = vadd.xlane.f32.xlu0 %v603_v56  ;;  %v600_v50 = vsel %vm51_vm0, %v1437_v33, 0.0 }
 0x1d7   :  { %v1016_v48 = vpop.f32.mrb[0].mxu1 }
 0x1d8   :  { %v1441_v49 = vadd.f32 %v1016_v48, %v906_v34  ;;  %v529_v17 = vpop.f32.mrb[1].mxu1 }
 0x1d9   :  { %v1445_v35 = vadd.f32 %v906_v34, %v529_v17 }
 0x1da   :  { %v609_v52 = vsel %vm51_vm0, %v1441_v49, 0.0  ;;  %601 = vadd.xlane.f32.xlu0 %v600_v50 }
 0x1db   :  { %610 = vadd.xlane.f32.xlu1 %v609_v52  ;;  %v1019_v53 = vpop.f32.mrb[2].mxu1  ;;  %v606_v59 = vsel %vm51_vm0, %v1445_v35, 0.0 }
 0x1dc   :  { %v539_v54 = vpop.f32.mrb[3].mxu1  ;;  %v1451_v58 = vadd.f32 %v1019_v53, %v906_v34 }
 0x1dd   :  { %v1449_v57 = vadd.f32 %v906_v34, %v539_v54 }
 0x1de   :  { %v615_v43 = vsel %vm51_vm0, %v1451_v58, 0.0 }
 0x1df   :  { %v1022_v60 = vpop.f32.mrb[4].mxu1  ;;  %607 = vadd.xlane.f32.xlu1 %v606_v59  ;;  %v612_v61 = vsel %vm51_vm0, %v1449_v57, 0.0 }
 0x1e0   :  { %v549_v62 = vpop.f32.mrb[5].mxu1  ;;  %613 = vadd.xlane.f32.xlu0 %v612_v61  ;;  %v1459_v3 = vadd.f32 %v1022_v60, %v906_v34 }
 0x1e1   :  { %v1457_v63 = vadd.f32 %v906_v34, %v549_v62 }
 0x1e2   :  { %v621_v12 = vsel %vm51_vm0, %v1459_v3, 0.0 }
 0x1e3   :  { %v1025_v5 = vpop.f32.mrb[6].mxu1  ;;  %616 = vadd.xlane.f32.xlu1 %v615_v43  ;;  %v618_v7 = vsel %vm51_vm0, %v1457_v63, 0.0 }
 0x1e4   :  { %v559_v8 = vpop.f32.mrb[7].mxu1  ;;  %619 = vadd.xlane.f32.xlu0 %v618_v7  ;;  %v1467_v11 = vadd.f32 %v1025_v5, %v906_v34 }
 0x1e5   :  { %v1465_v10 = vadd.f32 %v906_v34, %v559_v8 }
 0x1e6   :  { %v627_v16 = vsel %vm51_vm0, %v1467_v11, 0.0 }
 0x1e7   :  { %v1028_v13 = vpop.f32.mrb[8].mxu1  ;;  %622 = vadd.xlane.f32.xlu1 %v621_v12  ;;  %v624_v14 = vsel %vm51_vm0, %v1465_v10, 0.0 }
 0x1e8   :  { %v569_v40 = vpop.f32.mrb[9].mxu1  ;;  %625 = vadd.xlane.f32.xlu0 %v624_v14  ;;  %v1475_v55 = vadd.f32 %v1028_v13, %v906_v34 }
 0x1e9   :  { %v1473_v15 = vadd.f32 %v906_v34, %v569_v40 }
 0x1ea   :  { %v633_v51 = vsel %vm51_vm0, %v1475_v55, 0.0 }
 0x1eb   :  { %v1031_v19 = vpop.f32.mrb[10].mxu1  ;;  %628 = vadd.xlane.f32.xlu1 %v627_v16  ;;  %v630_v20 = vsel %vm51_vm0, %v1473_v15, 0.0 }
 0x1ec   :  { %v579_v21 = vpop.f32.mrb[11].mxu1  ;;  %631 = vadd.xlane.f32.xlu0 %v630_v20  ;;  %v1483_v24 = vadd.f32 %v1031_v19, %v906_v34 }
 0x1ed   :  { %v1481_v23 = vadd.f32 %v906_v34, %v579_v21 }
 0x1ee   :  { %v639_v29 = vsel %vm51_vm0, %v1483_v24, 0.0 }
 0x1ef   :  { %v1034_v25 = vpop.f32.mrb[12].mxu1  ;;  %634 = vadd.xlane.f32.xlu1 %v633_v51  ;;  %v636_v6 = vsel %vm51_vm0, %v1481_v23, 0.0 }
 0x1f0   :  { %v589_v26 = vpop.f32.mrb[13].mxu1  ;;  %637 = vadd.xlane.f32.xlu0 %v636_v6  ;;  %v1491_v28 = vadd.f32 %v1034_v25, %v906_v34 }
 0x1f1   :  { %v1489_v27 = vadd.f32 %v906_v34, %v589_v26 }
 0x1f2   :  { %v645_v31 = vsel %vm51_vm0, %v1491_v28, 0.0 }
 0x1f3   :  { %640 = vadd.xlane.f32.xlu1 %v639_v29  ;;  %v642_v30 = vsel %vm51_vm0, %v1489_v27, 0.0 }
 0x1f4   :  { %643 = vadd.xlane.f32.xlu0 %v642_v30 }
 0x1f7   :  { %646 = vadd.xlane.f32.xlu1 %v645_v31 }
 0x263   :  { %v605_v22 = vpop.xlane.xlu0 %604 }
 0x264   :  { %v650_v32 = vmul.f32 0.0625, %v605_v22 }
 0x266   :  { %v1500_v1 = vsub.f32 %v1435_v46, %v650_v32 }
 0x267   :  { %v602_v36 = vpop.xlane.xlu0 %601 }
 0x268   :  { %v611_v37 = vpop.xlane.xlu1 %610  ;;  %v649_v38 = vmul.f32 0.0625, %v602_v36  ;;  %v682_v41 = vmul.f32 %v1500_v1, %v1500_v1 }
 0x269   :  { %v652_v39 = vmul.f32 0.0625, %v611_v37 }
 0x26a   :  { %v1505_v18 = vsub.f32 %v1437_v33, %v649_v38  ;;  %v700_v42 = vsel %vm51_vm0, %v682_v41, 0.0 }
 0x26b   :  { %v1509_v44 = vsub.f32 %v1441_v49, %v652_v39  ;;  %701 = vadd.xlane.f32.xlu1 %v700_v42 }
 0x26c   :  { %v608_v0 = vpop.xlane.xlu1 %607  ;;  %v681_v34 = vmul.f32 %v1505_v18, %v1505_v18 }
 0x26d   :  { %v651_v45 = vmul.f32 0.0625, %v608_v0  ;;  %v614_v46 = vpop.xlane.xlu0 %613  ;;  %v684_v47 = vmul.f32 %v1509_v44, %v1509_v44 }
 0x26e   :  { %v653_v56 = vmul.f32 0.0625, %v614_v46  ;;  %v697_v48 = vsel %vm51_vm0, %v681_v34, 0.0 }
 0x26f   :  { %v1517_v33 = vsub.f32 %v1445_v35, %v651_v45  ;;  %v706_v17 = vsel %vm51_vm0, %v684_v47, 0.0  ;;  %698 = vadd.xlane.f32.xlu0 %v697_v48 }
 0x270   :  { %v1521_v49 = vsub.f32 %v1449_v57, %v653_v56  ;;  %v617_v50 = vpop.xlane.xlu1 %616  ;;  %707 = vadd.xlane.f32.xlu1 %v706_v17 }
 0x271   :  { %v654_v52 = vmul.f32 0.0625, %v617_v50  ;;  %v620_v53 = vpop.xlane.xlu0 %619  ;;  %v683_v54 = vmul.f32 %v1517_v33, %v1517_v33 }
 0x272   :  { %v655_v59 = vmul.f32 0.0625, %v620_v53  ;;  %v685_v61 = vmul.f32 %v1521_v49, %v1521_v49 }
 0x273   :  { %v1526_v60 = vsub.f32 %v1451_v58, %v654_v52  ;;  %v703_v35 = vsel %vm51_vm0, %v683_v54, 0.0 }
 0x274   :  { %v1532_v62 = vsub.f32 %v1457_v63, %v655_v59  ;;  %v623_v57 = vpop.xlane.xlu1 %622  ;;  %704 = vadd.xlane.f32.xlu0 %v703_v35  ;;  %v709_v13 = vsel %vm51_vm0, %v685_v61, 0.0 }
 0x275   :  { %v656_v43 = vmul.f32 0.0625, %v623_v57  ;;  %v626_v5 = vpop.xlane.xlu0 %625  ;;  %v686_v7 = vmul.f32 %v1526_v60, %v1526_v60 }
 0x276   :  { %v657_v8 = vmul.f32 0.0625, %v626_v5  ;;  %v687_v14 = vmul.f32 %v1532_v62, %v1532_v62 }
 0x277   :  { %v1537_v12 = vsub.f32 %v1459_v3, %v656_v43  ;;  %v712_v58 = vsel %vm51_vm0, %v686_v7, 0.0 }
 0x278   :  { %v1544_v63 = vsub.f32 %v1465_v10, %v657_v8  ;;  %v629_v40 = vpop.xlane.xlu1 %628  ;;  %713 = vadd.xlane.f32.xlu1 %v712_v58  ;;  %710 = vadd.xlane.f32.xlu0 %v709_v13  ;;  %v715_v25 = vsel %vm51_vm0, %v687_v14, 0.0 }
 0x279   :  { %v658_v16 = vmul.f32 0.0625, %v629_v40  ;;  %v632_v19 = vpop.xlane.xlu0 %631  ;;  %v688_v20 = vmul.f32 %v1537_v12, %v1537_v12 }
 0x27a   :  { %v659_v3 = vmul.f32 0.0625, %v632_v19  ;;  %v689_v10 = vmul.f32 %v1544_v63, %v1544_v63 }
 0x27b   :  { %v1549_v21 = vsub.f32 %v1467_v11, %v658_v16  ;;  %v718_v51 = vsel %vm51_vm0, %v688_v20, 0.0 }
 0x27c   :  { %v1556_v6 = vsub.f32 %v1473_v15, %v659_v3  ;;  %v635_v26 = vpop.xlane.xlu1 %634  ;;  %719 = vadd.xlane.f32.xlu1 %v718_v51  ;;  %716 = vadd.xlane.f32.xlu0 %v715_v25  ;;  %v721_v36 = vsel %vm51_vm0, %v689_v10, 0.0  ;;  %v1598_v51 = vld [vmem:[%s1764_s5] ss:$0 sm:$0xff] }
 0x27d   :  { %v660_v29 = vmul.f32 0.0625, %v635_v26  ;;  %v638_v30 = vpop.xlane.xlu0 %637  ;;  %v690_v31 = vmul.f32 %v1549_v21, %v1549_v21 }
 0x27e   :  { %v661_v11 = vmul.f32 0.0625, %v638_v30  ;;  %v691_v15 = vmul.f32 %v1556_v6, %v1556_v6 }
 0x27f   :  { %v1561_v22 = vsub.f32 %v1475_v55, %v660_v29  ;;  %v724_v32 = vsel %vm51_vm0, %v690_v31, 0.0  ;;  %v1604_v29 = vld [vmem:[%s1765_s6] ss:$0 sm:$0xff] }
 0x280   :  { %v1568_v37 = vsub.f32 %v1481_v23, %v661_v11  ;;  %v641_v38 = vpop.xlane.xlu1 %640  ;;  %725 = vadd.xlane.f32.xlu1 %v724_v32  ;;  %722 = vadd.xlane.f32.xlu0 %v721_v36  ;;  %v727_v45 = vsel %vm51_vm0, %v691_v15, 0.0 }
 0x281   :  { %v662_v41 = vmul.f32 0.0625, %v641_v38  ;;  %v644_v39 = vpop.xlane.xlu0 %643  ;;  %v692_v42 = vmul.f32 %v1561_v22, %v1561_v22 }
 0x282   :  { %v663_v55 = vmul.f32 0.0625, %v644_v39  ;;  %v693_v23 = vmul.f32 %v1568_v37, %v1568_v37 }
 0x283   :  { %v1573_v0 = vsub.f32 %v1483_v24, %v662_v41  ;;  %v730_v34 = vsel %vm51_vm0, %v692_v42, 0.0 }
 0x284   :  { %v1580_v46 = vsub.f32 %v1489_v27, %v663_v55  ;;  %v647_v47 = vpop.xlane.xlu1 %646  ;;  %731 = vadd.xlane.f32.xlu1 %v730_v34  ;;  %728 = vadd.xlane.f32.xlu0 %v727_v45  ;;  %v733_v50 = vsel %vm51_vm0, %v693_v23, 0.0 }
 0x285   :  { %v664_v56 = vmul.f32 0.0625, %v647_v47  ;;  %v694_v48 = vmul.f32 %v1573_v0, %v1573_v0 }
 0x286   :  { %v695_v52 = vmul.f32 %v1580_v46, %v1580_v46 }
 0x287   :  { %v1585_v24 = vsub.f32 %v1491_v28, %v664_v56  ;;  %v736_v17 = vsel %vm51_vm0, %v694_v48, 0.0 }
 0x288   :  { %737 = vadd.xlane.f32.xlu1 %v736_v17  ;;  %734 = vadd.xlane.f32.xlu0 %v733_v50  ;;  %v739_v54 = vsel %vm51_vm0, %v695_v52, 0.0 }
 0x289   :  { %v696_v27 = vmul.f32 %v1585_v24, %v1585_v24 }
 0x28b   :  { %v742_v53 = vsel %vm51_vm0, %v696_v27, 0.0 }
 0x28c   :  { %743 = vadd.xlane.f32.xlu1 %v742_v53  ;;  %740 = vadd.xlane.f32.xlu0 %v739_v54 }
 0x2f8   :  { %v702_v28 = vpop.xlane.xlu1 %701 }
 0x2f9   :  { %v746_v59 = vmul.f32 0.0625, %v702_v28 }
 0x2fb   :  { %v762_v35 = vadd.f32 1e-05, %v746_v59 }
 0x2fc   :  { %v699_v61 = vpop.xlane.xlu0 %698 }
 0x2fd   :  { %1095 = vrsqrt.f32 %v762_v35  ;;  %v708_v57 = vpop.xlane.xlu1 %707  ;;  %v745_v43 = vmul.f32 0.0625, %v699_v61 }
 0x2fe   :  { %v748_v5 = vmul.f32 0.0625, %v708_v57 }
 0x2ff   :  { %v761_v7 = vadd.f32 1e-05, %v745_v43 }
 0x300   :  { %v764_v8 = vadd.f32 1e-05, %v748_v5 }
 0x301   :  { %1097 = vrsqrt.f32 %v761_v7  ;;  %v705_v58 = vpop.xlane.xlu0 %704 }
 0x302   :  { %1099 = vrsqrt.f32 %v764_v8  ;;  %v747_v13 = vmul.f32 0.0625, %v705_v58 }
 0x304   :  { %v763_v14 = vadd.f32 1e-05, %v747_v13 }
 0x305   :  { %v714_v40 = vpop.xlane.xlu1 %713  ;;  %v711_v16 = vpop.xlane.xlu0 %710 }
 0x306   :  { %1101 = vrsqrt.f32 %v763_v14  ;;  %v750_v19 = vmul.f32 0.0625, %v714_v40  ;;  %v749_v20 = vmul.f32 0.0625, %v711_v16  ;;  %v1127_v16 = vld [vmem:[%s1760_s0 + $0x10] sm:$0xff] }
 0x307   :  { %v1096_v3 = vpop.eup %1095 }
 0x308   :  { %v794_v25 = vmul.f32 %v1096_v3, %v1500_v1  ;;  %v766_v10 = vadd.f32 1e-05, %v750_v19  ;;  %v765_v26 = vadd.f32 1e-05, %v749_v20 }
 0x309   :  { %v720_v30 = vpop.xlane.xlu1 %719  ;;  %v717_v31 = vpop.xlane.xlu0 %716 }
 0x30a   :  { %v816_v11 = vmul.f32 %v1598_v51, %v794_v25  ;;  %1103 = vrsqrt.f32 %v766_v10  ;;  %v752_v32 = vmul.f32 0.0625, %v720_v30  ;;  %v751_v36 = vmul.f32 0.0625, %v717_v31 }
 0x30b   :  { %v1098_v15 = vpop.eup %1097  ;;  %1105 = vrsqrt.f32 %v765_v26 }
 0x30c   :  { %v1100_v38 = vpop.eup %1099  ;;  %v838_v41 = vadd.f32 %v1604_v29, %v816_v11  ;;  %v793_v1 = vmul.f32 %v1098_v15, %v1505_v18  ;;  %v768_v39 = vadd.f32 1e-05, %v752_v32  ;;  %v767_v42 = vadd.f32 1e-05, %v751_v36 }
 0x30d   :  { %v796_v55 = vmul.f32 %v1100_v38, %v1509_v44  ;;  %v726_v34 = vpop.xlane.xlu1 %725  ;;  %v723_v45 = vpop.xlane.xlu0 %722  ;;  %v1128_v38 = vld [vmem:[%s1760_s0 + $0x28] sm:$0xff] }
 0x30e   :  { %v854_v23 = vadd.f32 %v838_v41, %v1196_v4  ;;  %v815_v47 = vmul.f32 %v1598_v51, %v793_v1  ;;  %1107 = vrsqrt.f32 %v768_v39  ;;  %v754_v56 = vmul.f32 0.0625, %v726_v34 }
 0x30f   :  { %v818_v48 = vmul.f32 %v1598_v51, %v796_v55  ;;  %1109 = vrsqrt.f32 %v767_v42  ;;  %v753_v17 = vmul.f32 0.0625, %v723_v45 }
 0x310   :  { %v1102_v50 = vpop.eup %1101  ;;  %870 = vst.msk [vmem:[%s1766_s7 + $0x8] sm:$0xff] %vm51_vm0, %v854_v23  ;;  %v837_v18 = vadd.f32 %v1604_v29, %v815_v47  ;;  %v770_v44 = vadd.f32 1e-05, %v754_v56 }
 0x311   :  { %v840_v52 = vadd.f32 %v1604_v29, %v818_v48  ;;  %v795_v4 = vmul.f32 %v1102_v50, %v1517_v33  ;;  %v769_v27 = vadd.f32 1e-05, %v753_v17  ;;  %v732_v53 = vpop.xlane.xlu1 %731  ;;  %v729_v54 = vpop.xlane.xlu0 %728  ;;  %v1130_v50 = vld [vmem:[%s1760_s0 + $0x38] sm:$0xff] }
 0x312   :  { %v853_v28 = vadd.f32 %v837_v18, %v1189_v2  ;;  %1111 = vrsqrt.f32 %v770_v44  ;;  %v756_v59 = vmul.f32 0.0625, %v732_v53  ;;  %v755_v35 = vmul.f32 0.0625, %v729_v54 }
 0x313   :  { %v856_v61 = vadd.f32 %v840_v52, %v1213_v9  ;;  %v817_v57 = vmul.f32 %v1598_v51, %v795_v4  ;;  %1113 = vrsqrt.f32 %v769_v27  ;;  %v1131_v52 = vld [vmem:[%s1760_s0 + $0x30] sm:$0xff] }
 0x314   :  { %v1104_v43 = vpop.eup %1103  ;;  %869 = vst.msk [vmem:[%s1766_s7] sm:$0xff] %vm51_vm0, %v853_v28  ;;  %v772_v33 = vadd.f32 1e-05, %v756_v59  ;;  %v771_v5 = vadd.f32 1e-05, %v755_v35  ;;  %v1132_v35 = vld [vmem:[%s1760_s0 + $0x48] sm:$0xff] }
 0x315   :  { %v1106_v7 = vpop.eup %1105  ;;  %872 = vst.msk [vmem:[%s1766_s7 + $0x18] sm:$0xff] %vm51_vm0, %v856_v61  ;;  %v839_v2 = vadd.f32 %v1604_v29, %v817_v57  ;;  %v798_v9 = vmul.f32 %v1104_v43, %v1526_v60  ;;  %v738_v8 = vpop.xlane.xlu1 %737 }
 0x316   :  { %v735_v58 = vpop.xlane.xlu0 %734  ;;  %v797_v13 = vmul.f32 %v1106_v7, %v1521_v49  ;;  %1115 = vrsqrt.f32 %v772_v33  ;;  %v758_v14 = vmul.f32 0.0625, %v738_v8 }
 0x317   :  { %v757_v40 = vmul.f32 0.0625, %v735_v58  ;;  %v855_v19 = vadd.f32 %v1127_v16, %v839_v2  ;;  %v820_v20 = vmul.f32 %v1598_v51, %v798_v9  ;;  %1117 = vrsqrt.f32 %v771_v5  ;;  %v1134_v58 = vld [vmem:[%s1760_s0 + $0x58] sm:$0xff] }
 0x318   :  { %v1108_v3 = vpop.eup %1107  ;;  %v819_v25 = vmul.f32 %v1598_v51, %v797_v13  ;;  %v774_v10 = vadd.f32 1e-05, %v758_v14 }
 0x319   :  { %v773_v60 = vadd.f32 1e-05, %v757_v40  ;;  %v1110_v26 = vpop.eup %1109  ;;  %871 = vst.msk [vmem:[%s1766_s7 + $0x10] sm:$0xff] %vm51_vm0, %v855_v19  ;;  %v842_v49 = vadd.f32 %v1604_v29, %v820_v20  ;;  %v800_v30 = vmul.f32 %v1108_v3, %v1537_v12  ;;  %v744_v31 = vpop.xlane.xlu1 %743  ;;  %v1129_v12 = vld [vmem:[%s1760_s0 + $0x20] sm:$0xff] }
 0x31a   :  { %v741_v11 = vpop.xlane.xlu0 %740  ;;  %v841_v32 = vadd.f32 %v1604_v29, %v819_v25  ;;  %v799_v36 = vmul.f32 %v1110_v26, %v1532_v62  ;;  %1119 = vrsqrt.f32 %v774_v10  ;;  %v760_v15 = vmul.f32 0.0625, %v744_v31 }
 0x31b   :  { %v858_v41 = vadd.f32 %v1128_v38, %v842_v49  ;;  %v822_v1 = vmul.f32 %v1598_v51, %v800_v30  ;;  %1121 = vrsqrt.f32 %v773_v60  ;;  %v759_v39 = vmul.f32 0.0625, %v741_v11  ;;  %v1136_v60 = vld [vmem:[%s1760_s0 + $0x68] sm:$0xff] }
 0x31c   :  { %v1112_v42 = vpop.eup %1111  ;;  %v857_v55 = vadd.f32 %v1129_v12, %v841_v32  ;;  %v821_v34 = vmul.f32 %v1598_v51, %v799_v36  ;;  %v776_v62 = vadd.f32 1e-05, %v760_v15  ;;  %v1138_v32 = vld [vmem:[%s1760_s0 + $0x78] sm:$0xff] }
 0x31d   :  { %v1114_v45 = vpop.eup %1113  ;;  %874 = vst.msk [vmem:[%s1766_s7 + $0x28] sm:$0xff] %vm51_vm0, %v858_v41  ;;  %v844_v23 = vadd.f32 %v1604_v29, %v822_v1  ;;  %v802_v47 = vmul.f32 %v1112_v42, %v1549_v21  ;;  %v775_v56 = vadd.f32 1e-05, %v759_v39 }
 0x31e   :  { %873 = vst.msk [vmem:[%s1766_s7 + $0x20] sm:$0xff] %vm51_vm0, %v857_v55  ;;  %v843_v48 = vadd.f32 %v1604_v29, %v821_v34  ;;  %v801_v17 = vmul.f32 %v1114_v45, %v1544_v63  ;;  %1123 = vrsqrt.f32 %v776_v62 }
 0x31f   :  { %v860_v18 = vadd.f32 %v1130_v50, %v844_v23  ;;  %v824_v44 = vmul.f32 %v1598_v51, %v802_v47  ;;  %1125 = vrsqrt.f32 %v775_v56 }
 0x320   :  { %v1116_v21 = vpop.eup %1115  ;;  %v859_v4 = vadd.f32 %v1131_v52, %v843_v48  ;;  %v823_v27 = vmul.f32 %v1598_v51, %v801_v17 }
 0x321   :  { %v1118_v53 = vpop.eup %1117  ;;  %876 = vst.msk [vmem:[%s1766_s7 + $0x38] sm:$0xff] %vm51_vm0, %v860_v18  ;;  %v846_v63 = vadd.f32 %v1604_v29, %v824_v44  ;;  %v804_v54 = vmul.f32 %v1116_v21, %v1561_v22  ;;  %v1133_v22 = vld [vmem:[%s1760_s0 + $0x40] sm:$0xff] }
 0x322   :  { %875 = vst.msk [vmem:[%s1766_s7 + $0x30] sm:$0xff] %vm51_vm0, %v859_v4  ;;  %v845_v28 = vadd.f32 %v1604_v29, %v823_v27  ;;  %v803_v59 = vmul.f32 %v1118_v53, %v1556_v6 }
 0x323   :  { %v862_v61 = vadd.f32 %v1132_v35, %v846_v63  ;;  %v826_v57 = vmul.f32 %v1598_v51, %v804_v54 }
 0x324   :  { %v1120_v43 = vpop.eup %1119  ;;  %v861_v33 = vadd.f32 %v1133_v22, %v845_v28  ;;  %v825_v5 = vmul.f32 %v1598_v51, %v803_v59 }
 0x325   :  { %v1122_v7 = vpop.eup %1121  ;;  %878 = vst.msk [vmem:[%s1766_s7 + $0x48] sm:$0xff] %vm51_vm0, %v862_v61  ;;  %v848_v6 = vadd.f32 %v1604_v29, %v826_v57  ;;  %v806_v2 = vmul.f32 %v1120_v43, %v1573_v0  ;;  %v1135_v0 = vld [vmem:[%s1760_s0 + $0x50] sm:$0xff] }
 0x326   :  { %877 = vst.msk [vmem:[%s1766_s7 + $0x40] sm:$0xff] %vm51_vm0, %v861_v33  ;;  %v847_v9 = vadd.f32 %v1604_v29, %v825_v5  ;;  %v805_v8 = vmul.f32 %v1122_v7, %v1568_v37 }
 0x327   :  { %v864_v13 = vadd.f32 %v1134_v58, %v848_v6  ;;  %v828_v14 = vmul.f32 %v1598_v51, %v806_v2 }
 0x328   :  { %v1124_v40 = vpop.eup %1123  ;;  %v863_v16 = vadd.f32 %v1135_v0, %v847_v9  ;;  %v827_v19 = vmul.f32 %v1598_v51, %v805_v8 }
 0x329   :  { %v1126_v20 = vpop.eup %1125  ;;  %880 = vst.msk [vmem:[%s1766_s7 + $0x58] sm:$0xff] %vm51_vm0, %v864_v13  ;;  %v850_v37 = vadd.f32 %v1604_v29, %v828_v14  ;;  %v808_v3 = vmul.f32 %v1124_v40, %v1585_v24  ;;  %v1137_v24 = vld [vmem:[%s1760_s0 + $0x60] sm:$0xff] }
 0x32a   :  { %879 = vst.msk [vmem:[%s1766_s7 + $0x50] sm:$0xff] %vm51_vm0, %v863_v16  ;;  %v849_v25 = vadd.f32 %v1604_v29, %v827_v19  ;;  %v807_v10 = vmul.f32 %v1126_v20, %v1580_v46 }
 0x32b   :  { %v866_v26 = vadd.f32 %v1136_v60, %v850_v37  ;;  %v830_v49 = vmul.f32 %v1598_v51, %v808_v3 }
 0x32c   :  { %v865_v30 = vadd.f32 %v1137_v24, %v849_v25  ;;  %v829_v31 = vmul.f32 %v1598_v51, %v807_v10  ;;  %v1139_v51 = vld [vmem:[%s1760_s0 + $0x70] sm:$0xff] }
 0x32d   :  { %882 = vst.msk [vmem:[%s1766_s7 + $0x68] sm:$0xff] %vm51_vm0, %v866_v26  ;;  %v852_v46 = vadd.f32 %v1604_v29, %v830_v49 }
 0x32e   :  { %881 = vst.msk [vmem:[%s1766_s7 + $0x60] sm:$0xff] %vm51_vm0, %v865_v30  ;;  %v851_v11 = vadd.f32 %v1604_v29, %v829_v31 }
 0x32f   :  { %v868_v36 = vadd.f32 %v1138_v32, %v852_v46 }
 0x330   :  { %v867_v15 = vadd.f32 %v1139_v51, %v851_v11 }
 0x331   :  { %884 = vst.msk [vmem:[%s1766_s7 + $0x78] sm:$0xff] %vm51_vm0, %v868_v36 }
 0x332   :  { %883 = vst.msk [vmem:[%s1766_s7 + $0x70] sm:$0xff] %vm51_vm0, %v867_v15 }

// kernel: _lambda_.32
= control target key start
LH: loop header
LB: loop body
LE: loop exit
PB: predicated region body
PF: predicated region fallthrough
CT: control target
= control target key end

     0   :  { %s3426_s15 = smov 0   ;;  %s3911_s0 = inlined_call_operand.vmem [shape: f32[2,16,4,16], index: 0, kind: input, shape index: {}]   ;;  %s3912_s1 = inlined_call_operand.vmem [shape: f32[2,16,4,16], index: 1, kind: input, shape index: {}]   ;;  %s3913_s2 = inlined_call_operand.vmem [shape: f32[2,16,4,16], index: 2, kind: input, shape index: {}]   ;;  %s3914_s3 = inlined_call_operand.vmem [shape: f32[16,4,4], index: 3, kind: input, shape index: {}]   ;;  %s3915_s4 = inlined_call_operand.vmem [shape: f32[2,16,4,16], index: 4, kind: output, shape index: {}]  }
   0x1 LB: > { %s3010_s16 = sadd.s32 4294967295, %s3397_s15   ;;  %p3014_p0 = scmp.ge.s32.totalorder %s3397_s15, 1  ;;  %s3397_s15 = sphi %s3426_s15, %s14_s15  }
   0x2   : > { %p182_p1 = scmp.lt.s32.totalorder %s3397_s15, 3 }
   0x4   : > { %p183_p2 = pnand %p3014_p0, %p182_p1 }
   0x5   : > { %p218_p3 = scmp.lt.s32.totalorder (!%p183_p2), %s3010_s16, 1  ;;  %v3399_v0 = vmov (!%p183_p2), 0.0   ;;  %vm3400_vm0 = vmmov (!%p183_p2), 0   ;;  %vm302_vm1 = vcmask (!%p183_p2), 130048   ;;  %v286_v33 = vld [vmem:[%s3914_s3] sm:$0xf] (!%p183_p2) }
   0x6   : > { %186 = sbr.rel (%p183_p2) target bundleno = 793 (0x319), region = 36  ;;  %3157 = vmatprep.subr.mxu0 (!%p183_p2), %v3399_v0  ;;  %3159 = vmatprep.mubr.msk.f32.mxu0 (!%p183_p2), %vm3400_vm0, %v3399_v0  ;;  %v287_v34 = vld [vmem:[%s3914_s3 + $0x4] sm:$0xf] (!%p183_p2)  ;;  %vm1519_vm2 = vcmask (!%p183_p2), 27648   ;;  %v288_v41 = vld [vmem:[%s3914_s3 + $0x8] sm:$0xf] (!%p183_p2) }
   0x7   : > { %3162 = vmatprep.subr.mxu1 (!%p183_p2), %v3399_v0  ;;  %3164 = vmatprep.mubr.msk.f32.mxu1 (!%p183_p2), %vm3400_vm0, %v3399_v0  ;;  %v289_v44 = vld [vmem:[%s3914_s3 + $0xc] sm:$0xf] (!%p183_p2)  ;;  %v290_v49 = vld [vmem:[%s3914_s3 + $0x10] sm:$0xf] (!%p183_p2)  ;;  %v291_v54 = vld [vmem:[%s3914_s3 + $0x14] sm:$0xf] (!%p183_p2) }
   0x8   : > { %v292_v59 = vld [vmem:[%s3914_s3 + $0x18] sm:$0xf] (!%p183_p2)  ;;  %vm1700_vm3 = vcmask (!%p183_p2), 1043456   ;;  %vm1696_vm4 = vcmask (!%p183_p2), 31744   ;;  %vm2914_vm5 = vcmask (!%p183_p2), 125952  }
   0xd   : > { %s3917_s16 = smov (!%p218_p3, %s3010_s16), 1 }
   0xe   : > { %s3440_s17 = sshll.u32 %s3917_s16, 6 }
   0xf   : > { %s3446_s20 = scalar_lea.vmem %s3912_s1, %s3440_s17  ;;  %s3452_s23 = scalar_lea.vmem %s3911_s0, %s3440_s17 }
  0x10   : > { %v254_v1 = vld [vmem:[%s3446_s20] sm:$0xf]  ;;  %v255_v2 = vld [vmem:[%s3446_s20 + $0x4] sm:$0xf]  ;;  %v256_v5 = vld [vmem:[%s3446_s20 + $0x8] sm:$0xf]  ;;  %s3750_s8 = scalar_lea.vmem %s3913_s2, %s3440_s17  ;;  %s3874_s11 = scalar_lea.vmem %s3915_s4, %s3440_s17 }
  0x11   : > { %3158 = vmatpush3.xpose.msk.msra.mxu0 %vm302_vm1, %v254_v1  ;;  %v238_v3 = vld [vmem:[%s3452_s23] sm:$0xf]  ;;  %3163 = vmatpush3.xpose.msk.msra.mxu1 %vm302_vm1, %v255_v2  ;;  %v239_v4 = vld [vmem:[%s3452_s23 + $0x4] sm:$0xf]  ;;  %v257_v6 = vld [vmem:[%s3446_s20 + $0xc] sm:$0xf] }
  0x12   : > { %3167 = vmatprep.subr.mxu0 %v3399_v0  ;;  %3172 = vmatprep.subr.mxu1 %v3399_v0  ;;  %v240_v7 = vld [vmem:[%s3452_s23 + $0x8] sm:$0xf]  ;;  %v258_v8 = vld [vmem:[%s3446_s20 + $0x10] sm:$0xf]  ;;  %v241_v9 = vld [vmem:[%s3452_s23 + $0xc] sm:$0xf] }
  0x13   : > { %v259_v10 = vld [vmem:[%s3446_s20 + $0x14] sm:$0xf]  ;;  %v242_v11 = vld [vmem:[%s3452_s23 + $0x10] sm:$0xf]  ;;  %v260_v12 = vld [vmem:[%s3446_s20 + $0x18] sm:$0xf] }
  0x14   : > { %3160 = vmatmul.mubr.msk.f32.vlgmr.msra.gmra.mrb[0].mxu0 %vm302_vm1, %v238_v3  ;;  %3165 = vmatmul.mubr.msk.f32.vlgmr.msra.gmra.mrb[0].mxu1 %vm302_vm1, %v239_v4  ;;  %v243_v13 = vld [vmem:[%s3452_s23 + $0x14] sm:$0xf]  ;;  %v261_v14 = vld [vmem:[%s3446_s20 + $0x1c] sm:$0xf]  ;;  %v244_v15 = vld [vmem:[%s3452_s23 + $0x18] sm:$0xf] }
  0x15   : > { %3168 = vmatpush3.xpose.msk.msra.mxu0 %vm302_vm1, %v256_v5  ;;  %3169 = vmatprep.mubr.msk.f32.mxu0 %vm3400_vm0, %v3399_v0  ;;  %v262_v16 = vld [vmem:[%s3446_s20 + $0x20] sm:$0xf]  ;;  %v245_v17 = vld [vmem:[%s3452_s23 + $0x1c] sm:$0xf]  ;;  %v263_v18 = vld [vmem:[%s3446_s20 + $0x24] sm:$0xf] }
  0x16   : > { %3177 = vmatprep.subr.mxu0 %v3399_v0  ;;  %3173 = vmatpush3.xpose.msk.msra.mxu1 %vm302_vm1, %v257_v6  ;;  %v246_v19 = vld [vmem:[%s3452_s23 + $0x20] sm:$0xf]  ;;  %v264_v20 = vld [vmem:[%s3446_s20 + $0x28] sm:$0xf]  ;;  %v247_v21 = vld [vmem:[%s3452_s23 + $0x24] sm:$0xf] }
  0x17   : > { %3174 = vmatprep.mubr.msk.f32.mxu1 %vm3400_vm0, %v3399_v0  ;;  %3182 = vmatprep.subr.mxu1 %v3399_v0  ;;  %v265_v22 = vld [vmem:[%s3446_s20 + $0x2c] sm:$0xf]  ;;  %v248_v23 = vld [vmem:[%s3452_s23 + $0x28] sm:$0xf]  ;;  %v266_v24 = vld [vmem:[%s3446_s20 + $0x30] sm:$0xf] }
  0x18   : > { %3170 = vmatmul.mubr.msk.f32.vlgmr.msra.gmra.mrb[2].mxu0 %vm302_vm1, %v240_v7  ;;  %v249_v25 = vld [vmem:[%s3452_s23 + $0x2c] sm:$0xf]  ;;  %v267_v26 = vld [vmem:[%s3446_s20 + $0x34] sm:$0xf]  ;;  %v250_v27 = vld [vmem:[%s3452_s23 + $0x30] sm:$0xf] }
  0x19   : > { %3178 = vmatpush3.xpose.msk.msra.mxu0 %vm302_vm1, %v258_v8  ;;  %3179 = vmatprep.mubr.msk.f32.mxu0 %vm3400_vm0, %v3399_v0  ;;  %v268_v28 = vld [vmem:[%s3446_s20 + $0x38] sm:$0xf]  ;;  %v251_v29 = vld [vmem:[%s3452_s23 + $0x34] sm:$0xf]  ;;  %v269_v30 = vld [vmem:[%s3446_s20 + $0x3c] sm:$0xf] }
  0x1a   : > { %3175 = vmatmul.mubr.msk.f32.vlgmr.msra.gmra.mrb[2].mxu1 %vm302_vm1, %v241_v9  ;;  %3187 = vmatprep.subr.mxu0 %v3399_v0  ;;  %v252_v31 = vld [vmem:[%s3452_s23 + $0x38] sm:$0xf]  ;;  %v253_v32 = vld [vmem:[%s3452_s23 + $0x3c] sm:$0xf]  ;;  %v294_v6 = vld [vmem:[%s3914_s3 + $0x20] sm:$0xf] }
  0x1b   : > { %3183 = vmatpush3.xpose.msk.msra.mxu1 %vm302_vm1, %v259_v10  ;;  %3184 = vmatprep.mubr.msk.f32.mxu1 %vm3400_vm0, %v3399_v0  ;;  %v293_v1 = vld [vmem:[%s3914_s3 + $0x1c] sm:$0xf] }
  0x1c   : > { %3180 = vmatmul.mubr.msk.f32.vlgmr.msra.gmra.mrb[4].mxu0 %vm302_vm1, %v242_v11  ;;  %3192 = vmatprep.subr.mxu1 %v3399_v0  ;;  %v295_v11 = vld [vmem:[%s3914_s3 + $0x24] sm:$0xf] }
  0x1d   : > { %3188 = vmatpush3.xpose.msk.msra.mxu0 %vm302_vm1, %v260_v12  ;;  %3189 = vmatprep.mubr.msk.f32.mxu0 %vm3400_vm0, %v3399_v0 }
  0x1e   : > { %3185 = vmatmul.mubr.msk.f32.vlgmr.msra.gmra.mrb[4].mxu1 %vm302_vm1, %v243_v13  ;;  %3197 = vmatprep.subr.mxu0 %v3399_v0 }
  0x1f   : > { %3193 = vmatpush3.xpose.msk.msra.mxu1 %vm302_vm1, %v261_v14  ;;  %3194 = vmatprep.mubr.msk.f32.mxu1 %vm3400_vm0, %v3399_v0 }
  0x20   : > { %3190 = vmatmul.mubr.msk.f32.vlgmr.msra.gmra.mrb[6].mxu0 %vm302_vm1, %v244_v15  ;;  %3202 = vmatprep.subr.mxu1 %v3399_v0 }
  0x21   : > { %3198 = vmatpush3.xpose.msk.msra.mxu0 %vm302_vm1, %v262_v16  ;;  %3199 = vmatprep.mubr.msk.f32.mxu0 %vm3400_vm0, %v3399_v0  ;;  %v296_v16 = vld [vmem:[%s3914_s3 + $0x28] sm:$0xf] }
  0x22   : > { %3195 = vmatmul.mubr.msk.f32.vlgmr.msra.gmra.mrb[6].mxu1 %vm302_vm1, %v245_v17  ;;  %3207 = vmatprep.subr.mxu0 %v3399_v0 }
  0x23   : > { %3203 = vmatpush3.xpose.msk.msra.mxu1 %vm302_vm1, %v263_v18  ;;  %3204 = vmatprep.mubr.msk.f32.mxu1 %vm3400_vm0, %v3399_v0 }
  0x24   : > { %3200 = vmatmul.mubr.msk.f32.vlgmr.msra.gmra.mrb[8].mxu0 %vm302_vm1, %v246_v19  ;;  %3212 = vmatprep.subr.mxu1 %v3399_v0 }
  0x25   : > { %3208 = vmatpush3.xpose.msk.msra.mxu0 %vm302_vm1, %v264_v20  ;;  %3209 = vmatprep.mubr.msk.f32.mxu0 %vm3400_vm0, %v3399_v0 }
  0x26   : > { %3205 = vmatmul.mubr.msk.f32.vlgmr.msra.gmra.mrb[8].mxu1 %vm302_vm1, %v247_v21  ;;  %3217 = vmatprep.subr.mxu0 %v3399_v0  ;;  %v297_v21 = vld [vmem:[%s3914_s3 + $0x2c] sm:$0xf] }
  0x27   : > { %3213 = vmatpush3.xpose.msk.msra.mxu1 %vm302_vm1, %v265_v22  ;;  %3214 = vmatprep.mubr.msk.f32.mxu1 %vm3400_vm0, %v3399_v0 }
  0x28   : > { %3210 = vmatmul.mubr.msk.f32.vlgmr.msra.gmra.mrb[10].mxu0 %vm302_vm1, %v248_v23  ;;  %3222 = vmatprep.subr.mxu1 %v3399_v0 }
  0x29   : > { %3218 = vmatpush3.xpose.msk.msra.mxu0 %vm302_vm1, %v266_v24  ;;  %3219 = vmatprep.mubr.msk.f32.mxu0 %vm3400_vm0, %v3399_v0 }
  0x2a   : > { %3215 = vmatmul.mubr.msk.f32.vlgmr.msra.gmra.mrb[10].mxu1 %vm302_vm1, %v249_v25  ;;  %3227 = vmatprep.subr.mxu0 %v3399_v0 }
  0x2b   : > { %3223 = vmatpush3.xpose.msk.msra.mxu1 %vm302_vm1, %v267_v26  ;;  %3224 = vmatprep.mubr.msk.f32.mxu1 %vm3400_vm0, %v3399_v0  ;;  %v298_v26 = vld [vmem:[%s3914_s3 + $0x30] sm:$0xf] }
  0x2c   : > { %3220 = vmatmul.mubr.msk.f32.vlgmr.msra.gmra.mrb[12].mxu0 %vm302_vm1, %v250_v27  ;;  %3232 = vmatprep.subr.mxu1 %v3399_v0 }
  0x2d   : > { %3228 = vmatpush3.xpose.msk.msra.mxu0 %vm302_vm1, %v268_v28  ;;  %3229 = vmatprep.mubr.msk.f32.mxu0 %vm3400_vm0, %v3399_v0 }
  0x2e   : > { %3225 = vmatmul.mubr.msk.f32.vlgmr.msra.gmra.mrb[12].mxu1 %vm302_vm1, %v251_v29  ;;  %3237 = vmatprep.subr.mxu0 %v3399_v0 }
  0x2f   : > { %3233 = vmatpush3.xpose.msk.msra.mxu1 %vm302_vm1, %v269_v30  ;;  %3234 = vmatprep.mubr.msk.f32.mxu1 %vm3400_vm0, %v3399_v0 }
  0x30   : > { %3230 = vmatmul.mubr.msk.f32.vlgmr.msra.gmra.mrb[14].mxu0 %vm302_vm1, %v252_v31  ;;  %3242 = vmatprep.subr.mxu1 %v3399_v0  ;;  %v299_v31 = vld [vmem:[%s3914_s3 + $0x34] sm:$0xf] }
  0x31   : > { %3239 = vmatprep.mubr.msk.f32.mxu0 %vm3400_vm0, %v3399_v0 }
  0x32   : > { %3235 = vmatmul.mubr.msk.f32.vlgmr.msra.gmra.mrb[14].mxu1 %vm302_vm1, %v253_v32 }
  0x33   : > { %3244 = vmatprep.mubr.msk.f32.mxu1 %vm3400_vm0, %v3399_v0 }
  0xe7   : > { %v375_v35 = vpop.f32.mrb[0].mxu0  ;;  %v451_v36 = vpop.f32.mrb[0].mxu1 }
  0xe8   : > { %v3572_v37 = vadd.f32 %v375_v35, %v286_v33  ;;  %v3161_v38 = vpop.f32.mrb[1].mxu0  ;;  %v3574_v39 = vadd.f32 %v451_v36, %v287_v34  ;;  %v3166_v40 = vpop.f32.mrb[1].mxu1  ;;  %v300_v36 = vld [vmem:[%s3914_s3 + $0x38] sm:$0xf] }
  0xea   : > { %v1520_v42 = vsel %vm1519_vm2, %v3572_v37, -inf  ;;  %v1523_v47 = vsel %vm1519_vm2, %v3574_v39, -inf }
  0xeb   : > { %1521 = vmax.xlane.f32.xlu0 %v1520_v42  ;;  %v527_v43 = vpop.f32.mrb[2].mxu0 }
  0xec   : > { %v3584_v45 = vadd.f32 %v527_v43, %v288_v41  ;;  %v3171_v46 = vpop.f32.mrb[3].mxu0  ;;  %v301_v43 = vld [vmem:[%s3914_s3 + $0x3c] sm:$0xf] }
  0xed   : > { %v603_v48 = vpop.f32.mrb[2].mxu1 }
  0xee   : > { %v3591_v50 = vadd.f32 %v603_v48, %v289_v44  ;;  %v1526_v51 = vsel %vm1519_vm2, %v3584_v45, -inf  ;;  %v3176_v52 = vpop.f32.mrb[3].mxu1 }
  0xef   : > { %1524 = vmax.xlane.f32.xlu0 %v1523_v47  ;;  %1527 = vmax.xlane.f32.xlu1 %v1526_v51  ;;  %v679_v53 = vpop.f32.mrb[4].mxu0 }
  0xf0   : > { %v3598_v55 = vadd.f32 %v679_v53, %v290_v49  ;;  %v3181_v56 = vpop.f32.mrb[5].mxu0  ;;  %v1529_v57 = vsel %vm1519_vm2, %v3591_v50, -inf }
  0xf1   : > { %v755_v58 = vpop.f32.mrb[4].mxu1 }
  0xf2   : > { %v3605_v60 = vadd.f32 %v755_v58, %v291_v54  ;;  %v1532_v61 = vsel %vm1519_vm2, %v3598_v55, -inf  ;;  %v3186_v62 = vpop.f32.mrb[5].mxu1 }
  0xf3   : > { %1530 = vmax.xlane.f32.xlu1 %v1529_v57  ;;  %1533 = vmax.xlane.f32.xlu0 %v1532_v61  ;;  %v831_v63 = vpop.f32.mrb[6].mxu0 }
  0xf4   : > { %v3612_v2 = vadd.f32 %v831_v63, %v292_v59  ;;  %v3191_v3 = vpop.f32.mrb[7].mxu0  ;;  %v1535_v4 = vsel %vm1519_vm2, %v3605_v60, -inf }
  0xf5   : > { %v907_v5 = vpop.f32.mrb[6].mxu1 }
  0xf6   : > { %v3619_v7 = vadd.f32 %v907_v5, %v293_v1  ;;  %v1538_v8 = vsel %vm1519_vm2, %v3612_v2, -inf  ;;  %v3196_v9 = vpop.f32.mrb[7].mxu1 }
  0xf7   : > { %1536 = vmax.xlane.f32.xlu1 %v1535_v4  ;;  %1539 = vmax.xlane.f32.xlu0 %v1538_v8  ;;  %v983_v10 = vpop.f32.mrb[8].mxu0 }
  0xf8   : > { %v3626_v12 = vadd.f32 %v983_v10, %v294_v6  ;;  %v3201_v13 = vpop.f32.mrb[9].mxu0  ;;  %v1541_v14 = vsel %vm1519_vm2, %v3619_v7, -inf }
  0xf9   : > { %v1059_v15 = vpop.f32.mrb[8].mxu1 }
  0xfa   : > { %v3633_v17 = vadd.f32 %v1059_v15, %v295_v11  ;;  %v1544_v18 = vsel %vm1519_vm2, %v3626_v12, -inf  ;;  %v3206_v19 = vpop.f32.mrb[9].mxu1 }
  0xfb   : > { %1542 = vmax.xlane.f32.xlu1 %v1541_v14  ;;  %1545 = vmax.xlane.f32.xlu0 %v1544_v18  ;;  %v1135_v20 = vpop.f32.mrb[10].mxu0 }
  0xfc   : > { %v3640_v22 = vadd.f32 %v1135_v20, %v296_v16  ;;  %v3211_v23 = vpop.f32.mrb[11].mxu0  ;;  %v1547_v24 = vsel %vm1519_vm2, %v3633_v17, -inf }
  0xfd   : > { %v1211_v25 = vpop.f32.mrb[10].mxu1 }
  0xfe   : > { %v3647_v27 = vadd.f32 %v1211_v25, %v297_v21  ;;  %v1550_v28 = vsel %vm1519_vm2, %v3640_v22, -inf  ;;  %v3216_v29 = vpop.f32.mrb[11].mxu1 }
  0xff   : > { %1548 = vmax.xlane.f32.xlu1 %v1547_v24  ;;  %1551 = vmax.xlane.f32.xlu0 %v1550_v28  ;;  %v1287_v30 = vpop.f32.mrb[12].mxu0 }
 0x100   : > { %v3654_v32 = vadd.f32 %v1287_v30, %v298_v26  ;;  %v3221_v33 = vpop.f32.mrb[13].mxu0  ;;  %v1553_v34 = vsel %vm1519_vm2, %v3647_v27, -inf }
 0x101   : > { %v1363_v35 = vpop.f32.mrb[12].mxu1 }
 0x102   : > { %v3661_v38 = vadd.f32 %v1363_v35, %v299_v31  ;;  %v1556_v40 = vsel %vm1519_vm2, %v3654_v32, -inf  ;;  %v3226_v41 = vpop.f32.mrb[13].mxu1 }
 0x103   : > { %1554 = vmax.xlane.f32.xlu1 %v1553_v34  ;;  %1557 = vmax.xlane.f32.xlu0 %v1556_v40  ;;  %v1439_v42 = vpop.f32.mrb[14].mxu0 }
 0x104   : > { %v3668_v44 = vadd.f32 %v1439_v42, %v300_v36  ;;  %v1559_v46 = vsel %vm1519_vm2, %v3661_v38, -inf  ;;  %v3231_v47 = vpop.f32.mrb[15].mxu0 }
 0x105   : > { %v1515_v48 = vpop.f32.mrb[14].mxu1 }
 0x106   : > { %v3672_v49 = vadd.f32 %v1515_v48, %v301_v43  ;;  %v1562_v51 = vsel %vm1519_vm2, %v3668_v44, -inf  ;;  %v3236_v52 = vpop.f32.mrb[15].mxu1 }
 0x107   : > { %1560 = vmax.xlane.f32.xlu1 %v1559_v46  ;;  %1563 = vmax.xlane.f32.xlu0 %v1562_v51 }
 0x108   : > { %v1565_v53 = vsel %vm1519_vm2, %v3672_v49, -inf }
 0x10b   : > { %1566 = vmax.xlane.f32.xlu1 %v1565_v53 }
 0x178   : > { %v1522_v54 = vpop.xlane.xlu0 %1521 }
 0x179   : > { %v1568_v56 = vsub.f32 %v3572_v37, %v1522_v54 }
 0x17b   : > { %v1584_v57 = vmul.f32 1.442695, %v1568_v56 }
 0x17c   : > { %v1525_v58 = vpop.xlane.xlu0 %1524  ;;  %v1528_v59 = vpop.xlane.xlu1 %1527 }
 0x17d   : > { %3327 = vpow2.f32 %v1584_v57  ;;  %v1569_v61 = vsub.f32 %v3574_v39, %v1525_v58  ;;  %v1570_v62 = vsub.f32 %v3584_v45, %v1528_v59 }
 0x17f   : > { %v1586_v63 = vmul.f32 1.442695, %v1569_v61  ;;  %v1588_v1 = vmul.f32 1.442695, %v1570_v62 }
 0x180   : > { %v1531_v3 = vpop.xlane.xlu1 %1530  ;;  %v1534_v4 = vpop.xlane.xlu0 %1533 }
 0x181   : > { %3329 = vpow2.f32 %v1586_v63  ;;  %v1571_v5 = vsub.f32 %v3591_v50, %v1531_v3  ;;  %v1572_v6 = vsub.f32 %v3598_v55, %v1534_v4 }
 0x182   : > { %3331 = vpow2.f32 %v1588_v1 }
 0x183   : > { %v1590_v8 = vmul.f32 1.442695, %v1571_v5  ;;  %v1592_v37 = vmul.f32 1.442695, %v1572_v6  ;;  %v270_v6 = vld [vmem:[%s3750_s8] sm:$0xf] }
 0x184   : > { %v1537_v9 = vpop.xlane.xlu1 %1536  ;;  %v1540_v10 = vpop.xlane.xlu0 %1539  ;;  %3238 = vmatpush3.msk.msra.mxu0 %vm1700_vm3, %v270_v6 }
 0x185   : > { %3333 = vpow2.f32 %v1590_v8  ;;  %v1573_v11 = vsub.f32 %v3605_v60, %v1537_v9  ;;  %v1574_v39 = vsub.f32 %v3612_v2, %v1540_v10  ;;  %3247 = vmatprep.subr.mxu0 %v3399_v0 }
 0x186   : > { %3335 = vpow2.f32 %v1592_v37 }
 0x187   : > { %v3685_v45 = vpop.eup %3327  ;;  %v1594_v13 = vmul.f32 1.442695, %v1573_v11  ;;  %v1596_v14 = vmul.f32 1.442695, %v1574_v39  ;;  %v271_v11 = vld [vmem:[%s3750_s8 + $0x4] sm:$0xf] }
 0x188   : > { %v1543_v15 = vpop.xlane.xlu1 %1542  ;;  %v1546_v16 = vpop.xlane.xlu0 %1545  ;;  %v1616_v50 = vsel %vm1519_vm2, %v3685_v45, 0.0  ;;  %3243 = vmatpush3.msk.msra.mxu1 %vm1700_vm3, %v271_v11 }
 0x189   : > { %3337 = vpow2.f32 %v1594_v13  ;;  %v1575_v55 = vsub.f32 %v3619_v7, %v1543_v15  ;;  %v1576_v18 = vsub.f32 %v3626_v12, %v1546_v16  ;;  %1617 = vadd.xlane.f32.xlu0 %v1616_v50  ;;  %3252 = vmatprep.subr.mxu1 %v3399_v0 }
 0x18a   : > { %3339 = vpow2.f32 %v1596_v14 }
 0x18b   : > { %v3691_v60 = vpop.eup %3329  ;;  %v1598_v2 = vmul.f32 1.442695, %v1575_v55  ;;  %v1600_v19 = vmul.f32 1.442695, %v1576_v18 }
 0x18c   : > { %v3693_v20 = vpop.eup %3331  ;;  %v1549_v21 = vpop.xlane.xlu1 %1548  ;;  %v1619_v24 = vsel %vm1519_vm2, %v3691_v60, 0.0 }
 0x18d   : > { %v1552_v23 = vpop.xlane.xlu0 %1551  ;;  %3341 = vpow2.f32 %v1598_v2  ;;  %v1577_v25 = vsub.f32 %v3633_v17, %v1549_v21  ;;  %1620 = vadd.xlane.f32.xlu1 %v1619_v24  ;;  %v1622_v12 = vsel %vm1519_vm2, %v3693_v20, 0.0 }
 0x18e   : > { %v1578_v7 = vsub.f32 %v3640_v22, %v1552_v23  ;;  %3343 = vpow2.f32 %v1600_v19  ;;  %1623 = vadd.xlane.f32.xlu0 %v1622_v12  ;;  %v272_v19 = vld [vmem:[%s3750_s8 + $0x8] sm:$0xf]  ;;  %v273_v12 = vld [vmem:[%s3750_s8 + $0xc] sm:$0xf] }
 0x18f   : > { %v3701_v26 = vpop.eup %3333  ;;  %v1602_v28 = vmul.f32 1.442695, %v1577_v25 }
 0x190   : > { %v1604_v29 = vmul.f32 1.442695, %v1578_v7  ;;  %v3703_v30 = vpop.eup %3335  ;;  %v1555_v31 = vpop.xlane.xlu1 %1554  ;;  %v1625_v34 = vsel %vm1519_vm2, %v3701_v26, 0.0 }
 0x191   : > { %v1558_v33 = vpop.xlane.xlu0 %1557  ;;  %3345 = vpow2.f32 %v1602_v28  ;;  %v1579_v17 = vsub.f32 %v3647_v27, %v1555_v31  ;;  %1626 = vadd.xlane.f32.xlu1 %v1625_v34  ;;  %v1628_v35 = vsel %vm1519_vm2, %v3703_v30, 0.0 }
 0x192   : > { %v1580_v22 = vsub.f32 %v3654_v32, %v1558_v33  ;;  %3347 = vpow2.f32 %v1604_v29  ;;  %1629 = vadd.xlane.f32.xlu0 %v1628_v35  ;;  %v274_v29 = vld [vmem:[%s3750_s8 + $0x10] sm:$0xf]  ;;  %v276_v35 = vld [vmem:[%s3750_s8 + $0x18] sm:$0xf] }
 0x193   : > { %v3711_v36 = vpop.eup %3337  ;;  %v1606_v40 = vmul.f32 1.442695, %v1579_v17 }
 0x194   : > { %v1608_v41 = vmul.f32 1.442695, %v1580_v22  ;;  %v3713_v42 = vpop.eup %3339  ;;  %v1561_v43 = vpop.xlane.xlu1 %1560  ;;  %v1631_v47 = vsel %vm1519_vm2, %v3711_v36, 0.0 }
 0x195   : > { %v1564_v46 = vpop.xlane.xlu0 %1563  ;;  %3349 = vpow2.f32 %v1606_v40  ;;  %v1581_v27 = vsub.f32 %v3661_v38, %v1561_v43  ;;  %1632 = vadd.xlane.f32.xlu1 %v1631_v47  ;;  %v1634_v48 = vsel %vm1519_vm2, %v3713_v42, 0.0  ;;  %v277_v43 = vld [vmem:[%s3750_s8 + $0x1c] sm:$0xf] }
 0x196   : > { %v1582_v32 = vsub.f32 %v3668_v44, %v1564_v46  ;;  %3351 = vpow2.f32 %v1608_v41  ;;  %1635 = vadd.xlane.f32.xlu0 %v1634_v48 }
 0x197   : > { %v3721_v51 = vpop.eup %3341  ;;  %v1610_v52 = vmul.f32 1.442695, %v1581_v27  ;;  %v278_v27 = vld [vmem:[%s3750_s8 + $0x20] sm:$0xf] }
 0x198   : > { %v1612_v53 = vmul.f32 1.442695, %v1582_v32  ;;  %v3723_v54 = vpop.eup %3343  ;;  %v1567_v56 = vpop.xlane.xlu1 %1566  ;;  %v1637_v57 = vsel %vm1519_vm2, %v3721_v51, 0.0 }
 0x199   : > { %3353 = vpow2.f32 %v1610_v52  ;;  %v1583_v38 = vsub.f32 %v3672_v49, %v1567_v56  ;;  %1638 = vadd.xlane.f32.xlu1 %v1637_v57  ;;  %v1640_v44 = vsel %vm1519_vm2, %v3723_v54, 0.0  ;;  %v279_v52 = vld [vmem:[%s3750_s8 + $0x24] sm:$0xf]  ;;  %v280_v57 = vld [vmem:[%s3750_s8 + $0x28] sm:$0xf] }
 0x19a   : > { %3355 = vpow2.f32 %v1612_v53  ;;  %1641 = vadd.xlane.f32.xlu0 %v1640_v44 }
 0x19b   : > { %v3730_v58 = vpop.eup %3345  ;;  %v1614_v59 = vmul.f32 1.442695, %v1583_v38 }
 0x19c   : > { %v3732_v61 = vpop.eup %3347  ;;  %v1643_v62 = vsel %vm1519_vm2, %v3730_v58, 0.0 }
 0x19d   : > { %3357 = vpow2.f32 %v1614_v59  ;;  %1644 = vadd.xlane.f32.xlu1 %v1643_v62  ;;  %v1646_v49 = vsel %vm1519_vm2, %v3732_v61, 0.0  ;;  %v281_v59 = vld [vmem:[%s3750_s8 + $0x2c] sm:$0xf] }
 0x19e   : > { %1647 = vadd.xlane.f32.xlu0 %v1646_v49  ;;  %v282_v49 = vld [vmem:[%s3750_s8 + $0x30] sm:$0xf] }
 0x19f   : > { %v3738_v63 = vpop.eup %3349 }
 0x1a0   : > { %v3740_v1 = vpop.eup %3351  ;;  %v1649_v3 = vsel %vm1519_vm2, %v3738_v63, 0.0 }
 0x1a1   : > { %1650 = vadd.xlane.f32.xlu1 %v1649_v3  ;;  %v1652_v4 = vsel %vm1519_vm2, %v3740_v1, 0.0 }
 0x1a2   : > { %1653 = vadd.xlane.f32.xlu0 %v1652_v4  ;;  %v283_v4 = vld [vmem:[%s3750_s8 + $0x34] sm:$0xf] }
 0x1a3   : > { %v3752_v5 = vpop.eup %3353 }
 0x1a4   : > { %v3755_v8 = vpop.eup %3355  ;;  %v1655_v37 = vsel %vm1519_vm2, %v3752_v5, 0.0 }
 0x1a5   : > { %1656 = vadd.xlane.f32.xlu1 %v1655_v37  ;;  %v1658_v9 = vsel %vm1519_vm2, %v3755_v8, 0.0  ;;  %v284_v37 = vld [vmem:[%s3750_s8 + $0x38] sm:$0xf] }
 0x1a6   : > { %1659 = vadd.xlane.f32.xlu0 %v1658_v9 }
 0x1a7   : > { %v3763_v10 = vpop.eup %3357 }
 0x1a8   : > { %v1661_v39 = vsel %vm1519_vm2, %v3763_v10, 0.0 }
 0x1a9   : > { %1662 = vadd.xlane.f32.xlu1 %v1661_v39 }
 0x216   : > { %v1618_v13 = vpop.xlane.xlu0 %1617 }
 0x217   : > { %3359 = vrcp.f32 %v1618_v13 }
 0x21a   : > { %v1621_v14 = vpop.xlane.xlu1 %1620 }
 0x21b   : > { %3361 = vrcp.f32 %v1621_v14  ;;  %v1624_v15 = vpop.xlane.xlu0 %1623 }
 0x21c   : > { %3363 = vrcp.f32 %v1624_v15 }
 0x21e   : > { %v1627_v16 = vpop.xlane.xlu1 %1626 }
 0x21f   : > { %3365 = vrcp.f32 %v1627_v16  ;;  %v1630_v50 = vpop.xlane.xlu0 %1629 }
 0x220   : > { %3367 = vrcp.f32 %v1630_v50 }
 0x221   : > { %v3360_v55 = vpop.eup %3359 }
 0x222   : > { %v1680_v18 = vmul.f32 %v3360_v55, %v3685_v45  ;;  %v1633_v2 = vpop.xlane.xlu1 %1632 }
 0x223   : > { %3369 = vrcp.f32 %v1633_v2  ;;  %v1636_v21 = vpop.xlane.xlu0 %1635 }
 0x224   : > { %3371 = vrcp.f32 %v1636_v21  ;;  %3240 = vmatmul.mubr.msk.f32.vlgmr.msra.gmra.mrb[16].mxu0 %vm1696_vm4, %v1680_v18 }
 0x225   : > { %v3362_v23 = vpop.eup %3361  ;;  %3248 = vmatpush3.msk.msra.mxu0 %vm1700_vm3, %v272_v19  ;;  %3249 = vmatprep.mubr.msk.f32.mxu0 %vm3400_vm0, %v3399_v0 }
 0x226   : > { %v3364_v24 = vpop.eup %3363  ;;  %v1681_v25 = vmul.f32 %v3362_v23, %v3691_v60  ;;  %v1639_v7 = vpop.xlane.xlu1 %1638  ;;  %3257 = vmatprep.subr.mxu0 %v3399_v0 }
 0x227   : > { %v1682_v45 = vmul.f32 %v3364_v24, %v3693_v20  ;;  %3373 = vrcp.f32 %v1639_v7  ;;  %v1642_v28 = vpop.xlane.xlu0 %1641  ;;  %v275_v20 = vld [vmem:[%s3750_s8 + $0x14] sm:$0xf] }
 0x228   : > { %3375 = vrcp.f32 %v1642_v28  ;;  %3245 = vmatmul.mubr.msk.f32.vlgmr.msra.gmra.mrb[16].mxu1 %vm1696_vm4, %v1681_v25 }
 0x229   : > { %v3366_v31 = vpop.eup %3365  ;;  %3250 = vmatmul.mubr.msk.f32.vlgmr.msra.gmra.mrb[18].mxu0 %vm1696_vm4, %v1682_v45  ;;  %3253 = vmatpush3.msk.msra.mxu1 %vm1700_vm3, %v273_v12 }
 0x22a   : > { %v3368_v60 = vpop.eup %3367  ;;  %v1683_v33 = vmul.f32 %v3366_v31, %v3701_v26  ;;  %v1645_v34 = vpop.xlane.xlu1 %1644  ;;  %3254 = vmatprep.mubr.msk.f32.mxu1 %vm3400_vm0, %v3399_v0  ;;  %3258 = vmatpush3.msk.msra.mxu0 %vm1700_vm3, %v274_v29 }
 0x22b   : > { %v1684_v17 = vmul.f32 %v3368_v60, %v3703_v30  ;;  %3377 = vrcp.f32 %v1645_v34  ;;  %v1648_v22 = vpop.xlane.xlu0 %1647  ;;  %3259 = vmatprep.mubr.msk.f32.mxu0 %vm3400_vm0, %v3399_v0  ;;  %3262 = vmatprep.subr.mxu1 %v3399_v0 }
 0x22c   : > { %3379 = vrcp.f32 %v1648_v22  ;;  %3255 = vmatmul.mubr.msk.f32.vlgmr.msra.gmra.mrb[18].mxu1 %vm1696_vm4, %v1683_v33  ;;  %3267 = vmatprep.subr.mxu0 %v3399_v0 }
 0x22d   : > { %v3370_v26 = vpop.eup %3369  ;;  %3260 = vmatmul.mubr.msk.f32.vlgmr.msra.gmra.mrb[20].mxu0 %vm1696_vm4, %v1684_v17  ;;  %3263 = vmatpush3.msk.msra.mxu1 %vm1700_vm3, %v275_v20 }
 0x22e   : > { %v3372_v30 = vpop.eup %3371  ;;  %v1685_v40 = vmul.f32 %v3370_v26, %v3711_v36  ;;  %v1651_v41 = vpop.xlane.xlu1 %1650  ;;  %3264 = vmatprep.mubr.msk.f32.mxu1 %vm3400_vm0, %v3399_v0  ;;  %3268 = vmatpush3.msk.msra.mxu0 %vm1700_vm3, %v276_v35 }
 0x22f   : > { %v1686_v46 = vmul.f32 %v3372_v30, %v3713_v42  ;;  %3381 = vrcp.f32 %v1651_v41  ;;  %v1654_v47 = vpop.xlane.xlu0 %1653  ;;  %3269 = vmatprep.mubr.msk.f32.mxu0 %vm3400_vm0, %v3399_v0  ;;  %3272 = vmatprep.subr.mxu1 %v3399_v0 }
 0x230   : > { %3383 = vrcp.f32 %v1654_v47  ;;  %3265 = vmatmul.mubr.msk.f32.vlgmr.msra.gmra.mrb[20].mxu1 %vm1696_vm4, %v1685_v40  ;;  %3277 = vmatprep.subr.mxu0 %v3399_v0 }
 0x231   : > { %v3374_v36 = vpop.eup %3373  ;;  %3270 = vmatmul.mubr.msk.f32.vlgmr.msra.gmra.mrb[22].mxu0 %vm1696_vm4, %v1686_v46  ;;  %3273 = vmatpush3.msk.msra.mxu1 %vm1700_vm3, %v277_v43 }
 0x232   : > { %v3376_v42 = vpop.eup %3375  ;;  %v1687_v32 = vmul.f32 %v3374_v36, %v3721_v51  ;;  %v1657_v48 = vpop.xlane.xlu1 %1656  ;;  %3274 = vmatprep.mubr.msk.f32.mxu1 %vm3400_vm0, %v3399_v0  ;;  %3278 = vmatpush3.msk.msra.mxu0 %vm1700_vm3, %v278_v27 }
 0x233   : > { %v1688_v53 = vmul.f32 %v3376_v42, %v3723_v54  ;;  %3385 = vrcp.f32 %v1657_v48  ;;  %v1660_v56 = vpop.xlane.xlu0 %1659  ;;  %3279 = vmatprep.mubr.msk.f32.mxu0 %vm3400_vm0, %v3399_v0  ;;  %3282 = vmatprep.subr.mxu1 %v3399_v0 }
 0x234   : > { %3387 = vrcp.f32 %v1660_v56  ;;  %3275 = vmatmul.mubr.msk.f32.vlgmr.msra.gmra.mrb[22].mxu1 %vm1696_vm4, %v1687_v32  ;;  %3287 = vmatprep.subr.mxu0 %v3399_v0 }
 0x235   : > { %v3378_v51 = vpop.eup %3377  ;;  %3280 = vmatmul.mubr.msk.f32.vlgmr.msra.gmra.mrb[24].mxu0 %vm1696_vm4, %v1688_v53  ;;  %3283 = vmatpush3.msk.msra.mxu1 %vm1700_vm3, %v279_v52 }
 0x236   : > { %v3380_v54 = vpop.eup %3379  ;;  %v1689_v38 = vmul.f32 %v3378_v51, %v3730_v58  ;;  %v1663_v44 = vpop.xlane.xlu1 %1662  ;;  %3284 = vmatprep.mubr.msk.f32.mxu1 %vm3400_vm0, %v3399_v0  ;;  %3288 = vmatpush3.msk.msra.mxu0 %vm1700_vm3, %v280_v57 }
 0x237   : > { %v1690_v62 = vmul.f32 %v3380_v54, %v3732_v61  ;;  %3389 = vrcp.f32 %v1663_v44  ;;  %3289 = vmatprep.mubr.msk.f32.mxu0 %vm3400_vm0, %v3399_v0  ;;  %3292 = vmatprep.subr.mxu1 %v3399_v0 }
 0x238   : > { %3285 = vmatmul.mubr.msk.f32.vlgmr.msra.gmra.mrb[24].mxu1 %vm1696_vm4, %v1689_v38  ;;  %3297 = vmatprep.subr.mxu0 %v3399_v0 }
 0x239   : > { %v3382_v58 = vpop.eup %3381  ;;  %3290 = vmatmul.mubr.msk.f32.vlgmr.msra.gmra.mrb[26].mxu0 %vm1696_vm4, %v1690_v62  ;;  %3293 = vmatpush3.msk.msra.mxu1 %vm1700_vm3, %v281_v59 }
 0x23a   : > { %v3384_v3 = vpop.eup %3383  ;;  %v1691_v61 = vmul.f32 %v3382_v58, %v3738_v63  ;;  %3294 = vmatprep.mubr.msk.f32.mxu1 %vm3400_vm0, %v3399_v0  ;;  %3298 = vmatpush3.msk.msra.mxu0 %vm1700_vm3, %v282_v49 }
 0x23b   : > { %v1692_v6 = vmul.f32 %v3384_v3, %v3740_v1  ;;  %3299 = vmatprep.mubr.msk.f32.mxu0 %vm3400_vm0, %v3399_v0  ;;  %3302 = vmatprep.subr.mxu1 %v3399_v0  ;;  %v285_v1 = vld [vmem:[%s3750_s8 + $0x3c] sm:$0xf] }
 0x23c   : > { %3295 = vmatmul.mubr.msk.f32.vlgmr.msra.gmra.mrb[26].mxu1 %vm1696_vm4, %v1691_v61  ;;  %3307 = vmatprep.subr.mxu0 %v3399_v0 }
 0x23d   : > { %v3386_v63 = vpop.eup %3385  ;;  %3300 = vmatmul.mubr.msk.f32.vlgmr.msra.gmra.mrb[28].mxu0 %vm1696_vm4, %v1692_v6  ;;  %3303 = vmatpush3.msk.msra.mxu1 %vm1700_vm3, %v283_v4 }
 0x23e   : > { %v3388_v9 = vpop.eup %3387  ;;  %v1693_v11 = vmul.f32 %v3386_v63, %v3752_v5  ;;  %3304 = vmatprep.mubr.msk.f32.mxu1 %vm3400_vm0, %v3399_v0  ;;  %3308 = vmatpush3.msk.msra.mxu0 %vm1700_vm3, %v284_v37 }
 0x23f   : > { %v1694_v39 = vmul.f32 %v3388_v9, %v3755_v8  ;;  %3309 = vmatprep.mubr.msk.f32.mxu0 %vm3400_vm0, %v3399_v0  ;;  %3312 = vmatprep.subr.mxu1 %v3399_v0 }
 0x240   : > { %3305 = vmatmul.mubr.msk.f32.vlgmr.msra.gmra.mrb[28].mxu1 %vm1696_vm4, %v1693_v11 }
 0x241   : > { %v3390_v13 = vpop.eup %3389  ;;  %3310 = vmatmul.mubr.msk.f32.vlgmr.msra.gmra.mrb[30].mxu0 %vm1696_vm4, %v1694_v39  ;;  %3313 = vmatpush3.msk.msra.mxu1 %vm1700_vm3, %v285_v1 }
 0x242   : > { %v1695_v5 = vmul.f32 %v3390_v13, %v3763_v10  ;;  %3314 = vmatprep.mubr.msk.f32.mxu1 %vm3400_vm0, %v3399_v0 }
 0x244   : > { %3315 = vmatmul.mubr.msk.f32.vlgmr.msra.gmra.mrb[30].mxu1 %vm1696_vm4, %v1695_v5 }
 0x2f7   : > { %v1770_v8 = vpop.f32.mrb[16].mxu0 }
 0x2f8   : > { %2915 = vst.msk [vmem:[%s3874_s11] sm:$0xf] %vm2914_vm5, %v1770_v8  ;;  %v3241_v10 = vpop.f32.mrb[17].mxu0 }
 0x2fb   : > { %v1846_v14 = vpop.f32.mrb[16].mxu1 }
 0x2fc   : > { %2916 = vst.msk [vmem:[%s3874_s11 + $0x4] sm:$0xf] %vm2914_vm5, %v1846_v14  ;;  %v1922_v0 = vpop.f32.mrb[18].mxu0  ;;  %v3246_v15 = vpop.f32.mrb[17].mxu1 }
 0x2fd   : > { %2917 = vst.msk [vmem:[%s3874_s11 + $0x8] sm:$0xf] %vm2914_vm5, %v1922_v0  ;;  %v3251_v16 = vpop.f32.mrb[19].mxu0 }
 0x2ff   : > { %v1998_v50 = vpop.f32.mrb[18].mxu1 }
 0x300   : > { %2918 = vst.msk [vmem:[%s3874_s11 + $0xc] sm:$0xf] %vm2914_vm5, %v1998_v50  ;;  %v2074_v55 = vpop.f32.mrb[20].mxu0  ;;  %v3256_v18 = vpop.f32.mrb[19].mxu1 }
 0x301   : > { %2919 = vst.msk [vmem:[%s3874_s11 + $0x10] sm:$0xf] %vm2914_vm5, %v2074_v55  ;;  %v3261_v2 = vpop.f32.mrb[21].mxu0 }
 0x303   : > { %v2150_v19 = vpop.f32.mrb[20].mxu1 }
 0x304   : > { %2920 = vst.msk [vmem:[%s3874_s11 + $0x14] sm:$0xf] %vm2914_vm5, %v2150_v19  ;;  %v2226_v21 = vpop.f32.mrb[22].mxu0  ;;  %v3266_v23 = vpop.f32.mrb[21].mxu1 }
 0x305   : > { %2921 = vst.msk [vmem:[%s3874_s11 + $0x18] sm:$0xf] %vm2914_vm5, %v2226_v21  ;;  %v3271_v24 = vpop.f32.mrb[23].mxu0 }
 0x307   : > { %v2302_v25 = vpop.f32.mrb[22].mxu1 }
 0x308   : > { %2922 = vst.msk [vmem:[%s3874_s11 + $0x1c] sm:$0xf] %vm2914_vm5, %v2302_v25  ;;  %v2378_v7 = vpop.f32.mrb[24].mxu0  ;;  %v3276_v12 = vpop.f32.mrb[23].mxu1 }
 0x309   : > { %2923 = vst.msk [vmem:[%s3874_s11 + $0x20] sm:$0xf] %vm2914_vm5, %v2378_v7  ;;  %v3281_v45 = vpop.f32.mrb[25].mxu0 }
 0x30b   : > { %v2454_v28 = vpop.f32.mrb[24].mxu1 }
 0x30c   : > { %2924 = vst.msk [vmem:[%s3874_s11 + $0x24] sm:$0xf] %vm2914_vm5, %v2454_v28  ;;  %v2530_v29 = vpop.f32.mrb[26].mxu0  ;;  %v3286_v31 = vpop.f32.mrb[25].mxu1 }
 0x30d   : > { %2925 = vst.msk [vmem:[%s3874_s11 + $0x28] sm:$0xf] %vm2914_vm5, %v2530_v29  ;;  %v3291_v60 = vpop.f32.mrb[27].mxu0 }
 0x30f   : > { %v2606_v33 = vpop.f32.mrb[26].mxu1 }
 0x310   : > { %2926 = vst.msk [vmem:[%s3874_s11 + $0x2c] sm:$0xf] %vm2914_vm5, %v2606_v33  ;;  %v2682_v34 = vpop.f32.mrb[28].mxu0  ;;  %v3296_v20 = vpop.f32.mrb[27].mxu1 }
 0x311   : > { %2927 = vst.msk [vmem:[%s3874_s11 + $0x30] sm:$0xf] %vm2914_vm5, %v2682_v34  ;;  %v3301_v17 = vpop.f32.mrb[29].mxu0 }
 0x313   : > { %v2758_v22 = vpop.f32.mrb[28].mxu1 }
 0x314   : > { %2928 = vst.msk [vmem:[%s3874_s11 + $0x34] sm:$0xf] %vm2914_vm5, %v2758_v22  ;;  %v2834_v35 = vpop.f32.mrb[30].mxu0  ;;  %v3306_v26 = vpop.f32.mrb[29].mxu1 }
 0x315   : > { %2929 = vst.msk [vmem:[%s3874_s11 + $0x38] sm:$0xf] %vm2914_vm5, %v2834_v35  ;;  %v3311_v30 = vpop.f32.mrb[31].mxu0 }
 0x317   : > { %v2910_v40 = vpop.f32.mrb[30].mxu1 }
 0x318   : > { %2930 = vst.msk [vmem:[%s3874_s11 + $0x3c] sm:$0xf] %vm2914_vm5, %v2910_v40  ;;  %v3316_v41 = vpop.f32.mrb[31].mxu1 }
 0x319 PF: > { %s14_s15 = sadd.s32 1, %s3397_s15  }
 0x31a   : > { %p11_p4 = scmp.ge.s32.totalorder %s14_s15, 4  }
 0x31c   :  { %13 = sbr.rel (!%p11_p4) target bundleno = 1 (0x1), region = 72 }

// kernel: _lambda_.41
= control target key start
LH: loop header
LB: loop body
LE: loop exit
PB: predicated region body
PF: predicated region fallthrough
CT: control target
= control target key end

     0   :  { %vm29_vm0 = vcmask 261120   ;;  %vm127_vm1 = vcmask 785408   ;;  %s238_s1 = inlined_call_operand.vmem [shape: f32[32,96], index: 1, kind: input, shape index: {}]   ;;  %s239_s0 = inlined_call_operand.vmem [shape: f32[32,32], index: 0, kind: input, shape index: {}]   ;;  %s240_s2 = inlined_call_operand.vmem [shape: f32[1,96], index: 2, kind: input, shape index: {}]   ;;  %s241_s3 = inlined_call_operand.vmem [shape: f32[32,96], index: 3, kind: output, shape index: {}]  }
   0x1   :  { %v18_v0 = vld [vmem:[%s238_s1] sm:$0xff]  ;;  %v19_v1 = vld [vmem:[%s238_s1 + $0x8] sm:$0xff]  ;;  %v20_v2 = vld [vmem:[%s238_s1 + $0x10] sm:$0xff] }
   0x2   :  { %v163_v3 = vpack.c.bf16 %v19_v1, %v18_v0  ;;  %v21_v4 = vld [vmem:[%s238_s1 + $0x18] sm:$0xff]  ;;  %v14_v5 = vld [vmem:[%s239_s0] sm:$0xff]  ;;  %v16_v6 = vld [vmem:[%s239_s0 + $0x10] sm:$0xff] }
   0x3   :  { %v167_v7 = vpack.c.bf16 %v21_v4, %v20_v2  ;;  %157 = vmatprep.mubr.msk.f32.mxu0 %vm29_vm0, %v14_v5  ;;  %160 = vmatprep.mubr.msk.f32.mxu1 %vm29_vm0, %v16_v6  ;;  %v15_v8 = vld [vmem:[%s239_s0 + $0x8] sm:$0xff]  ;;  %v17_v9 = vld [vmem:[%s239_s0 + $0x18] sm:$0xff]  ;;  %v136_v10 = vld [vmem:[%s240_s2] ss:$0 sm:$0xff] }
   0x4   :  { %164 = vmatprep.subr.bf16.mxu0 %v163_v3  ;;  %171 = vmatprep.subr.bf16.mxu1 %v163_v3 }
   0x5   :  { %166 = vmatpush3.bf16.msra.mxu0 %v163_v3  ;;  %173 = vmatpush3.bf16.msra.mxu1 %v163_v3 }
   0x6   :  { %168 = vmatprep.subr.bf16.mxu0 %v167_v7  ;;  %172 = vmatprep.subr.bf16.mxu1 %v167_v7 }
   0x9   :  { %170 = vmatpush3.bf16.msra.mxu0 %v167_v7  ;;  %174 = vmatpush3.bf16.msra.mxu1 %v167_v7 }
   0xc   :  { %158 = vmatmul.mubr.msk.f32.vlgmr.msra.gmra.mrb[0].mxu0 %vm29_vm0, %v15_v8  ;;  %161 = vmatmul.mubr.msk.f32.vlgmr.msra.gmra.mrb[0].mxu1 %vm29_vm0, %v17_v9 }
  0xdf   :  { %v159_v11 = vpop.f32.mrb[0].mxu0  ;;  %v162_v12 = vpop.f32.mrb[0].mxu1 }
  0xe0   :  { %v114_v13 = vadd.f32 %v159_v11, %v136_v10  ;;  %v124_v14 = vadd.f32 %v162_v12, %v136_v10  ;;  %v108_v15 = vpop.f32.mrb[1].mxu0  ;;  %v118_v16 = vpop.f32.mrb[1].mxu1 }
  0xe1   :  { %v109_v17 = vadd.f32 %v136_v10, %v108_v15  ;;  %v119_v18 = vadd.f32 %v136_v10, %v118_v16 }
  0xe2   :  { %129 = vst.msk [vmem:[%s241_s3 + $0x8] sm:$0xff] %vm127_vm1, %v114_v13  ;;  %131 = vst.msk [vmem:[%s241_s3 + $0x18] sm:$0xff] %vm127_vm1, %v124_v14 }
  0xe3   :  { %128 = vst.msk [vmem:[%s241_s3] sm:$0xff] %vm127_vm1, %v109_v17  ;;  %130 = vst.msk [vmem:[%s241_s3 + $0x10] sm:$0xff] %vm127_vm1, %v119_v18 }

// kernel: _lambda_.40
= control target key start
LH: loop header
LB: loop body
LE: loop exit
PB: predicated region body
PF: predicated region fallthrough
CT: control target
= control target key end

     0   :  { %vm23_vm0 = vcmask 523264   ;;  %vm202_vm1 = vcmask 261120   ;;  %s394_s0 = inlined_call_operand.vmem [shape: f32[32,64], index: 0, kind: input, shape index: {}]   ;;  %s395_s3 = inlined_call_operand.vmem [shape: f32[64,32], index: 3, kind: input, shape index: {}]   ;;  %s396_s1 = inlined_call_operand.vmem [shape: f32[1,64], index: 1, kind: input, shape index: {}]   ;;  %s397_s2 = inlined_call_operand.vmem [shape: f32[1,64], index: 2, kind: input, shape index: {}]   ;;  %s398_s4 = inlined_call_operand.vmem [shape: f32[32,32], index: 4, kind: output, shape index: {}]  }
   0x1   :  { %v17_v0 = vld [vmem:[%s394_s0] sm:$0xff]  ;;  %v18_v1 = vld [vmem:[%s394_s0 + $0x8] sm:$0xff]  ;;  %v19_v2 = vld [vmem:[%s394_s0 + $0x10] sm:$0xff] }
   0x2   :  { %v24_v3 = vsel %vm23_vm0, %v17_v0, 0.0  ;;  %v27_v4 = vsel %vm23_vm0, %v18_v1, 0.0  ;;  %v20_v5 = vld [vmem:[%s394_s0 + $0x18] sm:$0xff]  ;;  %v30_v6 = vsel %vm23_vm0, %v19_v2, 0.0  ;;  %v97_v28 = vld [vmem:[%s395_s3] sm:$0xff]  ;;  %v98_v29 = vld [vmem:[%s395_s3 + $0x8] sm:$0xff] }
   0x3   :  { %25 = vadd.xlane.f32.xlu0 %v24_v3  ;;  %28 = vadd.xlane.f32.xlu1 %v27_v4  ;;  %v33_v7 = vsel %vm23_vm0, %v20_v5, 0.0  ;;  %v251_v30 = vpack.c.bf16 %v98_v29, %v97_v28  ;;  %v99_v31 = vld [vmem:[%s395_s3 + $0x10] sm:$0xff]  ;;  %v100_v32 = vld [vmem:[%s395_s3 + $0x18] sm:$0xff]  ;;  %v101_v34 = vld [vmem:[%s395_s3 + $0x20] sm:$0xff] }
   0x4   :  { %v255_v33 = vpack.c.bf16 %v100_v32, %v99_v31  ;;  %v102_v35 = vld [vmem:[%s395_s3 + $0x28] sm:$0xff]  ;;  %v103_v37 = vld [vmem:[%s395_s3 + $0x30] sm:$0xff]  ;;  %v104_v38 = vld [vmem:[%s395_s3 + $0x38] sm:$0xff] }
   0x5   :  { %252 = vmatprep.subr.bf16.mxu0 %v251_v30  ;;  %267 = vmatprep.subr.bf16.mxu1 %v251_v30  ;;  %v259_v36 = vpack.c.bf16 %v102_v35, %v101_v34  ;;  %v263_v39 = vpack.c.bf16 %v104_v38, %v103_v37  ;;  %v211_v53 = vld [vmem:[%s396_s1] ss:$0 sm:$0xff] }
   0x6   :  { %254 = vmatpush3.bf16.msra.mxu0 %v251_v30  ;;  %271 = vmatpush3.bf16.msra.mxu1 %v251_v30  ;;  %v212_v55 = vld [vmem:[%s397_s2] ss:$0 sm:$0xff] }
   0x7   :  { %31 = vadd.xlane.f32.xlu0 %v30_v6  ;;  %34 = vadd.xlane.f32.xlu1 %v33_v7 }
   0x8   :  { %256 = vmatprep.subr.bf16.mxu0 %v255_v33  ;;  %268 = vmatprep.subr.bf16.mxu1 %v255_v33 }
   0xa   :  { %258 = vmatpush3.bf16.msra.mxu0 %v255_v33  ;;  %272 = vmatpush3.bf16.msra.mxu1 %v255_v33 }
   0xb   :  { %260 = vmatprep.subr.bf16.mxu0 %v259_v36  ;;  %269 = vmatprep.subr.bf16.mxu1 %v259_v36 }
   0xe   :  { %262 = vmatpush3.bf16.msra.mxu0 %v259_v36  ;;  %273 = vmatpush3.bf16.msra.mxu1 %v259_v36 }
   0xf   :  { %264 = vmatprep.subr.bf16.mxu0 %v263_v39  ;;  %270 = vmatprep.subr.bf16.mxu1 %v263_v39 }
  0x12   :  { %266 = vmatpush3.bf16.msra.mxu0 %v263_v39  ;;  %274 = vmatpush3.bf16.msra.mxu1 %v263_v39 }
  0x90   :  { %v26_v8 = vpop.xlane.xlu0 %25  ;;  %v29_v9 = vpop.xlane.xlu1 %28 }
  0x91   :  { %v37_v10 = vmul.f32 0.015625, %v26_v8  ;;  %v38_v11 = vmul.f32 0.015625, %v29_v9 }
  0x93   :  { %v324_v12 = vsub.f32 %v17_v0, %v37_v10  ;;  %v326_v13 = vsub.f32 %v18_v1, %v38_v11 }
  0x94   :  { %v32_v14 = vpop.xlane.xlu0 %31  ;;  %v35_v15 = vpop.xlane.xlu1 %34 }
  0x95   :  { %v39_v16 = vmul.f32 0.015625, %v32_v14  ;;  %v40_v17 = vmul.f32 0.015625, %v35_v15  ;;  %v45_v18 = vmul.f32 %v324_v12, %v324_v12  ;;  %v46_v19 = vmul.f32 %v326_v13, %v326_v13 }
  0x97   :  { %v332_v20 = vsub.f32 %v19_v2, %v39_v16  ;;  %v334_v21 = vsub.f32 %v20_v5, %v40_v17  ;;  %v49_v22 = vsel %vm23_vm0, %v45_v18, 0.0  ;;  %v52_v23 = vsel %vm23_vm0, %v46_v19, 0.0 }
  0x98   :  { %50 = vadd.xlane.f32.xlu0 %v49_v22 }
  0x99   :  { %v47_v24 = vmul.f32 %v332_v20, %v332_v20  ;;  %v48_v25 = vmul.f32 %v334_v21, %v334_v21 }
  0x9b   :  { %v55_v26 = vsel %vm23_vm0, %v47_v24, 0.0  ;;  %v58_v27 = vsel %vm23_vm0, %v48_v25, 0.0 }
  0x9c   :  { %53 = vadd.xlane.f32.xlu0 %v52_v23  ;;  %56 = vadd.xlane.f32.xlu1 %v55_v26 }
  0xa0   :  { %59 = vadd.xlane.f32.xlu1 %v58_v27 }
 0x125   :  { %v51_v40 = vpop.xlane.xlu0 %50 }
 0x126   :  { %v61_v41 = vmul.f32 0.015625, %v51_v40 }
 0x128   :  { %v65_v42 = vadd.f32 1e-05, %v61_v41 }
 0x129   :  { %v57_v43 = vpop.xlane.xlu1 %56  ;;  %v54_v44 = vpop.xlane.xlu0 %53 }
 0x12a   :  { %275 = vrsqrt.f32 %v65_v42  ;;  %v63_v45 = vmul.f32 0.015625, %v57_v43  ;;  %v62_v46 = vmul.f32 0.015625, %v54_v44 }
 0x12c   :  { %v67_v47 = vadd.f32 1e-05, %v63_v45  ;;  %v66_v48 = vadd.f32 1e-05, %v62_v46 }
 0x12d   :  { %v60_v49 = vpop.xlane.xlu1 %59 }
 0x12e   :  { %277 = vrsqrt.f32 %v67_v47  ;;  %v64_v50 = vmul.f32 0.015625, %v60_v49 }
 0x12f   :  { %279 = vrsqrt.f32 %v66_v48 }
 0x130   :  { %v68_v51 = vadd.f32 1e-05, %v64_v50 }
 0x132   :  { %281 = vrsqrt.f32 %v68_v51 }
 0x134   :  { %v276_v52 = vpop.eup %275 }
 0x135   :  { %v73_v54 = vmul.f32 %v276_v52, %v324_v12 }
 0x137   :  { %v83_v56 = vmul.f32 %v211_v53, %v73_v54 }
 0x138   :  { %v278_v57 = vpop.eup %277 }
 0x139   :  { %v280_v58 = vpop.eup %279  ;;  %v93_v59 = vadd.f32 %v212_v55, %v83_v56  ;;  %v75_v60 = vmul.f32 %v278_v57, %v332_v20 }
 0x13a   :  { %v74_v61 = vmul.f32 %v280_v58, %v326_v13 }
 0x13b   :  { %245 = vmatprep.mubr.msk.f32.mxu0 %vm23_vm0, %v93_v59  ;;  %v85_v62 = vmul.f32 %v211_v53, %v75_v60 }
 0x13c   :  { %v282_v63 = vpop.eup %281  ;;  %v84_v0 = vmul.f32 %v211_v53, %v74_v61 }
 0x13d   :  { %v95_v1 = vadd.f32 %v212_v55, %v85_v62  ;;  %v76_v2 = vmul.f32 %v282_v63, %v334_v21 }
 0x13e   :  { %v94_v3 = vadd.f32 %v212_v55, %v84_v0 }
 0x13f   :  { %248 = vmatprep.mubr.msk.f32.mxu1 %vm23_vm0, %v95_v1  ;;  %v86_v4 = vmul.f32 %v211_v53, %v76_v2 }
 0x140   :  { %246 = vmatmul.mubr.msk.f32.vlgmr.msra.gmra.mrb[0].mxu0 %vm23_vm0, %v94_v3 }
 0x141   :  { %v96_v5 = vadd.f32 %v212_v55, %v86_v4 }
 0x143   :  { %249 = vmatmul.mubr.msk.f32.vlgmr.msra.gmra.mrb[0].mxu1 %vm23_vm0, %v96_v5 }
 0x213   :  { %v247_v6 = vpop.f32.mrb[0].mxu0 }
 0x214   :  { %204 = vst.msk [vmem:[%s398_s4 + $0x8] sm:$0xff] %vm202_vm1, %v247_v6  ;;  %v183_v7 = vpop.f32.mrb[1].mxu0 }
 0x215   :  { %203 = vst.msk [vmem:[%s398_s4] sm:$0xff] %vm202_vm1, %v183_v7 }
 0x216   :  { %v250_v8 = vpop.f32.mrb[0].mxu1 }
 0x217   :  { %206 = vst.msk [vmem:[%s398_s4 + $0x18] sm:$0xff] %vm202_vm1, %v250_v8  ;;  %v193_v9 = vpop.f32.mrb[1].mxu1 }
 0x218   :  { %205 = vst.msk [vmem:[%s398_s4 + $0x10] sm:$0xff] %vm202_vm1, %v193_v9 }

// kernel: _lambda_.39
= control target key start
LH: loop header
LB: loop body
LE: loop exit
PB: predicated region body
PF: predicated region fallthrough
CT: control target
= control target key end

     0   :  { %vm32_vm0 = vcmask 130048   ;;  %s666_s0 = inlined_call_operand.vmem [shape: f32[128,16], index: 0, kind: input, shape index: {}]   ;;  %s667_s1 = inlined_call_operand.vmem [shape: f32[1,16], index: 1, kind: input, shape index: {}]   ;;  %s668_s2 = inlined_call_operand.vmem [shape: f32[1,16], index: 2, kind: input, shape index: {}]   ;;  %s669_s3 = inlined_call_operand.vmem [shape: f32[128,16], index: 3, kind: output, shape index: {}]  }
   0x1   :  { %v14_v0 = vld [vmem:[%s666_s0] sm:$0xff]  ;;  %v16_v1 = vld [vmem:[%s666_s0 + $0x10] sm:$0xff]  ;;  %v15_v2 = vld [vmem:[%s666_s0 + $0x8] sm:$0xff] }
   0x2   :  { %v33_v3 = vsel %vm32_vm0, %v14_v0, 0.0  ;;  %v39_v4 = vsel %vm32_vm0, %v16_v1, 0.0  ;;  %v17_v5 = vld [vmem:[%s666_s0 + $0x18] sm:$0xff]  ;;  %v36_v6 = vsel %vm32_vm0, %v15_v2, 0.0  ;;  %v18_v8 = vld [vmem:[%s666_s0 + $0x20] sm:$0xff]  ;;  %v19_v9 = vld [vmem:[%s666_s0 + $0x28] sm:$0xff] }
   0x3   :  { %34 = vadd.xlane.f32.xlu0 %v33_v3  ;;  %40 = vadd.xlane.f32.xlu1 %v39_v4  ;;  %v42_v7 = vsel %vm32_vm0, %v17_v5, 0.0  ;;  %v45_v10 = vsel %vm32_vm0, %v18_v8, 0.0  ;;  %v48_v11 = vsel %vm32_vm0, %v19_v9, 0.0  ;;  %v387_v12 = vld [vmem:[%s666_s0 + $0x30] sm:$0xff]  ;;  %v392_v13 = vld [vmem:[%s666_s0 + $0x38] sm:$0xff]  ;;  %v401_v16 = vld [vmem:[%s666_s0 + $0x40] sm:$0xff] }
   0x4   :  { %v51_v14 = vsel %vm32_vm0, %v387_v12, 0.0  ;;  %v54_v15 = vsel %vm32_vm0, %v392_v13, 0.0  ;;  %v406_v17 = vld [vmem:[%s666_s0 + $0x48] sm:$0xff]  ;;  %v57_v18 = vsel %vm32_vm0, %v401_v16, 0.0  ;;  %v415_v20 = vld [vmem:[%s666_s0 + $0x50] sm:$0xff]  ;;  %v420_v21 = vld [vmem:[%s666_s0 + $0x58] sm:$0xff] }
   0x5   :  { %v60_v19 = vsel %vm32_vm0, %v406_v17, 0.0  ;;  %v63_v22 = vsel %vm32_vm0, %v415_v20, 0.0  ;;  %v66_v23 = vsel %vm32_vm0, %v420_v21, 0.0  ;;  %v429_v24 = vld [vmem:[%s666_s0 + $0x60] sm:$0xff]  ;;  %v434_v25 = vld [vmem:[%s666_s0 + $0x68] sm:$0xff]  ;;  %v443_v28 = vld [vmem:[%s666_s0 + $0x70] sm:$0xff] }
   0x6   :  { %v69_v26 = vsel %vm32_vm0, %v429_v24, 0.0  ;;  %v72_v27 = vsel %vm32_vm0, %v434_v25, 0.0  ;;  %v448_v29 = vld [vmem:[%s666_s0 + $0x78] sm:$0xff]  ;;  %v75_v30 = vsel %vm32_vm0, %v443_v28, 0.0 }
   0x7   :  { %37 = vadd.xlane.f32.xlu0 %v36_v6  ;;  %43 = vadd.xlane.f32.xlu1 %v42_v7  ;;  %v78_v31 = vsel %vm32_vm0, %v448_v29, 0.0 }
   0xb   :  { %46 = vadd.xlane.f32.xlu0 %v45_v10  ;;  %49 = vadd.xlane.f32.xlu1 %v48_v11 }
   0xf   :  { %52 = vadd.xlane.f32.xlu0 %v51_v14  ;;  %55 = vadd.xlane.f32.xlu1 %v54_v15 }
  0x13   :  { %58 = vadd.xlane.f32.xlu0 %v57_v18  ;;  %61 = vadd.xlane.f32.xlu1 %v60_v19 }
  0x17   :  { %64 = vadd.xlane.f32.xlu0 %v63_v22  ;;  %67 = vadd.xlane.f32.xlu1 %v66_v23 }
  0x1b   :  { %70 = vadd.xlane.f32.xlu0 %v69_v26  ;;  %73 = vadd.xlane.f32.xlu1 %v72_v27 }
  0x1f   :  { %76 = vadd.xlane.f32.xlu0 %v75_v30  ;;  %79 = vadd.xlane.f32.xlu1 %v78_v31 }
  0x90   :  { %v35_v32 = vpop.xlane.xlu0 %34  ;;  %v41_v33 = vpop.xlane.xlu1 %40 }
  0x91   :  { %v82_v34 = vmul.f32 0.0625, %v35_v32  ;;  %v84_v35 = vmul.f32 0.0625, %v41_v33 }
  0x93   :  { %v454_v36 = vsub.f32 %v14_v0, %v82_v34  ;;  %v456_v37 = vsub.f32 %v16_v1, %v84_v35 }
  0x94   :  { %v38_v38 = vpop.xlane.xlu0 %37  ;;  %v44_v39 = vpop.xlane.xlu1 %43 }
  0x95   :  { %v83_v40 = vmul.f32 0.0625, %v38_v38  ;;  %v85_v41 = vmul.f32 0.0625, %v44_v39  ;;  %v114_v42 = vmul.f32 %v454_v36, %v454_v36  ;;  %v116_v43 = vmul.f32 %v456_v37, %v456_v37 }
  0x97   :  { %v462_v44 = vsub.f32 %v15_v2, %v83_v40  ;;  %v464_v45 = vsub.f32 %v17_v5, %v85_v41  ;;  %v130_v46 = vsel %vm32_vm0, %v114_v42, 0.0  ;;  %v136_v49 = vsel %vm32_vm0, %v116_v43, 0.0 }
  0x98   :  { %131 = vadd.xlane.f32.xlu0 %v130_v46  ;;  %v47_v47 = vpop.xlane.xlu0 %46  ;;  %v50_v48 = vpop.xlane.xlu1 %49 }
  0x99   :  { %v86_v50 = vmul.f32 0.0625, %v47_v47  ;;  %v87_v51 = vmul.f32 0.0625, %v50_v48  ;;  %v115_v52 = vmul.f32 %v462_v44, %v462_v44  ;;  %v117_v53 = vmul.f32 %v464_v45, %v464_v45 }
  0x9b   :  { %v472_v54 = vsub.f32 %v18_v8, %v86_v50  ;;  %v474_v55 = vsub.f32 %v19_v9, %v87_v51  ;;  %v133_v56 = vsel %vm32_vm0, %v115_v52, 0.0  ;;  %v139_v59 = vsel %vm32_vm0, %v117_v53, 0.0 }
  0x9c   :  { %137 = vadd.xlane.f32.xlu0 %v136_v49  ;;  %134 = vadd.xlane.f32.xlu1 %v133_v56  ;;  %v53_v57 = vpop.xlane.xlu0 %52  ;;  %v56_v58 = vpop.xlane.xlu1 %55 }
  0x9d   :  { %v88_v60 = vmul.f32 0.0625, %v53_v57  ;;  %v89_v61 = vmul.f32 0.0625, %v56_v58  ;;  %v118_v62 = vmul.f32 %v472_v54, %v472_v54  ;;  %v119_v63 = vmul.f32 %v474_v55, %v474_v55 }
  0x9f   :  { %v483_v0 = vsub.f32 %v387_v12, %v88_v60  ;;  %v486_v1 = vsub.f32 %v392_v13, %v89_v61  ;;  %v142_v2 = vsel %vm32_vm0, %v118_v62, 0.0  ;;  %v145_v5 = vsel %vm32_vm0, %v119_v63, 0.0 }
  0xa0   :  { %140 = vadd.xlane.f32.xlu1 %v139_v59  ;;  %143 = vadd.xlane.f32.xlu0 %v142_v2  ;;  %v59_v3 = vpop.xlane.xlu0 %58  ;;  %v62_v4 = vpop.xlane.xlu1 %61 }
  0xa1   :  { %v90_v6 = vmul.f32 0.0625, %v59_v3  ;;  %v91_v7 = vmul.f32 0.0625, %v62_v4  ;;  %v120_v8 = vmul.f32 %v483_v0, %v483_v0  ;;  %v121_v9 = vmul.f32 %v486_v1, %v486_v1 }
  0xa3   :  { %v495_v10 = vsub.f32 %v401_v16, %v90_v6  ;;  %v498_v11 = vsub.f32 %v406_v17, %v91_v7  ;;  %v148_v12 = vsel %vm32_vm0, %v120_v8, 0.0  ;;  %v151_v15 = vsel %vm32_vm0, %v121_v9, 0.0 }
  0xa4   :  { %146 = vadd.xlane.f32.xlu1 %v145_v5  ;;  %149 = vadd.xlane.f32.xlu0 %v148_v12  ;;  %v65_v13 = vpop.xlane.xlu0 %64  ;;  %v68_v14 = vpop.xlane.xlu1 %67 }
  0xa5   :  { %v92_v18 = vmul.f32 0.0625, %v65_v13  ;;  %v93_v19 = vmul.f32 0.0625, %v68_v14  ;;  %v122_v22 = vmul.f32 %v495_v10, %v495_v10  ;;  %v123_v16 = vmul.f32 %v498_v11, %v498_v11  ;;  %v547_v14 = vld [vmem:[%s667_s1] ss:$0 sm:$0xff] }
  0xa7   :  { %v507_v23 = vsub.f32 %v415_v20, %v92_v18  ;;  %v510_v17 = vsub.f32 %v420_v21, %v93_v19  ;;  %v154_v26 = vsel %vm32_vm0, %v122_v22, 0.0  ;;  %v157_v31 = vsel %vm32_vm0, %v123_v16, 0.0 }
  0xa8   :  { %152 = vadd.xlane.f32.xlu1 %v151_v15  ;;  %155 = vadd.xlane.f32.xlu0 %v154_v26  ;;  %v71_v27 = vpop.xlane.xlu0 %70  ;;  %v74_v30 = vpop.xlane.xlu1 %73  ;;  %v553_v26 = vld [vmem:[%s668_s2] ss:$0 sm:$0xff] }
  0xa9   :  { %v94_v32 = vmul.f32 0.0625, %v71_v27  ;;  %v95_v33 = vmul.f32 0.0625, %v74_v30  ;;  %v124_v34 = vmul.f32 %v507_v23, %v507_v23  ;;  %v125_v20 = vmul.f32 %v510_v17, %v510_v17 }
  0xab   :  { %v519_v35 = vsub.f32 %v429_v24, %v94_v32  ;;  %v522_v21 = vsub.f32 %v434_v25, %v95_v33  ;;  %v160_v38 = vsel %vm32_vm0, %v124_v34, 0.0  ;;  %v163_v41 = vsel %vm32_vm0, %v125_v20, 0.0 }
  0xac   :  { %158 = vadd.xlane.f32.xlu1 %v157_v31  ;;  %161 = vadd.xlane.f32.xlu0 %v160_v38  ;;  %v77_v39 = vpop.xlane.xlu0 %76  ;;  %v80_v40 = vpop.xlane.xlu1 %79 }
  0xad   :  { %v96_v42 = vmul.f32 0.0625, %v77_v39  ;;  %v97_v43 = vmul.f32 0.0625, %v80_v40  ;;  %v126_v46 = vmul.f32 %v519_v35, %v519_v35  ;;  %v127_v24 = vmul.f32 %v522_v21, %v522_v21 }
  0xaf   :  { %v531_v47 = vsub.f32 %v443_v28, %v96_v42  ;;  %v534_v25 = vsub.f32 %v448_v29, %v97_v43  ;;  %v166_v48 = vsel %vm32_vm0, %v126_v46, 0.0  ;;  %v169_v49 = vsel %vm32_vm0, %v127_v24, 0.0 }
  0xb0   :  { %164 = vadd.xlane.f32.xlu1 %v163_v41  ;;  %167 = vadd.xlane.f32.xlu0 %v166_v48 }
  0xb1   :  { %v128_v50 = vmul.f32 %v531_v47, %v531_v47  ;;  %v129_v51 = vmul.f32 %v534_v25, %v534_v25 }
  0xb3   :  { %v172_v52 = vsel %vm32_vm0, %v128_v50, 0.0  ;;  %v175_v28 = vsel %vm32_vm0, %v129_v51, 0.0 }
  0xb4   :  { %170 = vadd.xlane.f32.xlu1 %v169_v49  ;;  %173 = vadd.xlane.f32.xlu0 %v172_v52 }
  0xb8   :  { %176 = vadd.xlane.f32.xlu1 %v175_v28 }
 0x125   :  { %v132_v29 = vpop.xlane.xlu0 %131 }
 0x126   :  { %v178_v53 = vmul.f32 0.0625, %v132_v29 }
 0x128   :  { %v194_v56 = vadd.f32 1e-05, %v178_v53 }
 0x129   :  { %v135_v57 = vpop.xlane.xlu1 %134  ;;  %v138_v58 = vpop.xlane.xlu0 %137 }
 0x12a   :  { %308 = vrsqrt.f32 %v194_v56  ;;  %v179_v59 = vmul.f32 0.0625, %v135_v57  ;;  %v180_v60 = vmul.f32 0.0625, %v138_v58 }
 0x12c   :  { %v195_v61 = vadd.f32 1e-05, %v179_v59  ;;  %v196_v62 = vadd.f32 1e-05, %v180_v60 }
 0x12d   :  { %v141_v63 = vpop.xlane.xlu1 %140  ;;  %v144_v2 = vpop.xlane.xlu0 %143 }
 0x12e   :  { %310 = vrsqrt.f32 %v195_v61  ;;  %v181_v3 = vmul.f32 0.0625, %v141_v63  ;;  %v182_v4 = vmul.f32 0.0625, %v144_v2 }
 0x12f   :  { %312 = vrsqrt.f32 %v196_v62 }
 0x130   :  { %v197_v5 = vadd.f32 1e-05, %v181_v3  ;;  %v198_v6 = vadd.f32 1e-05, %v182_v4 }
 0x131   :  { %v147_v7 = vpop.xlane.xlu1 %146  ;;  %v150_v8 = vpop.xlane.xlu0 %149 }
 0x132   :  { %314 = vrsqrt.f32 %v197_v5  ;;  %v183_v9 = vmul.f32 0.0625, %v147_v7  ;;  %v184_v12 = vmul.f32 0.0625, %v150_v8 }
 0x133   :  { %316 = vrsqrt.f32 %v198_v6 }
 0x134   :  { %v309_v13 = vpop.eup %308  ;;  %v199_v15 = vadd.f32 1e-05, %v183_v9  ;;  %v200_v18 = vadd.f32 1e-05, %v184_v12 }
 0x135   :  { %v226_v19 = vmul.f32 %v309_v13, %v454_v36  ;;  %v153_v22 = vpop.xlane.xlu1 %152  ;;  %v156_v16 = vpop.xlane.xlu0 %155 }
 0x136   :  { %318 = vrsqrt.f32 %v199_v15  ;;  %v185_v27 = vmul.f32 0.0625, %v153_v22  ;;  %v186_v30 = vmul.f32 0.0625, %v156_v16 }
 0x137   :  { %v248_v31 = vmul.f32 %v547_v14, %v226_v19  ;;  %320 = vrsqrt.f32 %v200_v18 }
 0x138   :  { %v311_v32 = vpop.eup %310  ;;  %v201_v33 = vadd.f32 1e-05, %v185_v27  ;;  %v202_v34 = vadd.f32 1e-05, %v186_v30 }
 0x139   :  { %v313_v20 = vpop.eup %312  ;;  %v270_v38 = vadd.f32 %v553_v26, %v248_v31  ;;  %v227_v36 = vmul.f32 %v311_v32, %v462_v44  ;;  %v159_v39 = vpop.xlane.xlu1 %158 }
 0x13a   :  { %v162_v40 = vpop.xlane.xlu0 %161  ;;  %v228_v41 = vmul.f32 %v313_v20, %v456_v37  ;;  %322 = vrsqrt.f32 %v201_v33  ;;  %v187_v42 = vmul.f32 0.0625, %v159_v39 }
 0x13b   :  { %v188_v43 = vmul.f32 0.0625, %v162_v40  ;;  %286 = vst.msk [vmem:[%s669_s3] sm:$0xff] %vm32_vm0, %v270_v38  ;;  %v249_v46 = vmul.f32 %v547_v14, %v227_v36  ;;  %324 = vrsqrt.f32 %v202_v34 }
 0x13c   :  { %v315_v24 = vpop.eup %314  ;;  %v250_v48 = vmul.f32 %v547_v14, %v228_v41  ;;  %v203_v49 = vadd.f32 1e-05, %v187_v42 }
 0x13d   :  { %v204_v44 = vadd.f32 1e-05, %v188_v43  ;;  %v317_v50 = vpop.eup %316  ;;  %v271_v51 = vadd.f32 %v553_v26, %v249_v46  ;;  %v229_v37 = vmul.f32 %v315_v24, %v464_v45  ;;  %v165_v52 = vpop.xlane.xlu1 %164 }
 0x13e   :  { %v168_v28 = vpop.xlane.xlu0 %167  ;;  %v272_v29 = vadd.f32 %v553_v26, %v250_v48  ;;  %v230_v53 = vmul.f32 %v317_v50, %v472_v54  ;;  %326 = vrsqrt.f32 %v203_v49  ;;  %v189_v56 = vmul.f32 0.0625, %v165_v52 }
 0x13f   :  { %287 = vst.msk [vmem:[%s669_s3 + $0x8] sm:$0xff] %vm32_vm0, %v271_v51  ;;  %v251_v57 = vmul.f32 %v547_v14, %v229_v37  ;;  %328 = vrsqrt.f32 %v204_v44  ;;  %v190_v58 = vmul.f32 0.0625, %v168_v28 }
 0x140   :  { %v319_v59 = vpop.eup %318  ;;  %288 = vst.msk [vmem:[%s669_s3 + $0x10] sm:$0xff] %vm32_vm0, %v272_v29  ;;  %v252_v45 = vmul.f32 %v547_v14, %v230_v53  ;;  %v205_v54 = vadd.f32 1e-05, %v189_v56 }
 0x141   :  { %v321_v60 = vpop.eup %320  ;;  %v273_v61 = vadd.f32 %v553_v26, %v251_v57  ;;  %v231_v62 = vmul.f32 %v319_v59, %v474_v55  ;;  %v206_v63 = vadd.f32 1e-05, %v190_v58  ;;  %v171_v2 = vpop.xlane.xlu1 %170 }
 0x142   :  { %v174_v3 = vpop.xlane.xlu0 %173  ;;  %v274_v4 = vadd.f32 %v553_v26, %v252_v45  ;;  %v232_v5 = vmul.f32 %v321_v60, %v483_v0  ;;  %330 = vrsqrt.f32 %v205_v54  ;;  %v191_v6 = vmul.f32 0.0625, %v171_v2 }
 0x143   :  { %289 = vst.msk [vmem:[%s669_s3 + $0x18] sm:$0xff] %vm32_vm0, %v273_v61  ;;  %v253_v7 = vmul.f32 %v547_v14, %v231_v62  ;;  %332 = vrsqrt.f32 %v206_v63  ;;  %v192_v8 = vmul.f32 0.0625, %v174_v3 }
 0x144   :  { %v323_v9 = vpop.eup %322  ;;  %290 = vst.msk [vmem:[%s669_s3 + $0x20] sm:$0xff] %vm32_vm0, %v274_v4  ;;  %v254_v55 = vmul.f32 %v547_v14, %v232_v5  ;;  %v207_v0 = vadd.f32 1e-05, %v191_v6 }
 0x145   :  { %v325_v12 = vpop.eup %324  ;;  %v275_v13 = vadd.f32 %v553_v26, %v253_v7  ;;  %v233_v15 = vmul.f32 %v323_v9, %v486_v1  ;;  %v208_v18 = vadd.f32 1e-05, %v192_v8  ;;  %v177_v19 = vpop.xlane.xlu1 %176 }
 0x146   :  { %v276_v22 = vadd.f32 %v553_v26, %v254_v55  ;;  %v234_v16 = vmul.f32 %v325_v12, %v495_v10  ;;  %334 = vrsqrt.f32 %v207_v0  ;;  %v193_v27 = vmul.f32 0.0625, %v177_v19 }
 0x147   :  { %291 = vst.msk [vmem:[%s669_s3 + $0x28] sm:$0xff] %vm32_vm0, %v275_v13  ;;  %v255_v30 = vmul.f32 %v547_v14, %v233_v15  ;;  %336 = vrsqrt.f32 %v208_v18 }
 0x148   :  { %v327_v31 = vpop.eup %326  ;;  %292 = vst.msk [vmem:[%s669_s3 + $0x30] sm:$0xff] %vm32_vm0, %v276_v22  ;;  %v256_v1 = vmul.f32 %v547_v14, %v234_v16  ;;  %v209_v32 = vadd.f32 1e-05, %v193_v27 }
 0x149   :  { %v329_v10 = vpop.eup %328  ;;  %v277_v33 = vadd.f32 %v553_v26, %v255_v30  ;;  %v235_v34 = vmul.f32 %v327_v31, %v498_v11 }
 0x14a   :  { %v278_v20 = vadd.f32 %v553_v26, %v256_v1  ;;  %v236_v38 = vmul.f32 %v329_v10, %v507_v23  ;;  %338 = vrsqrt.f32 %v209_v32 }
 0x14b   :  { %293 = vst.msk [vmem:[%s669_s3 + $0x38] sm:$0xff] %vm32_vm0, %v277_v33  ;;  %v257_v36 = vmul.f32 %v547_v14, %v235_v34 }
 0x14c   :  { %v331_v39 = vpop.eup %330  ;;  %294 = vst.msk [vmem:[%s669_s3 + $0x40] sm:$0xff] %vm32_vm0, %v278_v20  ;;  %v258_v11 = vmul.f32 %v547_v14, %v236_v38 }
 0x14d   :  { %v333_v40 = vpop.eup %332  ;;  %v279_v41 = vadd.f32 %v553_v26, %v257_v36  ;;  %v237_v23 = vmul.f32 %v331_v39, %v510_v17 }
 0x14e   :  { %v280_v42 = vadd.f32 %v553_v26, %v258_v11  ;;  %v238_v43 = vmul.f32 %v333_v40, %v519_v35 }
 0x14f   :  { %295 = vst.msk [vmem:[%s669_s3 + $0x48] sm:$0xff] %vm32_vm0, %v279_v41  ;;  %v259_v46 = vmul.f32 %v547_v14, %v237_v23 }
 0x150   :  { %v335_v24 = vpop.eup %334  ;;  %296 = vst.msk [vmem:[%s669_s3 + $0x50] sm:$0xff] %vm32_vm0, %v280_v42  ;;  %v260_v48 = vmul.f32 %v547_v14, %v238_v43 }
 0x151   :  { %v337_v17 = vpop.eup %336  ;;  %v281_v49 = vadd.f32 %v553_v26, %v259_v46  ;;  %v239_v35 = vmul.f32 %v335_v24, %v522_v21 }
 0x152   :  { %v282_v44 = vadd.f32 %v553_v26, %v260_v48  ;;  %v240_v50 = vmul.f32 %v337_v17, %v531_v47 }
 0x153   :  { %297 = vst.msk [vmem:[%s669_s3 + $0x58] sm:$0xff] %vm32_vm0, %v281_v49  ;;  %v261_v51 = vmul.f32 %v547_v14, %v239_v35 }
 0x154   :  { %v339_v37 = vpop.eup %338  ;;  %298 = vst.msk [vmem:[%s669_s3 + $0x60] sm:$0xff] %vm32_vm0, %v282_v44  ;;  %v262_v52 = vmul.f32 %v547_v14, %v240_v50 }
 0x155   :  { %v283_v21 = vadd.f32 %v553_v26, %v261_v51  ;;  %v241_v28 = vmul.f32 %v339_v37, %v534_v25 }
 0x156   :  { %v284_v47 = vadd.f32 %v553_v26, %v262_v52 }
 0x157   :  { %299 = vst.msk [vmem:[%s669_s3 + $0x68] sm:$0xff] %vm32_vm0, %v283_v21  ;;  %v263_v29 = vmul.f32 %v547_v14, %v241_v28 }
 0x158   :  { %300 = vst.msk [vmem:[%s669_s3 + $0x70] sm:$0xff] %vm32_vm0, %v284_v47 }
 0x159   :  { %v285_v53 = vadd.f32 %v553_v26, %v263_v29 }
 0x15b   :  { %301 = vst.msk [vmem:[%s669_s3 + $0x78] sm:$0xff] %vm32_vm0, %v285_v53 }

// kernel: _lambda_.44
= control target key start
LH: loop header
LB: loop body
LE: loop exit
PB: predicated region body
PF: predicated region fallthrough
CT: control target
= control target key end

     0   :  { %vm41_vm0 = vcmask 261120   ;;  %s682_s1 = inlined_call_operand.vmem [shape: f32[32,128], index: 1, kind: input, shape index: {}]   ;;  %s683_s0 = inlined_call_operand.vmem [shape: f32[32,32], index: 0, kind: input, shape index: {}]   ;;  %s684_s3 = inlined_call_operand.vmem [shape: f32[128,32], index: 3, kind: input, shape index: {}]   ;;  %s685_s2 = inlined_call_operand.vmem [shape: f32[1,128], index: 2, kind: input, shape index: {}]   ;;  %s686_s4 = inlined_call_operand.vmem [shape: f32[1,32], index: 4, kind: input, shape index: {}, may-alias: {4,6}]   ;;  %s687_s5 = inlined_call_operand.vmem [shape: f32[1,32], index: 5, kind: input, shape index: {}]   ;;  %s688_s6 = inlined_call_operand.vmem [shape: f32[1,32], index: 6, kind: input, shape index: {}, may-alias: {4,6}]   ;;  %s689_s7 = inlined_call_operand.vmem [shape: f32[32,32], index: 7, kind: output, shape index: {}]  }
   0x1   :  { %v30_v0 = vld [vmem:[%s682_s1] sm:$0xff]  ;;  %v31_v1 = vld [vmem:[%s682_s1 + $0x8] sm:$0xff]  ;;  %v32_v2 = vld [vmem:[%s682_s1 + $0x10] sm:$0xff] }
   0x2   :  { %v458_v3 = vpack.c.bf16 %v31_v1, %v30_v0  ;;  %v33_v4 = vld [vmem:[%s682_s1 + $0x18] sm:$0xff]  ;;  %v569_v5 = vld [vmem:[%s683_s0] sm:$0xff]  ;;  %v576_v7 = vld [vmem:[%s683_s0 + $0x8] sm:$0xff] }
   0x3   :  { %v462_v6 = vpack.c.bf16 %v33_v4, %v32_v2  ;;  %414 = vmatprep.mubr.msk.f32.mxu0 %vm41_vm0, %v569_v5  ;;  %v581_v8 = vld [vmem:[%s683_s0 + $0x10] sm:$0xff]  ;;  %v590_v9 = vld [vmem:[%s683_s0 + $0x18] sm:$0xff]  ;;  %v175_v10 = vld [vmem:[%s684_s3] sm:$0xff] }
   0x4   :  { %459 = vmatprep.subr.bf16.mxu0 %v458_v3  ;;  %v176_v11 = vld [vmem:[%s684_s3 + $0x8] sm:$0xff]  ;;  %v177_v13 = vld [vmem:[%s684_s3 + $0x10] sm:$0xff]  ;;  %v178_v14 = vld [vmem:[%s684_s3 + $0x18] sm:$0xff] }
   0x5   :  { %461 = vmatpush3.bf16.msra.mxu0 %v458_v3  ;;  %v466_v12 = vpack.c.bf16 %v176_v11, %v175_v10  ;;  %v470_v15 = vpack.c.bf16 %v178_v14, %v177_v13  ;;  %v179_v16 = vld [vmem:[%s684_s3 + $0x20] sm:$0xff]  ;;  %v180_v17 = vld [vmem:[%s684_s3 + $0x28] sm:$0xff]  ;;  %v181_v19 = vld [vmem:[%s684_s3 + $0x30] sm:$0xff] }
   0x6   :  { %463 = vmatprep.subr.bf16.mxu0 %v462_v6  ;;  %v474_v18 = vpack.c.bf16 %v180_v17, %v179_v16  ;;  %v182_v20 = vld [vmem:[%s684_s3 + $0x38] sm:$0xff]  ;;  %v183_v22 = vld [vmem:[%s684_s3 + $0x40] sm:$0xff]  ;;  %v184_v23 = vld [vmem:[%s684_s3 + $0x48] sm:$0xff] }
   0x7   :  { %467 = vmatprep.subr.bf16.mxu1 %v466_v12  ;;  %v478_v21 = vpack.c.bf16 %v182_v20, %v181_v19  ;;  %v482_v24 = vpack.c.bf16 %v184_v23, %v183_v22  ;;  %v185_v25 = vld [vmem:[%s684_s3 + $0x50] sm:$0xff]  ;;  %v186_v26 = vld [vmem:[%s684_s3 + $0x58] sm:$0xff]  ;;  %v187_v27 = vld [vmem:[%s684_s3 + $0x60] sm:$0xff] }
   0x8   :  { %469 = vmatpush3.bf16.msra.mxu1 %v466_v12  ;;  %v486_v28 = vpack.c.bf16 %v186_v26, %v185_v25  ;;  %v188_v29 = vld [vmem:[%s684_s3 + $0x68] sm:$0xff]  ;;  %v189_v31 = vld [vmem:[%s684_s3 + $0x70] sm:$0xff]  ;;  %v190_v32 = vld [vmem:[%s684_s3 + $0x78] sm:$0xff] }
   0x9   :  { %465 = vmatpush3.bf16.msra.mxu0 %v462_v6  ;;  %471 = vmatprep.subr.bf16.mxu1 %v470_v15  ;;  %v490_v30 = vpack.c.bf16 %v188_v29, %v187_v27  ;;  %v494_v33 = vpack.c.bf16 %v190_v32, %v189_v31  ;;  %v370_v34 = vld [vmem:[%s685_s2] ss:$0 sm:$0xff] }
   0xa   :  { %v375_v19 = vld [vmem:[%s686_s4] ss:$0 sm:$0xff] }
   0xc   :  { %415 = vmatmul.mubr.msk.f32.vlgmr.msra.gmra.mrb[0].mxu0 %vm41_vm0, %v576_v7  ;;  %473 = vmatpush3.bf16.msra.mxu1 %v470_v15 }
   0xd   :  { %417 = vmatprep.mubr.msk.f32.mxu0 %vm41_vm0, %v581_v8  ;;  %475 = vmatprep.subr.bf16.mxu1 %v474_v18 }
  0x10   :  { %418 = vmatmul.mubr.msk.f32.gmra.mrb[2].mxu0 %vm41_vm0, %v590_v9  ;;  %477 = vmatpush3.bf16.msra.mxu1 %v474_v18 }
  0x11   :  { %479 = vmatprep.subr.bf16.mxu1 %v478_v21 }
  0x14   :  { %481 = vmatpush3.bf16.msra.mxu1 %v478_v21 }
  0x15   :  { %483 = vmatprep.subr.bf16.mxu1 %v482_v24 }
  0x18   :  { %485 = vmatpush3.bf16.msra.mxu1 %v482_v24 }
  0x19   :  { %487 = vmatprep.subr.bf16.mxu1 %v486_v28 }
  0x1c   :  { %489 = vmatpush3.bf16.msra.mxu1 %v486_v28 }
  0x1d   :  { %491 = vmatprep.subr.bf16.mxu1 %v490_v30 }
  0x20   :  { %493 = vmatpush3.bf16.msra.mxu1 %v490_v30 }
  0x21   :  { %495 = vmatprep.subr.bf16.mxu1 %v494_v33 }
  0x24   :  { %497 = vmatpush3.bf16.msra.mxu1 %v494_v33 }
  0xdf   :  { %v416_v35 = vpop.f32.mrb[0].mxu0 }
  0xe0   :  { %v126_v36 = vadd.f32 %v416_v35, %v370_v34  ;;  %v120_v37 = vpop.f32.mrb[1].mxu0 }
  0xe1   :  { %v121_v38 = vadd.f32 %v370_v34, %v120_v37 }
  0xe2   :  { %v140_v39 = vmul.f32 %v126_v36, %v126_v36 }
  0xe3   :  { %v139_v40 = vmul.f32 %v121_v38, %v121_v38  ;;  %v419_v41 = vpop.f32.mrb[2].mxu0 }
  0xe4   :  { %v144_v42 = vmul.f32 %v140_v39, %v126_v36  ;;  %v136_v43 = vadd.f32 %v419_v41, %v370_v34  ;;  %v130_v44 = vpop.f32.mrb[3].mxu0 }
  0xe5   :  { %v143_v45 = vmul.f32 %v139_v40, %v121_v38  ;;  %v131_v46 = vadd.f32 %v370_v34, %v130_v44 }
  0xe6   :  { %v148_v47 = vmul.f32 0.044715, %v144_v42  ;;  %v142_v48 = vmul.f32 %v136_v43, %v136_v43 }
  0xe7   :  { %v141_v49 = vmul.f32 %v131_v46, %v131_v46  ;;  %v147_v50 = vmul.f32 0.044715, %v143_v45 }
  0xe8   :  { %v152_v51 = vadd.f32 %v148_v47, %v126_v36  ;;  %v146_v52 = vmul.f32 %v142_v48, %v136_v43 }
  0xe9   :  { %v145_v53 = vmul.f32 %v141_v49, %v131_v46  ;;  %v151_v54 = vadd.f32 %v147_v50, %v121_v38 }
  0xea   :  { %v156_v55 = vmul.f32 0.7978846, %v152_v51  ;;  %v150_v56 = vmul.f32 0.044715, %v146_v52 }
  0xeb   :  { %v149_v57 = vmul.f32 0.044715, %v145_v53  ;;  %v155_v58 = vmul.f32 0.7978846, %v151_v54 }
  0xec   :  { %v154_v59 = vadd.f32 %v150_v56, %v136_v43  ;;  %498 = vtanh.f32 %v156_v55 }
  0xed   :  { %v153_v60 = vadd.f32 %v149_v57, %v131_v46  ;;  %500 = vtanh.f32 %v155_v58 }
  0xee   :  { %v158_v61 = vmul.f32 0.7978846, %v154_v59 }
  0xef   :  { %v157_v62 = vmul.f32 0.7978846, %v153_v60 }
  0xf0   :  { %502 = vtanh.f32 %v158_v61 }
  0xf1   :  { %504 = vtanh.f32 %v157_v62 }
  0xf6   :  { %v499_v63 = vpop.eup %498 }
  0xf7   :  { %v501_v0 = vpop.eup %500  ;;  %v164_v1 = vadd.f32 1.0, %v499_v63 }
  0xf8   :  { %v163_v2 = vadd.f32 1.0, %v501_v0 }
  0xf9   :  { %v168_v3 = vmul.f32 0.5, %v164_v1  ;;  %v376_v1 = vld [vmem:[%s687_s5] ss:$0 sm:$0xff] }
  0xfa   :  { %v503_v4 = vpop.eup %502  ;;  %v167_v6 = vmul.f32 0.5, %v163_v2 }
  0xfb   :  { %v505_v10 = vpop.eup %504  ;;  %v166_v11 = vadd.f32 1.0, %v503_v4  ;;  %v172_v14 = vmul.f32 %v168_v3, %v126_v36  ;;  %v377_v3 = vld [vmem:[%s688_s6] ss:$0 sm:$0xff] }
  0xfc   :  { %v171_v12 = vmul.f32 %v167_v6, %v121_v38  ;;  %v165_v13 = vadd.f32 1.0, %v505_v10 }
  0xfd   :  { %v170_v15 = vmul.f32 0.5, %v166_v11 }
  0xfe   :  { %452 = vmatprep.mubr.f32.mxu1 %v171_v12  ;;  %v169_v16 = vmul.f32 0.5, %v165_v13 }
  0xff   :  { %453 = vmatmul.mubr.f32.vlgmr.msra.gmra.mrb[0].mxu1 %v172_v14  ;;  %v174_v18 = vmul.f32 %v170_v15, %v136_v43 }
 0x100   :  { %v173_v17 = vmul.f32 %v169_v16, %v131_v46 }
 0x102   :  { %455 = vmatprep.mubr.f32.mxu1 %v173_v17 }
 0x103   :  { %456 = vmatmul.mubr.f32.gmra.mrb[2].mxu1 %v174_v18 }
 0x1d2   :  { %v454_v20 = vpop.f32.mrb[0].mxu1 }
 0x1d3   :  { %v264_v21 = vpop.f32.mrb[1].mxu1  ;;  %v270_v23 = vadd.f32 %v454_v20, %v375_v19 }
 0x1d4   :  { %v265_v22 = vadd.f32 %v375_v19, %v264_v21 }
 0x1d5   :  { %v288_v30 = vsel %vm41_vm0, %v270_v23, 0.0 }
 0x1d6   :  { %v457_v24 = vpop.f32.mrb[2].mxu1  ;;  %v285_v25 = vsel %vm41_vm0, %v265_v22, 0.0 }
 0x1d7   :  { %v274_v26 = vpop.f32.mrb[3].mxu1  ;;  %286 = vadd.xlane.f32.xlu0 %v285_v25  ;;  %v280_v28 = vadd.f32 %v457_v24, %v375_v19 }
 0x1d8   :  { %v275_v27 = vadd.f32 %v375_v19, %v274_v26 }
 0x1d9   :  { %v294_v31 = vsel %vm41_vm0, %v280_v28, 0.0 }
 0x1da   :  { %v291_v29 = vsel %vm41_vm0, %v275_v27, 0.0 }
 0x1db   :  { %292 = vadd.xlane.f32.xlu1 %v291_v29  ;;  %289 = vadd.xlane.f32.xlu0 %v288_v30 }
 0x1df   :  { %295 = vadd.xlane.f32.xlu1 %v294_v31 }
 0x264   :  { %v287_v32 = vpop.xlane.xlu0 %286 }
 0x265   :  { %v298_v33 = vmul.f32 0.03125, %v287_v32 }
 0x267   :  { %v302_v34 = vsub.f32 %v265_v22, %v298_v33 }
 0x268   :  { %v293_v35 = vpop.xlane.xlu1 %292  ;;  %v290_v36 = vpop.xlane.xlu0 %289 }
 0x269   :  { %v300_v37 = vmul.f32 0.03125, %v293_v35  ;;  %v299_v38 = vmul.f32 0.03125, %v290_v36  ;;  %v306_v39 = vmul.f32 %v302_v34, %v302_v34 }
 0x26b   :  { %v304_v40 = vsub.f32 %v275_v27, %v300_v37  ;;  %v303_v41 = vsub.f32 %v270_v23, %v299_v38  ;;  %v310_v42 = vsel %vm41_vm0, %v306_v39, 0.0 }
 0x26c   :  { %v296_v43 = vpop.xlane.xlu1 %295  ;;  %311 = vadd.xlane.f32.xlu0 %v310_v42 }
 0x26d   :  { %v301_v44 = vmul.f32 0.03125, %v296_v43  ;;  %v308_v45 = vmul.f32 %v304_v40, %v304_v40  ;;  %v307_v46 = vmul.f32 %v303_v41, %v303_v41 }
 0x26f   :  { %v305_v47 = vsub.f32 %v280_v28, %v301_v44  ;;  %v316_v48 = vsel %vm41_vm0, %v308_v45, 0.0  ;;  %v313_v49 = vsel %vm41_vm0, %v307_v46, 0.0 }
 0x270   :  { %317 = vadd.xlane.f32.xlu0 %v316_v48  ;;  %314 = vadd.xlane.f32.xlu1 %v313_v49 }
 0x271   :  { %v309_v50 = vmul.f32 %v305_v47, %v305_v47 }
 0x273   :  { %v319_v51 = vsel %vm41_vm0, %v309_v50, 0.0 }
 0x274   :  { %320 = vadd.xlane.f32.xlu1 %v319_v51 }
 0x2f9   :  { %v312_v52 = vpop.xlane.xlu0 %311 }
 0x2fa   :  { %v322_v53 = vmul.f32 0.03125, %v312_v52 }
 0x2fc   :  { %v326_v54 = vadd.f32 1e-05, %v322_v53 }
 0x2fd   :  { %v315_v55 = vpop.xlane.xlu1 %314  ;;  %v318_v56 = vpop.xlane.xlu0 %317 }
 0x2fe   :  { %506 = vrsqrt.f32 %v326_v54  ;;  %v323_v57 = vmul.f32 0.03125, %v315_v55  ;;  %v324_v58 = vmul.f32 0.03125, %v318_v56 }
 0x300   :  { %v327_v59 = vadd.f32 1e-05, %v323_v57  ;;  %v328_v60 = vadd.f32 1e-05, %v324_v58 }
 0x301   :  { %v321_v61 = vpop.xlane.xlu1 %320 }
 0x302   :  { %508 = vrsqrt.f32 %v327_v59  ;;  %v325_v62 = vmul.f32 0.03125, %v321_v61 }
 0x303   :  { %510 = vrsqrt.f32 %v328_v60 }
 0x304   :  { %v329_v63 = vadd.f32 1e-05, %v325_v62 }
 0x306   :  { %512 = vrsqrt.f32 %v329_v63 }
 0x308   :  { %v507_v0 = vpop.eup %506 }
 0x309   :  { %v334_v2 = vmul.f32 %v507_v0, %v302_v34 }
 0x30b   :  { %v344_v4 = vmul.f32 %v376_v1, %v334_v2 }
 0x30c   :  { %v509_v6 = vpop.eup %508 }
 0x30d   :  { %v511_v10 = vpop.eup %510  ;;  %v354_v11 = vadd.f32 %v377_v3, %v344_v4  ;;  %v335_v12 = vmul.f32 %v509_v6, %v303_v41 }
 0x30e   :  { %v336_v13 = vmul.f32 %v511_v10, %v304_v40 }
 0x30f   :  { %v358_v14 = vadd.f32 %v354_v11, %v569_v5  ;;  %v345_v15 = vmul.f32 %v376_v1, %v335_v12 }
 0x310   :  { %v513_v16 = vpop.eup %512  ;;  %v346_v17 = vmul.f32 %v376_v1, %v336_v13 }
 0x311   :  { %362 = vst.msk [vmem:[%s689_s7] sm:$0xff] %vm41_vm0, %v358_v14  ;;  %v355_v18 = vadd.f32 %v377_v3, %v345_v15  ;;  %v337_v19 = vmul.f32 %v513_v16, %v305_v47 }
 0x312   :  { %v356_v20 = vadd.f32 %v377_v3, %v346_v17 }
 0x313   :  { %v359_v21 = vadd.f32 %v355_v18, %v576_v7  ;;  %v347_v22 = vmul.f32 %v376_v1, %v337_v19 }
 0x314   :  { %v360_v23 = vadd.f32 %v356_v20, %v581_v8 }
 0x315   :  { %363 = vst.msk [vmem:[%s689_s7 + $0x8] sm:$0xff] %vm41_vm0, %v359_v21  ;;  %v357_v5 = vadd.f32 %v377_v3, %v347_v22 }
 0x316   :  { %364 = vst.msk [vmem:[%s689_s7 + $0x10] sm:$0xff] %vm41_vm0, %v360_v23 }
 0x317   :  { %v361_v24 = vadd.f32 %v357_v5, %v590_v9 }
 0x319   :  { %365 = vst.msk [vmem:[%s689_s7 + $0x18] sm:$0xff] %vm41_vm0, %v361_v24 }

// kernel: _lambda_.43
= control target key start
LH: loop header
LB: loop body
LE: loop exit
PB: predicated region body
PF: predicated region fallthrough
CT: control target
= control target key end

     0   :  { %vm38_vm0 = vcmask 261120   ;;  %s384_s2 = inlined_call_operand.vmem [shape: f32[32,32], index: 2, kind: input, shape index: {}]   ;;  %s385_s0 = inlined_call_operand.vmem [shape: f32[32,32], index: 0, kind: input, shape index: {}]   ;;  %s386_s3 = inlined_call_operand.vmem [shape: f32[1,32], index: 3, kind: input, shape index: {}, may-alias: {3,5}]   ;;  %s387_s4 = inlined_call_operand.vmem [shape: f32[1,32], index: 4, kind: input, shape index: {}]   ;;  %s388_s5 = inlined_call_operand.vmem [shape: f32[1,32], index: 5, kind: input, shape index: {}, may-alias: {3,5}]   ;;  %s389_s1 = inlined_call_operand.vmem [shape: f32[32,32], index: 1, kind: input, shape index: {}]   ;;  %s390_s6 = inlined_call_operand.vmem [shape: f32[32,32], index: 6, kind: output, shape index: {}]  }
   0x1   :  { %v27_v0 = vld [vmem:[%s384_s2] sm:$0xff]  ;;  %v28_v1 = vld [vmem:[%s384_s2 + $0x8] sm:$0xff]  ;;  %v29_v2 = vld [vmem:[%s384_s2 + $0x10] sm:$0xff] }
   0x2   :  { %v256_v3 = vpack.c.bf16 %v28_v1, %v27_v0  ;;  %v30_v4 = vld [vmem:[%s384_s2 + $0x18] sm:$0xff]  ;;  %v23_v5 = vld [vmem:[%s385_s0] sm:$0xff]  ;;  %v25_v6 = vld [vmem:[%s385_s0 + $0x10] sm:$0xff] }
   0x3   :  { %v260_v7 = vpack.c.bf16 %v30_v4, %v29_v2  ;;  %250 = vmatprep.mubr.msk.f32.mxu0 %vm38_vm0, %v23_v5  ;;  %253 = vmatprep.mubr.msk.f32.mxu1 %vm38_vm0, %v25_v6  ;;  %v24_v8 = vld [vmem:[%s385_s0 + $0x8] sm:$0xff]  ;;  %v26_v9 = vld [vmem:[%s385_s0 + $0x18] sm:$0xff]  ;;  %v227_v10 = vld [vmem:[%s386_s3] ss:$0 sm:$0xff] }
   0x4   :  { %257 = vmatprep.subr.bf16.mxu0 %v256_v3  ;;  %264 = vmatprep.subr.bf16.mxu1 %v256_v3  ;;  %v232_v56 = vld [vmem:[%s387_s4] ss:$0 sm:$0xff]  ;;  %v212_v5 = vld [vmem:[%s389_s1 + $0x8] sm:$0xff] }
   0x5   :  { %259 = vmatpush3.bf16.msra.mxu0 %v256_v3  ;;  %266 = vmatpush3.bf16.msra.mxu1 %v256_v3  ;;  %v233_v58 = vld [vmem:[%s388_s5] ss:$0 sm:$0xff] }
   0x6   :  { %261 = vmatprep.subr.bf16.mxu0 %v260_v7  ;;  %265 = vmatprep.subr.bf16.mxu1 %v260_v7  ;;  %v211_v61 = vld [vmem:[%s389_s1] sm:$0xff] }
   0x9   :  { %263 = vmatpush3.bf16.msra.mxu0 %v260_v7  ;;  %267 = vmatpush3.bf16.msra.mxu1 %v260_v7 }
   0xc   :  { %251 = vmatmul.mubr.msk.f32.vlgmr.msra.gmra.mrb[0].mxu0 %vm38_vm0, %v24_v8  ;;  %254 = vmatmul.mubr.msk.f32.vlgmr.msra.gmra.mrb[0].mxu1 %vm38_vm0, %v26_v9  ;;  %v213_v8 = vld [vmem:[%s389_s1 + $0x10] sm:$0xff] }
  0xdf   :  { %v252_v11 = vpop.f32.mrb[0].mxu0  ;;  %v255_v12 = vpop.f32.mrb[0].mxu1 }
  0xe0   :  { %v117_v13 = vpop.f32.mrb[1].mxu0  ;;  %v127_v14 = vpop.f32.mrb[1].mxu1  ;;  %v133_v15 = vadd.f32 %v255_v12, %v227_v10  ;;  %v123_v18 = vadd.f32 %v252_v11, %v227_v10 }
  0xe1   :  { %v118_v16 = vadd.f32 %v227_v10, %v117_v13  ;;  %v128_v17 = vadd.f32 %v227_v10, %v127_v14  ;;  %v214_v14 = vld [vmem:[%s389_s1 + $0x18] sm:$0xff] }
  0xe2   :  { %v147_v21 = vsel %vm38_vm0, %v133_v15, 0.0  ;;  %v141_v22 = vsel %vm38_vm0, %v123_v18, 0.0 }
  0xe3   :  { %v144_v19 = vsel %vm38_vm0, %v128_v17, 0.0  ;;  %v138_v20 = vsel %vm38_vm0, %v118_v16, 0.0 }
  0xe4   :  { %145 = vadd.xlane.f32.xlu1 %v144_v19  ;;  %139 = vadd.xlane.f32.xlu0 %v138_v20 }
  0xe8   :  { %148 = vadd.xlane.f32.xlu1 %v147_v21  ;;  %142 = vadd.xlane.f32.xlu0 %v141_v22 }
 0x171   :  { %v146_v23 = vpop.xlane.xlu1 %145  ;;  %v140_v24 = vpop.xlane.xlu0 %139 }
 0x172   :  { %v153_v25 = vmul.f32 0.03125, %v146_v23  ;;  %v151_v26 = vmul.f32 0.03125, %v140_v24 }
 0x174   :  { %v157_v27 = vsub.f32 %v128_v17, %v153_v25  ;;  %v155_v28 = vsub.f32 %v118_v16, %v151_v26 }
 0x175   :  { %v149_v29 = vpop.xlane.xlu1 %148  ;;  %v143_v30 = vpop.xlane.xlu0 %142 }
 0x176   :  { %v154_v31 = vmul.f32 0.03125, %v149_v29  ;;  %v152_v32 = vmul.f32 0.03125, %v143_v30  ;;  %v159_v33 = vmul.f32 %v155_v28, %v155_v28  ;;  %v161_v37 = vmul.f32 %v157_v27, %v157_v27 }
 0x178   :  { %v158_v34 = vsub.f32 %v133_v15, %v154_v31  ;;  %v156_v35 = vsub.f32 %v123_v18, %v152_v32  ;;  %v163_v36 = vsel %vm38_vm0, %v159_v33, 0.0  ;;  %v169_v39 = vsel %vm38_vm0, %v161_v37, 0.0 }
 0x179   :  { %164 = vadd.xlane.f32.xlu0 %v163_v36 }
 0x17a   :  { %v160_v38 = vmul.f32 %v156_v35, %v156_v35  ;;  %v162_v41 = vmul.f32 %v158_v34, %v158_v34 }
 0x17c   :  { %v166_v40 = vsel %vm38_vm0, %v160_v38, 0.0  ;;  %v172_v42 = vsel %vm38_vm0, %v162_v41, 0.0 }
 0x17d   :  { %170 = vadd.xlane.f32.xlu0 %v169_v39  ;;  %167 = vadd.xlane.f32.xlu1 %v166_v40 }
 0x181   :  { %173 = vadd.xlane.f32.xlu1 %v172_v42 }
 0x206   :  { %v165_v43 = vpop.xlane.xlu0 %164 }
 0x207   :  { %v175_v44 = vmul.f32 0.03125, %v165_v43 }
 0x209   :  { %v179_v45 = vadd.f32 1e-05, %v175_v44 }
 0x20a   :  { %v168_v46 = vpop.xlane.xlu1 %167  ;;  %v171_v47 = vpop.xlane.xlu0 %170 }
 0x20b   :  { %268 = vrsqrt.f32 %v179_v45  ;;  %v176_v48 = vmul.f32 0.03125, %v168_v46  ;;  %v177_v49 = vmul.f32 0.03125, %v171_v47 }
 0x20d   :  { %v180_v50 = vadd.f32 1e-05, %v176_v48  ;;  %v181_v51 = vadd.f32 1e-05, %v177_v49 }
 0x20e   :  { %v174_v52 = vpop.xlane.xlu1 %173 }
 0x20f   :  { %270 = vrsqrt.f32 %v180_v50  ;;  %v178_v53 = vmul.f32 0.03125, %v174_v52 }
 0x210   :  { %272 = vrsqrt.f32 %v181_v51 }
 0x211   :  { %v182_v54 = vadd.f32 1e-05, %v178_v53 }
 0x213   :  { %274 = vrsqrt.f32 %v182_v54 }
 0x215   :  { %v269_v55 = vpop.eup %268 }
 0x216   :  { %v187_v57 = vmul.f32 %v269_v55, %v155_v28 }
 0x218   :  { %v197_v59 = vmul.f32 %v232_v56, %v187_v57 }
 0x219   :  { %v271_v60 = vpop.eup %270 }
 0x21a   :  { %v273_v62 = vpop.eup %272  ;;  %v207_v63 = vadd.f32 %v233_v58, %v197_v59  ;;  %v188_v0 = vmul.f32 %v271_v60, %v156_v35 }
 0x21b   :  { %v189_v1 = vmul.f32 %v273_v62, %v157_v27 }
 0x21c   :  { %v215_v2 = vadd.f32 %v211_v61, %v207_v63  ;;  %v198_v3 = vmul.f32 %v232_v56, %v188_v0 }
 0x21d   :  { %v275_v4 = vpop.eup %274  ;;  %v199_v6 = vmul.f32 %v232_v56, %v189_v1 }
 0x21e   :  { %219 = vst.msk [vmem:[%s390_s6] sm:$0xff] %vm38_vm0, %v215_v2  ;;  %v208_v7 = vadd.f32 %v233_v58, %v198_v3  ;;  %v190_v9 = vmul.f32 %v275_v4, %v158_v34 }
 0x21f   :  { %v209_v10 = vadd.f32 %v233_v58, %v199_v6 }
 0x220   :  { %v216_v11 = vadd.f32 %v212_v5, %v208_v7  ;;  %v200_v12 = vmul.f32 %v232_v56, %v190_v9 }
 0x221   :  { %v217_v13 = vadd.f32 %v213_v8, %v209_v10 }
 0x222   :  { %220 = vst.msk [vmem:[%s390_s6 + $0x8] sm:$0xff] %vm38_vm0, %v216_v11  ;;  %v210_v15 = vadd.f32 %v233_v58, %v200_v12 }
 0x223   :  { %221 = vst.msk [vmem:[%s390_s6 + $0x10] sm:$0xff] %vm38_vm0, %v217_v13 }
 0x224   :  { %v218_v16 = vadd.f32 %v214_v14, %v210_v15 }
 0x226   :  { %222 = vst.msk [vmem:[%s390_s6 + $0x18] sm:$0xff] %vm38_vm0, %v218_v16 }

// kernel: _lambda_.42
= control target key start
LH: loop header
LB: loop body
LE: loop exit
PB: predicated region body
PF: predicated region fallthrough
CT: control target
= control target key end

     0   :  { %s1906_s15 = smov 0   ;;  %s2105_s0 = inlined_call_operand.vmem [shape: f32[2,8,4,16], index: 0, kind: input, shape index: {}]   ;;  %s2106_s1 = inlined_call_operand.vmem [shape: f32[2,8,4,16], index: 1, kind: input, shape index: {}]   ;;  %s2107_s2 = inlined_call_operand.vmem [shape: f32[2,8,4,16], index: 2, kind: input, shape index: {}]   ;;  %s2108_s3 = inlined_call_operand.vmem [shape: f32[8,4,4], index: 3, kind: input, shape index: {}]   ;;  %s2109_s4 = inlined_call_operand.vmem [shape: f32[2,8,4,16], index: 4, kind: output, shape index: {}]  }
   0x1 LB: > { %s1666_s16 = sadd.s32 4294967295, %s1877_s15   ;;  %p1670_p0 = scmp.ge.s32.totalorder %s1877_s15, 1  ;;  %s1877_s15 = sphi %s1906_s15, %s14_s15  }
   0x2   : > { %p182_p1 = scmp.lt.s32.totalorder %s1877_s15, 3 }
   0x4   : > { %p183_p2 = pnand %p1670_p0, %p182_p1 }
   0x5   : > { %p218_p3 = scmp.lt.s32.totalorder (!%p183_p2), %s1666_s16, 1  ;;  %v1879_v0 = vmov (!%p183_p2), 0.0   ;;  %vm1880_vm0 = vmmov (!%p183_p2), 0   ;;  %vm270_vm1 = vcmask (!%p183_p2), 130048   ;;  %v262_v17 = vld [vmem:[%s2108_s3] sm:$0xf] (!%p183_p2) }
   0x6   : > { %186 = sbr.rel (%p183_p2) target bundleno = 777 (0x309), region = 36  ;;  %1749 = vmatprep.subr.mxu0 (!%p183_p2), %v1879_v0  ;;  %1751 = vmatprep.mubr.msk.f32.mxu0 (!%p183_p2), %vm1880_vm0, %v1879_v0  ;;  %v263_v18 = vld [vmem:[%s2108_s3 + $0x4] sm:$0xf] (!%p183_p2)  ;;  %vm879_vm2 = vcmask (!%p183_p2), 27648   ;;  %v264_v25 = vld [vmem:[%s2108_s3 + $0x8] sm:$0xf] (!%p183_p2) }
   0x7   : > { %1754 = vmatprep.subr.mxu1 (!%p183_p2), %v1879_v0  ;;  %1756 = vmatprep.mubr.msk.f32.mxu1 (!%p183_p2), %vm1880_vm0, %v1879_v0  ;;  %v265_v28 = vld [vmem:[%s2108_s3 + $0xc] sm:$0xf] (!%p183_p2)  ;;  %v266_v33 = vld [vmem:[%s2108_s3 + $0x10] sm:$0xf] (!%p183_p2)  ;;  %v267_v38 = vld [vmem:[%s2108_s3 + $0x14] sm:$0xf] (!%p183_p2) }
   0x8   : > { %v268_v43 = vld [vmem:[%s2108_s3 + $0x18] sm:$0xf] (!%p183_p2)  ;;  %v269_v48 = vld [vmem:[%s2108_s3 + $0x1c] sm:$0xf] (!%p183_p2)  ;;  %vm972_vm3 = vcmask (!%p183_p2), 1043456   ;;  %vm968_vm4 = vcmask (!%p183_p2), 31744  }
   0x9   : > { %vm1578_vm5 = vcmask (!%p183_p2), 125952  }
   0xd   : > { %s2111_s16 = smov (!%p218_p3, %s1666_s16), 1 }
   0xe   : > { %s1920_s17 = sshll.u32 %s2111_s16, 5 }
   0xf   : > { %s1926_s20 = scalar_lea.vmem %s2106_s1, %s1920_s17  ;;  %s1932_s23 = scalar_lea.vmem %s2105_s0, %s1920_s17 }
  0x10   : > { %v246_v1 = vld [vmem:[%s1926_s20] sm:$0xf]  ;;  %v247_v2 = vld [vmem:[%s1926_s20 + $0x4] sm:$0xf]  ;;  %v248_v5 = vld [vmem:[%s1926_s20 + $0x8] sm:$0xf]  ;;  %s2043_s18 = scalar_lea.vmem %s2107_s2, %s1920_s17  ;;  %s237_s21 = scalar_lea.vmem %s2109_s4, %s1920_s17 }
  0x11   : > { %1750 = vmatpush3.xpose.msk.msra.mxu0 %vm270_vm1, %v246_v1  ;;  %v238_v3 = vld [vmem:[%s1932_s23] sm:$0xf]  ;;  %1755 = vmatpush3.xpose.msk.msra.mxu1 %vm270_vm1, %v247_v2  ;;  %v239_v4 = vld [vmem:[%s1932_s23 + $0x4] sm:$0xf]  ;;  %v249_v6 = vld [vmem:[%s1926_s20 + $0xc] sm:$0xf] }
  0x12   : > { %1759 = vmatprep.subr.mxu0 %v1879_v0  ;;  %1764 = vmatprep.subr.mxu1 %v1879_v0  ;;  %v240_v7 = vld [vmem:[%s1932_s23 + $0x8] sm:$0xf]  ;;  %v250_v8 = vld [vmem:[%s1926_s20 + $0x10] sm:$0xf]  ;;  %v241_v9 = vld [vmem:[%s1932_s23 + $0xc] sm:$0xf] }
  0x13   : > { %v251_v10 = vld [vmem:[%s1926_s20 + $0x14] sm:$0xf]  ;;  %v242_v11 = vld [vmem:[%s1932_s23 + $0x10] sm:$0xf]  ;;  %v252_v12 = vld [vmem:[%s1926_s20 + $0x18] sm:$0xf] }
  0x14   : > { %1752 = vmatmul.mubr.msk.f32.vlgmr.msra.gmra.mrb[0].mxu0 %vm270_vm1, %v238_v3  ;;  %1757 = vmatmul.mubr.msk.f32.vlgmr.msra.gmra.mrb[0].mxu1 %vm270_vm1, %v239_v4  ;;  %v243_v13 = vld [vmem:[%s1932_s23 + $0x14] sm:$0xf]  ;;  %v253_v14 = vld [vmem:[%s1926_s20 + $0x1c] sm:$0xf]  ;;  %v244_v15 = vld [vmem:[%s1932_s23 + $0x18] sm:$0xf] }
  0x15   : > { %1760 = vmatpush3.xpose.msk.msra.mxu0 %vm270_vm1, %v248_v5  ;;  %1761 = vmatprep.mubr.msk.f32.mxu0 %vm1880_vm0, %v1879_v0  ;;  %v245_v16 = vld [vmem:[%s1932_s23 + $0x1c] sm:$0xf] }
  0x16   : > { %1769 = vmatprep.subr.mxu0 %v1879_v0  ;;  %1765 = vmatpush3.xpose.msk.msra.mxu1 %vm270_vm1, %v249_v6 }
  0x17   : > { %1766 = vmatprep.mubr.msk.f32.mxu1 %vm1880_vm0, %v1879_v0  ;;  %1774 = vmatprep.subr.mxu1 %v1879_v0 }
  0x18   : > { %1762 = vmatmul.mubr.msk.f32.vlgmr.msra.gmra.mrb[2].mxu0 %vm270_vm1, %v240_v7 }
  0x19   : > { %1770 = vmatpush3.xpose.msk.msra.mxu0 %vm270_vm1, %v250_v8  ;;  %1771 = vmatprep.mubr.msk.f32.mxu0 %vm1880_vm0, %v1879_v0 }
  0x1a   : > { %1767 = vmatmul.mubr.msk.f32.vlgmr.msra.gmra.mrb[2].mxu1 %vm270_vm1, %v241_v9  ;;  %1779 = vmatprep.subr.mxu0 %v1879_v0 }
  0x1b   : > { %1775 = vmatpush3.xpose.msk.msra.mxu1 %vm270_vm1, %v251_v10  ;;  %1776 = vmatprep.mubr.msk.f32.mxu1 %vm1880_vm0, %v1879_v0 }
  0x1c   : > { %1772 = vmatmul.mubr.msk.f32.vlgmr.msra.gmra.mrb[4].mxu0 %vm270_vm1, %v242_v11  ;;  %1784 = vmatprep.subr.mxu1 %v1879_v0 }
  0x1d   : > { %1780 = vmatpush3.xpose.msk.msra.mxu0 %vm270_vm1, %v252_v12  ;;  %1781 = vmatprep.mubr.msk.f32.mxu0 %vm1880_vm0, %v1879_v0 }
  0x1e   : > { %1777 = vmatmul.mubr.msk.f32.vlgmr.msra.gmra.mrb[4].mxu1 %vm270_vm1, %v243_v13  ;;  %1789 = vmatprep.subr.mxu0 %v1879_v0 }
  0x1f   : > { %1785 = vmatpush3.xpose.msk.msra.mxu1 %vm270_vm1, %v253_v14  ;;  %1786 = vmatprep.mubr.msk.f32.mxu1 %vm1880_vm0, %v1879_v0 }
  0x20   : > { %1782 = vmatmul.mubr.msk.f32.vlgmr.msra.gmra.mrb[6].mxu0 %vm270_vm1, %v244_v15  ;;  %1794 = vmatprep.subr.mxu1 %v1879_v0 }
  0x21   : > { %1791 = vmatprep.mubr.msk.f32.mxu0 %vm1880_vm0, %v1879_v0 }
  0x22   : > { %1787 = vmatmul.mubr.msk.f32.vlgmr.msra.gmra.mrb[6].mxu1 %vm270_vm1, %v245_v16 }
  0x23   : > { %1796 = vmatprep.mubr.msk.f32.mxu1 %vm1880_vm0, %v1879_v0 }
  0xe7   : > { %v343_v19 = vpop.f32.mrb[0].mxu0  ;;  %v419_v20 = vpop.f32.mrb[0].mxu1 }
  0xe8   : > { %v344_v21 = vadd.f32 %v343_v19, %v262_v17  ;;  %v1753_v22 = vpop.f32.mrb[1].mxu0  ;;  %v420_v23 = vadd.f32 %v419_v20, %v263_v18  ;;  %v1758_v24 = vpop.f32.mrb[1].mxu1 }
  0xea   : > { %v880_v26 = vsel %vm879_vm2, %v344_v21, -inf  ;;  %v883_v31 = vsel %vm879_vm2, %v420_v23, -inf }
  0xeb   : > { %881 = vmax.xlane.f32.xlu0 %v880_v26  ;;  %v495_v27 = vpop.f32.mrb[2].mxu0 }
  0xec   : > { %v496_v29 = vadd.f32 %v495_v27, %v264_v25  ;;  %v1763_v30 = vpop.f32.mrb[3].mxu0 }
  0xed   : > { %v571_v32 = vpop.f32.mrb[2].mxu1 }
  0xee   : > { %v572_v34 = vadd.f32 %v571_v32, %v265_v28  ;;  %v886_v35 = vsel %vm879_vm2, %v496_v29, -inf  ;;  %v1768_v36 = vpop.f32.mrb[3].mxu1 }
  0xef   : > { %884 = vmax.xlane.f32.xlu0 %v883_v31  ;;  %887 = vmax.xlane.f32.xlu1 %v886_v35  ;;  %v647_v37 = vpop.f32.mrb[4].mxu0  ;;  %v255_v35 = vld [vmem:[%s2043_s18 + $0x4] sm:$0xf] }
  0xf0   : > { %v648_v39 = vadd.f32 %v647_v37, %v266_v33  ;;  %v1773_v40 = vpop.f32.mrb[5].mxu0  ;;  %v889_v41 = vsel %vm879_vm2, %v572_v34, -inf  ;;  %1795 = vmatpush3.msk.msra.mxu1 %vm972_vm3, %v255_v35 }
  0xf1   : > { %v723_v42 = vpop.f32.mrb[4].mxu1  ;;  %1804 = vmatprep.subr.mxu1 %v1879_v0 }
  0xf2   : > { %v724_v44 = vadd.f32 %v723_v42, %v267_v38  ;;  %v892_v45 = vsel %vm879_vm2, %v648_v39, -inf  ;;  %v1778_v46 = vpop.f32.mrb[5].mxu1 }
  0xf3   : > { %890 = vmax.xlane.f32.xlu1 %v889_v41  ;;  %893 = vmax.xlane.f32.xlu0 %v892_v45  ;;  %v799_v47 = vpop.f32.mrb[6].mxu0 }
  0xf4   : > { %v800_v49 = vadd.f32 %v799_v47, %v268_v43  ;;  %v895_v50 = vsel %vm879_vm2, %v724_v44, -inf  ;;  %v1783_v51 = vpop.f32.mrb[7].mxu0 }
  0xf5   : > { %v875_v52 = vpop.f32.mrb[6].mxu1 }
  0xf6   : > { %v876_v53 = vadd.f32 %v875_v52, %v269_v48  ;;  %v898_v54 = vsel %vm879_vm2, %v800_v49, -inf  ;;  %v1788_v55 = vpop.f32.mrb[7].mxu1  ;;  %v258_v52 = vld [vmem:[%s2043_s18 + $0x10] sm:$0xf] }
  0xf7   : > { %896 = vmax.xlane.f32.xlu1 %v895_v50  ;;  %899 = vmax.xlane.f32.xlu0 %v898_v54  ;;  %v257_v50 = vld [vmem:[%s2043_s18 + $0xc] sm:$0xf] }
  0xf8   : > { %v901_v56 = vsel %vm879_vm2, %v876_v53, -inf }
  0xfb   : > { %902 = vmax.xlane.f32.xlu1 %v901_v56  ;;  %v259_v56 = vld [vmem:[%s2043_s18 + $0x14] sm:$0xf] }
 0x178   : > { %v882_v57 = vpop.xlane.xlu0 %881 }
 0x179   : > { %v904_v58 = vsub.f32 %v344_v21, %v882_v57 }
 0x17b   : > { %v912_v59 = vmul.f32 1.442695, %v904_v58  ;;  %v260_v58 = vld [vmem:[%s2043_s18 + $0x18] sm:$0xf] }
 0x17c   : > { %v885_v60 = vpop.xlane.xlu0 %884  ;;  %v888_v61 = vpop.xlane.xlu1 %887 }
 0x17d   : > { %1839 = vpow2.f32 %v912_v59  ;;  %v905_v62 = vsub.f32 %v420_v23, %v885_v60  ;;  %v906_v63 = vsub.f32 %v496_v29, %v888_v61 }
 0x17f   : > { %v914_v1 = vmul.f32 1.442695, %v905_v62  ;;  %v916_v2 = vmul.f32 1.442695, %v906_v63  ;;  %v261_v62 = vld [vmem:[%s2043_s18 + $0x1c] sm:$0xf] }
 0x180   : > { %v891_v3 = vpop.xlane.xlu1 %890  ;;  %v894_v4 = vpop.xlane.xlu0 %893 }
 0x181   : > { %1841 = vpow2.f32 %v914_v1  ;;  %v907_v5 = vsub.f32 %v572_v34, %v891_v3  ;;  %v908_v6 = vsub.f32 %v648_v39, %v894_v4  ;;  %v254_v34 = vld [vmem:[%s2043_s18] sm:$0xf] }
 0x182   : > { %1843 = vpow2.f32 %v916_v2  ;;  %1790 = vmatpush3.msk.msra.mxu0 %vm972_vm3, %v254_v34 }
 0x183   : > { %v918_v7 = vmul.f32 1.442695, %v907_v5  ;;  %v920_v8 = vmul.f32 1.442695, %v908_v6  ;;  %1799 = vmatprep.subr.mxu0 %v1879_v0 }
 0x184   : > { %v897_v9 = vpop.xlane.xlu1 %896  ;;  %v900_v10 = vpop.xlane.xlu0 %899 }
 0x185   : > { %1845 = vpow2.f32 %v918_v7  ;;  %v909_v11 = vsub.f32 %v724_v44, %v897_v9  ;;  %v910_v12 = vsub.f32 %v800_v49, %v900_v10  ;;  %v256_v44 = vld [vmem:[%s2043_s18 + $0x8] sm:$0xf] }
 0x186   : > { %1847 = vpow2.f32 %v920_v8 }
 0x187   : > { %v1840_v13 = vpop.eup %1839  ;;  %v922_v14 = vmul.f32 1.442695, %v909_v11  ;;  %v924_v15 = vmul.f32 1.442695, %v910_v12 }
 0x188   : > { %v903_v16 = vpop.xlane.xlu1 %902  ;;  %v928_v17 = vsel %vm879_vm2, %v1840_v13, 0.0 }
 0x189   : > { %1849 = vpow2.f32 %v922_v14  ;;  %v911_v18 = vsub.f32 %v876_v53, %v903_v16  ;;  %929 = vadd.xlane.f32.xlu0 %v928_v17 }
 0x18a   : > { %1851 = vpow2.f32 %v924_v15 }
 0x18b   : > { %v1842_v19 = vpop.eup %1841  ;;  %v926_v20 = vmul.f32 1.442695, %v911_v18 }
 0x18c   : > { %v1844_v21 = vpop.eup %1843  ;;  %v931_v22 = vsel %vm879_vm2, %v1842_v19, 0.0 }
 0x18d   : > { %1853 = vpow2.f32 %v926_v20  ;;  %932 = vadd.xlane.f32.xlu1 %v931_v22  ;;  %v934_v23 = vsel %vm879_vm2, %v1844_v21, 0.0 }
 0x18e   : > { %935 = vadd.xlane.f32.xlu0 %v934_v23 }
 0x18f   : > { %v1846_v24 = vpop.eup %1845 }
 0x190   : > { %v1848_v25 = vpop.eup %1847  ;;  %v937_v26 = vsel %vm879_vm2, %v1846_v24, 0.0 }
 0x191   : > { %938 = vadd.xlane.f32.xlu1 %v937_v26  ;;  %v940_v27 = vsel %vm879_vm2, %v1848_v25, 0.0 }
 0x192   : > { %941 = vadd.xlane.f32.xlu0 %v940_v27 }
 0x193   : > { %v2027_v28 = vpop.eup %1849 }
 0x194   : > { %v2029_v29 = vpop.eup %1851  ;;  %v943_v30 = vsel %vm879_vm2, %v2027_v28, 0.0 }
 0x195   : > { %944 = vadd.xlane.f32.xlu1 %v943_v30  ;;  %v946_v31 = vsel %vm879_vm2, %v2029_v29, 0.0 }
 0x196   : > { %947 = vadd.xlane.f32.xlu0 %v946_v31 }
 0x197   : > { %v2035_v32 = vpop.eup %1853 }
 0x198   : > { %v949_v33 = vsel %vm879_vm2, %v2035_v32, 0.0 }
 0x199   : > { %950 = vadd.xlane.f32.xlu1 %v949_v33 }
 0x216   : > { %v930_v36 = vpop.xlane.xlu0 %929 }
 0x217   : > { %1855 = vrcp.f32 %v930_v36 }
 0x21a   : > { %v933_v37 = vpop.xlane.xlu1 %932 }
 0x21b   : > { %1857 = vrcp.f32 %v933_v37  ;;  %v936_v38 = vpop.xlane.xlu0 %935 }
 0x21c   : > { %1859 = vrcp.f32 %v936_v38 }
 0x21e   : > { %v939_v39 = vpop.xlane.xlu1 %938 }
 0x21f   : > { %1861 = vrcp.f32 %v939_v39  ;;  %v942_v40 = vpop.xlane.xlu0 %941 }
 0x220   : > { %1863 = vrcp.f32 %v942_v40 }
 0x221   : > { %v1856_v41 = vpop.eup %1855 }
 0x222   : > { %v960_v42 = vmul.f32 %v1856_v41, %v1840_v13  ;;  %v945_v43 = vpop.xlane.xlu1 %944 }
 0x223   : > { %1865 = vrcp.f32 %v945_v43  ;;  %v948_v45 = vpop.xlane.xlu0 %947 }
 0x224   : > { %1867 = vrcp.f32 %v948_v45  ;;  %1792 = vmatmul.mubr.msk.f32.vlgmr.msra.gmra.mrb[8].mxu0 %vm968_vm4, %v960_v42 }
 0x225   : > { %v1858_v46 = vpop.eup %1857  ;;  %1800 = vmatpush3.msk.msra.mxu0 %vm972_vm3, %v256_v44  ;;  %1801 = vmatprep.mubr.msk.f32.mxu0 %vm1880_vm0, %v1879_v0 }
 0x226   : > { %v1860_v47 = vpop.eup %1859  ;;  %v961_v48 = vmul.f32 %v1858_v46, %v1842_v19  ;;  %v951_v49 = vpop.xlane.xlu1 %950  ;;  %1809 = vmatprep.subr.mxu0 %v1879_v0 }
 0x227   : > { %v962_v51 = vmul.f32 %v1860_v47, %v1844_v21  ;;  %1869 = vrcp.f32 %v951_v49 }
 0x228   : > { %1797 = vmatmul.mubr.msk.f32.vlgmr.msra.gmra.mrb[8].mxu1 %vm968_vm4, %v961_v48 }
 0x229   : > { %v1862_v53 = vpop.eup %1861  ;;  %1802 = vmatmul.mubr.msk.f32.vlgmr.msra.gmra.mrb[10].mxu0 %vm968_vm4, %v962_v51  ;;  %1805 = vmatpush3.msk.msra.mxu1 %vm972_vm3, %v257_v50 }
 0x22a   : > { %v1864_v54 = vpop.eup %1863  ;;  %v963_v55 = vmul.f32 %v1862_v53, %v1846_v24  ;;  %1806 = vmatprep.mubr.msk.f32.mxu1 %vm1880_vm0, %v1879_v0  ;;  %1810 = vmatpush3.msk.msra.mxu0 %vm972_vm3, %v258_v52 }
 0x22b   : > { %v964_v57 = vmul.f32 %v1864_v54, %v1848_v25  ;;  %1811 = vmatprep.mubr.msk.f32.mxu0 %vm1880_vm0, %v1879_v0  ;;  %1814 = vmatprep.subr.mxu1 %v1879_v0 }
 0x22c   : > { %1807 = vmatmul.mubr.msk.f32.vlgmr.msra.gmra.mrb[10].mxu1 %vm968_vm4, %v963_v55  ;;  %1819 = vmatprep.subr.mxu0 %v1879_v0 }
 0x22d   : > { %v1866_v59 = vpop.eup %1865  ;;  %1812 = vmatmul.mubr.msk.f32.vlgmr.msra.gmra.mrb[12].mxu0 %vm968_vm4, %v964_v57  ;;  %1815 = vmatpush3.msk.msra.mxu1 %vm972_vm3, %v259_v56 }
 0x22e   : > { %v1868_v60 = vpop.eup %1867  ;;  %v965_v61 = vmul.f32 %v1866_v59, %v2027_v28  ;;  %1816 = vmatprep.mubr.msk.f32.mxu1 %vm1880_vm0, %v1879_v0  ;;  %1820 = vmatpush3.msk.msra.mxu0 %vm972_vm3, %v260_v58 }
 0x22f   : > { %v966_v63 = vmul.f32 %v1868_v60, %v2029_v29  ;;  %1821 = vmatprep.mubr.msk.f32.mxu0 %vm1880_vm0, %v1879_v0  ;;  %1824 = vmatprep.subr.mxu1 %v1879_v0 }
 0x230   : > { %1817 = vmatmul.mubr.msk.f32.vlgmr.msra.gmra.mrb[12].mxu1 %vm968_vm4, %v965_v61 }
 0x231   : > { %v1870_v1 = vpop.eup %1869  ;;  %1822 = vmatmul.mubr.msk.f32.vlgmr.msra.gmra.mrb[14].mxu0 %vm968_vm4, %v966_v63  ;;  %1825 = vmatpush3.msk.msra.mxu1 %vm972_vm3, %v261_v62 }
 0x232   : > { %v967_v2 = vmul.f32 %v1870_v1, %v2035_v32  ;;  %1826 = vmatprep.mubr.msk.f32.mxu1 %vm1880_vm0, %v1879_v0 }
 0x234   : > { %1827 = vmatmul.mubr.msk.f32.vlgmr.msra.gmra.mrb[14].mxu1 %vm968_vm4, %v967_v2 }
 0x2f7   : > { %v1042_v3 = vpop.f32.mrb[8].mxu0 }
 0x2f8   : > { %1579 = vst.msk [vmem:[%s237_s21] sm:$0xf] %vm1578_vm5, %v1042_v3  ;;  %v1793_v4 = vpop.f32.mrb[9].mxu0 }
 0x2fb   : > { %v1118_v5 = vpop.f32.mrb[8].mxu1 }
 0x2fc   : > { %1580 = vst.msk [vmem:[%s237_s21 + $0x4] sm:$0xf] %vm1578_vm5, %v1118_v5  ;;  %v1194_v6 = vpop.f32.mrb[10].mxu0  ;;  %v1798_v7 = vpop.f32.mrb[9].mxu1 }
 0x2fd   : > { %1581 = vst.msk [vmem:[%s237_s21 + $0x8] sm:$0xf] %vm1578_vm5, %v1194_v6  ;;  %v1803_v8 = vpop.f32.mrb[11].mxu0 }
 0x2ff   : > { %v1270_v0 = vpop.f32.mrb[10].mxu1 }
 0x300   : > { %1582 = vst.msk [vmem:[%s237_s21 + $0xc] sm:$0xf] %vm1578_vm5, %v1270_v0  ;;  %v1346_v9 = vpop.f32.mrb[12].mxu0  ;;  %v1808_v10 = vpop.f32.mrb[11].mxu1 }
 0x301   : > { %1583 = vst.msk [vmem:[%s237_s21 + $0x10] sm:$0xf] %vm1578_vm5, %v1346_v9  ;;  %v1813_v11 = vpop.f32.mrb[13].mxu0 }
 0x303   : > { %v1422_v12 = vpop.f32.mrb[12].mxu1 }
 0x304   : > { %1584 = vst.msk [vmem:[%s237_s21 + $0x14] sm:$0xf] %vm1578_vm5, %v1422_v12  ;;  %v1498_v13 = vpop.f32.mrb[14].mxu0  ;;  %v1818_v14 = vpop.f32.mrb[13].mxu1 }
 0x305   : > { %1585 = vst.msk [vmem:[%s237_s21 + $0x18] sm:$0xf] %vm1578_vm5, %v1498_v13  ;;  %v1823_v15 = vpop.f32.mrb[15].mxu0 }
 0x307   : > { %v1574_v16 = vpop.f32.mrb[14].mxu1 }
 0x308   : > { %1586 = vst.msk [vmem:[%s237_s21 + $0x1c] sm:$0xf] %vm1578_vm5, %v1574_v16  ;;  %v1828_v17 = vpop.f32.mrb[15].mxu1 }
 0x309 PF: > { %s14_s15 = sadd.s32 1, %s1877_s15  }
 0x30a   : > { %p11_p4 = scmp.ge.s32.totalorder %s14_s15, 4  }
 0x30c   :  { %13 = sbr.rel (!%p11_p4) target bundleno = 1 (0x1), region = 72 }

// kernel: _lambda_.49
= control target key start
LH: loop header
LB: loop body
LE: loop exit
PB: predicated region body
PF: predicated region fallthrough
CT: control target
= control target key end

     0   :  { %vm20_vm0 = vcmask 261120   ;;  %s174_s0 = inlined_call_operand.vmem [shape: f32[32,32], index: 0, kind: input, shape index: {}]   ;;  %s175_s1 = inlined_call_operand.vmem [shape: f32[1,32], index: 1, kind: input, shape index: {}]   ;;  %s176_s2 = inlined_call_operand.vmem [shape: f32[1,32], index: 2, kind: input, shape index: {}]   ;;  %s177_s3 = inlined_call_operand.vmem [shape: f32[32,32], index: 3, kind: output, shape index: {}]  }
   0x1   :  { %v14_v0 = vld [vmem:[%s174_s0] sm:$0xff]  ;;  %v16_v1 = vld [vmem:[%s174_s0 + $0x10] sm:$0xff]  ;;  %v15_v2 = vld [vmem:[%s174_s0 + $0x8] sm:$0xff] }
   0x2   :  { %v21_v3 = vsel %vm20_vm0, %v14_v0, 0.0  ;;  %v27_v4 = vsel %vm20_vm0, %v16_v1, 0.0  ;;  %v17_v5 = vld [vmem:[%s174_s0 + $0x18] sm:$0xff]  ;;  %v24_v6 = vsel %vm20_vm0, %v15_v2, 0.0  ;;  %v102_v41 = vld [vmem:[%s175_s1] ss:$0 sm:$0xff] }
   0x3   :  { %22 = vadd.xlane.f32.xlu0 %v21_v3  ;;  %28 = vadd.xlane.f32.xlu1 %v27_v4  ;;  %v30_v7 = vsel %vm20_vm0, %v17_v5, 0.0  ;;  %v103_v43 = vld [vmem:[%s176_s2] ss:$0 sm:$0xff] }
   0x7   :  { %25 = vadd.xlane.f32.xlu0 %v24_v6  ;;  %31 = vadd.xlane.f32.xlu1 %v30_v7 }
  0x90   :  { %v23_v8 = vpop.xlane.xlu0 %22  ;;  %v29_v9 = vpop.xlane.xlu1 %28 }
  0x91   :  { %v34_v10 = vmul.f32 0.03125, %v23_v8  ;;  %v36_v11 = vmul.f32 0.03125, %v29_v9 }
  0x93   :  { %v38_v12 = vsub.f32 %v14_v0, %v34_v10  ;;  %v40_v13 = vsub.f32 %v16_v1, %v36_v11 }
  0x94   :  { %v26_v14 = vpop.xlane.xlu0 %25  ;;  %v32_v15 = vpop.xlane.xlu1 %31 }
  0x95   :  { %v35_v16 = vmul.f32 0.03125, %v26_v14  ;;  %v37_v17 = vmul.f32 0.03125, %v32_v15  ;;  %v42_v18 = vmul.f32 %v38_v12, %v38_v12  ;;  %v44_v19 = vmul.f32 %v40_v13, %v40_v13 }
  0x97   :  { %v39_v20 = vsub.f32 %v15_v2, %v35_v16  ;;  %v41_v21 = vsub.f32 %v17_v5, %v37_v17  ;;  %v46_v22 = vsel %vm20_vm0, %v42_v18, 0.0  ;;  %v52_v23 = vsel %vm20_vm0, %v44_v19, 0.0 }
  0x98   :  { %47 = vadd.xlane.f32.xlu0 %v46_v22 }
  0x99   :  { %v43_v24 = vmul.f32 %v39_v20, %v39_v20  ;;  %v45_v25 = vmul.f32 %v41_v21, %v41_v21 }
  0x9b   :  { %v49_v26 = vsel %vm20_vm0, %v43_v24, 0.0  ;;  %v55_v27 = vsel %vm20_vm0, %v45_v25, 0.0 }
  0x9c   :  { %53 = vadd.xlane.f32.xlu0 %v52_v23  ;;  %50 = vadd.xlane.f32.xlu1 %v49_v26 }
  0xa0   :  { %56 = vadd.xlane.f32.xlu1 %v55_v27 }
 0x125   :  { %v48_v28 = vpop.xlane.xlu0 %47 }
 0x126   :  { %v58_v29 = vmul.f32 0.03125, %v48_v28 }
 0x128   :  { %v62_v30 = vadd.f32 1e-05, %v58_v29 }
 0x129   :  { %v51_v31 = vpop.xlane.xlu1 %50  ;;  %v54_v32 = vpop.xlane.xlu0 %53 }
 0x12a   :  { %104 = vrsqrt.f32 %v62_v30  ;;  %v59_v33 = vmul.f32 0.03125, %v51_v31  ;;  %v60_v34 = vmul.f32 0.03125, %v54_v32 }
 0x12c   :  { %v63_v35 = vadd.f32 1e-05, %v59_v33  ;;  %v64_v36 = vadd.f32 1e-05, %v60_v34 }
 0x12d   :  { %v57_v37 = vpop.xlane.xlu1 %56 }
 0x12e   :  { %106 = vrsqrt.f32 %v63_v35  ;;  %v61_v38 = vmul.f32 0.03125, %v57_v37 }
 0x12f   :  { %108 = vrsqrt.f32 %v64_v36 }
 0x130   :  { %v65_v39 = vadd.f32 1e-05, %v61_v38 }
 0x132   :  { %110 = vrsqrt.f32 %v65_v39 }
 0x134   :  { %v105_v40 = vpop.eup %104 }
 0x135   :  { %v70_v42 = vmul.f32 %v105_v40, %v38_v12 }
 0x137   :  { %v80_v44 = vmul.f32 %v102_v41, %v70_v42 }
 0x138   :  { %v107_v45 = vpop.eup %106 }
 0x139   :  { %v109_v46 = vpop.eup %108  ;;  %v90_v47 = vadd.f32 %v103_v43, %v80_v44  ;;  %v71_v48 = vmul.f32 %v107_v45, %v39_v20 }
 0x13a   :  { %v72_v49 = vmul.f32 %v109_v46, %v40_v13 }
 0x13b   :  { %94 = vst.msk [vmem:[%s177_s3] sm:$0xff] %vm20_vm0, %v90_v47  ;;  %v81_v50 = vmul.f32 %v102_v41, %v71_v48 }
 0x13c   :  { %v111_v51 = vpop.eup %110  ;;  %v82_v52 = vmul.f32 %v102_v41, %v72_v49 }
 0x13d   :  { %v91_v53 = vadd.f32 %v103_v43, %v81_v50  ;;  %v73_v54 = vmul.f32 %v111_v51, %v41_v21 }
 0x13e   :  { %v92_v55 = vadd.f32 %v103_v43, %v82_v52 }
 0x13f   :  { %95 = vst.msk [vmem:[%s177_s3 + $0x8] sm:$0xff] %vm20_vm0, %v91_v53  ;;  %v83_v56 = vmul.f32 %v102_v41, %v73_v54 }
 0x140   :  { %96 = vst.msk [vmem:[%s177_s3 + $0x10] sm:$0xff] %vm20_vm0, %v92_v55 }
 0x141   :  { %v93_v57 = vadd.f32 %v103_v43, %v83_v56 }
 0x143   :  { %97 = vst.msk [vmem:[%s177_s3 + $0x18] sm:$0xff] %vm20_vm0, %v93_v57 }

// kernel: _lambda_.50
= control target key start
LH: loop header
LB: loop body
LE: loop exit
PB: predicated region body
PF: predicated region fallthrough
CT: control target
= control target key end

     0   :  { %v221_v1 = vmov 0.0|0.0   ;;  %vm222_vm0 = vmmov 0   ;;  %v223_v23 = vmov 0.0   ;;  %vm132_vm1 = vcmask 523264   ;;  %s309_s0 = inlined_call_operand.vmem [shape: f32[8,128], index: 0, kind: input, shape index: {}]   ;;  %s310_s3 = inlined_call_operand.vmem [shape: f32[128,64], index: 3, kind: input, shape index: {}]   ;;  %s311_s1 = inlined_call_operand.vmem [shape: f32[1,128], index: 1, kind: input, shape index: {}]   ;;  %s312_s2 = inlined_call_operand.vmem [shape: f32[1,128], index: 2, kind: input, shape index: {}]   ;;  %s313_s4 = inlined_call_operand.vmem [shape: f32[8,64], index: 4, kind: output, shape index: {}]  }
   0x1   :  { %v17_v0 = vld [vmem:[%s309_s0] sm:$0xff]  ;;  %192 = vmatprep.subr.bf16.mxu0 %v221_v1  ;;  %v47_v3 = vld [vmem:[%s310_s3 + $0x8] sm:$0xff]  ;;  %v48_v4 = vld [vmem:[%s310_s3 + $0x10] sm:$0xff]  ;;  %189 = vmatprep.mubr.msk.f32.mxu0 %vm222_vm0, %v223_v23 }
   0x2   :  { %20 = vadd.xlane.f32.xlu0 %v17_v0  ;;  %v46_v2 = vld [vmem:[%s310_s3] sm:$0xff]  ;;  %v49_v6 = vld [vmem:[%s310_s3 + $0x18] sm:$0xff]  ;;  %v51_v9 = vld [vmem:[%s310_s3 + $0x28] sm:$0xff] }
   0x3   :  { %v193_v5 = vpack.c.bf16 %v47_v3, %v46_v2  ;;  %v196_v7 = vpack.c.bf16 %v49_v6, %v48_v4  ;;  %v50_v8 = vld [vmem:[%s310_s3 + $0x20] sm:$0xff]  ;;  %v52_v15 = vld [vmem:[%s310_s3 + $0x30] sm:$0xff]  ;;  %v53_v16 = vld [vmem:[%s310_s3 + $0x38] sm:$0xff] }
   0x4   :  { %v199_v10 = vpack.c.bf16 %v51_v9, %v50_v8  ;;  %v202_v17 = vpack.c.bf16 %v53_v16, %v52_v15  ;;  %v54_v18 = vld [vmem:[%s310_s3 + $0x40] sm:$0xff]  ;;  %v55_v19 = vld [vmem:[%s310_s3 + $0x48] sm:$0xff]  ;;  %v56_v21 = vld [vmem:[%s310_s3 + $0x50] sm:$0xff] }
   0x5   :  { %194 = vmatpush3.bf16.msra.mxu0 %v193_v5  ;;  %v205_v20 = vpack.c.bf16 %v55_v19, %v54_v18  ;;  %v57_v22 = vld [vmem:[%s310_s3 + $0x58] sm:$0xff]  ;;  %v58_v25 = vld [vmem:[%s310_s3 + $0x60] sm:$0xff]  ;;  %v59_v26 = vld [vmem:[%s310_s3 + $0x68] sm:$0xff] }
   0x6   :  { %195 = vmatprep.subr.bf16.mxu0 %v221_v1  ;;  %v208_v24 = vpack.c.bf16 %v57_v22, %v56_v21  ;;  %v211_v27 = vpack.c.bf16 %v59_v26, %v58_v25  ;;  %v60_v28 = vld [vmem:[%s310_s3 + $0x70] sm:$0xff]  ;;  %v61_v29 = vld [vmem:[%s310_s3 + $0x78] sm:$0xff]  ;;  %v138_v35 = vld [vmem:[%s311_s1] ss:$0 sm:$0xff] }
   0x7   :  { %v214_v30 = vpack.c.bf16 %v61_v29, %v60_v28  ;;  %v139_v37 = vld [vmem:[%s312_s2] ss:$0 sm:$0xff] }
   0x9   :  { %197 = vmatpush3.bf16.msra.mxu0 %v196_v7 }
   0xa   :  { %198 = vmatprep.subr.bf16.mxu0 %v221_v1 }
   0xd   :  { %200 = vmatpush3.bf16.msra.mxu0 %v199_v10 }
   0xe   :  { %201 = vmatprep.subr.bf16.mxu0 %v221_v1 }
  0x11   :  { %203 = vmatpush3.bf16.msra.mxu0 %v202_v17 }
  0x12   :  { %204 = vmatprep.subr.bf16.mxu0 %v221_v1 }
  0x15   :  { %206 = vmatpush3.bf16.msra.mxu0 %v205_v20 }
  0x16   :  { %207 = vmatprep.subr.bf16.mxu0 %v221_v1 }
  0x19   :  { %209 = vmatpush3.bf16.msra.mxu0 %v208_v24 }
  0x1a   :  { %210 = vmatprep.subr.bf16.mxu0 %v221_v1 }
  0x1d   :  { %212 = vmatpush3.bf16.msra.mxu0 %v211_v27 }
  0x1e   :  { %213 = vmatprep.subr.bf16.mxu0 %v221_v1 }
  0x21   :  { %215 = vmatpush3.bf16.msra.mxu0 %v214_v30 }
  0x8f   :  { %v21_v11 = vpop.xlane.xlu0 %20 }
  0x90   :  { %v23_v12 = vmul.f32 0.0078125, %v21_v11 }
  0x92   :  { %v24_v13 = vsub.f32 %v17_v0, %v23_v12 }
  0x94   :  { %v25_v14 = vmul.f32 %v24_v13, %v24_v13 }
  0x96   :  { %26 = vadd.xlane.f32.xlu0 %v25_v14 }
 0x123   :  { %v27_v31 = vpop.xlane.xlu0 %26 }
 0x124   :  { %v28_v32 = vmul.f32 0.0078125, %v27_v31 }
 0x126   :  { %v29_v33 = vadd.f32 1e-05, %v28_v32 }
 0x128   :  { %219 = vrsqrt.f32 %v29_v33 }
 0x132   :  { %v220_v34 = vpop.eup %219 }
 0x133   :  { %v31_v36 = vmul.f32 %v220_v34, %v24_v13 }
 0x135   :  { %v38_v38 = vmul.f32 %v138_v35, %v31_v36 }
 0x137   :  { %v45_v39 = vadd.f32 %v139_v37, %v38_v38 }
 0x139   :  { %190 = vmatmul.mubr.f32.vlgmr.msra.gmra.mrb[0].mxu0 %v45_v39 }
 0x20c   :  { %v128_v40 = vpop.f32.mrb[0].mxu0 }
 0x20d   :  { %133 = vst.msk [vmem:[%s313_s4] sm:$0xff] %vm132_vm1, %v128_v40  ;;  %v191_v41 = vpop.f32.mrb[1].mxu0 }

// kernel: _lambda_.51
= control target key start
LH: loop header
LB: loop body
LE: loop exit
PB: predicated region body
PF: predicated region fallthrough
CT: control target
= control target key end

     0   :  { %v142_v3 = vmov 0.0   ;;  %vm43_vm0 = vcmask 523264   ;;  %v33_v26 = vlaneseq  ;;  %s225_s1 = inlined_call_operand.vmem [shape: f32[64,192], index: 1, kind: input, shape index: {}]   ;;  %s226_s0 = inlined_call_operand.vmem [shape: f32[8,64], index: 0, kind: input, shape index: {}]   ;;  %s227_s2 = inlined_call_operand.vmem [shape: f32[1,192], index: 2, kind: input, shape index: {}]   ;;  %s228_s3 = inlined_call_operand.vmem [shape: f32[8,192], index: 3, kind: output, shape index: {}]  }
   0x1   :  { %v16_v0 = vld [vmem:[%s225_s1 + $0x8] sm:$0xff]  ;;  %v18_v1 = vld [vmem:[%s225_s1 + $0x18] sm:$0xff]  ;;  %v15_v2 = vld [vmem:[%s225_s1] sm:$0xff]  ;;  %111 = vmatprep.mubr.f32.mxu0 %v142_v3 }
   0x2   :  { %v125_v4 = vpack.c.bf16 %v18_v1, %v16_v0  ;;  %v17_v5 = vld [vmem:[%s225_s1 + $0x10] sm:$0xff]  ;;  %v20_v6 = vld [vmem:[%s225_s1 + $0x28] sm:$0xff]  ;;  %v22_v7 = vld [vmem:[%s225_s1 + $0x38] sm:$0xff]  ;;  %v34_v27 = vshrl.u32 %v33_v26, 7 }
   0x3   :  { %v127_v8 = vpack.c.bf16 %v17_v5, %v15_v2  ;;  %v129_v9 = vpack.c.bf16 %v22_v7, %v20_v6  ;;  %v19_v10 = vld [vmem:[%s225_s1 + $0x20] sm:$0xff]  ;;  %v21_v11 = vld [vmem:[%s225_s1 + $0x30] sm:$0xff]  ;;  %v24_v12 = vld [vmem:[%s225_s1 + $0x48] sm:$0xff] }
   0x4   :  { %126 = vmatprep.subr.bf16.mxu0 %v125_v4  ;;  %v26_v13 = vld [vmem:[%s225_s1 + $0x58] sm:$0xff]  ;;  %v131_v14 = vpack.c.bf16 %v21_v11, %v19_v10  ;;  %v23_v16 = vld [vmem:[%s225_s1 + $0x40] sm:$0xff]  ;;  %v25_v17 = vld [vmem:[%s225_s1 + $0x50] sm:$0xff]  ;;  %v35_v28 = vsub.s32 0, %v34_v27  ;;  %v39_v30 = vsub.s32 1, %v34_v27 }
   0x5   :  { %128 = vmatpush1.bf16.msra.mxu0 %v127_v8  ;;  %v133_v15 = vpack.c.bf16 %v26_v13, %v24_v12  ;;  %v28_v18 = vld [vmem:[%s225_s1 + $0x68] sm:$0xff]  ;;  %v30_v19 = vld [vmem:[%s225_s1 + $0x78] sm:$0xff]  ;;  %v135_v20 = vpack.c.bf16 %v25_v17, %v23_v16  ;;  %v27_v22 = vld [vmem:[%s225_s1 + $0x60] sm:$0xff] }
   0x6   :  { %130 = vmatprep.subr.bf16.mxu0 %v129_v9  ;;  %v137_v21 = vpack.c.bf16 %v30_v19, %v28_v18  ;;  %v29_v23 = vld [vmem:[%s225_s1 + $0x70] sm:$0xff]  ;;  %v14_v25 = vld [vmem:[%s226_s0] sm:$0xff] }
   0x7   :  { %v139_v24 = vpack.c.bf16 %v29_v23, %v27_v22  ;;  %v31_v29 = vld [vmem:[%s227_s2] sm:$0x3] }
   0x8   :  { %v36_v31 = vrot.slane %v31_v29, %v35_v28  ;;  %v40_v32 = vrot.slane %v31_v29, %v39_v30 }
   0x9   :  { %132 = vmatpush1.bf16.msra.mxu0 %v131_v14 }
   0xa   :  { %134 = vmatprep.subr.bf16.mxu0 %v133_v15 }
   0xd   :  { %136 = vmatpush1.bf16.msra.mxu0 %v135_v20 }
   0xe   :  { %138 = vmatprep.subr.bf16.mxu0 %v137_v21 }
  0x11   :  { %140 = vmatpush1.bf16.msra.mxu0 %v139_v24 }
  0x14   :  { %124 = vmatmul.mubr.msk.f32.vlgmr.msra.gmra.mrb[0].mxu0 %vm43_vm0, %v14_v25 }
  0xe7   :  { %v113_v33 = vpop.f32.mrb[0].mxu0 }
  0xe8   :  { %v114_v34 = vadd.f32 %v113_v33, %v36_v31  ;;  %v115_v35 = vpop.f32.mrb[1].mxu0 }
  0xe9   :  { %v116_v36 = vadd.f32 %v115_v35, %v40_v32 }
  0xea   :  { %118 = vst [vmem:[%s228_s3] sm:$0xff] %v114_v34 }
  0xeb   :  { %119 = vst.msk [vmem:[%s228_s3 + $0x8] sm:$0xff] %vm43_vm0, %v116_v36 }

// kernel: _lambda_.52
= control target key start
LH: loop header
LB: loop body
LE: loop exit
PB: predicated region body
PF: predicated region fallthrough
CT: control target
= control target key end

     0   :  { %s1146_s15 = smov 0   ;;  %s1235_s0 = inlined_call_operand.vmem [shape: f32[2,4,4,16], index: 0, kind: input, shape index: {}]   ;;  %s1236_s1 = inlined_call_operand.vmem [shape: f32[2,4,4,16], index: 1, kind: input, shape index: {}]   ;;  %s1237_s2 = inlined_call_operand.vmem [shape: f32[2,4,4,16], index: 2, kind: input, shape index: {}]   ;;  %s1238_s3 = inlined_call_operand.vmem [shape: f32[4,4,4], index: 3, kind: input, shape index: {}]   ;;  %s1239_s4 = inlined_call_operand.vmem [shape: f32[2,4,4,16], index: 4, kind: output, shape index: {}]  }
   0x1 LB: > { %s994_s16 = sadd.s32 4294967295, %s1117_s15   ;;  %p998_p0 = scmp.ge.s32.totalorder %s1117_s15, 1  ;;  %s1117_s15 = sphi %s1146_s15, %s14_s15  }
   0x2   : > { %p182_p1 = scmp.lt.s32.totalorder %s1117_s15, 3 }
   0x4   : > { %p183_p2 = pnand %p998_p0, %p182_p1 }
   0x5   : > { %p218_p3 = scmp.lt.s32.totalorder (!%p183_p2), %s994_s16, 1  ;;  %v1119_v0 = vmov (!%p183_p2), 0.0   ;;  %vm1120_vm0 = vmmov (!%p183_p2), 0   ;;  %vm254_vm1 = vcmask (!%p183_p2), 130048   ;;  %v250_v9 = vld [vmem:[%s1238_s3] sm:$0xf] (!%p183_p2) }
   0x6   : > { %186 = sbr.rel (%p183_p2) target bundleno = 769 (0x301), region = 36  ;;  %1045 = vmatprep.subr.mxu0 (!%p183_p2), %v1119_v0  ;;  %1047 = vmatprep.mubr.msk.f32.mxu0 (!%p183_p2), %vm1120_vm0, %v1119_v0  ;;  %v251_v10 = vld [vmem:[%s1238_s3 + $0x4] sm:$0xf] (!%p183_p2)  ;;  %vm559_vm2 = vcmask (!%p183_p2), 27648   ;;  %v252_v17 = vld [vmem:[%s1238_s3 + $0x8] sm:$0xf] (!%p183_p2) }
   0x7   : > { %1050 = vmatprep.subr.mxu1 (!%p183_p2), %v1119_v0  ;;  %1052 = vmatprep.mubr.msk.f32.mxu1 (!%p183_p2), %vm1120_vm0, %v1119_v0  ;;  %v253_v19 = vld [vmem:[%s1238_s3 + $0xc] sm:$0xf] (!%p183_p2)  ;;  %vm608_vm3 = vcmask (!%p183_p2), 1043456   ;;  %vm604_vm4 = vcmask (!%p183_p2), 31744   ;;  %vm910_vm5 = vcmask (!%p183_p2), 125952  }
   0xd   : > { %s1241_s16 = smov (!%p218_p3, %s994_s16), 1 }
   0xe   : > { %s1160_s17 = sshll.u32 %s1241_s16, 4 }
   0xf   : > { %s227_s20 = scalar_lea.vmem %s1236_s1, %s1160_s17  ;;  %s222_s23 = scalar_lea.vmem %s1235_s0, %s1160_s17 }
  0x10   : > { %v242_v1 = vld [vmem:[%s227_s20] sm:$0xf]  ;;  %v243_v2 = vld [vmem:[%s227_s20 + $0x4] sm:$0xf]  ;;  %v244_v5 = vld [vmem:[%s227_s20 + $0x8] sm:$0xf]  ;;  %s232_s8 = scalar_lea.vmem %s1237_s2, %s1160_s17  ;;  %s237_s11 = scalar_lea.vmem %s1239_s4, %s1160_s17 }
  0x11   : > { %1046 = vmatpush3.xpose.msk.msra.mxu0 %vm254_vm1, %v242_v1  ;;  %v238_v3 = vld [vmem:[%s222_s23] sm:$0xf]  ;;  %1051 = vmatpush3.xpose.msk.msra.mxu1 %vm254_vm1, %v243_v2  ;;  %v239_v4 = vld [vmem:[%s222_s23 + $0x4] sm:$0xf]  ;;  %v245_v6 = vld [vmem:[%s227_s20 + $0xc] sm:$0xf] }
  0x12   : > { %1055 = vmatprep.subr.mxu0 %v1119_v0  ;;  %1060 = vmatprep.subr.mxu1 %v1119_v0  ;;  %v240_v7 = vld [vmem:[%s222_s23 + $0x8] sm:$0xf]  ;;  %v241_v8 = vld [vmem:[%s222_s23 + $0xc] sm:$0xf]  ;;  %v246_v49 = vld [vmem:[%s232_s8] sm:$0xf] }
  0x13   : > { %v247_v50 = vld [vmem:[%s232_s8 + $0x4] sm:$0xf]  ;;  %v248_v57 = vld [vmem:[%s232_s8 + $0x8] sm:$0xf]  ;;  %v249_v61 = vld [vmem:[%s232_s8 + $0xc] sm:$0xf] }
  0x14   : > { %1048 = vmatmul.mubr.msk.f32.vlgmr.msra.gmra.mrb[0].mxu0 %vm254_vm1, %v238_v3  ;;  %1053 = vmatmul.mubr.msk.f32.vlgmr.msra.gmra.mrb[0].mxu1 %vm254_vm1, %v239_v4 }
  0x15   : > { %1056 = vmatpush3.xpose.msk.msra.mxu0 %vm254_vm1, %v244_v5  ;;  %1057 = vmatprep.mubr.msk.f32.mxu0 %vm1120_vm0, %v1119_v0 }
  0x16   : > { %1061 = vmatpush3.xpose.msk.msra.mxu1 %vm254_vm1, %v245_v6  ;;  %1062 = vmatprep.mubr.msk.f32.mxu1 %vm1120_vm0, %v1119_v0 }
  0x17   : > { %1065 = vmatprep.subr.mxu0 %v1119_v0  ;;  %1070 = vmatprep.subr.mxu1 %v1119_v0 }
  0x18   : > { %1058 = vmatmul.mubr.msk.f32.vlgmr.msra.gmra.mrb[2].mxu0 %vm254_vm1, %v240_v7 }
  0x19   : > { %1063 = vmatmul.mubr.msk.f32.vlgmr.msra.gmra.mrb[2].mxu1 %vm254_vm1, %v241_v8  ;;  %1067 = vmatprep.mubr.msk.f32.mxu0 %vm1120_vm0, %v1119_v0 }
  0x1a   : > { %1072 = vmatprep.mubr.msk.f32.mxu1 %vm1120_vm0, %v1119_v0  ;;  %1066 = vmatpush3.msk.msra.mxu0 %vm608_vm3, %v246_v49 }
  0x1b   : > { %1075 = vmatprep.subr.mxu0 %v1119_v0  ;;  %1071 = vmatpush3.msk.msra.mxu1 %vm608_vm3, %v247_v50 }
  0x1c   : > { %1080 = vmatprep.subr.mxu1 %v1119_v0 }
  0xe7   : > { %v327_v11 = vpop.f32.mrb[0].mxu0  ;;  %v403_v12 = vpop.f32.mrb[0].mxu1 }
  0xe8   : > { %v328_v13 = vadd.f32 %v327_v11, %v250_v9  ;;  %v1049_v14 = vpop.f32.mrb[1].mxu0  ;;  %v404_v15 = vadd.f32 %v403_v12, %v251_v10  ;;  %v1054_v16 = vpop.f32.mrb[1].mxu1 }
  0xea   : > { %v560_v18 = vsel %vm559_vm2, %v328_v13, -inf  ;;  %v563_v24 = vsel %vm559_vm2, %v404_v15, -inf }
  0xeb   : > { %561 = vmax.xlane.f32.xlu0 %v560_v18  ;;  %v479_v20 = vpop.f32.mrb[2].mxu0 }
  0xec   : > { %v480_v21 = vadd.f32 %v479_v20, %v252_v17  ;;  %v1059_v22 = vpop.f32.mrb[3].mxu0  ;;  %v555_v23 = vpop.f32.mrb[2].mxu1 }
  0xed   : > { %v556_v25 = vadd.f32 %v555_v23, %v253_v19  ;;  %v1064_v26 = vpop.f32.mrb[3].mxu1 }
  0xee   : > { %v566_v27 = vsel %vm559_vm2, %v480_v21, -inf }
  0xef   : > { %564 = vmax.xlane.f32.xlu0 %v563_v24  ;;  %567 = vmax.xlane.f32.xlu1 %v566_v27  ;;  %v569_v28 = vsel %vm559_vm2, %v556_v25, -inf }
  0xf3   : > { %570 = vmax.xlane.f32.xlu1 %v569_v28 }
 0x178   : > { %v562_v29 = vpop.xlane.xlu0 %561 }
 0x179   : > { %v572_v30 = vsub.f32 %v328_v13, %v562_v29 }
 0x17b   : > { %v576_v31 = vmul.f32 1.442695, %v572_v30 }
 0x17c   : > { %v565_v32 = vpop.xlane.xlu0 %564  ;;  %v568_v33 = vpop.xlane.xlu1 %567 }
 0x17d   : > { %1095 = vpow2.f32 %v576_v31  ;;  %v573_v34 = vsub.f32 %v404_v15, %v565_v32  ;;  %v574_v35 = vsub.f32 %v480_v21, %v568_v33 }
 0x17f   : > { %v578_v36 = vmul.f32 1.442695, %v573_v34  ;;  %v580_v37 = vmul.f32 1.442695, %v574_v35 }
 0x180   : > { %v571_v38 = vpop.xlane.xlu1 %570 }
 0x181   : > { %1097 = vpow2.f32 %v578_v36  ;;  %v575_v39 = vsub.f32 %v556_v25, %v571_v38 }
 0x182   : > { %1099 = vpow2.f32 %v580_v37 }
 0x183   : > { %v582_v40 = vmul.f32 1.442695, %v575_v39 }
 0x185   : > { %1101 = vpow2.f32 %v582_v40 }
 0x187   : > { %v1096_v41 = vpop.eup %1095 }
 0x188   : > { %v584_v42 = vsel %vm559_vm2, %v1096_v41, 0.0 }
 0x189   : > { %585 = vadd.xlane.f32.xlu0 %v584_v42 }
 0x18b   : > { %v1098_v43 = vpop.eup %1097 }
 0x18c   : > { %v1100_v44 = vpop.eup %1099  ;;  %v587_v45 = vsel %vm559_vm2, %v1098_v43, 0.0 }
 0x18d   : > { %588 = vadd.xlane.f32.xlu1 %v587_v45  ;;  %v590_v46 = vsel %vm559_vm2, %v1100_v44, 0.0 }
 0x18e   : > { %591 = vadd.xlane.f32.xlu0 %v590_v46 }
 0x18f   : > { %v1102_v47 = vpop.eup %1101 }
 0x190   : > { %v593_v48 = vsel %vm559_vm2, %v1102_v47, 0.0 }
 0x191   : > { %594 = vadd.xlane.f32.xlu1 %v593_v48 }
 0x216   : > { %v586_v51 = vpop.xlane.xlu0 %585 }
 0x217   : > { %1103 = vrcp.f32 %v586_v51 }
 0x21a   : > { %v589_v52 = vpop.xlane.xlu1 %588 }
 0x21b   : > { %v592_v53 = vpop.xlane.xlu0 %591  ;;  %1105 = vrcp.f32 %v589_v52 }
 0x21c   : > { %1107 = vrcp.f32 %v592_v53 }
 0x21e   : > { %v595_v54 = vpop.xlane.xlu1 %594 }
 0x21f   : > { %1109 = vrcp.f32 %v595_v54 }
 0x221   : > { %v1104_v55 = vpop.eup %1103 }
 0x222   : > { %v600_v56 = vmul.f32 %v1104_v55, %v1096_v41 }
 0x224   : > { %1068 = vmatmul.mubr.msk.f32.vlgmr.msra.gmra.mrb[4].mxu0 %vm604_vm4, %v600_v56 }
 0x225   : > { %v1106_v58 = vpop.eup %1105  ;;  %1076 = vmatpush3.msk.msra.mxu0 %vm608_vm3, %v248_v57  ;;  %1077 = vmatprep.mubr.msk.f32.mxu0 %vm1120_vm0, %v1119_v0 }
 0x226   : > { %v1108_v59 = vpop.eup %1107  ;;  %v601_v60 = vmul.f32 %v1106_v58, %v1098_v43 }
 0x227   : > { %v602_v62 = vmul.f32 %v1108_v59, %v1100_v44 }
 0x228   : > { %1073 = vmatmul.mubr.msk.f32.vlgmr.msra.gmra.mrb[4].mxu1 %vm604_vm4, %v601_v60 }
 0x229   : > { %v1110_v63 = vpop.eup %1109  ;;  %1078 = vmatmul.mubr.msk.f32.vlgmr.msra.gmra.mrb[6].mxu0 %vm604_vm4, %v602_v62  ;;  %1081 = vmatpush3.msk.msra.mxu1 %vm608_vm3, %v249_v61 }
 0x22a   : > { %v603_v1 = vmul.f32 %v1110_v63, %v1102_v47  ;;  %1082 = vmatprep.mubr.msk.f32.mxu1 %vm1120_vm0, %v1119_v0 }
 0x22c   : > { %1083 = vmatmul.mubr.msk.f32.vlgmr.msra.gmra.mrb[6].mxu1 %vm604_vm4, %v603_v1 }
 0x2f7   : > { %v678_v2 = vpop.f32.mrb[4].mxu0 }
 0x2f8   : > { %911 = vst.msk [vmem:[%s237_s11] sm:$0xf] %vm910_vm5, %v678_v2  ;;  %v1069_v3 = vpop.f32.mrb[5].mxu0 }
 0x2fb   : > { %v754_v4 = vpop.f32.mrb[4].mxu1 }
 0x2fc   : > { %912 = vst.msk [vmem:[%s237_s11 + $0x4] sm:$0xf] %vm910_vm5, %v754_v4  ;;  %v830_v5 = vpop.f32.mrb[6].mxu0  ;;  %v1074_v6 = vpop.f32.mrb[5].mxu1 }
 0x2fd   : > { %913 = vst.msk [vmem:[%s237_s11 + $0x8] sm:$0xf] %vm910_vm5, %v830_v5  ;;  %v1079_v7 = vpop.f32.mrb[7].mxu0 }
 0x2ff   : > { %v906_v8 = vpop.f32.mrb[6].mxu1 }
 0x300   : > { %914 = vst.msk [vmem:[%s237_s11 + $0xc] sm:$0xf] %vm910_vm5, %v906_v8  ;;  %v1084_v9 = vpop.f32.mrb[7].mxu1 }
 0x301 PF: > { %s14_s15 = sadd.s32 1, %s1117_s15  }
 0x302   : > { %p11_p4 = scmp.ge.s32.totalorder %s14_s15, 4  }
 0x304   :  { %13 = sbr.rel (!%p11_p4) target bundleno = 1 (0x1), region = 72 }

// kernel: _lambda_.59
= control target key start
LH: loop header
LB: loop body
LE: loop exit
PB: predicated region body
PF: predicated region fallthrough
CT: control target
= control target key end

     0   :  { %vm18_vm0 = vcmask 523264   ;;  %s136_s0 = inlined_call_operand.vmem [shape: f32[8,64], index: 0, kind: input, shape index: {}]   ;;  %s137_s1 = inlined_call_operand.vmem [shape: f32[1,64], index: 1, kind: input, shape index: {}]   ;;  %s138_s2 = inlined_call_operand.vmem [shape: f32[1,64], index: 2, kind: input, shape index: {}]   ;;  %s139_s3 = inlined_call_operand.hbm [shape: f32[8,64], index: 3, kind: output, shape index: {}]  }
   0x1   :  { %v15_v0 = vld [vmem:[%s136_s0] sm:$0xff] }
   0x2   :  { %8 = vsyncpa [#allocation3], 0  ;;  %v19_v1 = vsel %vm18_vm0, %v15_v0, 0.0  ;;  %v62_v11 = vld [vmem:[%s137_s1] ss:$0 sm:$0xff]  ;;  %s91_s17 = smov [#allocation2]  }
   0x3   :  { %20 = vadd.xlane.f32.xlu0 %v19_v1  ;;  %v63_v13 = vld [vmem:[%s138_s2] ss:$0 sm:$0xff]  ;;  %s54_s18 = sshll.u32 %s91_s17, 4  ;;  %s55_s18 = int_to_ptr.vmem [resolvable:$true] %s54_s18 }
   0x4   :  { %s67_s19 = scalar_lea.vmem %s55_s18, 128  ;;  %p72_p1 = scmp.lt.s32.totalorder %s55_s18, %s55_s18 }
   0x5   :  { %p68_p0 = scmp.ne.s32.totalorder %s55_s18, %s67_s19  ;;  %p73_p2 = scmp.lt.s32.totalorder %s67_s19, %s67_s19 }
   0x7   :  { %p74_p3 = por %p73_p2, %p72_p1 }
   0x9   :  { %p75_p4 = pnand %p74_p3, %p68_p0 }
  0x90   :  { %v21_v2 = vpop.xlane.xlu0 %20 }
  0x91   :  { %v23_v3 = vmul.f32 0.015625, %v21_v2 }
  0x93   :  { %v24_v4 = vsub.f32 %v15_v0, %v23_v3 }
  0x95   :  { %v25_v5 = vmul.f32 %v24_v4, %v24_v4 }
  0x97   :  { %v26_v6 = vsel %vm18_vm0, %v25_v5, 0.0 }
  0x98   :  { %27 = vadd.xlane.f32.xlu0 %v26_v6 }
 0x125   :  { %v28_v7 = vpop.xlane.xlu0 %27 }
 0x126   :  { %v29_v8 = vmul.f32 0.015625, %v28_v7 }
 0x128   :  { %v30_v9 = vadd.f32 1e-05, %v29_v8 }
 0x12a   :  { %65 = vrsqrt.f32 %v30_v9 }
 0x134   :  { %v66_v10 = vpop.eup %65 }
 0x135   :  { %v32_v12 = vmul.f32 %v66_v10, %v24_v4 }
 0x137   :  { %v39_v14 = vmul.f32 %v62_v11, %v32_v12 }
 0x139   :  { %v46_v15 = vadd.f32 %v63_v13, %v39_v14 }
 0x13b   :  { %47 = vst.msk [vmem:[#allocation2] sm:$0xff] %vm18_vm0, %v46_v15 }
 0x13c   :  { %78 = shalt.err (!%p75_p4)
}
 0x13d   :  { %s79_s21 = scalar_lea.hbm %s139_s3, 128 }
 0x13e   :  { %p80_p5 = scmp.ne.s32.totalorder %s139_s3, %s79_s21  ;;  %p83_p6 = scmp.lt.u32.totalorder %s79_s21, %s139_s3 }
 0x140   :  { %p85_p7 = pnand %p83_p6, %p80_p5 }
 0x142   :  { %88 = shalt.err (!%p85_p7)
}
 0x143   :  { %57 = dma.vmem_to_hbm [thread:$0]  %s55_s18, 128, %s139_s3, [#allocation3]  }
 0x144   :  { %89 = dma.done.wait [#allocation3], 128  }
 0x145   :  { %90 = vsyncadd [#allocation3], 4294967168 }
 0x146   :  { %61 = vsyncpa [#allocation3], 1 }

// kernel: _lambda_.53
= control target key start
LH: loop header
LB: loop body
LE: loop exit
PB: predicated region body
PF: predicated region fallthrough
CT: control target
= control target key end

     0   :  { %v199_v0 = vmov 0.0|0.0   ;;  %vm200_vm0 = vmmov 0   ;;  %v201_v4 = vmov 0.0   ;;  %vm39_vm1 = vcmask 523264   ;;  %s283_s2 = inlined_call_operand.vmem [shape: f32[64,64], index: 2, kind: input, shape index: {}]   ;;  %s284_s0 = inlined_call_operand.vmem [shape: f32[8,64], index: 0, kind: input, shape index: {}]   ;;  %s285_s3 = inlined_call_operand.vmem [shape: f32[1,64], index: 3, kind: input, shape index: {}, may-alias: {3,5}]   ;;  %s286_s4 = inlined_call_operand.vmem [shape: f32[1,64], index: 4, kind: input, shape index: {}]   ;;  %s287_s5 = inlined_call_operand.vmem [shape: f32[1,64], index: 5, kind: input, shape index: {}, may-alias: {3,5}]   ;;  %s288_s1 = inlined_call_operand.vmem [shape: f32[8,64], index: 1, kind: input, shape index: {}]   ;;  %s289_s6 = inlined_call_operand.vmem [shape: f32[8,64], index: 6, kind: output, shape index: {}]  }
   0x1   :  { %182 = vmatprep.subr.bf16.mxu0 %v199_v0  ;;  %v24_v1 = vld [vmem:[%s283_s2] sm:$0xff]  ;;  %v25_v2 = vld [vmem:[%s283_s2 + $0x8] sm:$0xff]  ;;  %v26_v3 = vld [vmem:[%s283_s2 + $0x10] sm:$0xff]  ;;  %179 = vmatprep.mubr.msk.f32.mxu0 %vm200_vm0, %v201_v4 }
   0x2   :  { %v183_v5 = vpack.c.bf16 %v25_v2, %v24_v1  ;;  %v27_v6 = vld [vmem:[%s283_s2 + $0x18] sm:$0xff]  ;;  %v28_v8 = vld [vmem:[%s283_s2 + $0x20] sm:$0xff]  ;;  %v29_v9 = vld [vmem:[%s283_s2 + $0x28] sm:$0xff] }
   0x3   :  { %v186_v7 = vpack.c.bf16 %v27_v6, %v26_v3  ;;  %v189_v10 = vpack.c.bf16 %v29_v9, %v28_v8  ;;  %v30_v11 = vld [vmem:[%s283_s2 + $0x30] sm:$0xff]  ;;  %v31_v12 = vld [vmem:[%s283_s2 + $0x38] sm:$0xff]  ;;  %v23_v14 = vld [vmem:[%s284_s0] sm:$0xff] }
   0x4   :  { %184 = vmatpush3.bf16.msra.mxu0 %v183_v5  ;;  %v192_v13 = vpack.c.bf16 %v31_v12, %v30_v11  ;;  %v150_v15 = vld [vmem:[%s285_s3] ss:$0 sm:$0xff] }
   0x5   :  { %185 = vmatprep.subr.bf16.mxu0 %v199_v0  ;;  %v152_v29 = vld [vmem:[%s286_s4] ss:$0 sm:$0xff] }
   0x6   :  { %v153_v31 = vld [vmem:[%s287_s5] ss:$0 sm:$0xff] }
   0x7   :  { %v143_v33 = vld [vmem:[%s288_s1] sm:$0xff] }
   0x8   :  { %187 = vmatpush3.bf16.msra.mxu0 %v186_v7 }
   0x9   :  { %188 = vmatprep.subr.bf16.mxu0 %v199_v0 }
   0xc   :  { %190 = vmatpush3.bf16.msra.mxu0 %v189_v10 }
   0xd   :  { %191 = vmatprep.subr.bf16.mxu0 %v199_v0 }
  0x10   :  { %193 = vmatpush3.bf16.msra.mxu0 %v192_v13 }
  0x13   :  { %180 = vmatmul.mubr.msk.f32.vlgmr.msra.gmra.mrb[0].mxu0 %vm39_vm1, %v23_v14 }
  0xe6   :  { %v109_v16 = vpop.f32.mrb[0].mxu0 }
  0xe7   :  { %v110_v17 = vadd.f32 %v150_v15, %v109_v16  ;;  %v181_v18 = vpop.f32.mrb[1].mxu0 }
  0xe9   :  { %v115_v19 = vsel %vm39_vm1, %v110_v17, 0.0 }
  0xea   :  { %116 = vadd.xlane.f32.xlu0 %v115_v19 }
 0x177   :  { %v117_v20 = vpop.xlane.xlu0 %116 }
 0x178   :  { %v119_v21 = vmul.f32 0.015625, %v117_v20 }
 0x17a   :  { %v120_v22 = vsub.f32 %v110_v17, %v119_v21 }
 0x17c   :  { %v121_v23 = vmul.f32 %v120_v22, %v120_v22 }
 0x17e   :  { %v122_v24 = vsel %vm39_vm1, %v121_v23, 0.0 }
 0x17f   :  { %123 = vadd.xlane.f32.xlu0 %v122_v24 }
 0x20c   :  { %v124_v25 = vpop.xlane.xlu0 %123 }
 0x20d   :  { %v125_v26 = vmul.f32 0.015625, %v124_v25 }
 0x20f   :  { %v126_v27 = vadd.f32 1e-05, %v125_v26 }
 0x211   :  { %197 = vrsqrt.f32 %v126_v27 }
 0x21b   :  { %v198_v28 = vpop.eup %197 }
 0x21c   :  { %v128_v30 = vmul.f32 %v198_v28, %v120_v22 }
 0x21e   :  { %v135_v32 = vmul.f32 %v152_v29, %v128_v30 }
 0x220   :  { %v142_v34 = vadd.f32 %v153_v31, %v135_v32 }
 0x222   :  { %v144_v35 = vadd.f32 %v143_v33, %v142_v34 }
 0x224   :  { %145 = vst.msk [vmem:[%s289_s6] sm:$0xff] %vm39_vm1, %v144_v35 }

// kernel: _lambda_.54
= control target key start
LH: loop header
LB: loop body
LE: loop exit
PB: predicated region body
PF: predicated region fallthrough
CT: control target
= control target key end

     0   :  { %v387_v3 = vmov 0.0   ;;  %vm55_vm0 = vcmask 523264   ;;  %s598_s1 = inlined_call_operand.vmem [shape: f32[64,256], index: 1, kind: input, shape index: {}]   ;;  %s599_s0 = inlined_call_operand.vmem [shape: f32[8,64], index: 0, kind: input, shape index: {}]   ;;  %s600_s3 = inlined_call_operand.vmem [shape: f32[256,64], index: 3, kind: input, shape index: {}]   ;;  %s601_s2 = inlined_call_operand.vmem [shape: f32[1,256], index: 2, kind: input, shape index: {}]   ;;  %s602_s4 = inlined_call_operand.vmem [shape: f32[1,64], index: 4, kind: input, shape index: {}, may-alias: {4,6}]   ;;  %s603_s5 = inlined_call_operand.vmem [shape: f32[1,64], index: 5, kind: input, shape index: {}]   ;;  %s604_s6 = inlined_call_operand.vmem [shape: f32[1,64], index: 6, kind: input, shape index: {}, may-alias: {4,6}]   ;;  %s605_s7 = inlined_call_operand.vmem [shape: f32[8,64], index: 7, kind: output, shape index: {}]  }
   0x1   :  { %v28_v0 = vld [vmem:[%s598_s1 + $0x8] sm:$0xff]  ;;  %v30_v1 = vld [vmem:[%s598_s1 + $0x18] sm:$0xff]  ;;  %v27_v2 = vld [vmem:[%s598_s1] sm:$0xff]  ;;  %123 = vmatprep.mubr.f32.mxu0 %v387_v3 }
   0x2   :  { %v332_v4 = vpack.c.bf16 %v30_v1, %v28_v0  ;;  %v29_v5 = vld [vmem:[%s598_s1 + $0x10] sm:$0xff]  ;;  %v32_v6 = vld [vmem:[%s598_s1 + $0x28] sm:$0xff]  ;;  %v34_v7 = vld [vmem:[%s598_s1 + $0x38] sm:$0xff] }
   0x3   :  { %v334_v8 = vpack.c.bf16 %v29_v5, %v27_v2  ;;  %v336_v9 = vpack.c.bf16 %v34_v7, %v32_v6  ;;  %v31_v10 = vld [vmem:[%s598_s1 + $0x20] sm:$0xff]  ;;  %v33_v11 = vld [vmem:[%s598_s1 + $0x30] sm:$0xff]  ;;  %v36_v12 = vld [vmem:[%s598_s1 + $0x48] sm:$0xff] }
   0x4   :  { %333 = vmatprep.subr.bf16.mxu0 %v332_v4  ;;  %v38_v13 = vld [vmem:[%s598_s1 + $0x58] sm:$0xff]  ;;  %v338_v14 = vpack.c.bf16 %v33_v11, %v31_v10  ;;  %v35_v16 = vld [vmem:[%s598_s1 + $0x40] sm:$0xff]  ;;  %v37_v17 = vld [vmem:[%s598_s1 + $0x50] sm:$0xff]  ;;  %v45_v10 = vlaneseq }
   0x5   :  { %335 = vmatpush1.bf16.msra.mxu0 %v334_v8  ;;  %v340_v15 = vpack.c.bf16 %v38_v13, %v36_v12  ;;  %v40_v18 = vld [vmem:[%s598_s1 + $0x68] sm:$0xff]  ;;  %v42_v19 = vld [vmem:[%s598_s1 + $0x78] sm:$0xff]  ;;  %v342_v20 = vpack.c.bf16 %v37_v17, %v35_v16  ;;  %v39_v22 = vld [vmem:[%s598_s1 + $0x60] sm:$0xff] }
   0x6   :  { %337 = vmatprep.subr.bf16.mxu0 %v336_v9  ;;  %v344_v21 = vpack.c.bf16 %v42_v19, %v40_v18  ;;  %v41_v23 = vld [vmem:[%s598_s1 + $0x70] sm:$0xff]  ;;  %v479_v25 = vld [vmem:[%s599_s0] sm:$0xff]  ;;  %v165_v27 = vld [vmem:[%s600_s3 + $0x88] sm:$0xff]  ;;  %v46_v11 = vshrl.u32 %v45_v10, 7 }
   0x7   :  { %v346_v24 = vpack.c.bf16 %v41_v23, %v39_v22  ;;  %v164_v26 = vld [vmem:[%s600_s3 + $0x80] sm:$0xff]  ;;  %v149_v30 = vld [vmem:[%s600_s3 + $0x8] sm:$0xff]  ;;  %v166_v32 = vld [vmem:[%s600_s3 + $0x90] sm:$0xff] }
   0x8   :  { %v348_v28 = vpack.c.bf16 %v165_v27, %v164_v26  ;;  %v148_v29 = vld [vmem:[%s600_s3] sm:$0xff]  ;;  %v167_v33 = vld [vmem:[%s600_s3 + $0x98] sm:$0xff]  ;;  %v150_v35 = vld [vmem:[%s600_s3 + $0x10] sm:$0xff]  ;;  %v47_v12 = vsub.s32 0, %v46_v11 }
   0x9   :  { %339 = vmatpush1.bf16.msra.mxu0 %v338_v14  ;;  %v350_v31 = vpack.c.bf16 %v149_v30, %v148_v29  ;;  %v352_v34 = vpack.c.bf16 %v167_v33, %v166_v32  ;;  %v151_v36 = vld [vmem:[%s600_s3 + $0x18] sm:$0xff]  ;;  %v168_v38 = vld [vmem:[%s600_s3 + $0xa0] sm:$0xff]  ;;  %v169_v39 = vld [vmem:[%s600_s3 + $0xa8] sm:$0xff]  ;;  %v51_v14 = vsub.s32 1, %v46_v11 }
   0xa   :  { %341 = vmatprep.subr.bf16.mxu0 %v340_v15  ;;  %349 = vmatprep.subr.bf16.mxu1 %v348_v28  ;;  %v354_v37 = vpack.c.bf16 %v151_v36, %v150_v35  ;;  %v356_v40 = vpack.c.bf16 %v169_v39, %v168_v38  ;;  %v152_v41 = vld [vmem:[%s600_s3 + $0x20] sm:$0xff]  ;;  %v153_v42 = vld [vmem:[%s600_s3 + $0x28] sm:$0xff]  ;;  %v170_v44 = vld [vmem:[%s600_s3 + $0xb0] sm:$0xff] }
   0xb   :  { %351 = vmatpush3.bf16.msra.mxu1 %v350_v31  ;;  %v358_v43 = vpack.c.bf16 %v153_v42, %v152_v41  ;;  %v171_v45 = vld [vmem:[%s600_s3 + $0xb8] sm:$0xff]  ;;  %v154_v47 = vld [vmem:[%s600_s3 + $0x30] sm:$0xff]  ;;  %v172_v50 = vld [vmem:[%s600_s3 + $0xc0] sm:$0xff] }
   0xc   :  { %353 = vmatprep.subr.bf16.mxu1 %v352_v34  ;;  %v360_v46 = vpack.c.bf16 %v171_v45, %v170_v44  ;;  %v155_v48 = vld [vmem:[%s600_s3 + $0x38] sm:$0xff]  ;;  %v173_v51 = vld [vmem:[%s600_s3 + $0xc8] sm:$0xff]  ;;  %v156_v52 = vld [vmem:[%s600_s3 + $0x40] sm:$0xff] }
   0xd   :  { %343 = vmatpush1.bf16.msra.mxu0 %v342_v20  ;;  %v362_v49 = vpack.c.bf16 %v155_v48, %v154_v47  ;;  %v364_v53 = vpack.c.bf16 %v173_v51, %v172_v50  ;;  %v157_v54 = vld [vmem:[%s600_s3 + $0x48] sm:$0xff]  ;;  %v174_v55 = vld [vmem:[%s600_s3 + $0xd0] sm:$0xff]  ;;  %v175_v56 = vld [vmem:[%s600_s3 + $0xd8] sm:$0xff] }
   0xe   :  { %345 = vmatprep.subr.bf16.mxu0 %v344_v21  ;;  %v366_v57 = vpack.c.bf16 %v157_v54, %v156_v52  ;;  %v368_v58 = vpack.c.bf16 %v175_v56, %v174_v55  ;;  %v158_v59 = vld [vmem:[%s600_s3 + $0x50] sm:$0xff]  ;;  %v159_v60 = vld [vmem:[%s600_s3 + $0x58] sm:$0xff]  ;;  %v176_v61 = vld [vmem:[%s600_s3 + $0xe0] sm:$0xff] }
   0xf   :  { %355 = vmatpush3.bf16.msra.mxu1 %v354_v37  ;;  %v177_v62 = vld [vmem:[%s600_s3 + $0xe8] sm:$0xff]  ;;  %v370_v63 = vpack.c.bf16 %v159_v60, %v158_v59  ;;  %v160_v1 = vld [vmem:[%s600_s3 + $0x60] sm:$0xff]  ;;  %v178_v3 = vld [vmem:[%s600_s3 + $0xf0] sm:$0xff] }
  0x10   :  { %357 = vmatprep.subr.bf16.mxu1 %v356_v40  ;;  %v372_v0 = vpack.c.bf16 %v177_v62, %v176_v61  ;;  %v161_v2 = vld [vmem:[%s600_s3 + $0x68] sm:$0xff]  ;;  %v179_v4 = vld [vmem:[%s600_s3 + $0xf8] sm:$0xff]  ;;  %v162_v7 = vld [vmem:[%s600_s3 + $0x70] sm:$0xff] }
  0x11   :  { %347 = vmatpush1.bf16.msra.mxu0 %v346_v24  ;;  %v374_v5 = vpack.c.bf16 %v161_v2, %v160_v1  ;;  %v376_v6 = vpack.c.bf16 %v179_v4, %v178_v3  ;;  %v163_v8 = vld [vmem:[%s600_s3 + $0x78] sm:$0xff]  ;;  %v43_v13 = vld [vmem:[%s601_s2] sm:$0x3] }
  0x12   :  { %v378_v9 = vpack.c.bf16 %v163_v8, %v162_v7  ;;  %v48_v15 = vrot.slane %v43_v13, %v47_v12  ;;  %v52_v16 = vrot.slane %v43_v13, %v51_v14  ;;  %v294_v42 = vld [vmem:[%s602_s4] ss:$0 sm:$0xff] }
  0x13   :  { %359 = vmatpush3.bf16.msra.mxu1 %v358_v43  ;;  %v295_v55 = vld [vmem:[%s603_s5] ss:$0 sm:$0xff] }
  0x14   :  { %293 = vmatmul.mubr.msk.f32.vlgmr.msra.gmra.mrb[0].mxu0 %vm55_vm0, %v479_v25  ;;  %361 = vmatprep.subr.bf16.mxu1 %v360_v46 }
  0x17   :  { %363 = vmatpush3.bf16.msra.mxu1 %v362_v49 }
  0x18   :  { %365 = vmatprep.subr.bf16.mxu1 %v364_v53 }
  0x1b   :  { %367 = vmatpush3.bf16.msra.mxu1 %v366_v57  ;;  %v296_v57 = vld [vmem:[%s604_s6] ss:$0 sm:$0xff] }
  0x1c   :  { %369 = vmatprep.subr.bf16.mxu1 %v368_v58 }
  0x1f   :  { %371 = vmatpush3.bf16.msra.mxu1 %v370_v63 }
  0x20   :  { %373 = vmatprep.subr.bf16.mxu1 %v372_v0 }
  0x23   :  { %375 = vmatpush3.bf16.msra.mxu1 %v374_v5 }
  0x24   :  { %377 = vmatprep.subr.bf16.mxu1 %v376_v6 }
  0x27   :  { %379 = vmatpush3.bf16.msra.mxu1 %v378_v9 }
  0xe7   :  { %v125_v17 = vpop.f32.mrb[0].mxu0 }
  0xe8   :  { %v126_v18 = vadd.f32 %v125_v17, %v48_v15  ;;  %v127_v19 = vpop.f32.mrb[1].mxu0 }
  0xe9   :  { %v128_v20 = vadd.f32 %v127_v19, %v52_v16 }
  0xea   :  { %v130_v21 = vmul.f32 %v126_v18, %v126_v18 }
  0xeb   :  { %v131_v22 = vmul.f32 %v128_v20, %v128_v20 }
  0xec   :  { %v132_v23 = vmul.f32 %v130_v21, %v126_v18 }
  0xed   :  { %v133_v24 = vmul.f32 %v131_v22, %v128_v20 }
  0xee   :  { %v134_v26 = vmul.f32 0.044715, %v132_v23 }
  0xef   :  { %v135_v27 = vmul.f32 0.044715, %v133_v24 }
  0xf0   :  { %v136_v28 = vadd.f32 %v134_v26, %v126_v18 }
  0xf1   :  { %v137_v29 = vadd.f32 %v135_v27, %v128_v20 }
  0xf2   :  { %v138_v30 = vmul.f32 0.7978846, %v136_v28 }
  0xf3   :  { %v139_v31 = vmul.f32 0.7978846, %v137_v29 }
  0xf4   :  { %381 = vtanh.f32 %v138_v30 }
  0xf5   :  { %383 = vtanh.f32 %v139_v31 }
  0xfe   :  { %v382_v32 = vpop.eup %381 }
  0xff   :  { %v384_v33 = vpop.eup %383  ;;  %v142_v34 = vadd.f32 1.0, %v382_v32 }
 0x100   :  { %v143_v35 = vadd.f32 1.0, %v384_v33 }
 0x101   :  { %v144_v36 = vmul.f32 0.5, %v142_v34 }
 0x102   :  { %v145_v37 = vmul.f32 0.5, %v143_v35 }
 0x103   :  { %v146_v39 = vmul.f32 %v144_v36, %v126_v18 }
 0x104   :  { %v147_v38 = vmul.f32 %v145_v37, %v128_v20 }
 0x106   :  { %251 = vmatprep.mubr.f32.mxu1 %v147_v38 }
 0x107   :  { %252 = vmatmul.mubr.f32.vlgmr.msra.gmra.mrb[0].mxu1 %v146_v39 }
 0x1da   :  { %v329_v40 = vpop.f32.mrb[0].mxu1 }
 0x1db   :  { %v330_v41 = vpop.f32.mrb[1].mxu1 }
 0x1dc   :  { %v331_v43 = vadd.f32 %v330_v41, %v329_v40 }
 0x1de   :  { %v254_v44 = vadd.f32 %v331_v43, %v294_v42 }
 0x1e0   :  { %v259_v45 = vsel %vm55_vm0, %v254_v44, 0.0 }
 0x1e1   :  { %260 = vadd.xlane.f32.xlu0 %v259_v45 }
 0x26e   :  { %v261_v46 = vpop.xlane.xlu0 %260 }
 0x26f   :  { %v263_v47 = vmul.f32 0.015625, %v261_v46 }
 0x271   :  { %v264_v48 = vsub.f32 %v254_v44, %v263_v47 }
 0x273   :  { %v265_v49 = vmul.f32 %v264_v48, %v264_v48 }
 0x275   :  { %v266_v50 = vsel %vm55_vm0, %v265_v49, 0.0 }
 0x276   :  { %267 = vadd.xlane.f32.xlu0 %v266_v50 }
 0x303   :  { %v268_v51 = vpop.xlane.xlu0 %267 }
 0x304   :  { %v269_v52 = vmul.f32 0.015625, %v268_v51 }
 0x306   :  { %v270_v53 = vadd.f32 1e-05, %v269_v52 }
 0x308   :  { %385 = vrsqrt.f32 %v270_v53 }
 0x312   :  { %v386_v54 = vpop.eup %385 }
 0x313   :  { %v272_v56 = vmul.f32 %v386_v54, %v264_v48 }
 0x315   :  { %v279_v58 = vmul.f32 %v295_v55, %v272_v56 }
 0x317   :  { %v286_v59 = vadd.f32 %v296_v57, %v279_v58 }
 0x319   :  { %v287_v60 = vadd.f32 %v286_v59, %v479_v25 }
 0x31b   :  { %288 = vst.msk [vmem:[%s605_s7] sm:$0xff] %vm55_vm0, %v287_v60 }

</bundles_post_ra>
